<compile_context>
chip_gen: v7x
topology: tpu7x:2x2x1
jax: 0.10.0
libtpu: 0.0.40
codegen_flags: <defaults>
</compile_context>

<pallas_src>
import math
from functools import partial

import jax
import jax.numpy as jnp
from jax import lax
from jax.experimental import pallas as pl
from jax.experimental.pallas import tpu as pltpu


# ------------------------------- parameters --------------------------------

def make_pe(max_len, d_model):
    position = jnp.arange(max_len, dtype=jnp.float32)[:, None]
    div_term = jnp.exp(jnp.arange(0, d_model, 2, dtype=jnp.float32)
                       * (-math.log(10000.0) / d_model))
    pe = jnp.zeros((max_len, d_model), jnp.float32)
    pe = pe.at[:, 0::2].set(jnp.sin(position * div_term))
    pe = pe.at[:, 1::2].set(jnp.cos(position * div_term))
    return pe  # (max_len, d_model); broadcast over batch happens per grid step


def init_params(key, input_dim, d_model, hidden_dim, n_enc, n_dec, max_len):
    keys = iter(jax.random.split(key, 4096))

    def dense(din, dout):
        w = jax.random.normal(next(keys), (din, dout), jnp.float32) / math.sqrt(din)
        b = jax.random.normal(next(keys), (1, dout), jnp.float32) * 0.01
        return w, b

    def mha_params(d):
        wqkv, bqkv = dense(d, 3 * d)          # fused in-projection (q | k | v)
        wo, bo = dense(d, d)
        return dict(wqkv=wqkv, bqkv=bqkv, wo=wo, bo=bo)

    def ln(d):
        return jnp.ones((1, d), jnp.float32), jnp.zeros((1, d), jnp.float32)

    def enc_layer(d, h):
        w1, b1 = dense(d, h); w2, b2 = dense(h, d)
        g1, bb1 = ln(d); g2, bb2 = ln(d)
        return dict(self_attn=mha_params(d), w1=w1, b1=b1, w2=w2, b2=b2,
                    ln1_g=g1, ln1_b=bb1, ln2_g=g2, ln2_b=bb2)

    def dec_layer(d, h):
        w1, b1 = dense(d, h); w2, b2 = dense(h, d)
        g1, bb1 = ln(d); g2, bb2 = ln(d); g3, bb3 = ln(d)
        return dict(self_attn=mha_params(d), cross_attn=mha_params(d),
                    w1=w1, b1=b1, w2=w2, b2=b2,
                    ln1_g=g1, ln1_b=bb1, ln2_g=g2, ln2_b=bb2, ln3_g=g3, ln3_b=bb3)

    w_emb, b_emb = dense(input_dim, d_model)
    params = dict(
        w_emb=w_emb, b_emb=b_emb,
        encoder=[enc_layer(d_model, hidden_dim) for _ in range(n_enc)],
        decoder=[dec_layer(d_model, hidden_dim) for _ in range(n_dec)],
    )
    return params, make_pe(max_len, d_model)


# --------------------------- fused forward kernel ---------------------------

def transformer_forward(src, tgt, params, pe, *, num_heads, hidden_dim,
                        use_mask=False, pos_output=True):
    """src: (Ls, B, input_dim), tgt: (Lt, B, input_dim) -> (Lt, B, d_model)."""
    Ls, B, in_dim = src.shape
    Lt = tgt.shape[0]
    D = params["w_emb"].shape[1]
    dh = D // num_heads
    emb_scale = math.sqrt(hidden_dim)   # module scales by sqrt(hidden_dim), not sqrt(d_model)
    attn_scale = 1.0 / math.sqrt(dh)

    flat_params, treedef = jax.tree_util.tree_flatten(params)
    n_leaves = len(flat_params)

    # Boundary layout plumbing (tiny XLA ops): batch-major slabs for the kernel.
    pe_src = pe[:Ls]                               # (Ls, D)
    pe_tgt = pe[:Lt]                               # (Lt, D)
    src_b = jnp.transpose(src, (1, 0, 2))          # (B, Ls, in_dim)
    tgt_b = jnp.transpose(tgt, (1, 0, 2))          # (B, Lt, in_dim)

    dot32 = partial(jnp.dot, preferred_element_type=jnp.float32)

    # ---------------- in-kernel building blocks (trace-time helpers) --------

    def tril_mask(L):
        # FLOAT mask: +1 on/below diagonal, 0 above -> ADDED to scores (PyTorch semantics).
        r = lax.broadcasted_iota(jnp.int32, (L, L), 0)
        c = lax.broadcasted_iota(jnp.int32, (L, L), 1)
        return (r >= c).astype(jnp.float32)

    def layer_norm(x, g_ref, b_ref):
        mu = jnp.mean(x, axis=-1, keepdims=True)
        d = x - mu
        var = jnp.mean(d * d, axis=-1, keepdims=True)
        return d * lax.rsqrt(var + 1e-5) * g_ref[...] + b_ref[...]

    def mha(xq, xkv, p, mask, is_self):
        # xq: (Lq, D), xkv: (Lk, D) -> (Lq, D)
        wqkv = p["wqkv"][...]      # (D, 3D)
        bqkv = p["bqkv"][...]      # (1, 3D)
        wo = p["wo"][...]          # (D, D)
        if is_self:
            qkv = dot32(xq, wqkv) + bqkv                       # one fused (Lq, 3D) matmul
            qp, kp, vp = qkv[:, :D], qkv[:, D:2 * D], qkv[:, 2 * D:]
        else:
            qp = dot32(xq, wqkv[:, :D]) + bqkv[:, :D]          # q from decoder state
            kv = dot32(xkv, wqkv[:, D:]) + bqkv[:, D:]         # fused k|v from memory
            kp, vp = kv[:, :D], kv[:, D:]
        out = None
        for h in range(num_heads):
            sl = slice(h * dh, (h + 1) * dh)
            qh = qp[:, sl] * attn_scale                        # fold 1/sqrt(dh) into q
            kh = kp[:, sl]
            vh = vp[:, sl]
            s = lax.dot_general(qh, kh, (((1,), (1,)), ((), ())),
                                preferred_element_type=jnp.float32)   # (Lq, Lk)
            if mask is not None:
                s = s + mask
            s = s - jnp.max(s, axis=-1, keepdims=True)
            e = jnp.exp(s)
            pa = e * pl.reciprocal(jnp.sum(e, axis=-1, keepdims=True), approx=True)
            oh = dot32(pa, vh)                                 # (Lq, dh)
            # out projection fused per head: sum_h oh @ Wo[h*dh:(h+1)*dh, :] == concat(heads) @ Wo
            contrib = dot32(oh, wo[sl, :])
            out = contrib if out is None else out + contrib
        return out + p["bo"][...]

    def ffn(x, p):
        h = jnp.maximum(dot32(x, p["w1"][...]) + p["b1"][...], 0.0)
        return dot32(h, p["w2"][...]) + p["b2"][...]

    def enc_layer(x, p, mask):
        h = layer_norm(x + mha(x, x, p["self_attn"], mask, True), p["ln1_g"], p["ln1_b"])
        return layer_norm(h + ffn(h, p), p["ln2_g"], p["ln2_b"])

    def dec_layer(x, mem, p, mask):
        h = layer_norm(x + mha(x, x, p["self_attn"], mask, True), p["ln1_g"], p["ln1_b"])
        h2 = layer_norm(h + mha(h, mem, p["cross_attn"], None, False), p["ln2_g"], p["ln2_b"])
        return layer_norm(h2 + ffn(h2, p), p["ln3_g"], p["ln3_b"])

    # ------------------------------ kernel body ------------------------------

    def kernel(*refs):
        src_ref, tgt_ref, pes_ref, pet_ref = refs[:4]
        pr = jax.tree_util.tree_unflatten(treedef, refs[4:4 + n_leaves])
        out_ref = refs[-1]

        w_emb = pr["w_emb"][...]
        b_emb = pr["b_emb"][...]
        # embedding * sqrt(hidden_dim) + positional encoding, fused in-kernel
        x = (dot32(src_ref[...], w_emb) + b_emb) * emb_scale + pes_ref[...]   # (Ls, D)
        y = (dot32(tgt_ref[...], w_emb) + b_emb) * emb_scale + pet_ref[...]   # (Lt, D)

        enc_mask = tril_mask(Ls) if use_mask else None   # skip all-zero masks statically
        for lp in pr["encoder"]:
            x = enc_layer(x, lp, enc_mask)
        memory = x

        tgt_mask = tril_mask(Lt)
        for lp in pr["decoder"]:
            y = dec_layer(y, memory, lp, tgt_mask)       # memory mask is always zero -> skipped
        if pos_output:
            y = jnp.maximum(y, 0.0)
        out_ref[...] = y

    # ------------------------------ pallas_call ------------------------------

    def rep_spec(shape):
        nd = len(shape)
        return pl.BlockSpec(shape, lambda b, _nd=nd: (0,) * _nd)   # same block every step

    in_specs = ([pl.BlockSpec((None, Ls, in_dim), lambda b: (b, 0, 0)),
                 pl.BlockSpec((None, Lt, in_dim), lambda b: (b, 0, 0)),
                 rep_spec((Ls, D)),
                 rep_spec((Lt, D))]
                + [rep_spec(tuple(leaf.shape)) for leaf in flat_params])

    out_b = pl.pallas_call(
        kernel,
        grid=(B,),   # one batch element per grid step; independent -> parallel
        out_shape=jax.ShapeDtypeStruct((B, Lt, D), jnp.float32),
        in_specs=in_specs,
        out_specs=pl.BlockSpec((None, Lt, D), lambda b: (b, 0, 0)),
        compiler_params=pltpu.CompilerParams(dimension_semantics=("parallel",)),
    )(src_b, tgt_b, pe_src, pe_tgt, *flat_params)

    return jnp.transpose(out_b, (1, 0, 2))   # back to (Lt, B, D) == PyTorch layout


# ---------------------------------- main ------------------------------------

if __name__ == "__main__":
    # Module hyperparameters (output_dim is unused by the PyTorch forward).
    input_dim, d_model, num_heads, hidden_dim, n_layers = 4, 32, 4, 32, 2
    Ls, Lt, B = 8, 8, 2  # src/tgt shapes are (seq, batch, input_dim)

    key = jax.random.PRNGKey(0)
    k_src, k_tgt, k_par = jax.random.split(key, 3)
    src = jax.random.normal(k_src, (Ls, B, input_dim), jnp.float32)
    tgt = jax.random.normal(k_tgt, (Lt, B, input_dim), jnp.float32)
    params, pe = init_params(k_par, input_dim, d_model, hidden_dim,
                             n_enc=n_layers, n_dec=n_layers, max_len=120)

    out = transformer_forward(src, tgt, params, pe, num_heads=num_heads,
                              hidden_dim=hidden_dim, use_mask=False, pos_output=True)
    jax.block_until_ready(out)
    assert out.shape == (Lt, B, d_model)
    print("KERNEL_OK")
</pallas_src>

<mosaic_0001>
module attributes {stable_mosaic.version = 11 : i64} {
  func.func @kernel(%arg0: i32, %arg1: memref<1x8x4xf32, #tpu.memory_space<vmem>>, %arg2: memref<1x8x4xf32, #tpu.memory_space<vmem>>, %arg3: memref<8x32xf32, #tpu.memory_space<vmem>>, %arg4: memref<8x32xf32, #tpu.memory_space<vmem>>, %arg5: memref<1x32xf32, #tpu.memory_space<vmem>>, %arg6: memref<1x32xf32, #tpu.memory_space<vmem>>, %arg7: memref<1x32xf32, #tpu.memory_space<vmem>>, %arg8: memref<1x32xf32, #tpu.memory_space<vmem>>, %arg9: memref<1x96xf32, #tpu.memory_space<vmem>>, %arg10: memref<32x32xf32, #tpu.memory_space<vmem>>, %arg11: memref<32x96xf32, #tpu.memory_space<vmem>>, %arg12: memref<1x32xf32, #tpu.memory_space<vmem>>, %arg13: memref<1x32xf32, #tpu.memory_space<vmem>>, %arg14: memref<1x32xf32, #tpu.memory_space<vmem>>, %arg15: memref<1x32xf32, #tpu.memory_space<vmem>>, %arg16: memref<1x32xf32, #tpu.memory_space<vmem>>, %arg17: memref<1x32xf32, #tpu.memory_space<vmem>>, %arg18: memref<1x32xf32, #tpu.memory_space<vmem>>, %arg19: memref<1x96xf32, #tpu.memory_space<vmem>>, %arg20: memref<32x32xf32, #tpu.memory_space<vmem>>, %arg21: memref<32x96xf32, #tpu.memory_space<vmem>>, %arg22: memref<32x32xf32, #tpu.memory_space<vmem>>, %arg23: memref<32x32xf32, #tpu.memory_space<vmem>>, %arg24: memref<1x32xf32, #tpu.memory_space<vmem>>, %arg25: memref<1x32xf32, #tpu.memory_space<vmem>>, %arg26: memref<1x32xf32, #tpu.memory_space<vmem>>, %arg27: memref<1x96xf32, #tpu.memory_space<vmem>>, %arg28: memref<32x32xf32, #tpu.memory_space<vmem>>, %arg29: memref<32x96xf32, #tpu.memory_space<vmem>>, %arg30: memref<1x32xf32, #tpu.memory_space<vmem>>, %arg31: memref<1x32xf32, #tpu.memory_space<vmem>>, %arg32: memref<1x32xf32, #tpu.memory_space<vmem>>, %arg33: memref<1x32xf32, #tpu.memory_space<vmem>>, %arg34: memref<1x32xf32, #tpu.memory_space<vmem>>, %arg35: memref<1x32xf32, #tpu.memory_space<vmem>>, %arg36: memref<1x32xf32, #tpu.memory_space<vmem>>, %arg37: memref<1x96xf32, #tpu.memory_space<vmem>>, %arg38: memref<32x32xf32, #tpu.memory_space<vmem>>, %arg39: memref<32x96xf32, #tpu.memory_space<vmem>>, %arg40: memref<32x32xf32, #tpu.memory_space<vmem>>, %arg41: memref<32x32xf32, #tpu.memory_space<vmem>>, %arg42: memref<1x32xf32, #tpu.memory_space<vmem>>, %arg43: memref<1x32xf32, #tpu.memory_space<vmem>>, %arg44: memref<1x32xf32, #tpu.memory_space<vmem>>, %arg45: memref<1x32xf32, #tpu.memory_space<vmem>>, %arg46: memref<1x32xf32, #tpu.memory_space<vmem>>, %arg47: memref<1x32xf32, #tpu.memory_space<vmem>>, %arg48: memref<1x32xf32, #tpu.memory_space<vmem>>, %arg49: memref<1x96xf32, #tpu.memory_space<vmem>>, %arg50: memref<32x32xf32, #tpu.memory_space<vmem>>, %arg51: memref<32x96xf32, #tpu.memory_space<vmem>>, %arg52: memref<32x32xf32, #tpu.memory_space<vmem>>, %arg53: memref<32x32xf32, #tpu.memory_space<vmem>>, %arg54: memref<1x32xf32, #tpu.memory_space<vmem>>, %arg55: memref<1x32xf32, #tpu.memory_space<vmem>>, %arg56: memref<1x32xf32, #tpu.memory_space<vmem>>, %arg57: memref<1x32xf32, #tpu.memory_space<vmem>>, %arg58: memref<1x32xf32, #tpu.memory_space<vmem>>, %arg59: memref<1x32xf32, #tpu.memory_space<vmem>>, %arg60: memref<1x32xf32, #tpu.memory_space<vmem>>, %arg61: memref<1x96xf32, #tpu.memory_space<vmem>>, %arg62: memref<32x32xf32, #tpu.memory_space<vmem>>, %arg63: memref<32x96xf32, #tpu.memory_space<vmem>>, %arg64: memref<32x32xf32, #tpu.memory_space<vmem>>, %arg65: memref<32x32xf32, #tpu.memory_space<vmem>>, %arg66: memref<4x32xf32, #tpu.memory_space<vmem>>, %arg67: memref<1x8x32xf32, #tpu.memory_space<vmem>>) attributes {dimension_semantics = [#tpu.dimension_semantics<parallel>], iteration_bounds = array<i64: 2>, scalar_prefetch = 0 : i64, scratch_operands = 0 : i64, tpu.core_type = #tpu.core_type<tc>, window_params = [{transform_indices = @transform_0, window_bounds = array<i64: 1, 8, 4>}, {transform_indices = @transform_1, window_bounds = array<i64: 1, 8, 4>}, {pipeline_mode = #tpu.pipeline_mode<synchronous>, transform_indices = @transform_2, window_bounds = array<i64: 8, 32>}, {pipeline_mode = #tpu.pipeline_mode<synchronous>, transform_indices = @transform_3, window_bounds = array<i64: 8, 32>}, {pipeline_mode = #tpu.pipeline_mode<synchronous>, transform_indices = @transform_4, window_bounds = array<i64: 1, 32>}, {pipeline_mode = #tpu.pipeline_mode<synchronous>, transform_indices = @transform_5, window_bounds = array<i64: 1, 32>}, {pipeline_mode = #tpu.pipeline_mode<synchronous>, transform_indices = @transform_6, window_bounds = array<i64: 1, 32>}, {pipeline_mode = #tpu.pipeline_mode<synchronous>, transform_indices = @transform_7, window_bounds = array<i64: 1, 32>}, {pipeline_mode = #tpu.pipeline_mode<synchronous>, transform_indices = @transform_8, window_bounds = array<i64: 1, 96>}, {pipeline_mode = #tpu.pipeline_mode<synchronous>, transform_indices = @transform_9, window_bounds = array<i64: 32, 32>}, {pipeline_mode = #tpu.pipeline_mode<synchronous>, transform_indices = @transform_10, window_bounds = array<i64: 32, 96>}, {pipeline_mode = #tpu.pipeline_mode<synchronous>, transform_indices = @transform_11, window_bounds = array<i64: 1, 32>}, {pipeline_mode = #tpu.pipeline_mode<synchronous>, transform_indices = @transform_12, window_bounds = array<i64: 1, 32>}, {pipeline_mode = #tpu.pipeline_mode<synchronous>, transform_indices = @transform_13, window_bounds = array<i64: 1, 32>}, {pipeline_mode = #tpu.pipeline_mode<synchronous>, transform_indices = @transform_14, window_bounds = array<i64: 1, 32>}, {pipeline_mode = #tpu.pipeline_mode<synchronous>, transform_indices = @transform_15, window_bounds = array<i64: 1, 32>}, {pipeline_mode = #tpu.pipeline_mode<synchronous>, transform_indices = @transform_16, window_bounds = array<i64: 1, 32>}, {pipeline_mode = #tpu.pipeline_mode<synchronous>, transform_indices = @transform_17, window_bounds = array<i64: 1, 32>}, {pipeline_mode = #tpu.pipeline_mode<synchronous>, transform_indices = @transform_18, window_bounds = array<i64: 1, 96>}, {pipeline_mode = #tpu.pipeline_mode<synchronous>, transform_indices = @transform_19, window_bounds = array<i64: 32, 32>}, {pipeline_mode = #tpu.pipeline_mode<synchronous>, transform_indices = @transform_20, window_bounds = array<i64: 32, 96>}, {pipeline_mode = #tpu.pipeline_mode<synchronous>, transform_indices = @transform_21, window_bounds = array<i64: 32, 32>}, {pipeline_mode = #tpu.pipeline_mode<synchronous>, transform_indices = @transform_22, window_bounds = array<i64: 32, 32>}, {pipeline_mode = #tpu.pipeline_mode<synchronous>, transform_indices = @transform_23, window_bounds = array<i64: 1, 32>}, {pipeline_mode = #tpu.pipeline_mode<synchronous>, transform_indices = @transform_24, window_bounds = array<i64: 1, 32>}, {pipeline_mode = #tpu.pipeline_mode<synchronous>, transform_indices = @transform_25, window_bounds = array<i64: 1, 32>}, {pipeline_mode = #tpu.pipeline_mode<synchronous>, transform_indices = @transform_26, window_bounds = array<i64: 1, 96>}, {pipeline_mode = #tpu.pipeline_mode<synchronous>, transform_indices = @transform_27, window_bounds = array<i64: 32, 32>}, {pipeline_mode = #tpu.pipeline_mode<synchronous>, transform_indices = @transform_28, window_bounds = array<i64: 32, 96>}, {pipeline_mode = #tpu.pipeline_mode<synchronous>, transform_indices = @transform_29, window_bounds = array<i64: 1, 32>}, {pipeline_mode = #tpu.pipeline_mode<synchronous>, transform_indices = @transform_30, window_bounds = array<i64: 1, 32>}, {pipeline_mode = #tpu.pipeline_mode<synchronous>, transform_indices = @transform_31, window_bounds = array<i64: 1, 32>}, {pipeline_mode = #tpu.pipeline_mode<synchronous>, transform_indices = @transform_32, window_bounds = array<i64: 1, 32>}, {pipeline_mode = #tpu.pipeline_mode<synchronous>, transform_indices = @transform_33, window_bounds = array<i64: 1, 32>}, {pipeline_mode = #tpu.pipeline_mode<synchronous>, transform_indices = @transform_34, window_bounds = array<i64: 1, 32>}, {pipeline_mode = #tpu.pipeline_mode<synchronous>, transform_indices = @transform_35, window_bounds = array<i64: 1, 32>}, {pipeline_mode = #tpu.pipeline_mode<synchronous>, transform_indices = @transform_36, window_bounds = array<i64: 1, 96>}, {pipeline_mode = #tpu.pipeline_mode<synchronous>, transform_indices = @transform_37, window_bounds = array<i64: 32, 32>}, {pipeline_mode = #tpu.pipeline_mode<synchronous>, transform_indices = @transform_38, window_bounds = array<i64: 32, 96>}, {pipeline_mode = #tpu.pipeline_mode<synchronous>, transform_indices = @transform_39, window_bounds = array<i64: 32, 32>}, {pipeline_mode = #tpu.pipeline_mode<synchronous>, transform_indices = @transform_40, window_bounds = array<i64: 32, 32>}, {pipeline_mode = #tpu.pipeline_mode<synchronous>, transform_indices = @transform_41, window_bounds = array<i64: 1, 32>}, {pipeline_mode = #tpu.pipeline_mode<synchronous>, transform_indices = @transform_42, window_bounds = array<i64: 1, 32>}, {pipeline_mode = #tpu.pipeline_mode<synchronous>, transform_indices = @transform_43, window_bounds = array<i64: 1, 32>}, {pipeline_mode = #tpu.pipeline_mode<synchronous>, transform_indices = @transform_44, window_bounds = array<i64: 1, 32>}, {pipeline_mode = #tpu.pipeline_mode<synchronous>, transform_indices = @transform_45, window_bounds = array<i64: 1, 32>}, {pipeline_mode = #tpu.pipeline_mode<synchronous>, transform_indices = @transform_46, window_bounds = array<i64: 1, 32>}, {pipeline_mode = #tpu.pipeline_mode<synchronous>, transform_indices = @transform_47, window_bounds = array<i64: 1, 32>}, {pipeline_mode = #tpu.pipeline_mode<synchronous>, transform_indices = @transform_48, window_bounds = array<i64: 1, 96>}, {pipeline_mode = #tpu.pipeline_mode<synchronous>, transform_indices = @transform_49, window_bounds = array<i64: 32, 32>}, {pipeline_mode = #tpu.pipeline_mode<synchronous>, transform_indices = @transform_50, window_bounds = array<i64: 32, 96>}, {pipeline_mode = #tpu.pipeline_mode<synchronous>, transform_indices = @transform_51, window_bounds = array<i64: 32, 32>}, {pipeline_mode = #tpu.pipeline_mode<synchronous>, transform_indices = @transform_52, window_bounds = array<i64: 32, 32>}, {pipeline_mode = #tpu.pipeline_mode<synchronous>, transform_indices = @transform_53, window_bounds = array<i64: 1, 32>}, {pipeline_mode = #tpu.pipeline_mode<synchronous>, transform_indices = @transform_54, window_bounds = array<i64: 1, 32>}, {pipeline_mode = #tpu.pipeline_mode<synchronous>, transform_indices = @transform_55, window_bounds = array<i64: 1, 32>}, {pipeline_mode = #tpu.pipeline_mode<synchronous>, transform_indices = @transform_56, window_bounds = array<i64: 1, 32>}, {pipeline_mode = #tpu.pipeline_mode<synchronous>, transform_indices = @transform_57, window_bounds = array<i64: 1, 32>}, {pipeline_mode = #tpu.pipeline_mode<synchronous>, transform_indices = @transform_58, window_bounds = array<i64: 1, 32>}, {pipeline_mode = #tpu.pipeline_mode<synchronous>, transform_indices = @transform_59, window_bounds = array<i64: 1, 32>}, {pipeline_mode = #tpu.pipeline_mode<synchronous>, transform_indices = @transform_60, window_bounds = array<i64: 1, 96>}, {pipeline_mode = #tpu.pipeline_mode<synchronous>, transform_indices = @transform_61, window_bounds = array<i64: 32, 32>}, {pipeline_mode = #tpu.pipeline_mode<synchronous>, transform_indices = @transform_62, window_bounds = array<i64: 32, 96>}, {pipeline_mode = #tpu.pipeline_mode<synchronous>, transform_indices = @transform_63, window_bounds = array<i64: 32, 32>}, {pipeline_mode = #tpu.pipeline_mode<synchronous>, transform_indices = @transform_64, window_bounds = array<i64: 32, 32>}, {pipeline_mode = #tpu.pipeline_mode<synchronous>, transform_indices = @transform_65, window_bounds = array<i64: 4, 32>}, {transform_indices = @transform_66, window_bounds = array<i64: 1, 8, 32>}]} {
    %c0 = arith.constant 0 : index
    %c0_0 = arith.constant 0 : index
    %0 = vector.load %arg66[%c0, %c0_0] : memref<4x32xf32, #tpu.memory_space<vmem>>, vector<4x32xf32>
    %c0_1 = arith.constant 0 : index
    %c0_2 = arith.constant 0 : index
    %1 = vector.load %arg5[%c0_1, %c0_2] : memref<1x32xf32, #tpu.memory_space<vmem>>, vector<1x32xf32>
    %c0_3 = arith.constant 0 : index
    %c0_4 = arith.constant 0 : index
    %c0_5 = arith.constant 0 : index
    %2 = vector.load %arg1[%c0_3, %c0_4, %c0_5] : memref<1x8x4xf32, #tpu.memory_space<vmem>>, vector<1x8x4xf32>
    %3 = vector.shape_cast %2 : vector<1x8x4xf32> to vector<8x4xf32>
    %cst = arith.constant dense<0.000000e+00> : vector<8x32xf32>
    %4 = tpu.matmul %3, %0, %cst {dimension_numbers = #tpu.dot_dimension_numbers<[1], [0], [0], [1], [0, 0, 1, 1], [], []>} : vector<8x4xf32>, vector<4x32xf32>, vector<8x32xf32> -> vector<8x32xf32>
    %5 = vector.broadcast %1 : vector<1x32xf32> to vector<8x32xf32>
    %6 = arith.addf %4, %5 : vector<8x32xf32>
    %cst_6 = arith.constant 5.65685415 : f32
    %7 = vector.broadcast %cst_6 : f32 to vector<8x32xf32>
    %8 = arith.mulf %6, %7 : vector<8x32xf32>
    %c0_7 = arith.constant 0 : index
    %c0_8 = arith.constant 0 : index
    %9 = vector.load %arg3[%c0_7, %c0_8] : memref<8x32xf32, #tpu.memory_space<vmem>>, vector<8x32xf32>
    %10 = arith.addf %8, %9 : vector<8x32xf32>
    %c0_9 = arith.constant 0 : index
    %c0_10 = arith.constant 0 : index
    %c0_11 = arith.constant 0 : index
    %11 = vector.load %arg2[%c0_9, %c0_10, %c0_11] : memref<1x8x4xf32, #tpu.memory_space<vmem>>, vector<1x8x4xf32>
    %12 = vector.shape_cast %11 : vector<1x8x4xf32> to vector<8x4xf32>
    %cst_12 = arith.constant dense<0.000000e+00> : vector<8x32xf32>
    %13 = tpu.matmul %12, %0, %cst_12 {dimension_numbers = #tpu.dot_dimension_numbers<[1], [0], [0], [1], [0, 0, 1, 1], [], []>} : vector<8x4xf32>, vector<4x32xf32>, vector<8x32xf32> -> vector<8x32xf32>
    %14 = vector.broadcast %1 : vector<1x32xf32> to vector<8x32xf32>
    %15 = arith.addf %13, %14 : vector<8x32xf32>
    %cst_13 = arith.constant 5.65685415 : f32
    %16 = vector.broadcast %cst_13 : f32 to vector<8x32xf32>
    %17 = arith.mulf %15, %16 : vector<8x32xf32>
    %c0_14 = arith.constant 0 : index
    %c0_15 = arith.constant 0 : index
    %18 = vector.load %arg4[%c0_14, %c0_15] : memref<8x32xf32, #tpu.memory_space<vmem>>, vector<8x32xf32>
    %19 = arith.addf %17, %18 : vector<8x32xf32>
    %c0_16 = arith.constant 0 : index
    %c0_17 = arith.constant 0 : index
    %20 = vector.load %arg51[%c0_16, %c0_17] : memref<32x96xf32, #tpu.memory_space<vmem>>, vector<32x96xf32>
    %c0_18 = arith.constant 0 : index
    %c0_19 = arith.constant 0 : index
    %21 = vector.load %arg49[%c0_18, %c0_19] : memref<1x96xf32, #tpu.memory_space<vmem>>, vector<1x96xf32>
    %c0_20 = arith.constant 0 : index
    %c0_21 = arith.constant 0 : index
    %22 = vector.load %arg50[%c0_20, %c0_21] : memref<32x32xf32, #tpu.memory_space<vmem>>, vector<32x32xf32>
    %cst_22 = arith.constant dense<0.000000e+00> : vector<8x96xf32>
    %23 = tpu.matmul %10, %20, %cst_22 {dimension_numbers = #tpu.dot_dimension_numbers<[1], [0], [0], [1], [0, 0, 1, 1], [], []>} : vector<8x32xf32>, vector<32x96xf32>, vector<8x96xf32> -> vector<8x96xf32>
    %24 = vector.broadcast %21 : vector<1x96xf32> to vector<8x96xf32>
    %25 = arith.addf %23, %24 : vector<8x96xf32>
    %26 = vector.extract_strided_slice %25 {offsets = [0, 0], sizes = [8, 32], strides = [1, 1]} : vector<8x96xf32> to vector<8x32xf32>
    %27 = vector.extract_strided_slice %25 {offsets = [0, 32], sizes = [8, 32], strides = [1, 1]} : vector<8x96xf32> to vector<8x32xf32>
    %28 = vector.extract_strided_slice %25 {offsets = [0, 64], sizes = [8, 32], strides = [1, 1]} : vector<8x96xf32> to vector<8x32xf32>
    %29 = vector.extract_strided_slice %26 {offsets = [0, 0], sizes = [8, 8], strides = [1, 1]} : vector<8x32xf32> to vector<8x8xf32>
    %cst_23 = arith.constant 0.353553385 : f32
    %30 = vector.broadcast %cst_23 : f32 to vector<8x8xf32>
    %31 = arith.mulf %29, %30 : vector<8x8xf32>
    %32 = vector.extract_strided_slice %27 {offsets = [0, 0], sizes = [8, 8], strides = [1, 1]} : vector<8x32xf32> to vector<8x8xf32>
    %33 = vector.extract_strided_slice %28 {offsets = [0, 0], sizes = [8, 8], strides = [1, 1]} : vector<8x32xf32> to vector<8x8xf32>
    %cst_24 = arith.constant dense<0.000000e+00> : vector<8x8xf32>
    %34 = tpu.matmul %31, %32, %cst_24 {dimension_numbers = #tpu.dot_dimension_numbers<[1], [1], [0], [0], [0, 0, 1, 0], [], []>} : vector<8x8xf32>, vector<8x8xf32>, vector<8x8xf32> -> vector<8x8xf32>
    %cst_25 = arith.constant dense<0xFF800000> : vector<8xf32>
    %35 = vector.multi_reduction <maximumf>, %34, %cst_25 [1] : vector<8x8xf32> to vector<8xf32>
    %36 = vector.shape_cast %35 : vector<8xf32> to vector<8x1xf32>
    %37 = vector.broadcast %36 : vector<8x1xf32> to vector<8x8xf32>
    %38 = arith.subf %34, %37 : vector<8x8xf32>
    %39 = math.exp %38 : vector<8x8xf32>
    %cst_26 = arith.constant dense<0.000000e+00> : vector<8xf32>
    %40 = vector.multi_reduction <add>, %39, %cst_26 [1] : vector<8x8xf32> to vector<8xf32>
    %41 = vector.shape_cast %40 : vector<8xf32> to vector<8x1xf32>
    %42 = tpu.reciprocal %41 {approx = true} : vector<8x1xf32> -> vector<8x1xf32>
    %43 = vector.broadcast %42 : vector<8x1xf32> to vector<8x8xf32>
    %44 = arith.mulf %39, %43 : vector<8x8xf32>
    %cst_27 = arith.constant dense<0.000000e+00> : vector<8x8xf32>
    %45 = tpu.matmul %44, %33, %cst_27 {dimension_numbers = #tpu.dot_dimension_numbers<[1], [0], [0], [1], [0, 0, 1, 1], [], []>} : vector<8x8xf32>, vector<8x8xf32>, vector<8x8xf32> -> vector<8x8xf32>
    %46 = vector.extract_strided_slice %22 {offsets = [0, 0], sizes = [8, 32], strides = [1, 1]} : vector<32x32xf32> to vector<8x32xf32>
    %cst_28 = arith.constant dense<0.000000e+00> : vector<8x32xf32>
    %47 = tpu.matmul %45, %46, %cst_28 {dimension_numbers = #tpu.dot_dimension_numbers<[1], [0], [0], [1], [0, 0, 1, 1], [], []>} : vector<8x8xf32>, vector<8x32xf32>, vector<8x32xf32> -> vector<8x32xf32>
    %48 = vector.extract_strided_slice %26 {offsets = [0, 8], sizes = [8, 8], strides = [1, 1]} : vector<8x32xf32> to vector<8x8xf32>
    %cst_29 = arith.constant 0.353553385 : f32
    %49 = vector.broadcast %cst_29 : f32 to vector<8x8xf32>
    %50 = arith.mulf %48, %49 : vector<8x8xf32>
    %51 = vector.extract_strided_slice %27 {offsets = [0, 8], sizes = [8, 8], strides = [1, 1]} : vector<8x32xf32> to vector<8x8xf32>
    %52 = vector.extract_strided_slice %28 {offsets = [0, 8], sizes = [8, 8], strides = [1, 1]} : vector<8x32xf32> to vector<8x8xf32>
    %cst_30 = arith.constant dense<0.000000e+00> : vector<8x8xf32>
    %53 = tpu.matmul %50, %51, %cst_30 {dimension_numbers = #tpu.dot_dimension_numbers<[1], [1], [0], [0], [0, 0, 1, 0], [], []>} : vector<8x8xf32>, vector<8x8xf32>, vector<8x8xf32> -> vector<8x8xf32>
    %cst_31 = arith.constant dense<0xFF800000> : vector<8xf32>
    %54 = vector.multi_reduction <maximumf>, %53, %cst_31 [1] : vector<8x8xf32> to vector<8xf32>
    %55 = vector.shape_cast %54 : vector<8xf32> to vector<8x1xf32>
    %56 = vector.broadcast %55 : vector<8x1xf32> to vector<8x8xf32>
    %57 = arith.subf %53, %56 : vector<8x8xf32>
    %58 = math.exp %57 : vector<8x8xf32>
    %cst_32 = arith.constant dense<0.000000e+00> : vector<8xf32>
    %59 = vector.multi_reduction <add>, %58, %cst_32 [1] : vector<8x8xf32> to vector<8xf32>
    %60 = vector.shape_cast %59 : vector<8xf32> to vector<8x1xf32>
    %61 = tpu.reciprocal %60 {approx = true} : vector<8x1xf32> -> vector<8x1xf32>
    %62 = vector.broadcast %61 : vector<8x1xf32> to vector<8x8xf32>
    %63 = arith.mulf %58, %62 : vector<8x8xf32>
    %cst_33 = arith.constant dense<0.000000e+00> : vector<8x8xf32>
    %64 = tpu.matmul %63, %52, %cst_33 {dimension_numbers = #tpu.dot_dimension_numbers<[1], [0], [0], [1], [0, 0, 1, 1], [], []>} : vector<8x8xf32>, vector<8x8xf32>, vector<8x8xf32> -> vector<8x8xf32>
    %65 = vector.extract_strided_slice %22 {offsets = [8, 0], sizes = [8, 32], strides = [1, 1]} : vector<32x32xf32> to vector<8x32xf32>
    %cst_34 = arith.constant dense<0.000000e+00> : vector<8x32xf32>
    %66 = tpu.matmul %64, %65, %cst_34 {dimension_numbers = #tpu.dot_dimension_numbers<[1], [0], [0], [1], [0, 0, 1, 1], [], []>} : vector<8x8xf32>, vector<8x32xf32>, vector<8x32xf32> -> vector<8x32xf32>
    %67 = arith.addf %47, %66 : vector<8x32xf32>
    %68 = vector.extract_strided_slice %26 {offsets = [0, 16], sizes = [8, 8], strides = [1, 1]} : vector<8x32xf32> to vector<8x8xf32>
    %cst_35 = arith.constant 0.353553385 : f32
    %69 = vector.broadcast %cst_35 : f32 to vector<8x8xf32>
    %70 = arith.mulf %68, %69 : vector<8x8xf32>
    %71 = vector.extract_strided_slice %27 {offsets = [0, 16], sizes = [8, 8], strides = [1, 1]} : vector<8x32xf32> to vector<8x8xf32>
    %72 = vector.extract_strided_slice %28 {offsets = [0, 16], sizes = [8, 8], strides = [1, 1]} : vector<8x32xf32> to vector<8x8xf32>
    %cst_36 = arith.constant dense<0.000000e+00> : vector<8x8xf32>
    %73 = tpu.matmul %70, %71, %cst_36 {dimension_numbers = #tpu.dot_dimension_numbers<[1], [1], [0], [0], [0, 0, 1, 0], [], []>} : vector<8x8xf32>, vector<8x8xf32>, vector<8x8xf32> -> vector<8x8xf32>
    %cst_37 = arith.constant dense<0xFF800000> : vector<8xf32>
    %74 = vector.multi_reduction <maximumf>, %73, %cst_37 [1] : vector<8x8xf32> to vector<8xf32>
    %75 = vector.shape_cast %74 : vector<8xf32> to vector<8x1xf32>
    %76 = vector.broadcast %75 : vector<8x1xf32> to vector<8x8xf32>
    %77 = arith.subf %73, %76 : vector<8x8xf32>
    %78 = math.exp %77 : vector<8x8xf32>
    %cst_38 = arith.constant dense<0.000000e+00> : vector<8xf32>
    %79 = vector.multi_reduction <add>, %78, %cst_38 [1] : vector<8x8xf32> to vector<8xf32>
    %80 = vector.shape_cast %79 : vector<8xf32> to vector<8x1xf32>
    %81 = tpu.reciprocal %80 {approx = true} : vector<8x1xf32> -> vector<8x1xf32>
    %82 = vector.broadcast %81 : vector<8x1xf32> to vector<8x8xf32>
    %83 = arith.mulf %78, %82 : vector<8x8xf32>
    %cst_39 = arith.constant dense<0.000000e+00> : vector<8x8xf32>
    %84 = tpu.matmul %83, %72, %cst_39 {dimension_numbers = #tpu.dot_dimension_numbers<[1], [0], [0], [1], [0, 0, 1, 1], [], []>} : vector<8x8xf32>, vector<8x8xf32>, vector<8x8xf32> -> vector<8x8xf32>
    %85 = vector.extract_strided_slice %22 {offsets = [16, 0], sizes = [8, 32], strides = [1, 1]} : vector<32x32xf32> to vector<8x32xf32>
    %cst_40 = arith.constant dense<0.000000e+00> : vector<8x32xf32>
    %86 = tpu.matmul %84, %85, %cst_40 {dimension_numbers = #tpu.dot_dimension_numbers<[1], [0], [0], [1], [0, 0, 1, 1], [], []>} : vector<8x8xf32>, vector<8x32xf32>, vector<8x32xf32> -> vector<8x32xf32>
    %87 = arith.addf %67, %86 : vector<8x32xf32>
    %88 = vector.extract_strided_slice %26 {offsets = [0, 24], sizes = [8, 8], strides = [1, 1]} : vector<8x32xf32> to vector<8x8xf32>
    %cst_41 = arith.constant 0.353553385 : f32
    %89 = vector.broadcast %cst_41 : f32 to vector<8x8xf32>
    %90 = arith.mulf %88, %89 : vector<8x8xf32>
    %91 = vector.extract_strided_slice %27 {offsets = [0, 24], sizes = [8, 8], strides = [1, 1]} : vector<8x32xf32> to vector<8x8xf32>
    %92 = vector.extract_strided_slice %28 {offsets = [0, 24], sizes = [8, 8], strides = [1, 1]} : vector<8x32xf32> to vector<8x8xf32>
    %cst_42 = arith.constant dense<0.000000e+00> : vector<8x8xf32>
    %93 = tpu.matmul %90, %91, %cst_42 {dimension_numbers = #tpu.dot_dimension_numbers<[1], [1], [0], [0], [0, 0, 1, 0], [], []>} : vector<8x8xf32>, vector<8x8xf32>, vector<8x8xf32> -> vector<8x8xf32>
    %cst_43 = arith.constant dense<0xFF800000> : vector<8xf32>
    %94 = vector.multi_reduction <maximumf>, %93, %cst_43 [1] : vector<8x8xf32> to vector<8xf32>
    %95 = vector.shape_cast %94 : vector<8xf32> to vector<8x1xf32>
    %96 = vector.broadcast %95 : vector<8x1xf32> to vector<8x8xf32>
    %97 = arith.subf %93, %96 : vector<8x8xf32>
    %98 = math.exp %97 : vector<8x8xf32>
    %cst_44 = arith.constant dense<0.000000e+00> : vector<8xf32>
    %99 = vector.multi_reduction <add>, %98, %cst_44 [1] : vector<8x8xf32> to vector<8xf32>
    %100 = vector.shape_cast %99 : vector<8xf32> to vector<8x1xf32>
    %101 = tpu.reciprocal %100 {approx = true} : vector<8x1xf32> -> vector<8x1xf32>
    %102 = vector.broadcast %101 : vector<8x1xf32> to vector<8x8xf32>
    %103 = arith.mulf %98, %102 : vector<8x8xf32>
    %cst_45 = arith.constant dense<0.000000e+00> : vector<8x8xf32>
    %104 = tpu.matmul %103, %92, %cst_45 {dimension_numbers = #tpu.dot_dimension_numbers<[1], [0], [0], [1], [0, 0, 1, 1], [], []>} : vector<8x8xf32>, vector<8x8xf32>, vector<8x8xf32> -> vector<8x8xf32>
    %105 = vector.extract_strided_slice %22 {offsets = [24, 0], sizes = [8, 32], strides = [1, 1]} : vector<32x32xf32> to vector<8x32xf32>
    %cst_46 = arith.constant dense<0.000000e+00> : vector<8x32xf32>
    %106 = tpu.matmul %104, %105, %cst_46 {dimension_numbers = #tpu.dot_dimension_numbers<[1], [0], [0], [1], [0, 0, 1, 1], [], []>} : vector<8x8xf32>, vector<8x32xf32>, vector<8x32xf32> -> vector<8x32xf32>
    %107 = arith.addf %87, %106 : vector<8x32xf32>
    %c0_47 = arith.constant 0 : index
    %c0_48 = arith.constant 0 : index
    %108 = vector.load %arg48[%c0_47, %c0_48] : memref<1x32xf32, #tpu.memory_space<vmem>>, vector<1x32xf32>
    %109 = vector.broadcast %108 : vector<1x32xf32> to vector<8x32xf32>
    %110 = arith.addf %107, %109 : vector<8x32xf32>
    %111 = arith.addf %10, %110 : vector<8x32xf32>
    %cst_49 = arith.constant dense<0.000000e+00> : vector<8xf32>
    %112 = vector.multi_reduction <add>, %111, %cst_49 [1] : vector<8x32xf32> to vector<8xf32>
    %113 = vector.shape_cast %112 : vector<8xf32> to vector<8x1xf32>
    %cst_50 = arith.constant 3.200000e+01 : f32
    %114 = vector.broadcast %cst_50 : f32 to vector<8x1xf32>
    %115 = arith.divf %113, %114 : vector<8x1xf32>
    %116 = vector.broadcast %115 : vector<8x1xf32> to vector<8x32xf32>
    %117 = arith.subf %111, %116 : vector<8x32xf32>
    %118 = arith.mulf %117, %117 : vector<8x32xf32>
    %cst_51 = arith.constant dense<0.000000e+00> : vector<8xf32>
    %119 = vector.multi_reduction <add>, %118, %cst_51 [1] : vector<8x32xf32> to vector<8xf32>
    %120 = vector.shape_cast %119 : vector<8xf32> to vector<8x1xf32>
    %cst_52 = arith.constant 3.200000e+01 : f32
    %121 = vector.broadcast %cst_52 : f32 to vector<8x1xf32>
    %122 = arith.divf %120, %121 : vector<8x1xf32>
    %cst_53 = arith.constant 9.99999974E-6 : f32
    %123 = vector.broadcast %cst_53 : f32 to vector<8x1xf32>
    %124 = arith.addf %122, %123 : vector<8x1xf32>
    %125 = math.rsqrt %124 : vector<8x1xf32>
    %126 = vector.broadcast %125 : vector<8x1xf32> to vector<8x32xf32>
    %127 = arith.mulf %117, %126 : vector<8x32xf32>
    %c0_54 = arith.constant 0 : index
    %c0_55 = arith.constant 0 : index
    %128 = vector.load %arg45[%c0_54, %c0_55] : memref<1x32xf32, #tpu.memory_space<vmem>>, vector<1x32xf32>
    %129 = vector.broadcast %128 : vector<1x32xf32> to vector<8x32xf32>
    %130 = arith.mulf %127, %129 : vector<8x32xf32>
    %c0_56 = arith.constant 0 : index
    %c0_57 = arith.constant 0 : index
    %131 = vector.load %arg44[%c0_56, %c0_57] : memref<1x32xf32, #tpu.memory_space<vmem>>, vector<1x32xf32>
    %132 = vector.broadcast %131 : vector<1x32xf32> to vector<8x32xf32>
    %133 = arith.addf %130, %132 : vector<8x32xf32>
    %c0_58 = arith.constant 0 : index
    %c0_59 = arith.constant 0 : index
    %134 = vector.load %arg52[%c0_58, %c0_59] : memref<32x32xf32, #tpu.memory_space<vmem>>, vector<32x32xf32>
    %cst_60 = arith.constant dense<0.000000e+00> : vector<8x32xf32>
    %135 = tpu.matmul %133, %134, %cst_60 {dimension_numbers = #tpu.dot_dimension_numbers<[1], [0], [0], [1], [0, 0, 1, 1], [], []>} : vector<8x32xf32>, vector<32x32xf32>, vector<8x32xf32> -> vector<8x32xf32>
    %c0_61 = arith.constant 0 : index
    %c0_62 = arith.constant 0 : index
    %136 = vector.load %arg42[%c0_61, %c0_62] : memref<1x32xf32, #tpu.memory_space<vmem>>, vector<1x32xf32>
    %137 = vector.broadcast %136 : vector<1x32xf32> to vector<8x32xf32>
    %138 = arith.addf %135, %137 : vector<8x32xf32>
    %cst_63 = arith.constant 0.000000e+00 : f32
    %139 = vector.broadcast %cst_63 : f32 to vector<8x32xf32>
    %140 = arith.maximumf %138, %139 : vector<8x32xf32>
    %c0_64 = arith.constant 0 : index
    %c0_65 = arith.constant 0 : index
    %141 = vector.load %arg53[%c0_64, %c0_65] : memref<32x32xf32, #tpu.memory_space<vmem>>, vector<32x32xf32>
    %cst_66 = arith.constant dense<0.000000e+00> : vector<8x32xf32>
    %142 = tpu.matmul %140, %141, %cst_66 {dimension_numbers = #tpu.dot_dimension_numbers<[1], [0], [0], [1], [0, 0, 1, 1], [], []>} : vector<8x32xf32>, vector<32x32xf32>, vector<8x32xf32> -> vector<8x32xf32>
    %c0_67 = arith.constant 0 : index
    %c0_68 = arith.constant 0 : index
    %143 = vector.load %arg43[%c0_67, %c0_68] : memref<1x32xf32, #tpu.memory_space<vmem>>, vector<1x32xf32>
    %144 = vector.broadcast %143 : vector<1x32xf32> to vector<8x32xf32>
    %145 = arith.addf %142, %144 : vector<8x32xf32>
    %146 = arith.addf %133, %145 : vector<8x32xf32>
    %cst_69 = arith.constant dense<0.000000e+00> : vector<8xf32>
    %147 = vector.multi_reduction <add>, %146, %cst_69 [1] : vector<8x32xf32> to vector<8xf32>
    %148 = vector.shape_cast %147 : vector<8xf32> to vector<8x1xf32>
    %cst_70 = arith.constant 3.200000e+01 : f32
    %149 = vector.broadcast %cst_70 : f32 to vector<8x1xf32>
    %150 = arith.divf %148, %149 : vector<8x1xf32>
    %151 = vector.broadcast %150 : vector<8x1xf32> to vector<8x32xf32>
    %152 = arith.subf %146, %151 : vector<8x32xf32>
    %153 = arith.mulf %152, %152 : vector<8x32xf32>
    %cst_71 = arith.constant dense<0.000000e+00> : vector<8xf32>
    %154 = vector.multi_reduction <add>, %153, %cst_71 [1] : vector<8x32xf32> to vector<8xf32>
    %155 = vector.shape_cast %154 : vector<8xf32> to vector<8x1xf32>
    %cst_72 = arith.constant 3.200000e+01 : f32
    %156 = vector.broadcast %cst_72 : f32 to vector<8x1xf32>
    %157 = arith.divf %155, %156 : vector<8x1xf32>
    %cst_73 = arith.constant 9.99999974E-6 : f32
    %158 = vector.broadcast %cst_73 : f32 to vector<8x1xf32>
    %159 = arith.addf %157, %158 : vector<8x1xf32>
    %160 = math.rsqrt %159 : vector<8x1xf32>
    %161 = vector.broadcast %160 : vector<8x1xf32> to vector<8x32xf32>
    %162 = arith.mulf %152, %161 : vector<8x32xf32>
    %c0_74 = arith.constant 0 : index
    %c0_75 = arith.constant 0 : index
    %163 = vector.load %arg47[%c0_74, %c0_75] : memref<1x32xf32, #tpu.memory_space<vmem>>, vector<1x32xf32>
    %164 = vector.broadcast %163 : vector<1x32xf32> to vector<8x32xf32>
    %165 = arith.mulf %162, %164 : vector<8x32xf32>
    %c0_76 = arith.constant 0 : index
    %c0_77 = arith.constant 0 : index
    %166 = vector.load %arg46[%c0_76, %c0_77] : memref<1x32xf32, #tpu.memory_space<vmem>>, vector<1x32xf32>
    %167 = vector.broadcast %166 : vector<1x32xf32> to vector<8x32xf32>
    %168 = arith.addf %165, %167 : vector<8x32xf32>
    %c0_78 = arith.constant 0 : index
    %c0_79 = arith.constant 0 : index
    %169 = vector.load %arg63[%c0_78, %c0_79] : memref<32x96xf32, #tpu.memory_space<vmem>>, vector<32x96xf32>
    %c0_80 = arith.constant 0 : index
    %c0_81 = arith.constant 0 : index
    %170 = vector.load %arg61[%c0_80, %c0_81] : memref<1x96xf32, #tpu.memory_space<vmem>>, vector<1x96xf32>
    %c0_82 = arith.constant 0 : index
    %c0_83 = arith.constant 0 : index
    %171 = vector.load %arg62[%c0_82, %c0_83] : memref<32x32xf32, #tpu.memory_space<vmem>>, vector<32x32xf32>
    %cst_84 = arith.constant dense<0.000000e+00> : vector<8x96xf32>
    %172 = tpu.matmul %168, %169, %cst_84 {dimension_numbers = #tpu.dot_dimension_numbers<[1], [0], [0], [1], [0, 0, 1, 1], [], []>} : vector<8x32xf32>, vector<32x96xf32>, vector<8x96xf32> -> vector<8x96xf32>
    %173 = vector.broadcast %170 : vector<1x96xf32> to vector<8x96xf32>
    %174 = arith.addf %172, %173 : vector<8x96xf32>
    %175 = vector.extract_strided_slice %174 {offsets = [0, 0], sizes = [8, 32], strides = [1, 1]} : vector<8x96xf32> to vector<8x32xf32>
    %176 = vector.extract_strided_slice %174 {offsets = [0, 32], sizes = [8, 32], strides = [1, 1]} : vector<8x96xf32> to vector<8x32xf32>
    %177 = vector.extract_strided_slice %174 {offsets = [0, 64], sizes = [8, 32], strides = [1, 1]} : vector<8x96xf32> to vector<8x32xf32>
    %178 = vector.extract_strided_slice %175 {offsets = [0, 0], sizes = [8, 8], strides = [1, 1]} : vector<8x32xf32> to vector<8x8xf32>
    %cst_85 = arith.constant 0.353553385 : f32
    %179 = vector.broadcast %cst_85 : f32 to vector<8x8xf32>
    %180 = arith.mulf %178, %179 : vector<8x8xf32>
    %181 = vector.extract_strided_slice %176 {offsets = [0, 0], sizes = [8, 8], strides = [1, 1]} : vector<8x32xf32> to vector<8x8xf32>
    %182 = vector.extract_strided_slice %177 {offsets = [0, 0], sizes = [8, 8], strides = [1, 1]} : vector<8x32xf32> to vector<8x8xf32>
    %cst_86 = arith.constant dense<0.000000e+00> : vector<8x8xf32>
    %183 = tpu.matmul %180, %181, %cst_86 {dimension_numbers = #tpu.dot_dimension_numbers<[1], [1], [0], [0], [0, 0, 1, 0], [], []>} : vector<8x8xf32>, vector<8x8xf32>, vector<8x8xf32> -> vector<8x8xf32>
    %cst_87 = arith.constant dense<0xFF800000> : vector<8xf32>
    %184 = vector.multi_reduction <maximumf>, %183, %cst_87 [1] : vector<8x8xf32> to vector<8xf32>
    %185 = vector.shape_cast %184 : vector<8xf32> to vector<8x1xf32>
    %186 = vector.broadcast %185 : vector<8x1xf32> to vector<8x8xf32>
    %187 = arith.subf %183, %186 : vector<8x8xf32>
    %188 = math.exp %187 : vector<8x8xf32>
    %cst_88 = arith.constant dense<0.000000e+00> : vector<8xf32>
    %189 = vector.multi_reduction <add>, %188, %cst_88 [1] : vector<8x8xf32> to vector<8xf32>
    %190 = vector.shape_cast %189 : vector<8xf32> to vector<8x1xf32>
    %191 = tpu.reciprocal %190 {approx = true} : vector<8x1xf32> -> vector<8x1xf32>
    %192 = vector.broadcast %191 : vector<8x1xf32> to vector<8x8xf32>
    %193 = arith.mulf %188, %192 : vector<8x8xf32>
    %cst_89 = arith.constant dense<0.000000e+00> : vector<8x8xf32>
    %194 = tpu.matmul %193, %182, %cst_89 {dimension_numbers = #tpu.dot_dimension_numbers<[1], [0], [0], [1], [0, 0, 1, 1], [], []>} : vector<8x8xf32>, vector<8x8xf32>, vector<8x8xf32> -> vector<8x8xf32>
    %195 = vector.extract_strided_slice %171 {offsets = [0, 0], sizes = [8, 32], strides = [1, 1]} : vector<32x32xf32> to vector<8x32xf32>
    %cst_90 = arith.constant dense<0.000000e+00> : vector<8x32xf32>
    %196 = tpu.matmul %194, %195, %cst_90 {dimension_numbers = #tpu.dot_dimension_numbers<[1], [0], [0], [1], [0, 0, 1, 1], [], []>} : vector<8x8xf32>, vector<8x32xf32>, vector<8x32xf32> -> vector<8x32xf32>
    %197 = vector.extract_strided_slice %175 {offsets = [0, 8], sizes = [8, 8], strides = [1, 1]} : vector<8x32xf32> to vector<8x8xf32>
    %cst_91 = arith.constant 0.353553385 : f32
    %198 = vector.broadcast %cst_91 : f32 to vector<8x8xf32>
    %199 = arith.mulf %197, %198 : vector<8x8xf32>
    %200 = vector.extract_strided_slice %176 {offsets = [0, 8], sizes = [8, 8], strides = [1, 1]} : vector<8x32xf32> to vector<8x8xf32>
    %201 = vector.extract_strided_slice %177 {offsets = [0, 8], sizes = [8, 8], strides = [1, 1]} : vector<8x32xf32> to vector<8x8xf32>
    %cst_92 = arith.constant dense<0.000000e+00> : vector<8x8xf32>
    %202 = tpu.matmul %199, %200, %cst_92 {dimension_numbers = #tpu.dot_dimension_numbers<[1], [1], [0], [0], [0, 0, 1, 0], [], []>} : vector<8x8xf32>, vector<8x8xf32>, vector<8x8xf32> -> vector<8x8xf32>
    %cst_93 = arith.constant dense<0xFF800000> : vector<8xf32>
    %203 = vector.multi_reduction <maximumf>, %202, %cst_93 [1] : vector<8x8xf32> to vector<8xf32>
    %204 = vector.shape_cast %203 : vector<8xf32> to vector<8x1xf32>
    %205 = vector.broadcast %204 : vector<8x1xf32> to vector<8x8xf32>
    %206 = arith.subf %202, %205 : vector<8x8xf32>
    %207 = math.exp %206 : vector<8x8xf32>
    %cst_94 = arith.constant dense<0.000000e+00> : vector<8xf32>
    %208 = vector.multi_reduction <add>, %207, %cst_94 [1] : vector<8x8xf32> to vector<8xf32>
    %209 = vector.shape_cast %208 : vector<8xf32> to vector<8x1xf32>
    %210 = tpu.reciprocal %209 {approx = true} : vector<8x1xf32> -> vector<8x1xf32>
    %211 = vector.broadcast %210 : vector<8x1xf32> to vector<8x8xf32>
    %212 = arith.mulf %207, %211 : vector<8x8xf32>
    %cst_95 = arith.constant dense<0.000000e+00> : vector<8x8xf32>
    %213 = tpu.matmul %212, %201, %cst_95 {dimension_numbers = #tpu.dot_dimension_numbers<[1], [0], [0], [1], [0, 0, 1, 1], [], []>} : vector<8x8xf32>, vector<8x8xf32>, vector<8x8xf32> -> vector<8x8xf32>
    %214 = vector.extract_strided_slice %171 {offsets = [8, 0], sizes = [8, 32], strides = [1, 1]} : vector<32x32xf32> to vector<8x32xf32>
    %cst_96 = arith.constant dense<0.000000e+00> : vector<8x32xf32>
    %215 = tpu.matmul %213, %214, %cst_96 {dimension_numbers = #tpu.dot_dimension_numbers<[1], [0], [0], [1], [0, 0, 1, 1], [], []>} : vector<8x8xf32>, vector<8x32xf32>, vector<8x32xf32> -> vector<8x32xf32>
    %216 = arith.addf %196, %215 : vector<8x32xf32>
    %217 = vector.extract_strided_slice %175 {offsets = [0, 16], sizes = [8, 8], strides = [1, 1]} : vector<8x32xf32> to vector<8x8xf32>
    %cst_97 = arith.constant 0.353553385 : f32
    %218 = vector.broadcast %cst_97 : f32 to vector<8x8xf32>
    %219 = arith.mulf %217, %218 : vector<8x8xf32>
    %220 = vector.extract_strided_slice %176 {offsets = [0, 16], sizes = [8, 8], strides = [1, 1]} : vector<8x32xf32> to vector<8x8xf32>
    %221 = vector.extract_strided_slice %177 {offsets = [0, 16], sizes = [8, 8], strides = [1, 1]} : vector<8x32xf32> to vector<8x8xf32>
    %cst_98 = arith.constant dense<0.000000e+00> : vector<8x8xf32>
    %222 = tpu.matmul %219, %220, %cst_98 {dimension_numbers = #tpu.dot_dimension_numbers<[1], [1], [0], [0], [0, 0, 1, 0], [], []>} : vector<8x8xf32>, vector<8x8xf32>, vector<8x8xf32> -> vector<8x8xf32>
    %cst_99 = arith.constant dense<0xFF800000> : vector<8xf32>
    %223 = vector.multi_reduction <maximumf>, %222, %cst_99 [1] : vector<8x8xf32> to vector<8xf32>
    %224 = vector.shape_cast %223 : vector<8xf32> to vector<8x1xf32>
    %225 = vector.broadcast %224 : vector<8x1xf32> to vector<8x8xf32>
    %226 = arith.subf %222, %225 : vector<8x8xf32>
    %227 = math.exp %226 : vector<8x8xf32>
    %cst_100 = arith.constant dense<0.000000e+00> : vector<8xf32>
    %228 = vector.multi_reduction <add>, %227, %cst_100 [1] : vector<8x8xf32> to vector<8xf32>
    %229 = vector.shape_cast %228 : vector<8xf32> to vector<8x1xf32>
    %230 = tpu.reciprocal %229 {approx = true} : vector<8x1xf32> -> vector<8x1xf32>
    %231 = vector.broadcast %230 : vector<8x1xf32> to vector<8x8xf32>
    %232 = arith.mulf %227, %231 : vector<8x8xf32>
    %cst_101 = arith.constant dense<0.000000e+00> : vector<8x8xf32>
    %233 = tpu.matmul %232, %221, %cst_101 {dimension_numbers = #tpu.dot_dimension_numbers<[1], [0], [0], [1], [0, 0, 1, 1], [], []>} : vector<8x8xf32>, vector<8x8xf32>, vector<8x8xf32> -> vector<8x8xf32>
    %234 = vector.extract_strided_slice %171 {offsets = [16, 0], sizes = [8, 32], strides = [1, 1]} : vector<32x32xf32> to vector<8x32xf32>
    %cst_102 = arith.constant dense<0.000000e+00> : vector<8x32xf32>
    %235 = tpu.matmul %233, %234, %cst_102 {dimension_numbers = #tpu.dot_dimension_numbers<[1], [0], [0], [1], [0, 0, 1, 1], [], []>} : vector<8x8xf32>, vector<8x32xf32>, vector<8x32xf32> -> vector<8x32xf32>
    %236 = arith.addf %216, %235 : vector<8x32xf32>
    %237 = vector.extract_strided_slice %175 {offsets = [0, 24], sizes = [8, 8], strides = [1, 1]} : vector<8x32xf32> to vector<8x8xf32>
    %cst_103 = arith.constant 0.353553385 : f32
    %238 = vector.broadcast %cst_103 : f32 to vector<8x8xf32>
    %239 = arith.mulf %237, %238 : vector<8x8xf32>
    %240 = vector.extract_strided_slice %176 {offsets = [0, 24], sizes = [8, 8], strides = [1, 1]} : vector<8x32xf32> to vector<8x8xf32>
    %241 = vector.extract_strided_slice %177 {offsets = [0, 24], sizes = [8, 8], strides = [1, 1]} : vector<8x32xf32> to vector<8x8xf32>
    %cst_104 = arith.constant dense<0.000000e+00> : vector<8x8xf32>
    %242 = tpu.matmul %239, %240, %cst_104 {dimension_numbers = #tpu.dot_dimension_numbers<[1], [1], [0], [0], [0, 0, 1, 0], [], []>} : vector<8x8xf32>, vector<8x8xf32>, vector<8x8xf32> -> vector<8x8xf32>
    %cst_105 = arith.constant dense<0xFF800000> : vector<8xf32>
    %243 = vector.multi_reduction <maximumf>, %242, %cst_105 [1] : vector<8x8xf32> to vector<8xf32>
    %244 = vector.shape_cast %243 : vector<8xf32> to vector<8x1xf32>
    %245 = vector.broadcast %244 : vector<8x1xf32> to vector<8x8xf32>
    %246 = arith.subf %242, %245 : vector<8x8xf32>
    %247 = math.exp %246 : vector<8x8xf32>
    %cst_106 = arith.constant dense<0.000000e+00> : vector<8xf32>
    %248 = vector.multi_reduction <add>, %247, %cst_106 [1] : vector<8x8xf32> to vector<8xf32>
    %249 = vector.shape_cast %248 : vector<8xf32> to vector<8x1xf32>
    %250 = tpu.reciprocal %249 {approx = true} : vector<8x1xf32> -> vector<8x1xf32>
    %251 = vector.broadcast %250 : vector<8x1xf32> to vector<8x8xf32>
    %252 = arith.mulf %247, %251 : vector<8x8xf32>
    %cst_107 = arith.constant dense<0.000000e+00> : vector<8x8xf32>
    %253 = tpu.matmul %252, %241, %cst_107 {dimension_numbers = #tpu.dot_dimension_numbers<[1], [0], [0], [1], [0, 0, 1, 1], [], []>} : vector<8x8xf32>, vector<8x8xf32>, vector<8x8xf32> -> vector<8x8xf32>
    %254 = vector.extract_strided_slice %171 {offsets = [24, 0], sizes = [8, 32], strides = [1, 1]} : vector<32x32xf32> to vector<8x32xf32>
    %cst_108 = arith.constant dense<0.000000e+00> : vector<8x32xf32>
    %255 = tpu.matmul %253, %254, %cst_108 {dimension_numbers = #tpu.dot_dimension_numbers<[1], [0], [0], [1], [0, 0, 1, 1], [], []>} : vector<8x8xf32>, vector<8x32xf32>, vector<8x32xf32> -> vector<8x32xf32>
    %256 = arith.addf %236, %255 : vector<8x32xf32>
    %c0_109 = arith.constant 0 : index
    %c0_110 = arith.constant 0 : index
    %257 = vector.load %arg60[%c0_109, %c0_110] : memref<1x32xf32, #tpu.memory_space<vmem>>, vector<1x32xf32>
    %258 = vector.broadcast %257 : vector<1x32xf32> to vector<8x32xf32>
    %259 = arith.addf %256, %258 : vector<8x32xf32>
    %260 = arith.addf %168, %259 : vector<8x32xf32>
    %cst_111 = arith.constant dense<0.000000e+00> : vector<8xf32>
    %261 = vector.multi_reduction <add>, %260, %cst_111 [1] : vector<8x32xf32> to vector<8xf32>
    %262 = vector.shape_cast %261 : vector<8xf32> to vector<8x1xf32>
    %cst_112 = arith.constant 3.200000e+01 : f32
    %263 = vector.broadcast %cst_112 : f32 to vector<8x1xf32>
    %264 = arith.divf %262, %263 : vector<8x1xf32>
    %265 = vector.broadcast %264 : vector<8x1xf32> to vector<8x32xf32>
    %266 = arith.subf %260, %265 : vector<8x32xf32>
    %267 = arith.mulf %266, %266 : vector<8x32xf32>
    %cst_113 = arith.constant dense<0.000000e+00> : vector<8xf32>
    %268 = vector.multi_reduction <add>, %267, %cst_113 [1] : vector<8x32xf32> to vector<8xf32>
    %269 = vector.shape_cast %268 : vector<8xf32> to vector<8x1xf32>
    %cst_114 = arith.constant 3.200000e+01 : f32
    %270 = vector.broadcast %cst_114 : f32 to vector<8x1xf32>
    %271 = arith.divf %269, %270 : vector<8x1xf32>
    %cst_115 = arith.constant 9.99999974E-6 : f32
    %272 = vector.broadcast %cst_115 : f32 to vector<8x1xf32>
    %273 = arith.addf %271, %272 : vector<8x1xf32>
    %274 = math.rsqrt %273 : vector<8x1xf32>
    %275 = vector.broadcast %274 : vector<8x1xf32> to vector<8x32xf32>
    %276 = arith.mulf %266, %275 : vector<8x32xf32>
    %c0_116 = arith.constant 0 : index
    %c0_117 = arith.constant 0 : index
    %277 = vector.load %arg57[%c0_116, %c0_117] : memref<1x32xf32, #tpu.memory_space<vmem>>, vector<1x32xf32>
    %278 = vector.broadcast %277 : vector<1x32xf32> to vector<8x32xf32>
    %279 = arith.mulf %276, %278 : vector<8x32xf32>
    %c0_118 = arith.constant 0 : index
    %c0_119 = arith.constant 0 : index
    %280 = vector.load %arg56[%c0_118, %c0_119] : memref<1x32xf32, #tpu.memory_space<vmem>>, vector<1x32xf32>
    %281 = vector.broadcast %280 : vector<1x32xf32> to vector<8x32xf32>
    %282 = arith.addf %279, %281 : vector<8x32xf32>
    %c0_120 = arith.constant 0 : index
    %c0_121 = arith.constant 0 : index
    %283 = vector.load %arg64[%c0_120, %c0_121] : memref<32x32xf32, #tpu.memory_space<vmem>>, vector<32x32xf32>
    %cst_122 = arith.constant dense<0.000000e+00> : vector<8x32xf32>
    %284 = tpu.matmul %282, %283, %cst_122 {dimension_numbers = #tpu.dot_dimension_numbers<[1], [0], [0], [1], [0, 0, 1, 1], [], []>} : vector<8x32xf32>, vector<32x32xf32>, vector<8x32xf32> -> vector<8x32xf32>
    %c0_123 = arith.constant 0 : index
    %c0_124 = arith.constant 0 : index
    %285 = vector.load %arg54[%c0_123, %c0_124] : memref<1x32xf32, #tpu.memory_space<vmem>>, vector<1x32xf32>
    %286 = vector.broadcast %285 : vector<1x32xf32> to vector<8x32xf32>
    %287 = arith.addf %284, %286 : vector<8x32xf32>
    %cst_125 = arith.constant 0.000000e+00 : f32
    %288 = vector.broadcast %cst_125 : f32 to vector<8x32xf32>
    %289 = arith.maximumf %287, %288 : vector<8x32xf32>
    %c0_126 = arith.constant 0 : index
    %c0_127 = arith.constant 0 : index
    %290 = vector.load %arg65[%c0_126, %c0_127] : memref<32x32xf32, #tpu.memory_space<vmem>>, vector<32x32xf32>
    %cst_128 = arith.constant dense<0.000000e+00> : vector<8x32xf32>
    %291 = tpu.matmul %289, %290, %cst_128 {dimension_numbers = #tpu.dot_dimension_numbers<[1], [0], [0], [1], [0, 0, 1, 1], [], []>} : vector<8x32xf32>, vector<32x32xf32>, vector<8x32xf32> -> vector<8x32xf32>
    %c0_129 = arith.constant 0 : index
    %c0_130 = arith.constant 0 : index
    %292 = vector.load %arg55[%c0_129, %c0_130] : memref<1x32xf32, #tpu.memory_space<vmem>>, vector<1x32xf32>
    %293 = vector.broadcast %292 : vector<1x32xf32> to vector<8x32xf32>
    %294 = arith.addf %291, %293 : vector<8x32xf32>
    %295 = arith.addf %282, %294 : vector<8x32xf32>
    %cst_131 = arith.constant dense<0.000000e+00> : vector<8xf32>
    %296 = vector.multi_reduction <add>, %295, %cst_131 [1] : vector<8x32xf32> to vector<8xf32>
    %297 = vector.shape_cast %296 : vector<8xf32> to vector<8x1xf32>
    %cst_132 = arith.constant 3.200000e+01 : f32
    %298 = vector.broadcast %cst_132 : f32 to vector<8x1xf32>
    %299 = arith.divf %297, %298 : vector<8x1xf32>
    %300 = vector.broadcast %299 : vector<8x1xf32> to vector<8x32xf32>
    %301 = arith.subf %295, %300 : vector<8x32xf32>
    %302 = arith.mulf %301, %301 : vector<8x32xf32>
    %cst_133 = arith.constant dense<0.000000e+00> : vector<8xf32>
    %303 = vector.multi_reduction <add>, %302, %cst_133 [1] : vector<8x32xf32> to vector<8xf32>
    %304 = vector.shape_cast %303 : vector<8xf32> to vector<8x1xf32>
    %cst_134 = arith.constant 3.200000e+01 : f32
    %305 = vector.broadcast %cst_134 : f32 to vector<8x1xf32>
    %306 = arith.divf %304, %305 : vector<8x1xf32>
    %cst_135 = arith.constant 9.99999974E-6 : f32
    %307 = vector.broadcast %cst_135 : f32 to vector<8x1xf32>
    %308 = arith.addf %306, %307 : vector<8x1xf32>
    %309 = math.rsqrt %308 : vector<8x1xf32>
    %310 = vector.broadcast %309 : vector<8x1xf32> to vector<8x32xf32>
    %311 = arith.mulf %301, %310 : vector<8x32xf32>
    %c0_136 = arith.constant 0 : index
    %c0_137 = arith.constant 0 : index
    %312 = vector.load %arg59[%c0_136, %c0_137] : memref<1x32xf32, #tpu.memory_space<vmem>>, vector<1x32xf32>
    %313 = vector.broadcast %312 : vector<1x32xf32> to vector<8x32xf32>
    %314 = arith.mulf %311, %313 : vector<8x32xf32>
    %c0_138 = arith.constant 0 : index
    %c0_139 = arith.constant 0 : index
    %315 = vector.load %arg58[%c0_138, %c0_139] : memref<1x32xf32, #tpu.memory_space<vmem>>, vector<1x32xf32>
    %316 = vector.broadcast %315 : vector<1x32xf32> to vector<8x32xf32>
    %317 = arith.addf %314, %316 : vector<8x32xf32>
    %318 = tpu.iota {dimensions = array<i32: 0>} : vector<8x8xi32>
    %319 = tpu.iota {dimensions = array<i32: 1>} : vector<8x8xi32>
    %320 = arith.cmpi sge, %318, %319 : vector<8x8xi32>
    %321 = arith.extui %320 : vector<8x8xi1> to vector<8x8xi32>
    %322 = arith.sitofp %321 : vector<8x8xi32> to vector<8x8xf32>
    %c0_140 = arith.constant 0 : index
    %c0_141 = arith.constant 0 : index
    %323 = vector.load %arg21[%c0_140, %c0_141] : memref<32x96xf32, #tpu.memory_space<vmem>>, vector<32x96xf32>
    %c0_142 = arith.constant 0 : index
    %c0_143 = arith.constant 0 : index
    %324 = vector.load %arg19[%c0_142, %c0_143] : memref<1x96xf32, #tpu.memory_space<vmem>>, vector<1x96xf32>
    %c0_144 = arith.constant 0 : index
    %c0_145 = arith.constant 0 : index
    %325 = vector.load %arg20[%c0_144, %c0_145] : memref<32x32xf32, #tpu.memory_space<vmem>>, vector<32x32xf32>
    %cst_146 = arith.constant dense<0.000000e+00> : vector<8x96xf32>
    %326 = tpu.matmul %19, %323, %cst_146 {dimension_numbers = #tpu.dot_dimension_numbers<[1], [0], [0], [1], [0, 0, 1, 1], [], []>} : vector<8x32xf32>, vector<32x96xf32>, vector<8x96xf32> -> vector<8x96xf32>
    %327 = vector.broadcast %324 : vector<1x96xf32> to vector<8x96xf32>
    %328 = arith.addf %326, %327 : vector<8x96xf32>
    %329 = vector.extract_strided_slice %328 {offsets = [0, 0], sizes = [8, 32], strides = [1, 1]} : vector<8x96xf32> to vector<8x32xf32>
    %330 = vector.extract_strided_slice %328 {offsets = [0, 32], sizes = [8, 32], strides = [1, 1]} : vector<8x96xf32> to vector<8x32xf32>
    %331 = vector.extract_strided_slice %328 {offsets = [0, 64], sizes = [8, 32], strides = [1, 1]} : vector<8x96xf32> to vector<8x32xf32>
    %332 = vector.extract_strided_slice %329 {offsets = [0, 0], sizes = [8, 8], strides = [1, 1]} : vector<8x32xf32> to vector<8x8xf32>
    %cst_147 = arith.constant 0.353553385 : f32
    %333 = vector.broadcast %cst_147 : f32 to vector<8x8xf32>
    %334 = arith.mulf %332, %333 : vector<8x8xf32>
    %335 = vector.extract_strided_slice %330 {offsets = [0, 0], sizes = [8, 8], strides = [1, 1]} : vector<8x32xf32> to vector<8x8xf32>
    %336 = vector.extract_strided_slice %331 {offsets = [0, 0], sizes = [8, 8], strides = [1, 1]} : vector<8x32xf32> to vector<8x8xf32>
    %cst_148 = arith.constant dense<0.000000e+00> : vector<8x8xf32>
    %337 = tpu.matmul %334, %335, %cst_148 {dimension_numbers = #tpu.dot_dimension_numbers<[1], [1], [0], [0], [0, 0, 1, 0], [], []>} : vector<8x8xf32>, vector<8x8xf32>, vector<8x8xf32> -> vector<8x8xf32>
    %338 = arith.addf %337, %322 : vector<8x8xf32>
    %cst_149 = arith.constant dense<0xFF800000> : vector<8xf32>
    %339 = vector.multi_reduction <maximumf>, %338, %cst_149 [1] : vector<8x8xf32> to vector<8xf32>
    %340 = vector.shape_cast %339 : vector<8xf32> to vector<8x1xf32>
    %341 = vector.broadcast %340 : vector<8x1xf32> to vector<8x8xf32>
    %342 = arith.subf %338, %341 : vector<8x8xf32>
    %343 = math.exp %342 : vector<8x8xf32>
    %cst_150 = arith.constant dense<0.000000e+00> : vector<8xf32>
    %344 = vector.multi_reduction <add>, %343, %cst_150 [1] : vector<8x8xf32> to vector<8xf32>
    %345 = vector.shape_cast %344 : vector<8xf32> to vector<8x1xf32>
    %346 = tpu.reciprocal %345 {approx = true} : vector<8x1xf32> -> vector<8x1xf32>
    %347 = vector.broadcast %346 : vector<8x1xf32> to vector<8x8xf32>
    %348 = arith.mulf %343, %347 : vector<8x8xf32>
    %cst_151 = arith.constant dense<0.000000e+00> : vector<8x8xf32>
    %349 = tpu.matmul %348, %336, %cst_151 {dimension_numbers = #tpu.dot_dimension_numbers<[1], [0], [0], [1], [0, 0, 1, 1], [], []>} : vector<8x8xf32>, vector<8x8xf32>, vector<8x8xf32> -> vector<8x8xf32>
    %350 = vector.extract_strided_slice %325 {offsets = [0, 0], sizes = [8, 32], strides = [1, 1]} : vector<32x32xf32> to vector<8x32xf32>
    %cst_152 = arith.constant dense<0.000000e+00> : vector<8x32xf32>
    %351 = tpu.matmul %349, %350, %cst_152 {dimension_numbers = #tpu.dot_dimension_numbers<[1], [0], [0], [1], [0, 0, 1, 1], [], []>} : vector<8x8xf32>, vector<8x32xf32>, vector<8x32xf32> -> vector<8x32xf32>
    %352 = vector.extract_strided_slice %329 {offsets = [0, 8], sizes = [8, 8], strides = [1, 1]} : vector<8x32xf32> to vector<8x8xf32>
    %cst_153 = arith.constant 0.353553385 : f32
    %353 = vector.broadcast %cst_153 : f32 to vector<8x8xf32>
    %354 = arith.mulf %352, %353 : vector<8x8xf32>
    %355 = vector.extract_strided_slice %330 {offsets = [0, 8], sizes = [8, 8], strides = [1, 1]} : vector<8x32xf32> to vector<8x8xf32>
    %356 = vector.extract_strided_slice %331 {offsets = [0, 8], sizes = [8, 8], strides = [1, 1]} : vector<8x32xf32> to vector<8x8xf32>
    %cst_154 = arith.constant dense<0.000000e+00> : vector<8x8xf32>
    %357 = tpu.matmul %354, %355, %cst_154 {dimension_numbers = #tpu.dot_dimension_numbers<[1], [1], [0], [0], [0, 0, 1, 0], [], []>} : vector<8x8xf32>, vector<8x8xf32>, vector<8x8xf32> -> vector<8x8xf32>
    %358 = arith.addf %357, %322 : vector<8x8xf32>
    %cst_155 = arith.constant dense<0xFF800000> : vector<8xf32>
    %359 = vector.multi_reduction <maximumf>, %358, %cst_155 [1] : vector<8x8xf32> to vector<8xf32>
    %360 = vector.shape_cast %359 : vector<8xf32> to vector<8x1xf32>
    %361 = vector.broadcast %360 : vector<8x1xf32> to vector<8x8xf32>
    %362 = arith.subf %358, %361 : vector<8x8xf32>
    %363 = math.exp %362 : vector<8x8xf32>
    %cst_156 = arith.constant dense<0.000000e+00> : vector<8xf32>
    %364 = vector.multi_reduction <add>, %363, %cst_156 [1] : vector<8x8xf32> to vector<8xf32>
    %365 = vector.shape_cast %364 : vector<8xf32> to vector<8x1xf32>
    %366 = tpu.reciprocal %365 {approx = true} : vector<8x1xf32> -> vector<8x1xf32>
    %367 = vector.broadcast %366 : vector<8x1xf32> to vector<8x8xf32>
    %368 = arith.mulf %363, %367 : vector<8x8xf32>
    %cst_157 = arith.constant dense<0.000000e+00> : vector<8x8xf32>
    %369 = tpu.matmul %368, %356, %cst_157 {dimension_numbers = #tpu.dot_dimension_numbers<[1], [0], [0], [1], [0, 0, 1, 1], [], []>} : vector<8x8xf32>, vector<8x8xf32>, vector<8x8xf32> -> vector<8x8xf32>
    %370 = vector.extract_strided_slice %325 {offsets = [8, 0], sizes = [8, 32], strides = [1, 1]} : vector<32x32xf32> to vector<8x32xf32>
    %cst_158 = arith.constant dense<0.000000e+00> : vector<8x32xf32>
    %371 = tpu.matmul %369, %370, %cst_158 {dimension_numbers = #tpu.dot_dimension_numbers<[1], [0], [0], [1], [0, 0, 1, 1], [], []>} : vector<8x8xf32>, vector<8x32xf32>, vector<8x32xf32> -> vector<8x32xf32>
    %372 = arith.addf %351, %371 : vector<8x32xf32>
    %373 = vector.extract_strided_slice %329 {offsets = [0, 16], sizes = [8, 8], strides = [1, 1]} : vector<8x32xf32> to vector<8x8xf32>
    %cst_159 = arith.constant 0.353553385 : f32
    %374 = vector.broadcast %cst_159 : f32 to vector<8x8xf32>
    %375 = arith.mulf %373, %374 : vector<8x8xf32>
    %376 = vector.extract_strided_slice %330 {offsets = [0, 16], sizes = [8, 8], strides = [1, 1]} : vector<8x32xf32> to vector<8x8xf32>
    %377 = vector.extract_strided_slice %331 {offsets = [0, 16], sizes = [8, 8], strides = [1, 1]} : vector<8x32xf32> to vector<8x8xf32>
    %cst_160 = arith.constant dense<0.000000e+00> : vector<8x8xf32>
    %378 = tpu.matmul %375, %376, %cst_160 {dimension_numbers = #tpu.dot_dimension_numbers<[1], [1], [0], [0], [0, 0, 1, 0], [], []>} : vector<8x8xf32>, vector<8x8xf32>, vector<8x8xf32> -> vector<8x8xf32>
    %379 = arith.addf %378, %322 : vector<8x8xf32>
    %cst_161 = arith.constant dense<0xFF800000> : vector<8xf32>
    %380 = vector.multi_reduction <maximumf>, %379, %cst_161 [1] : vector<8x8xf32> to vector<8xf32>
    %381 = vector.shape_cast %380 : vector<8xf32> to vector<8x1xf32>
    %382 = vector.broadcast %381 : vector<8x1xf32> to vector<8x8xf32>
    %383 = arith.subf %379, %382 : vector<8x8xf32>
    %384 = math.exp %383 : vector<8x8xf32>
    %cst_162 = arith.constant dense<0.000000e+00> : vector<8xf32>
    %385 = vector.multi_reduction <add>, %384, %cst_162 [1] : vector<8x8xf32> to vector<8xf32>
    %386 = vector.shape_cast %385 : vector<8xf32> to vector<8x1xf32>
    %387 = tpu.reciprocal %386 {approx = true} : vector<8x1xf32> -> vector<8x1xf32>
    %388 = vector.broadcast %387 : vector<8x1xf32> to vector<8x8xf32>
    %389 = arith.mulf %384, %388 : vector<8x8xf32>
    %cst_163 = arith.constant dense<0.000000e+00> : vector<8x8xf32>
    %390 = tpu.matmul %389, %377, %cst_163 {dimension_numbers = #tpu.dot_dimension_numbers<[1], [0], [0], [1], [0, 0, 1, 1], [], []>} : vector<8x8xf32>, vector<8x8xf32>, vector<8x8xf32> -> vector<8x8xf32>
    %391 = vector.extract_strided_slice %325 {offsets = [16, 0], sizes = [8, 32], strides = [1, 1]} : vector<32x32xf32> to vector<8x32xf32>
    %cst_164 = arith.constant dense<0.000000e+00> : vector<8x32xf32>
    %392 = tpu.matmul %390, %391, %cst_164 {dimension_numbers = #tpu.dot_dimension_numbers<[1], [0], [0], [1], [0, 0, 1, 1], [], []>} : vector<8x8xf32>, vector<8x32xf32>, vector<8x32xf32> -> vector<8x32xf32>
    %393 = arith.addf %372, %392 : vector<8x32xf32>
    %394 = vector.extract_strided_slice %329 {offsets = [0, 24], sizes = [8, 8], strides = [1, 1]} : vector<8x32xf32> to vector<8x8xf32>
    %cst_165 = arith.constant 0.353553385 : f32
    %395 = vector.broadcast %cst_165 : f32 to vector<8x8xf32>
    %396 = arith.mulf %394, %395 : vector<8x8xf32>
    %397 = vector.extract_strided_slice %330 {offsets = [0, 24], sizes = [8, 8], strides = [1, 1]} : vector<8x32xf32> to vector<8x8xf32>
    %398 = vector.extract_strided_slice %331 {offsets = [0, 24], sizes = [8, 8], strides = [1, 1]} : vector<8x32xf32> to vector<8x8xf32>
    %cst_166 = arith.constant dense<0.000000e+00> : vector<8x8xf32>
    %399 = tpu.matmul %396, %397, %cst_166 {dimension_numbers = #tpu.dot_dimension_numbers<[1], [1], [0], [0], [0, 0, 1, 0], [], []>} : vector<8x8xf32>, vector<8x8xf32>, vector<8x8xf32> -> vector<8x8xf32>
    %400 = arith.addf %399, %322 : vector<8x8xf32>
    %cst_167 = arith.constant dense<0xFF800000> : vector<8xf32>
    %401 = vector.multi_reduction <maximumf>, %400, %cst_167 [1] : vector<8x8xf32> to vector<8xf32>
    %402 = vector.shape_cast %401 : vector<8xf32> to vector<8x1xf32>
    %403 = vector.broadcast %402 : vector<8x1xf32> to vector<8x8xf32>
    %404 = arith.subf %400, %403 : vector<8x8xf32>
    %405 = math.exp %404 : vector<8x8xf32>
    %cst_168 = arith.constant dense<0.000000e+00> : vector<8xf32>
    %406 = vector.multi_reduction <add>, %405, %cst_168 [1] : vector<8x8xf32> to vector<8xf32>
    %407 = vector.shape_cast %406 : vector<8xf32> to vector<8x1xf32>
    %408 = tpu.reciprocal %407 {approx = true} : vector<8x1xf32> -> vector<8x1xf32>
    %409 = vector.broadcast %408 : vector<8x1xf32> to vector<8x8xf32>
    %410 = arith.mulf %405, %409 : vector<8x8xf32>
    %cst_169 = arith.constant dense<0.000000e+00> : vector<8x8xf32>
    %411 = tpu.matmul %410, %398, %cst_169 {dimension_numbers = #tpu.dot_dimension_numbers<[1], [0], [0], [1], [0, 0, 1, 1], [], []>} : vector<8x8xf32>, vector<8x8xf32>, vector<8x8xf32> -> vector<8x8xf32>
    %412 = vector.extract_strided_slice %325 {offsets = [24, 0], sizes = [8, 32], strides = [1, 1]} : vector<32x32xf32> to vector<8x32xf32>
    %cst_170 = arith.constant dense<0.000000e+00> : vector<8x32xf32>
    %413 = tpu.matmul %411, %412, %cst_170 {dimension_numbers = #tpu.dot_dimension_numbers<[1], [0], [0], [1], [0, 0, 1, 1], [], []>} : vector<8x8xf32>, vector<8x32xf32>, vector<8x32xf32> -> vector<8x32xf32>
    %414 = arith.addf %393, %413 : vector<8x32xf32>
    %c0_171 = arith.constant 0 : index
    %c0_172 = arith.constant 0 : index
    %415 = vector.load %arg18[%c0_171, %c0_172] : memref<1x32xf32, #tpu.memory_space<vmem>>, vector<1x32xf32>
    %416 = vector.broadcast %415 : vector<1x32xf32> to vector<8x32xf32>
    %417 = arith.addf %414, %416 : vector<8x32xf32>
    %418 = arith.addf %19, %417 : vector<8x32xf32>
    %cst_173 = arith.constant dense<0.000000e+00> : vector<8xf32>
    %419 = vector.multi_reduction <add>, %418, %cst_173 [1] : vector<8x32xf32> to vector<8xf32>
    %420 = vector.shape_cast %419 : vector<8xf32> to vector<8x1xf32>
    %cst_174 = arith.constant 3.200000e+01 : f32
    %421 = vector.broadcast %cst_174 : f32 to vector<8x1xf32>
    %422 = arith.divf %420, %421 : vector<8x1xf32>
    %423 = vector.broadcast %422 : vector<8x1xf32> to vector<8x32xf32>
    %424 = arith.subf %418, %423 : vector<8x32xf32>
    %425 = arith.mulf %424, %424 : vector<8x32xf32>
    %cst_175 = arith.constant dense<0.000000e+00> : vector<8xf32>
    %426 = vector.multi_reduction <add>, %425, %cst_175 [1] : vector<8x32xf32> to vector<8xf32>
    %427 = vector.shape_cast %426 : vector<8xf32> to vector<8x1xf32>
    %cst_176 = arith.constant 3.200000e+01 : f32
    %428 = vector.broadcast %cst_176 : f32 to vector<8x1xf32>
    %429 = arith.divf %427, %428 : vector<8x1xf32>
    %cst_177 = arith.constant 9.99999974E-6 : f32
    %430 = vector.broadcast %cst_177 : f32 to vector<8x1xf32>
    %431 = arith.addf %429, %430 : vector<8x1xf32>
    %432 = math.rsqrt %431 : vector<8x1xf32>
    %433 = vector.broadcast %432 : vector<8x1xf32> to vector<8x32xf32>
    %434 = arith.mulf %424, %433 : vector<8x32xf32>
    %c0_178 = arith.constant 0 : index
    %c0_179 = arith.constant 0 : index
    %435 = vector.load %arg13[%c0_178, %c0_179] : memref<1x32xf32, #tpu.memory_space<vmem>>, vector<1x32xf32>
    %436 = vector.broadcast %435 : vector<1x32xf32> to vector<8x32xf32>
    %437 = arith.mulf %434, %436 : vector<8x32xf32>
    %c0_180 = arith.constant 0 : index
    %c0_181 = arith.constant 0 : index
    %438 = vector.load %arg12[%c0_180, %c0_181] : memref<1x32xf32, #tpu.memory_space<vmem>>, vector<1x32xf32>
    %439 = vector.broadcast %438 : vector<1x32xf32> to vector<8x32xf32>
    %440 = arith.addf %437, %439 : vector<8x32xf32>
    %c0_182 = arith.constant 0 : index
    %c0_183 = arith.constant 0 : index
    %441 = vector.load %arg11[%c0_182, %c0_183] : memref<32x96xf32, #tpu.memory_space<vmem>>, vector<32x96xf32>
    %c0_184 = arith.constant 0 : index
    %c0_185 = arith.constant 0 : index
    %442 = vector.load %arg9[%c0_184, %c0_185] : memref<1x96xf32, #tpu.memory_space<vmem>>, vector<1x96xf32>
    %c0_186 = arith.constant 0 : index
    %c0_187 = arith.constant 0 : index
    %443 = vector.load %arg10[%c0_186, %c0_187] : memref<32x32xf32, #tpu.memory_space<vmem>>, vector<32x32xf32>
    %444 = vector.extract_strided_slice %441 {offsets = [0, 0], sizes = [32, 32], strides = [1, 1]} : vector<32x96xf32> to vector<32x32xf32>
    %cst_188 = arith.constant dense<0.000000e+00> : vector<8x32xf32>
    %445 = tpu.matmul %440, %444, %cst_188 {dimension_numbers = #tpu.dot_dimension_numbers<[1], [0], [0], [1], [0, 0, 1, 1], [], []>} : vector<8x32xf32>, vector<32x32xf32>, vector<8x32xf32> -> vector<8x32xf32>
    %446 = vector.extract_strided_slice %442 {offsets = [0, 0], sizes = [1, 32], strides = [1, 1]} : vector<1x96xf32> to vector<1x32xf32>
    %447 = vector.broadcast %446 : vector<1x32xf32> to vector<8x32xf32>
    %448 = arith.addf %445, %447 : vector<8x32xf32>
    %449 = vector.extract_strided_slice %441 {offsets = [0, 32], sizes = [32, 64], strides = [1, 1]} : vector<32x96xf32> to vector<32x64xf32>
    %cst_189 = arith.constant dense<0.000000e+00> : vector<8x64xf32>
    %450 = tpu.matmul %317, %449, %cst_189 {dimension_numbers = #tpu.dot_dimension_numbers<[1], [0], [0], [1], [0, 0, 1, 1], [], []>} : vector<8x32xf32>, vector<32x64xf32>, vector<8x64xf32> -> vector<8x64xf32>
    %451 = vector.extract_strided_slice %442 {offsets = [0, 32], sizes = [1, 64], strides = [1, 1]} : vector<1x96xf32> to vector<1x64xf32>
    %452 = vector.broadcast %451 : vector<1x64xf32> to vector<8x64xf32>
    %453 = arith.addf %450, %452 : vector<8x64xf32>
    %454 = vector.extract_strided_slice %453 {offsets = [0, 0], sizes = [8, 32], strides = [1, 1]} : vector<8x64xf32> to vector<8x32xf32>
    %455 = vector.extract_strided_slice %453 {offsets = [0, 32], sizes = [8, 32], strides = [1, 1]} : vector<8x64xf32> to vector<8x32xf32>
    %456 = vector.extract_strided_slice %448 {offsets = [0, 0], sizes = [8, 8], strides = [1, 1]} : vector<8x32xf32> to vector<8x8xf32>
    %cst_190 = arith.constant 0.353553385 : f32
    %457 = vector.broadcast %cst_190 : f32 to vector<8x8xf32>
    %458 = arith.mulf %456, %457 : vector<8x8xf32>
    %459 = vector.extract_strided_slice %454 {offsets = [0, 0], sizes = [8, 8], strides = [1, 1]} : vector<8x32xf32> to vector<8x8xf32>
    %460 = vector.extract_strided_slice %455 {offsets = [0, 0], sizes = [8, 8], strides = [1, 1]} : vector<8x32xf32> to vector<8x8xf32>
    %cst_191 = arith.constant dense<0.000000e+00> : vector<8x8xf32>
    %461 = tpu.matmul %458, %459, %cst_191 {dimension_numbers = #tpu.dot_dimension_numbers<[1], [1], [0], [0], [0, 0, 1, 0], [], []>} : vector<8x8xf32>, vector<8x8xf32>, vector<8x8xf32> -> vector<8x8xf32>
    %cst_192 = arith.constant dense<0xFF800000> : vector<8xf32>
    %462 = vector.multi_reduction <maximumf>, %461, %cst_192 [1] : vector<8x8xf32> to vector<8xf32>
    %463 = vector.shape_cast %462 : vector<8xf32> to vector<8x1xf32>
    %464 = vector.broadcast %463 : vector<8x1xf32> to vector<8x8xf32>
    %465 = arith.subf %461, %464 : vector<8x8xf32>
    %466 = math.exp %465 : vector<8x8xf32>
    %cst_193 = arith.constant dense<0.000000e+00> : vector<8xf32>
    %467 = vector.multi_reduction <add>, %466, %cst_193 [1] : vector<8x8xf32> to vector<8xf32>
    %468 = vector.shape_cast %467 : vector<8xf32> to vector<8x1xf32>
    %469 = tpu.reciprocal %468 {approx = true} : vector<8x1xf32> -> vector<8x1xf32>
    %470 = vector.broadcast %469 : vector<8x1xf32> to vector<8x8xf32>
    %471 = arith.mulf %466, %470 : vector<8x8xf32>
    %cst_194 = arith.constant dense<0.000000e+00> : vector<8x8xf32>
    %472 = tpu.matmul %471, %460, %cst_194 {dimension_numbers = #tpu.dot_dimension_numbers<[1], [0], [0], [1], [0, 0, 1, 1], [], []>} : vector<8x8xf32>, vector<8x8xf32>, vector<8x8xf32> -> vector<8x8xf32>
    %473 = vector.extract_strided_slice %443 {offsets = [0, 0], sizes = [8, 32], strides = [1, 1]} : vector<32x32xf32> to vector<8x32xf32>
    %cst_195 = arith.constant dense<0.000000e+00> : vector<8x32xf32>
    %474 = tpu.matmul %472, %473, %cst_195 {dimension_numbers = #tpu.dot_dimension_numbers<[1], [0], [0], [1], [0, 0, 1, 1], [], []>} : vector<8x8xf32>, vector<8x32xf32>, vector<8x32xf32> -> vector<8x32xf32>
    %475 = vector.extract_strided_slice %448 {offsets = [0, 8], sizes = [8, 8], strides = [1, 1]} : vector<8x32xf32> to vector<8x8xf32>
    %cst_196 = arith.constant 0.353553385 : f32
    %476 = vector.broadcast %cst_196 : f32 to vector<8x8xf32>
    %477 = arith.mulf %475, %476 : vector<8x8xf32>
    %478 = vector.extract_strided_slice %454 {offsets = [0, 8], sizes = [8, 8], strides = [1, 1]} : vector<8x32xf32> to vector<8x8xf32>
    %479 = vector.extract_strided_slice %455 {offsets = [0, 8], sizes = [8, 8], strides = [1, 1]} : vector<8x32xf32> to vector<8x8xf32>
    %cst_197 = arith.constant dense<0.000000e+00> : vector<8x8xf32>
    %480 = tpu.matmul %477, %478, %cst_197 {dimension_numbers = #tpu.dot_dimension_numbers<[1], [1], [0], [0], [0, 0, 1, 0], [], []>} : vector<8x8xf32>, vector<8x8xf32>, vector<8x8xf32> -> vector<8x8xf32>
    %cst_198 = arith.constant dense<0xFF800000> : vector<8xf32>
    %481 = vector.multi_reduction <maximumf>, %480, %cst_198 [1] : vector<8x8xf32> to vector<8xf32>
    %482 = vector.shape_cast %481 : vector<8xf32> to vector<8x1xf32>
    %483 = vector.broadcast %482 : vector<8x1xf32> to vector<8x8xf32>
    %484 = arith.subf %480, %483 : vector<8x8xf32>
    %485 = math.exp %484 : vector<8x8xf32>
    %cst_199 = arith.constant dense<0.000000e+00> : vector<8xf32>
    %486 = vector.multi_reduction <add>, %485, %cst_199 [1] : vector<8x8xf32> to vector<8xf32>
    %487 = vector.shape_cast %486 : vector<8xf32> to vector<8x1xf32>
    %488 = tpu.reciprocal %487 {approx = true} : vector<8x1xf32> -> vector<8x1xf32>
    %489 = vector.broadcast %488 : vector<8x1xf32> to vector<8x8xf32>
    %490 = arith.mulf %485, %489 : vector<8x8xf32>
    %cst_200 = arith.constant dense<0.000000e+00> : vector<8x8xf32>
    %491 = tpu.matmul %490, %479, %cst_200 {dimension_numbers = #tpu.dot_dimension_numbers<[1], [0], [0], [1], [0, 0, 1, 1], [], []>} : vector<8x8xf32>, vector<8x8xf32>, vector<8x8xf32> -> vector<8x8xf32>
    %492 = vector.extract_strided_slice %443 {offsets = [8, 0], sizes = [8, 32], strides = [1, 1]} : vector<32x32xf32> to vector<8x32xf32>
    %cst_201 = arith.constant dense<0.000000e+00> : vector<8x32xf32>
    %493 = tpu.matmul %491, %492, %cst_201 {dimension_numbers = #tpu.dot_dimension_numbers<[1], [0], [0], [1], [0, 0, 1, 1], [], []>} : vector<8x8xf32>, vector<8x32xf32>, vector<8x32xf32> -> vector<8x32xf32>
    %494 = arith.addf %474, %493 : vector<8x32xf32>
    %495 = vector.extract_strided_slice %448 {offsets = [0, 16], sizes = [8, 8], strides = [1, 1]} : vector<8x32xf32> to vector<8x8xf32>
    %cst_202 = arith.constant 0.353553385 : f32
    %496 = vector.broadcast %cst_202 : f32 to vector<8x8xf32>
    %497 = arith.mulf %495, %496 : vector<8x8xf32>
    %498 = vector.extract_strided_slice %454 {offsets = [0, 16], sizes = [8, 8], strides = [1, 1]} : vector<8x32xf32> to vector<8x8xf32>
    %499 = vector.extract_strided_slice %455 {offsets = [0, 16], sizes = [8, 8], strides = [1, 1]} : vector<8x32xf32> to vector<8x8xf32>
    %cst_203 = arith.constant dense<0.000000e+00> : vector<8x8xf32>
    %500 = tpu.matmul %497, %498, %cst_203 {dimension_numbers = #tpu.dot_dimension_numbers<[1], [1], [0], [0], [0, 0, 1, 0], [], []>} : vector<8x8xf32>, vector<8x8xf32>, vector<8x8xf32> -> vector<8x8xf32>
    %cst_204 = arith.constant dense<0xFF800000> : vector<8xf32>
    %501 = vector.multi_reduction <maximumf>, %500, %cst_204 [1] : vector<8x8xf32> to vector<8xf32>
    %502 = vector.shape_cast %501 : vector<8xf32> to vector<8x1xf32>
    %503 = vector.broadcast %502 : vector<8x1xf32> to vector<8x8xf32>
    %504 = arith.subf %500, %503 : vector<8x8xf32>
    %505 = math.exp %504 : vector<8x8xf32>
    %cst_205 = arith.constant dense<0.000000e+00> : vector<8xf32>
    %506 = vector.multi_reduction <add>, %505, %cst_205 [1] : vector<8x8xf32> to vector<8xf32>
    %507 = vector.shape_cast %506 : vector<8xf32> to vector<8x1xf32>
    %508 = tpu.reciprocal %507 {approx = true} : vector<8x1xf32> -> vector<8x1xf32>
    %509 = vector.broadcast %508 : vector<8x1xf32> to vector<8x8xf32>
    %510 = arith.mulf %505, %509 : vector<8x8xf32>
    %cst_206 = arith.constant dense<0.000000e+00> : vector<8x8xf32>
    %511 = tpu.matmul %510, %499, %cst_206 {dimension_numbers = #tpu.dot_dimension_numbers<[1], [0], [0], [1], [0, 0, 1, 1], [], []>} : vector<8x8xf32>, vector<8x8xf32>, vector<8x8xf32> -> vector<8x8xf32>
    %512 = vector.extract_strided_slice %443 {offsets = [16, 0], sizes = [8, 32], strides = [1, 1]} : vector<32x32xf32> to vector<8x32xf32>
    %cst_207 = arith.constant dense<0.000000e+00> : vector<8x32xf32>
    %513 = tpu.matmul %511, %512, %cst_207 {dimension_numbers = #tpu.dot_dimension_numbers<[1], [0], [0], [1], [0, 0, 1, 1], [], []>} : vector<8x8xf32>, vector<8x32xf32>, vector<8x32xf32> -> vector<8x32xf32>
    %514 = arith.addf %494, %513 : vector<8x32xf32>
    %515 = vector.extract_strided_slice %448 {offsets = [0, 24], sizes = [8, 8], strides = [1, 1]} : vector<8x32xf32> to vector<8x8xf32>
    %cst_208 = arith.constant 0.353553385 : f32
    %516 = vector.broadcast %cst_208 : f32 to vector<8x8xf32>
    %517 = arith.mulf %515, %516 : vector<8x8xf32>
    %518 = vector.extract_strided_slice %454 {offsets = [0, 24], sizes = [8, 8], strides = [1, 1]} : vector<8x32xf32> to vector<8x8xf32>
    %519 = vector.extract_strided_slice %455 {offsets = [0, 24], sizes = [8, 8], strides = [1, 1]} : vector<8x32xf32> to vector<8x8xf32>
    %cst_209 = arith.constant dense<0.000000e+00> : vector<8x8xf32>
    %520 = tpu.matmul %517, %518, %cst_209 {dimension_numbers = #tpu.dot_dimension_numbers<[1], [1], [0], [0], [0, 0, 1, 0], [], []>} : vector<8x8xf32>, vector<8x8xf32>, vector<8x8xf32> -> vector<8x8xf32>
    %cst_210 = arith.constant dense<0xFF800000> : vector<8xf32>
    %521 = vector.multi_reduction <maximumf>, %520, %cst_210 [1] : vector<8x8xf32> to vector<8xf32>
    %522 = vector.shape_cast %521 : vector<8xf32> to vector<8x1xf32>
    %523 = vector.broadcast %522 : vector<8x1xf32> to vector<8x8xf32>
    %524 = arith.subf %520, %523 : vector<8x8xf32>
    %525 = math.exp %524 : vector<8x8xf32>
    %cst_211 = arith.constant dense<0.000000e+00> : vector<8xf32>
    %526 = vector.multi_reduction <add>, %525, %cst_211 [1] : vector<8x8xf32> to vector<8xf32>
    %527 = vector.shape_cast %526 : vector<8xf32> to vector<8x1xf32>
    %528 = tpu.reciprocal %527 {approx = true} : vector<8x1xf32> -> vector<8x1xf32>
    %529 = vector.broadcast %528 : vector<8x1xf32> to vector<8x8xf32>
    %530 = arith.mulf %525, %529 : vector<8x8xf32>
    %cst_212 = arith.constant dense<0.000000e+00> : vector<8x8xf32>
    %531 = tpu.matmul %530, %519, %cst_212 {dimension_numbers = #tpu.dot_dimension_numbers<[1], [0], [0], [1], [0, 0, 1, 1], [], []>} : vector<8x8xf32>, vector<8x8xf32>, vector<8x8xf32> -> vector<8x8xf32>
    %532 = vector.extract_strided_slice %443 {offsets = [24, 0], sizes = [8, 32], strides = [1, 1]} : vector<32x32xf32> to vector<8x32xf32>
    %cst_213 = arith.constant dense<0.000000e+00> : vector<8x32xf32>
    %533 = tpu.matmul %531, %532, %cst_213 {dimension_numbers = #tpu.dot_dimension_numbers<[1], [0], [0], [1], [0, 0, 1, 1], [], []>} : vector<8x8xf32>, vector<8x32xf32>, vector<8x32xf32> -> vector<8x32xf32>
    %534 = arith.addf %514, %533 : vector<8x32xf32>
    %c0_214 = arith.constant 0 : index
    %c0_215 = arith.constant 0 : index
    %535 = vector.load %arg8[%c0_214, %c0_215] : memref<1x32xf32, #tpu.memory_space<vmem>>, vector<1x32xf32>
    %536 = vector.broadcast %535 : vector<1x32xf32> to vector<8x32xf32>
    %537 = arith.addf %534, %536 : vector<8x32xf32>
    %538 = arith.addf %440, %537 : vector<8x32xf32>
    %cst_216 = arith.constant dense<0.000000e+00> : vector<8xf32>
    %539 = vector.multi_reduction <add>, %538, %cst_216 [1] : vector<8x32xf32> to vector<8xf32>
    %540 = vector.shape_cast %539 : vector<8xf32> to vector<8x1xf32>
    %cst_217 = arith.constant 3.200000e+01 : f32
    %541 = vector.broadcast %cst_217 : f32 to vector<8x1xf32>
    %542 = arith.divf %540, %541 : vector<8x1xf32>
    %543 = vector.broadcast %542 : vector<8x1xf32> to vector<8x32xf32>
    %544 = arith.subf %538, %543 : vector<8x32xf32>
    %545 = arith.mulf %544, %544 : vector<8x32xf32>
    %cst_218 = arith.constant dense<0.000000e+00> : vector<8xf32>
    %546 = vector.multi_reduction <add>, %545, %cst_218 [1] : vector<8x32xf32> to vector<8xf32>
    %547 = vector.shape_cast %546 : vector<8xf32> to vector<8x1xf32>
    %cst_219 = arith.constant 3.200000e+01 : f32
    %548 = vector.broadcast %cst_219 : f32 to vector<8x1xf32>
    %549 = arith.divf %547, %548 : vector<8x1xf32>
    %cst_220 = arith.constant 9.99999974E-6 : f32
    %550 = vector.broadcast %cst_220 : f32 to vector<8x1xf32>
    %551 = arith.addf %549, %550 : vector<8x1xf32>
    %552 = math.rsqrt %551 : vector<8x1xf32>
    %553 = vector.broadcast %552 : vector<8x1xf32> to vector<8x32xf32>
    %554 = arith.mulf %544, %553 : vector<8x32xf32>
    %c0_221 = arith.constant 0 : index
    %c0_222 = arith.constant 0 : index
    %555 = vector.load %arg15[%c0_221, %c0_222] : memref<1x32xf32, #tpu.memory_space<vmem>>, vector<1x32xf32>
    %556 = vector.broadcast %555 : vector<1x32xf32> to vector<8x32xf32>
    %557 = arith.mulf %554, %556 : vector<8x32xf32>
    %c0_223 = arith.constant 0 : index
    %c0_224 = arith.constant 0 : index
    %558 = vector.load %arg14[%c0_223, %c0_224] : memref<1x32xf32, #tpu.memory_space<vmem>>, vector<1x32xf32>
    %559 = vector.broadcast %558 : vector<1x32xf32> to vector<8x32xf32>
    %560 = arith.addf %557, %559 : vector<8x32xf32>
    %c0_225 = arith.constant 0 : index
    %c0_226 = arith.constant 0 : index
    %561 = vector.load %arg22[%c0_225, %c0_226] : memref<32x32xf32, #tpu.memory_space<vmem>>, vector<32x32xf32>
    %cst_227 = arith.constant dense<0.000000e+00> : vector<8x32xf32>
    %562 = tpu.matmul %560, %561, %cst_227 {dimension_numbers = #tpu.dot_dimension_numbers<[1], [0], [0], [1], [0, 0, 1, 1], [], []>} : vector<8x32xf32>, vector<32x32xf32>, vector<8x32xf32> -> vector<8x32xf32>
    %c0_228 = arith.constant 0 : index
    %c0_229 = arith.constant 0 : index
    %563 = vector.load %arg6[%c0_228, %c0_229] : memref<1x32xf32, #tpu.memory_space<vmem>>, vector<1x32xf32>
    %564 = vector.broadcast %563 : vector<1x32xf32> to vector<8x32xf32>
    %565 = arith.addf %562, %564 : vector<8x32xf32>
    %cst_230 = arith.constant 0.000000e+00 : f32
    %566 = vector.broadcast %cst_230 : f32 to vector<8x32xf32>
    %567 = arith.maximumf %565, %566 : vector<8x32xf32>
    %c0_231 = arith.constant 0 : index
    %c0_232 = arith.constant 0 : index
    %568 = vector.load %arg23[%c0_231, %c0_232] : memref<32x32xf32, #tpu.memory_space<vmem>>, vector<32x32xf32>
    %cst_233 = arith.constant dense<0.000000e+00> : vector<8x32xf32>
    %569 = tpu.matmul %567, %568, %cst_233 {dimension_numbers = #tpu.dot_dimension_numbers<[1], [0], [0], [1], [0, 0, 1, 1], [], []>} : vector<8x32xf32>, vector<32x32xf32>, vector<8x32xf32> -> vector<8x32xf32>
    %c0_234 = arith.constant 0 : index
    %c0_235 = arith.constant 0 : index
    %570 = vector.load %arg7[%c0_234, %c0_235] : memref<1x32xf32, #tpu.memory_space<vmem>>, vector<1x32xf32>
    %571 = vector.broadcast %570 : vector<1x32xf32> to vector<8x32xf32>
    %572 = arith.addf %569, %571 : vector<8x32xf32>
    %573 = arith.addf %560, %572 : vector<8x32xf32>
    %cst_236 = arith.constant dense<0.000000e+00> : vector<8xf32>
    %574 = vector.multi_reduction <add>, %573, %cst_236 [1] : vector<8x32xf32> to vector<8xf32>
    %575 = vector.shape_cast %574 : vector<8xf32> to vector<8x1xf32>
    %cst_237 = arith.constant 3.200000e+01 : f32
    %576 = vector.broadcast %cst_237 : f32 to vector<8x1xf32>
    %577 = arith.divf %575, %576 : vector<8x1xf32>
    %578 = vector.broadcast %577 : vector<8x1xf32> to vector<8x32xf32>
    %579 = arith.subf %573, %578 : vector<8x32xf32>
    %580 = arith.mulf %579, %579 : vector<8x32xf32>
    %cst_238 = arith.constant dense<0.000000e+00> : vector<8xf32>
    %581 = vector.multi_reduction <add>, %580, %cst_238 [1] : vector<8x32xf32> to vector<8xf32>
    %582 = vector.shape_cast %581 : vector<8xf32> to vector<8x1xf32>
    %cst_239 = arith.constant 3.200000e+01 : f32
    %583 = vector.broadcast %cst_239 : f32 to vector<8x1xf32>
    %584 = arith.divf %582, %583 : vector<8x1xf32>
    %cst_240 = arith.constant 9.99999974E-6 : f32
    %585 = vector.broadcast %cst_240 : f32 to vector<8x1xf32>
    %586 = arith.addf %584, %585 : vector<8x1xf32>
    %587 = math.rsqrt %586 : vector<8x1xf32>
    %588 = vector.broadcast %587 : vector<8x1xf32> to vector<8x32xf32>
    %589 = arith.mulf %579, %588 : vector<8x32xf32>
    %c0_241 = arith.constant 0 : index
    %c0_242 = arith.constant 0 : index
    %590 = vector.load %arg17[%c0_241, %c0_242] : memref<1x32xf32, #tpu.memory_space<vmem>>, vector<1x32xf32>
    %591 = vector.broadcast %590 : vector<1x32xf32> to vector<8x32xf32>
    %592 = arith.mulf %589, %591 : vector<8x32xf32>
    %c0_243 = arith.constant 0 : index
    %c0_244 = arith.constant 0 : index
    %593 = vector.load %arg16[%c0_243, %c0_244] : memref<1x32xf32, #tpu.memory_space<vmem>>, vector<1x32xf32>
    %594 = vector.broadcast %593 : vector<1x32xf32> to vector<8x32xf32>
    %595 = arith.addf %592, %594 : vector<8x32xf32>
    %c0_245 = arith.constant 0 : index
    %c0_246 = arith.constant 0 : index
    %596 = vector.load %arg39[%c0_245, %c0_246] : memref<32x96xf32, #tpu.memory_space<vmem>>, vector<32x96xf32>
    %c0_247 = arith.constant 0 : index
    %c0_248 = arith.constant 0 : index
    %597 = vector.load %arg37[%c0_247, %c0_248] : memref<1x96xf32, #tpu.memory_space<vmem>>, vector<1x96xf32>
    %c0_249 = arith.constant 0 : index
    %c0_250 = arith.constant 0 : index
    %598 = vector.load %arg38[%c0_249, %c0_250] : memref<32x32xf32, #tpu.memory_space<vmem>>, vector<32x32xf32>
    %cst_251 = arith.constant dense<0.000000e+00> : vector<8x96xf32>
    %599 = tpu.matmul %595, %596, %cst_251 {dimension_numbers = #tpu.dot_dimension_numbers<[1], [0], [0], [1], [0, 0, 1, 1], [], []>} : vector<8x32xf32>, vector<32x96xf32>, vector<8x96xf32> -> vector<8x96xf32>
    %600 = vector.broadcast %597 : vector<1x96xf32> to vector<8x96xf32>
    %601 = arith.addf %599, %600 : vector<8x96xf32>
    %602 = vector.extract_strided_slice %601 {offsets = [0, 0], sizes = [8, 32], strides = [1, 1]} : vector<8x96xf32> to vector<8x32xf32>
    %603 = vector.extract_strided_slice %601 {offsets = [0, 32], sizes = [8, 32], strides = [1, 1]} : vector<8x96xf32> to vector<8x32xf32>
    %604 = vector.extract_strided_slice %601 {offsets = [0, 64], sizes = [8, 32], strides = [1, 1]} : vector<8x96xf32> to vector<8x32xf32>
    %605 = vector.extract_strided_slice %602 {offsets = [0, 0], sizes = [8, 8], strides = [1, 1]} : vector<8x32xf32> to vector<8x8xf32>
    %cst_252 = arith.constant 0.353553385 : f32
    %606 = vector.broadcast %cst_252 : f32 to vector<8x8xf32>
    %607 = arith.mulf %605, %606 : vector<8x8xf32>
    %608 = vector.extract_strided_slice %603 {offsets = [0, 0], sizes = [8, 8], strides = [1, 1]} : vector<8x32xf32> to vector<8x8xf32>
    %609 = vector.extract_strided_slice %604 {offsets = [0, 0], sizes = [8, 8], strides = [1, 1]} : vector<8x32xf32> to vector<8x8xf32>
    %cst_253 = arith.constant dense<0.000000e+00> : vector<8x8xf32>
    %610 = tpu.matmul %607, %608, %cst_253 {dimension_numbers = #tpu.dot_dimension_numbers<[1], [1], [0], [0], [0, 0, 1, 0], [], []>} : vector<8x8xf32>, vector<8x8xf32>, vector<8x8xf32> -> vector<8x8xf32>
    %611 = arith.addf %610, %322 : vector<8x8xf32>
    %cst_254 = arith.constant dense<0xFF800000> : vector<8xf32>
    %612 = vector.multi_reduction <maximumf>, %611, %cst_254 [1] : vector<8x8xf32> to vector<8xf32>
    %613 = vector.shape_cast %612 : vector<8xf32> to vector<8x1xf32>
    %614 = vector.broadcast %613 : vector<8x1xf32> to vector<8x8xf32>
    %615 = arith.subf %611, %614 : vector<8x8xf32>
    %616 = math.exp %615 : vector<8x8xf32>
    %cst_255 = arith.constant dense<0.000000e+00> : vector<8xf32>
    %617 = vector.multi_reduction <add>, %616, %cst_255 [1] : vector<8x8xf32> to vector<8xf32>
    %618 = vector.shape_cast %617 : vector<8xf32> to vector<8x1xf32>
    %619 = tpu.reciprocal %618 {approx = true} : vector<8x1xf32> -> vector<8x1xf32>
    %620 = vector.broadcast %619 : vector<8x1xf32> to vector<8x8xf32>
    %621 = arith.mulf %616, %620 : vector<8x8xf32>
    %cst_256 = arith.constant dense<0.000000e+00> : vector<8x8xf32>
    %622 = tpu.matmul %621, %609, %cst_256 {dimension_numbers = #tpu.dot_dimension_numbers<[1], [0], [0], [1], [0, 0, 1, 1], [], []>} : vector<8x8xf32>, vector<8x8xf32>, vector<8x8xf32> -> vector<8x8xf32>
    %623 = vector.extract_strided_slice %598 {offsets = [0, 0], sizes = [8, 32], strides = [1, 1]} : vector<32x32xf32> to vector<8x32xf32>
    %cst_257 = arith.constant dense<0.000000e+00> : vector<8x32xf32>
    %624 = tpu.matmul %622, %623, %cst_257 {dimension_numbers = #tpu.dot_dimension_numbers<[1], [0], [0], [1], [0, 0, 1, 1], [], []>} : vector<8x8xf32>, vector<8x32xf32>, vector<8x32xf32> -> vector<8x32xf32>
    %625 = vector.extract_strided_slice %602 {offsets = [0, 8], sizes = [8, 8], strides = [1, 1]} : vector<8x32xf32> to vector<8x8xf32>
    %cst_258 = arith.constant 0.353553385 : f32
    %626 = vector.broadcast %cst_258 : f32 to vector<8x8xf32>
    %627 = arith.mulf %625, %626 : vector<8x8xf32>
    %628 = vector.extract_strided_slice %603 {offsets = [0, 8], sizes = [8, 8], strides = [1, 1]} : vector<8x32xf32> to vector<8x8xf32>
    %629 = vector.extract_strided_slice %604 {offsets = [0, 8], sizes = [8, 8], strides = [1, 1]} : vector<8x32xf32> to vector<8x8xf32>
    %cst_259 = arith.constant dense<0.000000e+00> : vector<8x8xf32>
    %630 = tpu.matmul %627, %628, %cst_259 {dimension_numbers = #tpu.dot_dimension_numbers<[1], [1], [0], [0], [0, 0, 1, 0], [], []>} : vector<8x8xf32>, vector<8x8xf32>, vector<8x8xf32> -> vector<8x8xf32>
    %631 = arith.addf %630, %322 : vector<8x8xf32>
    %cst_260 = arith.constant dense<0xFF800000> : vector<8xf32>
    %632 = vector.multi_reduction <maximumf>, %631, %cst_260 [1] : vector<8x8xf32> to vector<8xf32>
    %633 = vector.shape_cast %632 : vector<8xf32> to vector<8x1xf32>
    %634 = vector.broadcast %633 : vector<8x1xf32> to vector<8x8xf32>
    %635 = arith.subf %631, %634 : vector<8x8xf32>
    %636 = math.exp %635 : vector<8x8xf32>
    %cst_261 = arith.constant dense<0.000000e+00> : vector<8xf32>
    %637 = vector.multi_reduction <add>, %636, %cst_261 [1] : vector<8x8xf32> to vector<8xf32>
    %638 = vector.shape_cast %637 : vector<8xf32> to vector<8x1xf32>
    %639 = tpu.reciprocal %638 {approx = true} : vector<8x1xf32> -> vector<8x1xf32>
    %640 = vector.broadcast %639 : vector<8x1xf32> to vector<8x8xf32>
    %641 = arith.mulf %636, %640 : vector<8x8xf32>
    %cst_262 = arith.constant dense<0.000000e+00> : vector<8x8xf32>
    %642 = tpu.matmul %641, %629, %cst_262 {dimension_numbers = #tpu.dot_dimension_numbers<[1], [0], [0], [1], [0, 0, 1, 1], [], []>} : vector<8x8xf32>, vector<8x8xf32>, vector<8x8xf32> -> vector<8x8xf32>
    %643 = vector.extract_strided_slice %598 {offsets = [8, 0], sizes = [8, 32], strides = [1, 1]} : vector<32x32xf32> to vector<8x32xf32>
    %cst_263 = arith.constant dense<0.000000e+00> : vector<8x32xf32>
    %644 = tpu.matmul %642, %643, %cst_263 {dimension_numbers = #tpu.dot_dimension_numbers<[1], [0], [0], [1], [0, 0, 1, 1], [], []>} : vector<8x8xf32>, vector<8x32xf32>, vector<8x32xf32> -> vector<8x32xf32>
    %645 = arith.addf %624, %644 : vector<8x32xf32>
    %646 = vector.extract_strided_slice %602 {offsets = [0, 16], sizes = [8, 8], strides = [1, 1]} : vector<8x32xf32> to vector<8x8xf32>
    %cst_264 = arith.constant 0.353553385 : f32
    %647 = vector.broadcast %cst_264 : f32 to vector<8x8xf32>
    %648 = arith.mulf %646, %647 : vector<8x8xf32>
    %649 = vector.extract_strided_slice %603 {offsets = [0, 16], sizes = [8, 8], strides = [1, 1]} : vector<8x32xf32> to vector<8x8xf32>
    %650 = vector.extract_strided_slice %604 {offsets = [0, 16], sizes = [8, 8], strides = [1, 1]} : vector<8x32xf32> to vector<8x8xf32>
    %cst_265 = arith.constant dense<0.000000e+00> : vector<8x8xf32>
    %651 = tpu.matmul %648, %649, %cst_265 {dimension_numbers = #tpu.dot_dimension_numbers<[1], [1], [0], [0], [0, 0, 1, 0], [], []>} : vector<8x8xf32>, vector<8x8xf32>, vector<8x8xf32> -> vector<8x8xf32>
    %652 = arith.addf %651, %322 : vector<8x8xf32>
    %cst_266 = arith.constant dense<0xFF800000> : vector<8xf32>
    %653 = vector.multi_reduction <maximumf>, %652, %cst_266 [1] : vector<8x8xf32> to vector<8xf32>
    %654 = vector.shape_cast %653 : vector<8xf32> to vector<8x1xf32>
    %655 = vector.broadcast %654 : vector<8x1xf32> to vector<8x8xf32>
    %656 = arith.subf %652, %655 : vector<8x8xf32>
    %657 = math.exp %656 : vector<8x8xf32>
    %cst_267 = arith.constant dense<0.000000e+00> : vector<8xf32>
    %658 = vector.multi_reduction <add>, %657, %cst_267 [1] : vector<8x8xf32> to vector<8xf32>
    %659 = vector.shape_cast %658 : vector<8xf32> to vector<8x1xf32>
    %660 = tpu.reciprocal %659 {approx = true} : vector<8x1xf32> -> vector<8x1xf32>
    %661 = vector.broadcast %660 : vector<8x1xf32> to vector<8x8xf32>
    %662 = arith.mulf %657, %661 : vector<8x8xf32>
    %cst_268 = arith.constant dense<0.000000e+00> : vector<8x8xf32>
    %663 = tpu.matmul %662, %650, %cst_268 {dimension_numbers = #tpu.dot_dimension_numbers<[1], [0], [0], [1], [0, 0, 1, 1], [], []>} : vector<8x8xf32>, vector<8x8xf32>, vector<8x8xf32> -> vector<8x8xf32>
    %664 = vector.extract_strided_slice %598 {offsets = [16, 0], sizes = [8, 32], strides = [1, 1]} : vector<32x32xf32> to vector<8x32xf32>
    %cst_269 = arith.constant dense<0.000000e+00> : vector<8x32xf32>
    %665 = tpu.matmul %663, %664, %cst_269 {dimension_numbers = #tpu.dot_dimension_numbers<[1], [0], [0], [1], [0, 0, 1, 1], [], []>} : vector<8x8xf32>, vector<8x32xf32>, vector<8x32xf32> -> vector<8x32xf32>
    %666 = arith.addf %645, %665 : vector<8x32xf32>
    %667 = vector.extract_strided_slice %602 {offsets = [0, 24], sizes = [8, 8], strides = [1, 1]} : vector<8x32xf32> to vector<8x8xf32>
    %cst_270 = arith.constant 0.353553385 : f32
    %668 = vector.broadcast %cst_270 : f32 to vector<8x8xf32>
    %669 = arith.mulf %667, %668 : vector<8x8xf32>
    %670 = vector.extract_strided_slice %603 {offsets = [0, 24], sizes = [8, 8], strides = [1, 1]} : vector<8x32xf32> to vector<8x8xf32>
    %671 = vector.extract_strided_slice %604 {offsets = [0, 24], sizes = [8, 8], strides = [1, 1]} : vector<8x32xf32> to vector<8x8xf32>
    %cst_271 = arith.constant dense<0.000000e+00> : vector<8x8xf32>
    %672 = tpu.matmul %669, %670, %cst_271 {dimension_numbers = #tpu.dot_dimension_numbers<[1], [1], [0], [0], [0, 0, 1, 0], [], []>} : vector<8x8xf32>, vector<8x8xf32>, vector<8x8xf32> -> vector<8x8xf32>
    %673 = arith.addf %672, %322 : vector<8x8xf32>
    %cst_272 = arith.constant dense<0xFF800000> : vector<8xf32>
    %674 = vector.multi_reduction <maximumf>, %673, %cst_272 [1] : vector<8x8xf32> to vector<8xf32>
    %675 = vector.shape_cast %674 : vector<8xf32> to vector<8x1xf32>
    %676 = vector.broadcast %675 : vector<8x1xf32> to vector<8x8xf32>
    %677 = arith.subf %673, %676 : vector<8x8xf32>
    %678 = math.exp %677 : vector<8x8xf32>
    %cst_273 = arith.constant dense<0.000000e+00> : vector<8xf32>
    %679 = vector.multi_reduction <add>, %678, %cst_273 [1] : vector<8x8xf32> to vector<8xf32>
    %680 = vector.shape_cast %679 : vector<8xf32> to vector<8x1xf32>
    %681 = tpu.reciprocal %680 {approx = true} : vector<8x1xf32> -> vector<8x1xf32>
    %682 = vector.broadcast %681 : vector<8x1xf32> to vector<8x8xf32>
    %683 = arith.mulf %678, %682 : vector<8x8xf32>
    %cst_274 = arith.constant dense<0.000000e+00> : vector<8x8xf32>
    %684 = tpu.matmul %683, %671, %cst_274 {dimension_numbers = #tpu.dot_dimension_numbers<[1], [0], [0], [1], [0, 0, 1, 1], [], []>} : vector<8x8xf32>, vector<8x8xf32>, vector<8x8xf32> -> vector<8x8xf32>
    %685 = vector.extract_strided_slice %598 {offsets = [24, 0], sizes = [8, 32], strides = [1, 1]} : vector<32x32xf32> to vector<8x32xf32>
    %cst_275 = arith.constant dense<0.000000e+00> : vector<8x32xf32>
    %686 = tpu.matmul %684, %685, %cst_275 {dimension_numbers = #tpu.dot_dimension_numbers<[1], [0], [0], [1], [0, 0, 1, 1], [], []>} : vector<8x8xf32>, vector<8x32xf32>, vector<8x32xf32> -> vector<8x32xf32>
    %687 = arith.addf %666, %686 : vector<8x32xf32>
    %c0_276 = arith.constant 0 : index
    %c0_277 = arith.constant 0 : index
    %688 = vector.load %arg36[%c0_276, %c0_277] : memref<1x32xf32, #tpu.memory_space<vmem>>, vector<1x32xf32>
    %689 = vector.broadcast %688 : vector<1x32xf32> to vector<8x32xf32>
    %690 = arith.addf %687, %689 : vector<8x32xf32>
    %691 = arith.addf %595, %690 : vector<8x32xf32>
    %cst_278 = arith.constant dense<0.000000e+00> : vector<8xf32>
    %692 = vector.multi_reduction <add>, %691, %cst_278 [1] : vector<8x32xf32> to vector<8xf32>
    %693 = vector.shape_cast %692 : vector<8xf32> to vector<8x1xf32>
    %cst_279 = arith.constant 3.200000e+01 : f32
    %694 = vector.broadcast %cst_279 : f32 to vector<8x1xf32>
    %695 = arith.divf %693, %694 : vector<8x1xf32>
    %696 = vector.broadcast %695 : vector<8x1xf32> to vector<8x32xf32>
    %697 = arith.subf %691, %696 : vector<8x32xf32>
    %698 = arith.mulf %697, %697 : vector<8x32xf32>
    %cst_280 = arith.constant dense<0.000000e+00> : vector<8xf32>
    %699 = vector.multi_reduction <add>, %698, %cst_280 [1] : vector<8x32xf32> to vector<8xf32>
    %700 = vector.shape_cast %699 : vector<8xf32> to vector<8x1xf32>
    %cst_281 = arith.constant 3.200000e+01 : f32
    %701 = vector.broadcast %cst_281 : f32 to vector<8x1xf32>
    %702 = arith.divf %700, %701 : vector<8x1xf32>
    %cst_282 = arith.constant 9.99999974E-6 : f32
    %703 = vector.broadcast %cst_282 : f32 to vector<8x1xf32>
    %704 = arith.addf %702, %703 : vector<8x1xf32>
    %705 = math.rsqrt %704 : vector<8x1xf32>
    %706 = vector.broadcast %705 : vector<8x1xf32> to vector<8x32xf32>
    %707 = arith.mulf %697, %706 : vector<8x32xf32>
    %c0_283 = arith.constant 0 : index
    %c0_284 = arith.constant 0 : index
    %708 = vector.load %arg31[%c0_283, %c0_284] : memref<1x32xf32, #tpu.memory_space<vmem>>, vector<1x32xf32>
    %709 = vector.broadcast %708 : vector<1x32xf32> to vector<8x32xf32>
    %710 = arith.mulf %707, %709 : vector<8x32xf32>
    %c0_285 = arith.constant 0 : index
    %c0_286 = arith.constant 0 : index
    %711 = vector.load %arg30[%c0_285, %c0_286] : memref<1x32xf32, #tpu.memory_space<vmem>>, vector<1x32xf32>
    %712 = vector.broadcast %711 : vector<1x32xf32> to vector<8x32xf32>
    %713 = arith.addf %710, %712 : vector<8x32xf32>
    %c0_287 = arith.constant 0 : index
    %c0_288 = arith.constant 0 : index
    %714 = vector.load %arg29[%c0_287, %c0_288] : memref<32x96xf32, #tpu.memory_space<vmem>>, vector<32x96xf32>
    %c0_289 = arith.constant 0 : index
    %c0_290 = arith.constant 0 : index
    %715 = vector.load %arg27[%c0_289, %c0_290] : memref<1x96xf32, #tpu.memory_space<vmem>>, vector<1x96xf32>
    %c0_291 = arith.constant 0 : index
    %c0_292 = arith.constant 0 : index
    %716 = vector.load %arg28[%c0_291, %c0_292] : memref<32x32xf32, #tpu.memory_space<vmem>>, vector<32x32xf32>
    %717 = vector.extract_strided_slice %714 {offsets = [0, 0], sizes = [32, 32], strides = [1, 1]} : vector<32x96xf32> to vector<32x32xf32>
    %cst_293 = arith.constant dense<0.000000e+00> : vector<8x32xf32>
    %718 = tpu.matmul %713, %717, %cst_293 {dimension_numbers = #tpu.dot_dimension_numbers<[1], [0], [0], [1], [0, 0, 1, 1], [], []>} : vector<8x32xf32>, vector<32x32xf32>, vector<8x32xf32> -> vector<8x32xf32>
    %719 = vector.extract_strided_slice %715 {offsets = [0, 0], sizes = [1, 32], strides = [1, 1]} : vector<1x96xf32> to vector<1x32xf32>
    %720 = vector.broadcast %719 : vector<1x32xf32> to vector<8x32xf32>
    %721 = arith.addf %718, %720 : vector<8x32xf32>
    %722 = vector.extract_strided_slice %714 {offsets = [0, 32], sizes = [32, 64], strides = [1, 1]} : vector<32x96xf32> to vector<32x64xf32>
    %cst_294 = arith.constant dense<0.000000e+00> : vector<8x64xf32>
    %723 = tpu.matmul %317, %722, %cst_294 {dimension_numbers = #tpu.dot_dimension_numbers<[1], [0], [0], [1], [0, 0, 1, 1], [], []>} : vector<8x32xf32>, vector<32x64xf32>, vector<8x64xf32> -> vector<8x64xf32>
    %724 = vector.extract_strided_slice %715 {offsets = [0, 32], sizes = [1, 64], strides = [1, 1]} : vector<1x96xf32> to vector<1x64xf32>
    %725 = vector.broadcast %724 : vector<1x64xf32> to vector<8x64xf32>
    %726 = arith.addf %723, %725 : vector<8x64xf32>
    %727 = vector.extract_strided_slice %726 {offsets = [0, 0], sizes = [8, 32], strides = [1, 1]} : vector<8x64xf32> to vector<8x32xf32>
    %728 = vector.extract_strided_slice %726 {offsets = [0, 32], sizes = [8, 32], strides = [1, 1]} : vector<8x64xf32> to vector<8x32xf32>
    %729 = vector.extract_strided_slice %721 {offsets = [0, 0], sizes = [8, 8], strides = [1, 1]} : vector<8x32xf32> to vector<8x8xf32>
    %cst_295 = arith.constant 0.353553385 : f32
    %730 = vector.broadcast %cst_295 : f32 to vector<8x8xf32>
    %731 = arith.mulf %729, %730 : vector<8x8xf32>
    %732 = vector.extract_strided_slice %727 {offsets = [0, 0], sizes = [8, 8], strides = [1, 1]} : vector<8x32xf32> to vector<8x8xf32>
    %733 = vector.extract_strided_slice %728 {offsets = [0, 0], sizes = [8, 8], strides = [1, 1]} : vector<8x32xf32> to vector<8x8xf32>
    %cst_296 = arith.constant dense<0.000000e+00> : vector<8x8xf32>
    %734 = tpu.matmul %731, %732, %cst_296 {dimension_numbers = #tpu.dot_dimension_numbers<[1], [1], [0], [0], [0, 0, 1, 0], [], []>} : vector<8x8xf32>, vector<8x8xf32>, vector<8x8xf32> -> vector<8x8xf32>
    %cst_297 = arith.constant dense<0xFF800000> : vector<8xf32>
    %735 = vector.multi_reduction <maximumf>, %734, %cst_297 [1] : vector<8x8xf32> to vector<8xf32>
    %736 = vector.shape_cast %735 : vector<8xf32> to vector<8x1xf32>
    %737 = vector.broadcast %736 : vector<8x1xf32> to vector<8x8xf32>
    %738 = arith.subf %734, %737 : vector<8x8xf32>
    %739 = math.exp %738 : vector<8x8xf32>
    %cst_298 = arith.constant dense<0.000000e+00> : vector<8xf32>
    %740 = vector.multi_reduction <add>, %739, %cst_298 [1] : vector<8x8xf32> to vector<8xf32>
    %741 = vector.shape_cast %740 : vector<8xf32> to vector<8x1xf32>
    %742 = tpu.reciprocal %741 {approx = true} : vector<8x1xf32> -> vector<8x1xf32>
    %743 = vector.broadcast %742 : vector<8x1xf32> to vector<8x8xf32>
    %744 = arith.mulf %739, %743 : vector<8x8xf32>
    %cst_299 = arith.constant dense<0.000000e+00> : vector<8x8xf32>
    %745 = tpu.matmul %744, %733, %cst_299 {dimension_numbers = #tpu.dot_dimension_numbers<[1], [0], [0], [1], [0, 0, 1, 1], [], []>} : vector<8x8xf32>, vector<8x8xf32>, vector<8x8xf32> -> vector<8x8xf32>
    %746 = vector.extract_strided_slice %716 {offsets = [0, 0], sizes = [8, 32], strides = [1, 1]} : vector<32x32xf32> to vector<8x32xf32>
    %cst_300 = arith.constant dense<0.000000e+00> : vector<8x32xf32>
    %747 = tpu.matmul %745, %746, %cst_300 {dimension_numbers = #tpu.dot_dimension_numbers<[1], [0], [0], [1], [0, 0, 1, 1], [], []>} : vector<8x8xf32>, vector<8x32xf32>, vector<8x32xf32> -> vector<8x32xf32>
    %748 = vector.extract_strided_slice %721 {offsets = [0, 8], sizes = [8, 8], strides = [1, 1]} : vector<8x32xf32> to vector<8x8xf32>
    %cst_301 = arith.constant 0.353553385 : f32
    %749 = vector.broadcast %cst_301 : f32 to vector<8x8xf32>
    %750 = arith.mulf %748, %749 : vector<8x8xf32>
    %751 = vector.extract_strided_slice %727 {offsets = [0, 8], sizes = [8, 8], strides = [1, 1]} : vector<8x32xf32> to vector<8x8xf32>
    %752 = vector.extract_strided_slice %728 {offsets = [0, 8], sizes = [8, 8], strides = [1, 1]} : vector<8x32xf32> to vector<8x8xf32>
    %cst_302 = arith.constant dense<0.000000e+00> : vector<8x8xf32>
    %753 = tpu.matmul %750, %751, %cst_302 {dimension_numbers = #tpu.dot_dimension_numbers<[1], [1], [0], [0], [0, 0, 1, 0], [], []>} : vector<8x8xf32>, vector<8x8xf32>, vector<8x8xf32> -> vector<8x8xf32>
    %cst_303 = arith.constant dense<0xFF800000> : vector<8xf32>
    %754 = vector.multi_reduction <maximumf>, %753, %cst_303 [1] : vector<8x8xf32> to vector<8xf32>
    %755 = vector.shape_cast %754 : vector<8xf32> to vector<8x1xf32>
    %756 = vector.broadcast %755 : vector<8x1xf32> to vector<8x8xf32>
    %757 = arith.subf %753, %756 : vector<8x8xf32>
    %758 = math.exp %757 : vector<8x8xf32>
    %cst_304 = arith.constant dense<0.000000e+00> : vector<8xf32>
    %759 = vector.multi_reduction <add>, %758, %cst_304 [1] : vector<8x8xf32> to vector<8xf32>
    %760 = vector.shape_cast %759 : vector<8xf32> to vector<8x1xf32>
    %761 = tpu.reciprocal %760 {approx = true} : vector<8x1xf32> -> vector<8x1xf32>
    %762 = vector.broadcast %761 : vector<8x1xf32> to vector<8x8xf32>
    %763 = arith.mulf %758, %762 : vector<8x8xf32>
    %cst_305 = arith.constant dense<0.000000e+00> : vector<8x8xf32>
    %764 = tpu.matmul %763, %752, %cst_305 {dimension_numbers = #tpu.dot_dimension_numbers<[1], [0], [0], [1], [0, 0, 1, 1], [], []>} : vector<8x8xf32>, vector<8x8xf32>, vector<8x8xf32> -> vector<8x8xf32>
    %765 = vector.extract_strided_slice %716 {offsets = [8, 0], sizes = [8, 32], strides = [1, 1]} : vector<32x32xf32> to vector<8x32xf32>
    %cst_306 = arith.constant dense<0.000000e+00> : vector<8x32xf32>
    %766 = tpu.matmul %764, %765, %cst_306 {dimension_numbers = #tpu.dot_dimension_numbers<[1], [0], [0], [1], [0, 0, 1, 1], [], []>} : vector<8x8xf32>, vector<8x32xf32>, vector<8x32xf32> -> vector<8x32xf32>
    %767 = arith.addf %747, %766 : vector<8x32xf32>
    %768 = vector.extract_strided_slice %721 {offsets = [0, 16], sizes = [8, 8], strides = [1, 1]} : vector<8x32xf32> to vector<8x8xf32>
    %cst_307 = arith.constant 0.353553385 : f32
    %769 = vector.broadcast %cst_307 : f32 to vector<8x8xf32>
    %770 = arith.mulf %768, %769 : vector<8x8xf32>
    %771 = vector.extract_strided_slice %727 {offsets = [0, 16], sizes = [8, 8], strides = [1, 1]} : vector<8x32xf32> to vector<8x8xf32>
    %772 = vector.extract_strided_slice %728 {offsets = [0, 16], sizes = [8, 8], strides = [1, 1]} : vector<8x32xf32> to vector<8x8xf32>
    %cst_308 = arith.constant dense<0.000000e+00> : vector<8x8xf32>
    %773 = tpu.matmul %770, %771, %cst_308 {dimension_numbers = #tpu.dot_dimension_numbers<[1], [1], [0], [0], [0, 0, 1, 0], [], []>} : vector<8x8xf32>, vector<8x8xf32>, vector<8x8xf32> -> vector<8x8xf32>
    %cst_309 = arith.constant dense<0xFF800000> : vector<8xf32>
    %774 = vector.multi_reduction <maximumf>, %773, %cst_309 [1] : vector<8x8xf32> to vector<8xf32>
    %775 = vector.shape_cast %774 : vector<8xf32> to vector<8x1xf32>
    %776 = vector.broadcast %775 : vector<8x1xf32> to vector<8x8xf32>
    %777 = arith.subf %773, %776 : vector<8x8xf32>
    %778 = math.exp %777 : vector<8x8xf32>
    %cst_310 = arith.constant dense<0.000000e+00> : vector<8xf32>
    %779 = vector.multi_reduction <add>, %778, %cst_310 [1] : vector<8x8xf32> to vector<8xf32>
    %780 = vector.shape_cast %779 : vector<8xf32> to vector<8x1xf32>
    %781 = tpu.reciprocal %780 {approx = true} : vector<8x1xf32> -> vector<8x1xf32>
    %782 = vector.broadcast %781 : vector<8x1xf32> to vector<8x8xf32>
    %783 = arith.mulf %778, %782 : vector<8x8xf32>
    %cst_311 = arith.constant dense<0.000000e+00> : vector<8x8xf32>
    %784 = tpu.matmul %783, %772, %cst_311 {dimension_numbers = #tpu.dot_dimension_numbers<[1], [0], [0], [1], [0, 0, 1, 1], [], []>} : vector<8x8xf32>, vector<8x8xf32>, vector<8x8xf32> -> vector<8x8xf32>
    %785 = vector.extract_strided_slice %716 {offsets = [16, 0], sizes = [8, 32], strides = [1, 1]} : vector<32x32xf32> to vector<8x32xf32>
    %cst_312 = arith.constant dense<0.000000e+00> : vector<8x32xf32>
    %786 = tpu.matmul %784, %785, %cst_312 {dimension_numbers = #tpu.dot_dimension_numbers<[1], [0], [0], [1], [0, 0, 1, 1], [], []>} : vector<8x8xf32>, vector<8x32xf32>, vector<8x32xf32> -> vector<8x32xf32>
    %787 = arith.addf %767, %786 : vector<8x32xf32>
    %788 = vector.extract_strided_slice %721 {offsets = [0, 24], sizes = [8, 8], strides = [1, 1]} : vector<8x32xf32> to vector<8x8xf32>
    %cst_313 = arith.constant 0.353553385 : f32
    %789 = vector.broadcast %cst_313 : f32 to vector<8x8xf32>
    %790 = arith.mulf %788, %789 : vector<8x8xf32>
    %791 = vector.extract_strided_slice %727 {offsets = [0, 24], sizes = [8, 8], strides = [1, 1]} : vector<8x32xf32> to vector<8x8xf32>
    %792 = vector.extract_strided_slice %728 {offsets = [0, 24], sizes = [8, 8], strides = [1, 1]} : vector<8x32xf32> to vector<8x8xf32>
    %cst_314 = arith.constant dense<0.000000e+00> : vector<8x8xf32>
    %793 = tpu.matmul %790, %791, %cst_314 {dimension_numbers = #tpu.dot_dimension_numbers<[1], [1], [0], [0], [0, 0, 1, 0], [], []>} : vector<8x8xf32>, vector<8x8xf32>, vector<8x8xf32> -> vector<8x8xf32>
    %cst_315 = arith.constant dense<0xFF800000> : vector<8xf32>
    %794 = vector.multi_reduction <maximumf>, %793, %cst_315 [1] : vector<8x8xf32> to vector<8xf32>
    %795 = vector.shape_cast %794 : vector<8xf32> to vector<8x1xf32>
    %796 = vector.broadcast %795 : vector<8x1xf32> to vector<8x8xf32>
    %797 = arith.subf %793, %796 : vector<8x8xf32>
    %798 = math.exp %797 : vector<8x8xf32>
    %cst_316 = arith.constant dense<0.000000e+00> : vector<8xf32>
    %799 = vector.multi_reduction <add>, %798, %cst_316 [1] : vector<8x8xf32> to vector<8xf32>
    %800 = vector.shape_cast %799 : vector<8xf32> to vector<8x1xf32>
    %801 = tpu.reciprocal %800 {approx = true} : vector<8x1xf32> -> vector<8x1xf32>
    %802 = vector.broadcast %801 : vector<8x1xf32> to vector<8x8xf32>
    %803 = arith.mulf %798, %802 : vector<8x8xf32>
    %cst_317 = arith.constant dense<0.000000e+00> : vector<8x8xf32>
    %804 = tpu.matmul %803, %792, %cst_317 {dimension_numbers = #tpu.dot_dimension_numbers<[1], [0], [0], [1], [0, 0, 1, 1], [], []>} : vector<8x8xf32>, vector<8x8xf32>, vector<8x8xf32> -> vector<8x8xf32>
    %805 = vector.extract_strided_slice %716 {offsets = [24, 0], sizes = [8, 32], strides = [1, 1]} : vector<32x32xf32> to vector<8x32xf32>
    %cst_318 = arith.constant dense<0.000000e+00> : vector<8x32xf32>
    %806 = tpu.matmul %804, %805, %cst_318 {dimension_numbers = #tpu.dot_dimension_numbers<[1], [0], [0], [1], [0, 0, 1, 1], [], []>} : vector<8x8xf32>, vector<8x32xf32>, vector<8x32xf32> -> vector<8x32xf32>
    %807 = arith.addf %787, %806 : vector<8x32xf32>
    %c0_319 = arith.constant 0 : index
    %c0_320 = arith.constant 0 : index
    %808 = vector.load %arg26[%c0_319, %c0_320] : memref<1x32xf32, #tpu.memory_space<vmem>>, vector<1x32xf32>
    %809 = vector.broadcast %808 : vector<1x32xf32> to vector<8x32xf32>
    %810 = arith.addf %807, %809 : vector<8x32xf32>
    %811 = arith.addf %713, %810 : vector<8x32xf32>
    %cst_321 = arith.constant dense<0.000000e+00> : vector<8xf32>
    %812 = vector.multi_reduction <add>, %811, %cst_321 [1] : vector<8x32xf32> to vector<8xf32>
    %813 = vector.shape_cast %812 : vector<8xf32> to vector<8x1xf32>
    %cst_322 = arith.constant 3.200000e+01 : f32
    %814 = vector.broadcast %cst_322 : f32 to vector<8x1xf32>
    %815 = arith.divf %813, %814 : vector<8x1xf32>
    %816 = vector.broadcast %815 : vector<8x1xf32> to vector<8x32xf32>
    %817 = arith.subf %811, %816 : vector<8x32xf32>
    %818 = arith.mulf %817, %817 : vector<8x32xf32>
    %cst_323 = arith.constant dense<0.000000e+00> : vector<8xf32>
    %819 = vector.multi_reduction <add>, %818, %cst_323 [1] : vector<8x32xf32> to vector<8xf32>
    %820 = vector.shape_cast %819 : vector<8xf32> to vector<8x1xf32>
    %cst_324 = arith.constant 3.200000e+01 : f32
    %821 = vector.broadcast %cst_324 : f32 to vector<8x1xf32>
    %822 = arith.divf %820, %821 : vector<8x1xf32>
    %cst_325 = arith.constant 9.99999974E-6 : f32
    %823 = vector.broadcast %cst_325 : f32 to vector<8x1xf32>
    %824 = arith.addf %822, %823 : vector<8x1xf32>
    %825 = math.rsqrt %824 : vector<8x1xf32>
    %826 = vector.broadcast %825 : vector<8x1xf32> to vector<8x32xf32>
    %827 = arith.mulf %817, %826 : vector<8x32xf32>
    %c0_326 = arith.constant 0 : index
    %c0_327 = arith.constant 0 : index
    %828 = vector.load %arg33[%c0_326, %c0_327] : memref<1x32xf32, #tpu.memory_space<vmem>>, vector<1x32xf32>
    %829 = vector.broadcast %828 : vector<1x32xf32> to vector<8x32xf32>
    %830 = arith.mulf %827, %829 : vector<8x32xf32>
    %c0_328 = arith.constant 0 : index
    %c0_329 = arith.constant 0 : index
    %831 = vector.load %arg32[%c0_328, %c0_329] : memref<1x32xf32, #tpu.memory_space<vmem>>, vector<1x32xf32>
    %832 = vector.broadcast %831 : vector<1x32xf32> to vector<8x32xf32>
    %833 = arith.addf %830, %832 : vector<8x32xf32>
    %c0_330 = arith.constant 0 : index
    %c0_331 = arith.constant 0 : index
    %834 = vector.load %arg40[%c0_330, %c0_331] : memref<32x32xf32, #tpu.memory_space<vmem>>, vector<32x32xf32>
    %cst_332 = arith.constant dense<0.000000e+00> : vector<8x32xf32>
    %835 = tpu.matmul %833, %834, %cst_332 {dimension_numbers = #tpu.dot_dimension_numbers<[1], [0], [0], [1], [0, 0, 1, 1], [], []>} : vector<8x32xf32>, vector<32x32xf32>, vector<8x32xf32> -> vector<8x32xf32>
    %c0_333 = arith.constant 0 : index
    %c0_334 = arith.constant 0 : index
    %836 = vector.load %arg24[%c0_333, %c0_334] : memref<1x32xf32, #tpu.memory_space<vmem>>, vector<1x32xf32>
    %837 = vector.broadcast %836 : vector<1x32xf32> to vector<8x32xf32>
    %838 = arith.addf %835, %837 : vector<8x32xf32>
    %cst_335 = arith.constant 0.000000e+00 : f32
    %839 = vector.broadcast %cst_335 : f32 to vector<8x32xf32>
    %840 = arith.maximumf %838, %839 : vector<8x32xf32>
    %c0_336 = arith.constant 0 : index
    %c0_337 = arith.constant 0 : index
    %841 = vector.load %arg41[%c0_336, %c0_337] : memref<32x32xf32, #tpu.memory_space<vmem>>, vector<32x32xf32>
    %cst_338 = arith.constant dense<0.000000e+00> : vector<8x32xf32>
    %842 = tpu.matmul %840, %841, %cst_338 {dimension_numbers = #tpu.dot_dimension_numbers<[1], [0], [0], [1], [0, 0, 1, 1], [], []>} : vector<8x32xf32>, vector<32x32xf32>, vector<8x32xf32> -> vector<8x32xf32>
    %c0_339 = arith.constant 0 : index
    %c0_340 = arith.constant 0 : index
    %843 = vector.load %arg25[%c0_339, %c0_340] : memref<1x32xf32, #tpu.memory_space<vmem>>, vector<1x32xf32>
    %844 = vector.broadcast %843 : vector<1x32xf32> to vector<8x32xf32>
    %845 = arith.addf %842, %844 : vector<8x32xf32>
    %846 = arith.addf %833, %845 : vector<8x32xf32>
    %cst_341 = arith.constant dense<0.000000e+00> : vector<8xf32>
    %847 = vector.multi_reduction <add>, %846, %cst_341 [1] : vector<8x32xf32> to vector<8xf32>
    %848 = vector.shape_cast %847 : vector<8xf32> to vector<8x1xf32>
    %cst_342 = arith.constant 3.200000e+01 : f32
    %849 = vector.broadcast %cst_342 : f32 to vector<8x1xf32>
    %850 = arith.divf %848, %849 : vector<8x1xf32>
    %851 = vector.broadcast %850 : vector<8x1xf32> to vector<8x32xf32>
    %852 = arith.subf %846, %851 : vector<8x32xf32>
    %853 = arith.mulf %852, %852 : vector<8x32xf32>
    %cst_343 = arith.constant dense<0.000000e+00> : vector<8xf32>
    %854 = vector.multi_reduction <add>, %853, %cst_343 [1] : vector<8x32xf32> to vector<8xf32>
    %855 = vector.shape_cast %854 : vector<8xf32> to vector<8x1xf32>
    %cst_344 = arith.constant 3.200000e+01 : f32
    %856 = vector.broadcast %cst_344 : f32 to vector<8x1xf32>
    %857 = arith.divf %855, %856 : vector<8x1xf32>
    %cst_345 = arith.constant 9.99999974E-6 : f32
    %858 = vector.broadcast %cst_345 : f32 to vector<8x1xf32>
    %859 = arith.addf %857, %858 : vector<8x1xf32>
    %860 = math.rsqrt %859 : vector<8x1xf32>
    %861 = vector.broadcast %860 : vector<8x1xf32> to vector<8x32xf32>
    %862 = arith.mulf %852, %861 : vector<8x32xf32>
    %c0_346 = arith.constant 0 : index
    %c0_347 = arith.constant 0 : index
    %863 = vector.load %arg35[%c0_346, %c0_347] : memref<1x32xf32, #tpu.memory_space<vmem>>, vector<1x32xf32>
    %864 = vector.broadcast %863 : vector<1x32xf32> to vector<8x32xf32>
    %865 = arith.mulf %862, %864 : vector<8x32xf32>
    %c0_348 = arith.constant 0 : index
    %c0_349 = arith.constant 0 : index
    %866 = vector.load %arg34[%c0_348, %c0_349] : memref<1x32xf32, #tpu.memory_space<vmem>>, vector<1x32xf32>
    %867 = vector.broadcast %866 : vector<1x32xf32> to vector<8x32xf32>
    %868 = arith.addf %865, %867 : vector<8x32xf32>
    %cst_350 = arith.constant 0.000000e+00 : f32
    %869 = vector.broadcast %cst_350 : f32 to vector<8x32xf32>
    %870 = arith.maximumf %868, %869 : vector<8x32xf32>
    %c0_351 = arith.constant 0 : index
    %c0_352 = arith.constant 0 : index
    %c0_353 = arith.constant 0 : index
    %871 = vector.load %arg67[%c0_351, %c0_352, %c0_353] : memref<1x8x32xf32, #tpu.memory_space<vmem>>, vector<1x8x32xf32>
    %872 = vector.shape_cast %871 : vector<1x8x32xf32> to vector<8x32xf32>
    %873 = vector.shape_cast %870 : vector<8x32xf32> to vector<1x8x32xf32>
    tpu.vector_store %arg67[%c0_351, %c0_352, %c0_353], %873 {strides = array<i32>} : memref<1x8x32xf32, #tpu.memory_space<vmem>>, vector<1x8x32xf32>,
    return
  }
  func.func @transform_0(%arg0: i32) -> (i32, i32, i32) {
    %c0_i32 = arith.constant 0 : i32
    %c0_i32_0 = arith.constant 0 : i32
    %c0_i32_1 = arith.constant 0 : i32
    return %arg0, %c0_i32, %c0_i32_0 : i32, i32, i32
  }
  func.func @transform_1(%arg0: i32) -> (i32, i32, i32) {
    %c0_i32 = arith.constant 0 : i32
    %c0_i32_0 = arith.constant 0 : i32
    %c0_i32_1 = arith.constant 0 : i32
    return %arg0, %c0_i32, %c0_i32_0 : i32, i32, i32
  }
  func.func @transform_2(%arg0: i32) -> (i32, i32) {
    %c0_i32 = arith.constant 0 : i32
    %c0_i32_0 = arith.constant 0 : i32
    %c0_i32_1 = arith.constant 0 : i32
    return %c0_i32, %c0_i32_0 : i32, i32
  }
  func.func @transform_3(%arg0: i32) -> (i32, i32) {
    %c0_i32 = arith.constant 0 : i32
    %c0_i32_0 = arith.constant 0 : i32
    %c0_i32_1 = arith.constant 0 : i32
    return %c0_i32, %c0_i32_0 : i32, i32
  }
  func.func @transform_4(%arg0: i32) -> (i32, i32) {
    %c0_i32 = arith.constant 0 : i32
    %c0_i32_0 = arith.constant 0 : i32
    %c0_i32_1 = arith.constant 0 : i32
    return %c0_i32, %c0_i32_0 : i32, i32
  }
  func.func @transform_5(%arg0: i32) -> (i32, i32) {
    %c0_i32 = arith.constant 0 : i32
    %c0_i32_0 = arith.constant 0 : i32
    %c0_i32_1 = arith.constant 0 : i32
    return %c0_i32, %c0_i32_0 : i32, i32
  }
  func.func @transform_6(%arg0: i32) -> (i32, i32) {
    %c0_i32 = arith.constant 0 : i32
    %c0_i32_0 = arith.constant 0 : i32
    %c0_i32_1 = arith.constant 0 : i32
    return %c0_i32, %c0_i32_0 : i32, i32
  }
  func.func @transform_7(%arg0: i32) -> (i32, i32) {
    %c0_i32 = arith.constant 0 : i32
    %c0_i32_0 = arith.constant 0 : i32
    %c0_i32_1 = arith.constant 0 : i32
    return %c0_i32, %c0_i32_0 : i32, i32
  }
  func.func @transform_8(%arg0: i32) -> (i32, i32) {
    %c0_i32 = arith.constant 0 : i32
    %c0_i32_0 = arith.constant 0 : i32
    %c0_i32_1 = arith.constant 0 : i32
    return %c0_i32, %c0_i32_0 : i32, i32
  }
  func.func @transform_9(%arg0: i32) -> (i32, i32) {
    %c0_i32 = arith.constant 0 : i32
    %c0_i32_0 = arith.constant 0 : i32
    %c0_i32_1 = arith.constant 0 : i32
    return %c0_i32, %c0_i32_0 : i32, i32
  }
  func.func @transform_10(%arg0: i32) -> (i32, i32) {
    %c0_i32 = arith.constant 0 : i32
    %c0_i32_0 = arith.constant 0 : i32
    %c0_i32_1 = arith.constant 0 : i32
    return %c0_i32, %c0_i32_0 : i32, i32
  }
  func.func @transform_11(%arg0: i32) -> (i32, i32) {
    %c0_i32 = arith.constant 0 : i32
    %c0_i32_0 = arith.constant 0 : i32
    %c0_i32_1 = arith.constant 0 : i32
    return %c0_i32, %c0_i32_0 : i32, i32
  }
  func.func @transform_12(%arg0: i32) -> (i32, i32) {
    %c0_i32 = arith.constant 0 : i32
    %c0_i32_0 = arith.constant 0 : i32
    %c0_i32_1 = arith.constant 0 : i32
    return %c0_i32, %c0_i32_0 : i32, i32
  }
  func.func @transform_13(%arg0: i32) -> (i32, i32) {
    %c0_i32 = arith.constant 0 : i32
    %c0_i32_0 = arith.constant 0 : i32
    %c0_i32_1 = arith.constant 0 : i32
    return %c0_i32, %c0_i32_0 : i32, i32
  }
  func.func @transform_14(%arg0: i32) -> (i32, i32) {
    %c0_i32 = arith.constant 0 : i32
    %c0_i32_0 = arith.constant 0 : i32
    %c0_i32_1 = arith.constant 0 : i32
    return %c0_i32, %c0_i32_0 : i32, i32
  }
  func.func @transform_15(%arg0: i32) -> (i32, i32) {
    %c0_i32 = arith.constant 0 : i32
    %c0_i32_0 = arith.constant 0 : i32
    %c0_i32_1 = arith.constant 0 : i32
    return %c0_i32, %c0_i32_0 : i32, i32
  }
  func.func @transform_16(%arg0: i32) -> (i32, i32) {
    %c0_i32 = arith.constant 0 : i32
    %c0_i32_0 = arith.constant 0 : i32
    %c0_i32_1 = arith.constant 0 : i32
    return %c0_i32, %c0_i32_0 : i32, i32
  }
  func.func @transform_17(%arg0: i32) -> (i32, i32) {
    %c0_i32 = arith.constant 0 : i32
    %c0_i32_0 = arith.constant 0 : i32
    %c0_i32_1 = arith.constant 0 : i32
    return %c0_i32, %c0_i32_0 : i32, i32
  }
  func.func @transform_18(%arg0: i32) -> (i32, i32) {
    %c0_i32 = arith.constant 0 : i32
    %c0_i32_0 = arith.constant 0 : i32
    %c0_i32_1 = arith.constant 0 : i32
    return %c0_i32, %c0_i32_0 : i32, i32
  }
  func.func @transform_19(%arg0: i32) -> (i32, i32) {
    %c0_i32 = arith.constant 0 : i32
    %c0_i32_0 = arith.constant 0 : i32
    %c0_i32_1 = arith.constant 0 : i32
    return %c0_i32, %c0_i32_0 : i32, i32
  }
  func.func @transform_20(%arg0: i32) -> (i32, i32) {
    %c0_i32 = arith.constant 0 : i32
    %c0_i32_0 = arith.constant 0 : i32
    %c0_i32_1 = arith.constant 0 : i32
    return %c0_i32, %c0_i32_0 : i32, i32
  }
  func.func @transform_21(%arg0: i32) -> (i32, i32) {
    %c0_i32 = arith.constant 0 : i32
    %c0_i32_0 = arith.constant 0 : i32
    %c0_i32_1 = arith.constant 0 : i32
    return %c0_i32, %c0_i32_0 : i32, i32
  }
  func.func @transform_22(%arg0: i32) -> (i32, i32) {
    %c0_i32 = arith.constant 0 : i32
    %c0_i32_0 = arith.constant 0 : i32
    %c0_i32_1 = arith.constant 0 : i32
    return %c0_i32, %c0_i32_0 : i32, i32
  }
  func.func @transform_23(%arg0: i32) -> (i32, i32) {
    %c0_i32 = arith.constant 0 : i32
    %c0_i32_0 = arith.constant 0 : i32
    %c0_i32_1 = arith.constant 0 : i32
    return %c0_i32, %c0_i32_0 : i32, i32
  }
  func.func @transform_24(%arg0: i32) -> (i32, i32) {
    %c0_i32 = arith.constant 0 : i32
    %c0_i32_0 = arith.constant 0 : i32
    %c0_i32_1 = arith.constant 0 : i32
    return %c0_i32, %c0_i32_0 : i32, i32
  }
  func.func @transform_25(%arg0: i32) -> (i32, i32) {
    %c0_i32 = arith.constant 0 : i32
    %c0_i32_0 = arith.constant 0 : i32
    %c0_i32_1 = arith.constant 0 : i32
    return %c0_i32, %c0_i32_0 : i32, i32
  }
  func.func @transform_26(%arg0: i32) -> (i32, i32) {
    %c0_i32 = arith.constant 0 : i32
    %c0_i32_0 = arith.constant 0 : i32
    %c0_i32_1 = arith.constant 0 : i32
    return %c0_i32, %c0_i32_0 : i32, i32
  }
  func.func @transform_27(%arg0: i32) -> (i32, i32) {
    %c0_i32 = arith.constant 0 : i32
    %c0_i32_0 = arith.constant 0 : i32
    %c0_i32_1 = arith.constant 0 : i32
    return %c0_i32, %c0_i32_0 : i32, i32
  }
  func.func @transform_28(%arg0: i32) -> (i32, i32) {
    %c0_i32 = arith.constant 0 : i32
    %c0_i32_0 = arith.constant 0 : i32
    %c0_i32_1 = arith.constant 0 : i32
    return %c0_i32, %c0_i32_0 : i32, i32
  }
  func.func @transform_29(%arg0: i32) -> (i32, i32) {
    %c0_i32 = arith.constant 0 : i32
    %c0_i32_0 = arith.constant 0 : i32
    %c0_i32_1 = arith.constant 0 : i32
    return %c0_i32, %c0_i32_0 : i32, i32
  }
  func.func @transform_30(%arg0: i32) -> (i32, i32) {
    %c0_i32 = arith.constant 0 : i32
    %c0_i32_0 = arith.constant 0 : i32
    %c0_i32_1 = arith.constant 0 : i32
    return %c0_i32, %c0_i32_0 : i32, i32
  }
  func.func @transform_31(%arg0: i32) -> (i32, i32) {
    %c0_i32 = arith.constant 0 : i32
    %c0_i32_0 = arith.constant 0 : i32
    %c0_i32_1 = arith.constant 0 : i32
    return %c0_i32, %c0_i32_0 : i32, i32
  }
  func.func @transform_32(%arg0: i32) -> (i32, i32) {
    %c0_i32 = arith.constant 0 : i32
    %c0_i32_0 = arith.constant 0 : i32
    %c0_i32_1 = arith.constant 0 : i32
    return %c0_i32, %c0_i32_0 : i32, i32
  }
  func.func @transform_33(%arg0: i32) -> (i32, i32) {
    %c0_i32 = arith.constant 0 : i32
    %c0_i32_0 = arith.constant 0 : i32
    %c0_i32_1 = arith.constant 0 : i32
    return %c0_i32, %c0_i32_0 : i32, i32
  }
  func.func @transform_34(%arg0: i32) -> (i32, i32) {
    %c0_i32 = arith.constant 0 : i32
    %c0_i32_0 = arith.constant 0 : i32
    %c0_i32_1 = arith.constant 0 : i32
    return %c0_i32, %c0_i32_0 : i32, i32
  }
  func.func @transform_35(%arg0: i32) -> (i32, i32) {
    %c0_i32 = arith.constant 0 : i32
    %c0_i32_0 = arith.constant 0 : i32
    %c0_i32_1 = arith.constant 0 : i32
    return %c0_i32, %c0_i32_0 : i32, i32
  }
  func.func @transform_36(%arg0: i32) -> (i32, i32) {
    %c0_i32 = arith.constant 0 : i32
    %c0_i32_0 = arith.constant 0 : i32
    %c0_i32_1 = arith.constant 0 : i32
    return %c0_i32, %c0_i32_0 : i32, i32
  }
  func.func @transform_37(%arg0: i32) -> (i32, i32) {
    %c0_i32 = arith.constant 0 : i32
    %c0_i32_0 = arith.constant 0 : i32
    %c0_i32_1 = arith.constant 0 : i32
    return %c0_i32, %c0_i32_0 : i32, i32
  }
  func.func @transform_38(%arg0: i32) -> (i32, i32) {
    %c0_i32 = arith.constant 0 : i32
    %c0_i32_0 = arith.constant 0 : i32
    %c0_i32_1 = arith.constant 0 : i32
    return %c0_i32, %c0_i32_0 : i32, i32
  }
  func.func @transform_39(%arg0: i32) -> (i32, i32) {
    %c0_i32 = arith.constant 0 : i32
    %c0_i32_0 = arith.constant 0 : i32
    %c0_i32_1 = arith.constant 0 : i32
    return %c0_i32, %c0_i32_0 : i32, i32
  }
  func.func @transform_40(%arg0: i32) -> (i32, i32) {
    %c0_i32 = arith.constant 0 : i32
    %c0_i32_0 = arith.constant 0 : i32
    %c0_i32_1 = arith.constant 0 : i32
    return %c0_i32, %c0_i32_0 : i32, i32
  }
  func.func @transform_41(%arg0: i32) -> (i32, i32) {
    %c0_i32 = arith.constant 0 : i32
    %c0_i32_0 = arith.constant 0 : i32
    %c0_i32_1 = arith.constant 0 : i32
    return %c0_i32, %c0_i32_0 : i32, i32
  }
  func.func @transform_42(%arg0: i32) -> (i32, i32) {
    %c0_i32 = arith.constant 0 : i32
    %c0_i32_0 = arith.constant 0 : i32
    %c0_i32_1 = arith.constant 0 : i32
    return %c0_i32, %c0_i32_0 : i32, i32
  }
  func.func @transform_43(%arg0: i32) -> (i32, i32) {
    %c0_i32 = arith.constant 0 : i32
    %c0_i32_0 = arith.constant 0 : i32
    %c0_i32_1 = arith.constant 0 : i32
    return %c0_i32, %c0_i32_0 : i32, i32
  }
  func.func @transform_44(%arg0: i32) -> (i32, i32) {
    %c0_i32 = arith.constant 0 : i32
    %c0_i32_0 = arith.constant 0 : i32
    %c0_i32_1 = arith.constant 0 : i32
    return %c0_i32, %c0_i32_0 : i32, i32
  }
  func.func @transform_45(%arg0: i32) -> (i32, i32) {
    %c0_i32 = arith.constant 0 : i32
    %c0_i32_0 = arith.constant 0 : i32
    %c0_i32_1 = arith.constant 0 : i32
    return %c0_i32, %c0_i32_0 : i32, i32
  }
  func.func @transform_46(%arg0: i32) -> (i32, i32) {
    %c0_i32 = arith.constant 0 : i32
    %c0_i32_0 = arith.constant 0 : i32
    %c0_i32_1 = arith.constant 0 : i32
    return %c0_i32, %c0_i32_0 : i32, i32
  }
  func.func @transform_47(%arg0: i32) -> (i32, i32) {
    %c0_i32 = arith.constant 0 : i32
    %c0_i32_0 = arith.constant 0 : i32
    %c0_i32_1 = arith.constant 0 : i32
    return %c0_i32, %c0_i32_0 : i32, i32
  }
  func.func @transform_48(%arg0: i32) -> (i32, i32) {
    %c0_i32 = arith.constant 0 : i32
    %c0_i32_0 = arith.constant 0 : i32
    %c0_i32_1 = arith.constant 0 : i32
    return %c0_i32, %c0_i32_0 : i32, i32
  }
  func.func @transform_49(%arg0: i32) -> (i32, i32) {
    %c0_i32 = arith.constant 0 : i32
    %c0_i32_0 = arith.constant 0 : i32
    %c0_i32_1 = arith.constant 0 : i32
    return %c0_i32, %c0_i32_0 : i32, i32
  }
  func.func @transform_50(%arg0: i32) -> (i32, i32) {
    %c0_i32 = arith.constant 0 : i32
    %c0_i32_0 = arith.constant 0 : i32
    %c0_i32_1 = arith.constant 0 : i32
    return %c0_i32, %c0_i32_0 : i32, i32
  }
  func.func @transform_51(%arg0: i32) -> (i32, i32) {
    %c0_i32 = arith.constant 0 : i32
    %c0_i32_0 = arith.constant 0 : i32
    %c0_i32_1 = arith.constant 0 : i32
    return %c0_i32, %c0_i32_0 : i32, i32
  }
  func.func @transform_52(%arg0: i32) -> (i32, i32) {
    %c0_i32 = arith.constant 0 : i32
    %c0_i32_0 = arith.constant 0 : i32
    %c0_i32_1 = arith.constant 0 : i32
    return %c0_i32, %c0_i32_0 : i32, i32
  }
  func.func @transform_53(%arg0: i32) -> (i32, i32) {
    %c0_i32 = arith.constant 0 : i32
    %c0_i32_0 = arith.constant 0 : i32
    %c0_i32_1 = arith.constant 0 : i32
    return %c0_i32, %c0_i32_0 : i32, i32
  }
  func.func @transform_54(%arg0: i32) -> (i32, i32) {
    %c0_i32 = arith.constant 0 : i32
    %c0_i32_0 = arith.constant 0 : i32
    %c0_i32_1 = arith.constant 0 : i32
    return %c0_i32, %c0_i32_0 : i32, i32
  }
  func.func @transform_55(%arg0: i32) -> (i32, i32) {
    %c0_i32 = arith.constant 0 : i32
    %c0_i32_0 = arith.constant 0 : i32
    %c0_i32_1 = arith.constant 0 : i32
    return %c0_i32, %c0_i32_0 : i32, i32
  }
  func.func @transform_56(%arg0: i32) -> (i32, i32) {
    %c0_i32 = arith.constant 0 : i32
    %c0_i32_0 = arith.constant 0 : i32
    %c0_i32_1 = arith.constant 0 : i32
    return %c0_i32, %c0_i32_0 : i32, i32
  }
  func.func @transform_57(%arg0: i32) -> (i32, i32) {
    %c0_i32 = arith.constant 0 : i32
    %c0_i32_0 = arith.constant 0 : i32
    %c0_i32_1 = arith.constant 0 : i32
    return %c0_i32, %c0_i32_0 : i32, i32
  }
  func.func @transform_58(%arg0: i32) -> (i32, i32) {
    %c0_i32 = arith.constant 0 : i32
    %c0_i32_0 = arith.constant 0 : i32
    %c0_i32_1 = arith.constant 0 : i32
    return %c0_i32, %c0_i32_0 : i32, i32
  }
  func.func @transform_59(%arg0: i32) -> (i32, i32) {
    %c0_i32 = arith.constant 0 : i32
    %c0_i32_0 = arith.constant 0 : i32
    %c0_i32_1 = arith.constant 0 : i32
    return %c0_i32, %c0_i32_0 : i32, i32
  }
  func.func @transform_60(%arg0: i32) -> (i32, i32) {
    %c0_i32 = arith.constant 0 : i32
    %c0_i32_0 = arith.constant 0 : i32
    %c0_i32_1 = arith.constant 0 : i32
    return %c0_i32, %c0_i32_0 : i32, i32
  }
  func.func @transform_61(%arg0: i32) -> (i32, i32) {
    %c0_i32 = arith.constant 0 : i32
    %c0_i32_0 = arith.constant 0 : i32
    %c0_i32_1 = arith.constant 0 : i32
    return %c0_i32, %c0_i32_0 : i32, i32
  }
  func.func @transform_62(%arg0: i32) -> (i32, i32) {
    %c0_i32 = arith.constant 0 : i32
    %c0_i32_0 = arith.constant 0 : i32
    %c0_i32_1 = arith.constant 0 : i32
    return %c0_i32, %c0_i32_0 : i32, i32
  }
  func.func @transform_63(%arg0: i32) -> (i32, i32) {
    %c0_i32 = arith.constant 0 : i32
    %c0_i32_0 = arith.constant 0 : i32
    %c0_i32_1 = arith.constant 0 : i32
    return %c0_i32, %c0_i32_0 : i32, i32
  }
  func.func @transform_64(%arg0: i32) -> (i32, i32) {
    %c0_i32 = arith.constant 0 : i32
    %c0_i32_0 = arith.constant 0 : i32
    %c0_i32_1 = arith.constant 0 : i32
    return %c0_i32, %c0_i32_0 : i32, i32
  }
  func.func @transform_65(%arg0: i32) -> (i32, i32) {
    %c0_i32 = arith.constant 0 : i32
    %c0_i32_0 = arith.constant 0 : i32
    %c0_i32_1 = arith.constant 0 : i32
    return %c0_i32, %c0_i32_0 : i32, i32
  }
  func.func @transform_66(%arg0: i32) -> (i32, i32, i32) {
    %c0_i32 = arith.constant 0 : i32
    %c0_i32_0 = arith.constant 0 : i32
    %c0_i32_1 = arith.constant 0 : i32
    return %arg0, %c0_i32, %c0_i32_0 : i32, i32, i32
  }
}

</mosaic_0001>

<bundles_post_ra>
// kernel: tpu_custom_call.1
= control target key start
LH: loop header
LB: loop body
LE: loop exit
PB: predicated region body
PF: predicated region fallthrough
CT: control target
= control target key end

     0   :  { %s14198_s6 = smov 1   ;;  %s14199_s10 = smov 2   ;;  %s16178_s0 = inlined_call_operand.smem [shape: u32[67], index: -1, kind: input, shape index: {}] }
   0x1   :  { %s14341_s5 = sld [smem:[%s16178_s0]]   ;;  %s14200_s14 = smov 3  }
   0x2   :  { %s14346_s9 = sld [smem:[%s16178_s0 + %s14198_s6]]   ;;  %s14201_s18 = smov 4  }
   0x3   :  { %s14351_s13 = sld [smem:[%s16178_s0 + %s14199_s10]]   ;;  %s14202_s22 = smov 5  }
   0x4   :  { %s14356_s17 = sld [smem:[%s16178_s0 + %s14200_s14]]   ;;  %s14203_s26 = smov 6  }
   0x5   :  { %s14361_s21 = sld [smem:[%s16178_s0 + %s14201_s18]]   ;;  %s14204_s30 = smov 7  }
   0x6   :  { %s14366_s25 = sld [smem:[%s16178_s0 + %s14202_s22]]   ;;  %s14205_s4 = smov 8  }
   0x7   :  { %16301 = sst [smem:[#allocation111_spill]] %s14341_s5  ;;  %s14206_s10 = smov 9  }
   0x8   :  { %16302 = sst [smem:[#allocation112_spill]] %s14346_s9  ;;  %s14207_s15 = smov 10  }
   0x9   :  { %16303 = sst [smem:[#allocation113_spill]] %s14351_s13  ;;  %s14208_s20 = smov 11  }
   0xa   :  { %16304 = sst [smem:[#allocation114_spill]] %s14356_s17  ;;  %s14210_s1 = smov 13  }
   0xb   :  { %16305 = sst [smem:[#allocation115_spill]] %s14361_s21  ;;  %s14211_s7 = smov 14  }
   0xc   :  { %s14371_s29 = sld [smem:[%s16178_s0 + %s14203_s26]]   ;;  %s14209_s26 = smov 12  }
   0xd   :  { %s14376_s3 = sld [smem:[%s16178_s0 + %s14204_s30]]   ;;  %s14213_s22 = smov 16  }
   0xe   :  { %s14381_s8 = sld [smem:[%s16178_s0 + %s14205_s4]]   ;;  %s14214_s28 = smov 17  }
   0xf   :  { %s14386_s14 = sld [smem:[%s16178_s0 + %s14206_s10]]  }
  0x10   :  { %s14391_s19 = sld [smem:[%s16178_s0 + %s14207_s15]]   ;;  %s14212_s15 = smov 15  }
  0x11   :  { %s14396_s24 = sld [smem:[%s16178_s0 + %s14208_s20]]  }
  0x12   :  { %16306 = sst [smem:[#allocation116_spill]] %s14371_s29 }
  0x13   :  { %16307 = sst [smem:[#allocation117_spill]] %s14376_s3 }
  0x14   :  { %16308 = sst [smem:[#allocation118_spill]] %s14381_s8 }
  0x15   :  { %16309 = sst [smem:[#allocation119_spill]] %s14386_s14 }
  0x16   :  { %16310 = sst [smem:[#allocation120_spill]] %s14391_s19 }
  0x17   :  { %s14401_s30 = sld [smem:[%s16178_s0 + %s14209_s26]]  }
  0x18   :  { %s14406_s6 = sld [smem:[%s16178_s0 + %s14210_s1]]  }
  0x19   :  { %s14411_s12 = sld [smem:[%s16178_s0 + %s14211_s7]]   ;;  %s14215_s7 = smov 18  }
  0x1a   :  { %s14416_s20 = sld [smem:[%s16178_s0 + %s14212_s15]]   ;;  %s14216_s15 = smov 19  }
  0x1b   :  { %s14421_s27 = sld [smem:[%s16178_s0 + %s14213_s22]]   ;;  %s14217_s22 = smov 20  }
  0x1c   :  { %s14426_s4 = sld [smem:[%s16178_s0 + %s14214_s28]]   ;;  %s14218_s28 = smov 21  }
  0x1d   :  { %16311 = sst [smem:[#allocation121_spill]] %s14401_s30 }
  0x1e   :  { %16312 = sst [smem:[#allocation122_spill]] %s14406_s6 }
  0x1f   :  { %16313 = sst [smem:[#allocation123_spill]] %s14411_s12 }
  0x20   :  { %s14431_s14 = sld [smem:[%s16178_s0 + %s14215_s7]]   ;;  %s14219_s7 = smov 22  }
  0x21   :  { %16314 = sst [smem:[#allocation124_spill]] %s14421_s27 }
  0x22   :  { %16315 = sst [smem:[#allocation125_spill]] %s14426_s4 }
  0x23   :  { %s14436_s19 = sld [smem:[%s16178_s0 + %s14216_s15]]   ;;  %s14220_s15 = smov 23  }
  0x24   :  { %s14441_s9 = sld [smem:[%s16178_s0 + %s14217_s22]]   ;;  %s14221_s22 = smov 24  }
  0x25   :  { %s14446_s5 = sld [smem:[%s16178_s0 + %s14218_s28]]   ;;  %s14222_s28 = smov 25  }
  0x26   :  { %16316 = sst [smem:[#allocation126_spill]] %s14431_s14 }
  0x27   :  { %s14451_s14 = sld [smem:[%s16178_s0 + %s14219_s7]]   ;;  %s14223_s7 = smov 26  }
  0x28   :  { %s14461_s27 = sld [smem:[%s16178_s0 + %s14221_s22]]   ;;  %s14225_s22 = smov 28  }
  0x29   :  { %16317 = sst [smem:[#allocation127_spill]] %s14436_s19 }
  0x2a   :  { %16318 = sst [smem:[#allocation128_spill]] %s14441_s9 }
  0x2b   :  { %16319 = sst [smem:[#allocation129_spill]] %s14446_s5 }
  0x2c   :  { %s14456_s19 = sld [smem:[%s16178_s0 + %s14220_s15]]   ;;  %s14224_s15 = smov 27  }
  0x2d   :  { %16320 = sst [smem:[#allocation130_spill]] %s14451_s14 }
  0x2e   :  { %16321 = sst [smem:[#allocation131_spill]] %s14461_s27 }
  0x2f   :  { %s14466_s5 = sld [smem:[%s16178_s0 + %s14222_s28]]   ;;  %s14226_s28 = smov 29  }
  0x30   :  { %s14471_s14 = sld [smem:[%s16178_s0 + %s14223_s7]]   ;;  %s14227_s7 = smov 30  }
  0x31   :  { %s14476_s12 = sld [smem:[%s16178_s0 + %s14224_s15]]   ;;  %s14228_s15 = smov 31  }
  0x32   :  { %s14481_s27 = sld [smem:[%s16178_s0 + %s14225_s22]]   ;;  %s14229_s22 = smov 32  }
  0x33   :  { %s14486_s30 = sld [smem:[%s16178_s0 + %s14226_s28]]   ;;  %s14230_s28 = smov 33  }
  0x34   :  { %s14496_s8 = sld [smem:[%s16178_s0 + %s14228_s15]]   ;;  %s14232_s15 = smov 35  }
  0x35   :  { %16322 = sst [smem:[#allocation132_spill]] %s14466_s5 }
  0x36   :  { %16323 = sst [smem:[#allocation133_spill]] %s14471_s14 }
  0x37   :  { %16324 = sst [smem:[#allocation134_spill]] %s14476_s12 }
  0x38   :  { %16325 = sst [smem:[#allocation135_spill]] %s14481_s27 }
  0x39   :  { %s14491_s14 = sld [smem:[%s16178_s0 + %s14227_s7]]   ;;  %s14231_s7 = smov 34  }
  0x3a   :  { %16327 = sst [smem:[#allocation137_spill]] %s14496_s8 }
  0x3b   :  { %s14501_s27 = sld [smem:[%s16178_s0 + %s14229_s22]]   ;;  %s14233_s22 = smov 36  }
  0x3c   :  { %s14506_s29 = sld [smem:[%s16178_s0 + %s14230_s28]]   ;;  %s14234_s28 = smov 37  }
  0x3d   :  { %s14516_s21 = sld [smem:[%s16178_s0 + %s14232_s15]]   ;;  %s14236_s15 = smov 39  }
  0x3e   :  { %s14526_s13 = sld [smem:[%s16178_s0 + %s14234_s28]]   ;;  %s14238_s28 = smov 41  }
  0x3f   :  { %16326 = sst [smem:[#allocation136_spill]] %s14491_s14 }
  0x40   :  { %s14511_s14 = sld [smem:[%s16178_s0 + %s14231_s7]]   ;;  %s14235_s7 = smov 38  }
  0x41   :  { %16328 = sst [smem:[#allocation138_spill]] %s14501_s27 }
  0x42   :  { %s14521_s27 = sld [smem:[%s16178_s0 + %s14233_s22]]   ;;  %s14237_s22 = smov 40  }
  0x43   :  { %16330 = sst [smem:[#allocation140_spill]] %s14516_s21 }
  0x44   :  { %16332 = sst [smem:[#allocation142_spill]] %s14526_s13 }
  0x45   :  { %s14536_s21 = sld [smem:[%s16178_s0 + %s14236_s15]]   ;;  %s14240_s15 = smov 43  }
  0x46   :  { %16329 = sst [smem:[#allocation139_spill]] %s14511_s14 }
  0x47   :  { %s14531_s14 = sld [smem:[%s16178_s0 + %s14235_s7]]   ;;  %s14239_s7 = smov 42  }
  0x48   :  { %16331 = sst [smem:[#allocation141_spill]] %s14521_s27 }
  0x49   :  { %s14541_s27 = sld [smem:[%s16178_s0 + %s14237_s22]]   ;;  %s14241_s22 = smov 44  }
  0x4a   :  { %s14546_s13 = sld [smem:[%s16178_s0 + %s14238_s28]]   ;;  %s14242_s28 = smov 45  }
  0x4b   :  { %16334 = sst [smem:[#allocation144_spill]] %s14536_s21 }
  0x4c   :  { %s14556_s21 = sld [smem:[%s16178_s0 + %s14240_s15]]   ;;  %s14244_s15 = smov 47  }
  0x4d   :  { %16333 = sst [smem:[#allocation143_spill]] %s14531_s14 }
  0x4e   :  { %s14551_s14 = sld [smem:[%s16178_s0 + %s14239_s7]]   ;;  %s14243_s7 = smov 46  }
  0x4f   :  { %16335 = sst [smem:[#allocation145_spill]] %s14541_s27 }
  0x50   :  { %16336 = sst [smem:[#allocation146_spill]] %s14546_s13 }
  0x51   :  { %s14561_s27 = sld [smem:[%s16178_s0 + %s14241_s22]]   ;;  %s14245_s22 = smov 48  }
  0x52   :  { %16338 = sst [smem:[#allocation148_spill]] %s14556_s21 }
  0x53   :  { %s14566_s13 = sld [smem:[%s16178_s0 + %s14242_s28]]   ;;  %s14246_s28 = smov 49  }
  0x54   :  { %16337 = sst [smem:[#allocation147_spill]] %s14551_s14 }
  0x55   :  { %s14571_s14 = sld [smem:[%s16178_s0 + %s14243_s7]]   ;;  %s14247_s7 = smov 50  }
  0x56   :  { %s14576_s21 = sld [smem:[%s16178_s0 + %s14244_s15]]   ;;  %s14248_s15 = smov 51  }
  0x57   :  { %16339 = sst [smem:[#allocation149_spill]] %s14561_s27 }
  0x58   :  { %s14581_s27 = sld [smem:[%s16178_s0 + %s14245_s22]]   ;;  %s14249_s22 = smov 52  }
  0x59   :  { %16340 = sst [smem:[#allocation150_spill]] %s14566_s13 }
  0x5a   :  { %s14586_s13 = sld [smem:[%s16178_s0 + %s14246_s28]]   ;;  %s14250_s28 = smov 53  }
  0x5b   :  { %16341 = sst [smem:[#allocation151_spill]] %s14571_s14 }
  0x5c   :  { %16342 = sst [smem:[#allocation152_spill]] %s14576_s21 }
  0x5d   :  { %s14591_s14 = sld [smem:[%s16178_s0 + %s14247_s7]]   ;;  %s14251_s7 = smov 54  }
  0x5e   :  { %16343 = sst [smem:[#allocation153_spill]] %s14581_s27 }
  0x5f   :  { %s14596_s21 = sld [smem:[%s16178_s0 + %s14248_s15]]   ;;  %s14252_s15 = smov 55  }
  0x60   :  { %16344 = sst [smem:[#allocation154_spill]] %s14586_s13 }
  0x61   :  { %s14601_s27 = sld [smem:[%s16178_s0 + %s14249_s22]]   ;;  %s14253_s22 = smov 56  }
  0x62   :  { %s14606_s13 = sld [smem:[%s16178_s0 + %s14250_s28]]   ;;  %s14254_s28 = smov 57  }
  0x63   :  { %16345 = sst [smem:[#allocation155_spill]] %s14591_s14 }
  0x64   :  { %s14611_s14 = sld [smem:[%s16178_s0 + %s14251_s7]]   ;;  %s14255_s7 = smov 58  }
  0x65   :  { %16346 = sst [smem:[#allocation156_spill]] %s14596_s21 }
  0x66   :  { %s14616_s21 = sld [smem:[%s16178_s0 + %s14252_s15]]   ;;  %s14256_s15 = smov 59  }
  0x67   :  { %16347 = sst [smem:[#allocation157_spill]] %s14601_s27 }
  0x68   :  { %16348 = sst [smem:[#allocation158_spill]] %s14606_s13 }
  0x69   :  { %s14621_s27 = sld [smem:[%s16178_s0 + %s14253_s22]]   ;;  %s14257_s22 = smov 60  }
  0x6a   :  { %16349 = sst [smem:[#allocation159_spill]] %s14611_s14 }
  0x6b   :  { %s14626_s13 = sld [smem:[%s16178_s0 + %s14254_s28]]   ;;  %s14258_s28 = smov 61  }
  0x6c   :  { %16350 = sst [smem:[#allocation160_spill]] %s14616_s21 }
  0x6d   :  { %s14631_s14 = sld [smem:[%s16178_s0 + %s14255_s7]]   ;;  %s14259_s7 = smov 62  }
  0x6e   :  { %s14636_s21 = sld [smem:[%s16178_s0 + %s14256_s15]]   ;;  %s14260_s15 = smov 63  }
  0x6f   :  { %16351 = sst [smem:[#allocation161_spill]] %s14621_s27 }
  0x70   :  { %s14641_s27 = sld [smem:[%s16178_s0 + %s14257_s22]]   ;;  %s14261_s22 = smov 64  }
  0x71   :  { %16352 = sst [smem:[#allocation162_spill]] %s14626_s13 }
  0x72   :  { %s14646_s13 = sld [smem:[%s16178_s0 + %s14258_s28]]   ;;  %s14262_s28 = smov 65  }
  0x73   :  { %16353 = sst [smem:[#allocation163_spill]] %s14631_s14 }
  0x74   :  { %16354 = sst [smem:[#allocation164_spill]] %s14636_s21 }
  0x75   :  { %s14651_s14 = sld [smem:[%s16178_s0 + %s14259_s7]]   ;;  %s14263_s7 = smov 66  }
  0x76   :  { %16355 = sst [smem:[#allocation165_spill]] %s14641_s27 }
  0x77   :  { %s14656_s21 = sld [smem:[%s16178_s0 + %s14260_s15]]  }
  0x78   :  { %16356 = sst [smem:[#allocation166_spill]] %s14646_s13 }
  0x79   :  { %s14661_s27 = sld [smem:[%s16178_s0 + %s14261_s22]]  }
  0x7a   :  { %s14666_s13 = sld [smem:[%s16178_s0 + %s14262_s28]]  }
  0x7b   :  { %16357 = sst [smem:[#allocation167_spill]] %s14651_s14 }
  0x7c   :  { %s14671_s14 = sld [smem:[%s16178_s0 + %s14263_s7]]  }
  0x7d   :  { %138 = vsyncpa [#allocation3], 0 }
  0x7e   :  { %139 = vsyncpa [#allocation6], 0 }
  0x7f   :  { %140 = vsyncpa [#allocation9], 0 }
  0x80   :  { %141 = vsyncpa [#allocation12], 0 }
  0x81   :  { %142 = vsyncpa [#allocation15], 0 }
  0x82   :  { %143 = vsyncpa [#allocation18], 0 }
  0x83   :  { %144 = vsyncpa [#allocation21], 0 }
  0x84   :  { %145 = vsyncpa [#allocation24], 0 }
  0x85   :  { %146 = vsyncpa [#allocation27], 0 }
  0x86   :  { %147 = vsyncpa [#allocation30], 0 }
  0x87   :  { %148 = vsyncpa [#allocation33], 0 }
  0x88   :  { %149 = vsyncpa [#allocation36], 0 }
  0x89   :  { %150 = vsyncpa [#allocation39], 0 }
  0x8a   :  { %151 = vsyncpa [#allocation42], 0 }
  0x8b   :  { %152 = vsyncpa [#allocation45], 0 }
  0x8c   :  { %153 = vsyncpa [#allocation48], 0 }
  0x8d   :  { %154 = vsyncpa [#allocation51], 0 }
  0x8e   :  { %155 = vsyncpa [#allocation54], 0 }
  0x8f   :  { %156 = vsyncpa [#allocation57], 0 }
  0x90   :  { %157 = vsyncpa [#allocation60], 0 }
  0x91   :  { %158 = vsyncpa [#allocation63], 0 }
  0x92   :  { %159 = vsyncpa [#allocation66], 0 }
  0x93   :  { %160 = vsyncpa [#allocation69], 0 }
  0x94   :  { %161 = vsyncpa [#allocation72], 0 }
  0x95   :  { %162 = vsyncpa [#allocation75], 0 }
  0x96   :  { %163 = vsyncpa [#allocation78], 0 }
  0x97   :  { %164 = vsyncpa [#allocation81], 0 }
  0x98   :  { %165 = vsyncpa [#allocation4], 0 }
  0x99   :  { %167 = vsyncpa [#allocation4 + $0x1], 0  ;;  %s14673_s0 = smov 0   ;;  %s14675_s15 = smov 0  }
  0x9a   :  { %s14677_s16 = smov 0   ;;  %s14679_s18 = smov 0  }
  0x9b LB: > { %s16358_s12 = sld [smem:[#allocation134_spill]]  ;;  %s16359_s9 = sld [smem:[#allocation128_spill]]  ;;  %s14196_s18 = sphi %s14679_s18, %s16443_s18   ;;  %s14192_s16 = sphi %s14677_s16, %s16445_s16   ;;  %s14188_s15 = sphi %s14675_s15, %s16447_s15   ;;  %s14184_s0 = sphi %s14673_s0, %s16446_s0  }
  0x9c   : > { %s16360_s8 = sld [smem:[#allocation137_spill]]  ;;  %s16361_s6 = sld [smem:[#allocation122_spill]] }
  0x9d   : > { %s16362_s5 = sld [smem:[#allocation132_spill]]  ;;  %s16363_s4 = sld [smem:[#allocation125_spill]] }
  0x9e   : > { %s16364_s3 = sld [smem:[#allocation117_spill]]  ;;  %s16365_s17 = sld [smem:[#allocation114_spill]] }
  0x9f   : > { %16366 = sst [smem:[#allocation168_spill]] %s14192_s16  ;;  %s14694_s22 = sadd.s32 4294967295, %s14196_s18  }
  0xa0   : > { %s10910_s23 = sadd.s32 4294967294, %s14196_s18   ;;  %s14698_s26 = sadd.s32 1, %s14196_s18  }
  0xa1   : > { %16367 = sst [smem:[#allocation169_spill]] %s14698_s26  ;;  %s1576_s28 = sadd.s32 1, %s14192_s16 }
  0xa2   : > { %s1573_s1 = ssub.s32 %s14196_s18, %s14698_s26  ;;  %p1586_p0 = scmp.ne.s32.totalorder %s14192_s16, %s14188_s15 }
  0xa3   : > { %p1574_p1 = scmp.eq.s32.totalorder %s1573_s1, 0  ;;  %p1587_p2 = scmp.eq.s32.totalorder %s14694_s22, 1 }
  0xa4   : > { %p1592_p3 = scmp.ne.s32.totalorder %s14188_s15, %s14184_s0  ;;  %p1593_p4 = scmp.eq.s32.totalorder %s10910_s23, 1 }
  0xa5   : > { %s14709_s2 = scalar_select %p1574_p1, %s14192_s16, %s1576_s28  }
  0xa6   : > { %p14711_p5 = por %p1587_p2, %p1586_p0  ;;  %p14715_p6 = por %p1593_p4, %p1592_p3 }
  0xa7   : > { %16368 = sst [smem:[#allocation170_spill]] %s14709_s2  ;;  %p10911_p7 = scmp.ge.s32.totalorder %s14196_s18, 1 }
  0xa8   : > { %s16369_s7 = scalar_select %p14711_p5, 1, 0 }
  0xa9   : > { %s16370_s10 = scalar_select %p14715_p6, 1, 0 }
  0xaa   : > { %p1600_p8 = scmp.lt.s32.totalorder %s14196_s18, 3 }
  0xab   : > { %16371 = sst [smem:[#allocation171_spill]] %s16370_s10 }
  0xac   : > { %p14721_p9 = pnand %p10911_p7, %p1600_p8 }
  0xad   : > { %p12267_p10 = scmp.eq.s32.totalorder (!%p14721_p9), %s14694_s22, 0  ;;  %s14264_s23 = smov (!%p14721_p9), [#allocation5]  }
  0xae   : > { %1604 = sbr.rel (%p14721_p9) target bundleno = 1465 (0x5b9), region = 12  ;;  %s1624_s28 = sshll.u32 (!%p14721_p9), %s14264_s23, 4  ;;  %s1625_s28 = int_to_ptr.vmem [resolvable:$true] %s1624_s28 }
  0xaf   : > { %s14265_s1 = smov (!%p14721_p9), [#allocation8]   ;;  %s12674_s16 = scalar_lea.hbm (!%p14721_p9), %s16365_s17, 128 }
  0xb0   : > { %s1646_s2 = sshll.u32 (!%p14721_p9), %s14265_s1, 4  ;;  %p12675_p11 = scmp.ne.s32.totalorder (!%p14721_p9), %s16365_s17, %s12674_s16  ;;  %s1647_s2 = int_to_ptr.vmem [resolvable:$true] %s1646_s2 }
  0xb1   : > { %p12680_p0 = scmp.lt.u32.totalorder (!%p14721_p9), %s12674_s16, %s16365_s17 }
  0xb2   : > { %p12676_p12 = pnand (!%p14721_p9), %p12675_p11, %p12267_p10 }
  0xb4   : > { %p12677_p13 = pneg (!%p14721_p9), %p12676_p12 }
  0xb6   : > { %p12682_p1 = pnand %p12680_p0, %p12677_p13 }
  0xb8   : > { %12685 = shalt.err (!%p12682_p1)
}
  0xb9   : > { %s12686_s26 = scalar_lea.vmem %s1625_s28, 128  ;;  %p12693_p7 = scmp.lt.s32.totalorder %s1625_s28, %s1625_s28 }
  0xba   : > { %p12687_p2 = scmp.ne.s32.totalorder %s1625_s28, %s12686_s26  ;;  %p12694_p8 = scmp.lt.s32.totalorder %s12686_s26, %s12686_s26 }
  0xbc   : > { %p12688_p3 = pnand %p12687_p2, %p12267_p10  ;;  %p12695_p6 = por %p12694_p8, %p12693_p7 }
  0xbe   : > { %p12689_p4 = pneg %p12688_p3 }
  0xc0   : > { %p12696_p5 = pnand %p12695_p6, %p12689_p4 }
  0xc2   : > { %12699 = shalt.err (!%p12696_p5)
}
  0xc3   : > { %12056 = dma.hbm_to_vmem [thread:$0]  (%p12267_p10), %s16365_s17, 128, %s1625_s28, [#allocation6]  }
  0xc4   : > { %s12700_s16 = scalar_lea.hbm %s14366_s25, 16 }
  0xc5   : > { %p12701_p11 = scmp.ne.s32.totalorder %s14366_s25, %s12700_s16  ;;  %p12706_p0 = scmp.lt.u32.totalorder %s12700_s16, %s14366_s25 }
  0xc7   : > { %p12702_p12 = pnand %p12701_p11, %p12267_p10 }
  0xc9   : > { %p12703_p13 = pneg %p12702_p12 }
  0xcb   : > { %p12708_p1 = pnand %p12706_p0, %p12703_p13 }
  0xcd   : > { %12711 = shalt.err (!%p12708_p1)
}
  0xce   : > { %s12712_s26 = scalar_lea.vmem %s1647_s2, 16  ;;  %s12718_s23 = scalar_lea.vmem %s1647_s2, 32 }
  0xcf   : > { %p12713_p5 = scmp.ne.s32.totalorder %s1647_s2, %s12712_s26  ;;  %p12719_p3 = scmp.lt.s32.totalorder %s1647_s2, %s1647_s2 }
  0xd0   : > { %p12720_p4 = scmp.lt.s32.totalorder %s12718_s23, %s12712_s26 }
  0xd1   : > { %p12714_p6 = pnand %p12713_p5, %p12267_p10 }
  0xd2   : > { %p12721_p7 = por %p12720_p4, %p12719_p3 }
  0xd3   : > { %p12715_p2 = pneg %p12714_p6 }
  0xd5   : > { %p12722_p8 = pnand %p12721_p7, %p12715_p2 }
  0xd7   : > { %12725 = shalt.err (!%p12722_p8)
}
  0xd8   : > { %12060 = dma.hbm_to_vmem [thread:$0]  (%p12267_p10), %s14366_s25, 16, %s1647_s2, [#allocation9]  }
  0xd9   : > { %s14266_s28 = smov [#allocation11]   ;;  %s14267_s16 = smov [#allocation14]  }
  0xda   : > { %s1668_s1 = sshll.u32 %s14266_s28, 4  ;;  %s1696_s17 = sshll.u32 %s14267_s16, 4  ;;  %s1669_s1 = int_to_ptr.vmem [resolvable:$true] %s1668_s1  ;;  %s1697_s17 = int_to_ptr.vmem [resolvable:$true] %s1696_s17 }
  0xdb   : > { %s12726_s10 = scalar_lea.hbm %s16364_s3, 16 }
  0xdc   : > { %p12727_p11 = scmp.ne.s32.totalorder %s16364_s3, %s12726_s10  ;;  %p12732_p0 = scmp.lt.u32.totalorder %s12726_s10, %s16364_s3 }
  0xde   : > { %p12728_p12 = pnand %p12727_p11, %p12267_p10 }
  0xe0   : > { %p12729_p13 = pneg %p12728_p12 }
  0xe2   : > { %p12734_p1 = pnand %p12732_p0, %p12729_p13 }
  0xe4   : > { %12737 = shalt.err (!%p12734_p1)
}
  0xe5   : > { %s12738_s26 = scalar_lea.vmem %s1669_s1, 16  ;;  %s12744_s2 = scalar_lea.vmem %s1669_s1, 32 }
  0xe6   : > { %p12739_p5 = scmp.ne.s32.totalorder %s1669_s1, %s12738_s26  ;;  %p12745_p3 = scmp.lt.s32.totalorder %s1669_s1, %s1669_s1 }
  0xe7   : > { %p12746_p4 = scmp.lt.s32.totalorder %s12744_s2, %s12738_s26 }
  0xe8   : > { %p12740_p6 = pnand %p12739_p5, %p12267_p10 }
  0xe9   : > { %p12747_p7 = por %p12746_p4, %p12745_p3 }
  0xea   : > { %p12741_p2 = pneg %p12740_p6 }
  0xec   : > { %p12748_p8 = pnand %p12747_p7, %p12741_p2 }
  0xee   : > { %12751 = shalt.err (!%p12748_p8)
}
  0xef   : > { %12064 = dma.hbm_to_vmem [thread:$0]  (%p12267_p10), %s16364_s3, 16, %s1669_s1, [#allocation12]  }
  0xf0   : > { %s12752_s10 = scalar_lea.hbm %s14396_s24, 16 }
  0xf1   : > { %p12753_p11 = scmp.ne.s32.totalorder %s14396_s24, %s12752_s10  ;;  %p12758_p0 = scmp.lt.u32.totalorder %s12752_s10, %s14396_s24 }
  0xf3   : > { %p12754_p12 = pnand %p12753_p11, %p12267_p10 }
  0xf5   : > { %p12755_p13 = pneg %p12754_p12 }
  0xf7   : > { %p12760_p1 = pnand %p12758_p0, %p12755_p13 }
  0xf9   : > { %12763 = shalt.err (!%p12760_p1)
}
  0xfa   : > { %s12764_s23 = scalar_lea.vmem %s1697_s17, 16  ;;  %s12770_s28 = scalar_lea.vmem %s1697_s17, 32 }
  0xfb   : > { %p12765_p5 = scmp.ne.s32.totalorder %s1697_s17, %s12764_s23  ;;  %p12771_p3 = scmp.lt.s32.totalorder %s1697_s17, %s1697_s17 }
  0xfc   : > { %p12772_p4 = scmp.lt.s32.totalorder %s12770_s28, %s12764_s23 }
  0xfd   : > { %p12766_p6 = pnand %p12765_p5, %p12267_p10 }
  0xfe   : > { %p12773_p7 = por %p12772_p4, %p12771_p3 }
  0xff   : > { %p12767_p2 = pneg %p12766_p6 }
 0x101   : > { %p12774_p8 = pnand %p12773_p7, %p12767_p2 }
 0x103   : > { %12777 = shalt.err (!%p12774_p8)
}
 0x104   : > { %12068 = dma.hbm_to_vmem [thread:$0]  (%p12267_p10), %s14396_s24, 16, %s1697_s17, [#allocation15]  }
 0x105   : > { %s14268_s1 = smov [#allocation17]   ;;  %s14269_s26 = smov [#allocation20]  }
 0x106   : > { %s1718_s16 = sshll.u32 %s14268_s1, 4  ;;  %s1740_s2 = sshll.u32 %s14269_s26, 4  ;;  %s1719_s16 = int_to_ptr.vmem [resolvable:$true] %s1718_s16  ;;  %s1741_s2 = int_to_ptr.vmem [resolvable:$true] %s1740_s2 }
 0x107   : > { %s12778_s10 = scalar_lea.hbm %s16361_s6, 16 }
 0x108   : > { %p12779_p11 = scmp.ne.s32.totalorder %s16361_s6, %s12778_s10  ;;  %p12784_p0 = scmp.lt.u32.totalorder %s12778_s10, %s16361_s6 }
 0x10a   : > { %p12780_p12 = pnand %p12779_p11, %p12267_p10 }
 0x10c   : > { %p12781_p13 = pneg %p12780_p12 }
 0x10e   : > { %p12786_p1 = pnand %p12784_p0, %p12781_p13 }
 0x110   : > { %12789 = shalt.err (!%p12786_p1)
}
 0x111   : > { %s12790_s23 = scalar_lea.vmem %s1719_s16, 16  ;;  %s12796_s17 = scalar_lea.vmem %s1719_s16, 32 }
 0x112   : > { %p12791_p5 = scmp.ne.s32.totalorder %s1719_s16, %s12790_s23  ;;  %p12797_p3 = scmp.lt.s32.totalorder %s1719_s16, %s1719_s16 }
 0x113   : > { %p12798_p4 = scmp.lt.s32.totalorder %s12796_s17, %s12790_s23 }
 0x114   : > { %p12792_p6 = pnand %p12791_p5, %p12267_p10 }
 0x115   : > { %p12799_p7 = por %p12798_p4, %p12797_p3 }
 0x116   : > { %p12793_p2 = pneg %p12792_p6 }
 0x118   : > { %p12800_p8 = pnand %p12799_p7, %p12793_p2 }
 0x11a   : > { %12803 = shalt.err (!%p12800_p8)
}
 0x11b   : > { %12072 = dma.hbm_to_vmem [thread:$0]  (%p12267_p10), %s16361_s6, 16, %s1719_s16, [#allocation18]  }
 0x11c   : > { %s12804_s28 = scalar_lea.hbm %s14416_s20, 16 }
 0x11d   : > { %p12805_p11 = scmp.ne.s32.totalorder %s14416_s20, %s12804_s28  ;;  %p12810_p0 = scmp.lt.u32.totalorder %s12804_s28, %s14416_s20 }
 0x11f   : > { %p12806_p12 = pnand %p12805_p11, %p12267_p10 }
 0x121   : > { %p12807_p13 = pneg %p12806_p12 }
 0x123   : > { %p12812_p1 = pnand %p12810_p0, %p12807_p13 }
 0x125   : > { %12815 = shalt.err (!%p12812_p1)
}
 0x126   : > { %s12816_s1 = scalar_lea.vmem %s1741_s2, 16  ;;  %s12822_s26 = scalar_lea.vmem %s1741_s2, 32 }
 0x127   : > { %p12817_p5 = scmp.ne.s32.totalorder %s1741_s2, %s12816_s1  ;;  %p12823_p3 = scmp.lt.s32.totalorder %s1741_s2, %s1741_s2 }
 0x128   : > { %p12824_p4 = scmp.lt.s32.totalorder %s12822_s26, %s12816_s1 }
 0x129   : > { %p12818_p6 = pnand %p12817_p5, %p12267_p10 }
 0x12a   : > { %p12825_p7 = por %p12824_p4, %p12823_p3 }
 0x12b   : > { %p12819_p2 = pneg %p12818_p6 }
 0x12d   : > { %p12826_p8 = pnand %p12825_p7, %p12819_p2 }
 0x12f   : > { %12829 = shalt.err (!%p12826_p8)
}
 0x130   : > { %12076 = dma.hbm_to_vmem [thread:$0]  (%p12267_p10), %s14416_s20, 16, %s1741_s2, [#allocation21]  }
 0x131   : > { %s14270_s16 = smov [#allocation23]   ;;  %s14271_s23 = smov [#allocation26]  }
 0x132   : > { %s1762_s10 = sshll.u32 %s14270_s16, 4  ;;  %s1786_s17 = sshll.u32 %s14271_s23, 4  ;;  %s1763_s10 = int_to_ptr.vmem [resolvable:$true] %s1762_s10  ;;  %s1787_s17 = int_to_ptr.vmem [resolvable:$true] %s1786_s17 }
 0x133   : > { %s12830_s28 = scalar_lea.hbm %s16363_s4, 16 }
 0x134   : > { %p12831_p11 = scmp.ne.s32.totalorder %s16363_s4, %s12830_s28  ;;  %p12836_p0 = scmp.lt.u32.totalorder %s12830_s28, %s16363_s4 }
 0x136   : > { %p12832_p12 = pnand %p12831_p11, %p12267_p10 }
 0x138   : > { %p12833_p13 = pneg %p12832_p12 }
 0x13a   : > { %p12838_p1 = pnand %p12836_p0, %p12833_p13 }
 0x13c   : > { %12841 = shalt.err (!%p12838_p1)
}
 0x13d   : > { %s12842_s1 = scalar_lea.vmem %s1763_s10, 16  ;;  %s12848_s2 = scalar_lea.vmem %s1763_s10, 32 }
 0x13e   : > { %p12843_p5 = scmp.ne.s32.totalorder %s1763_s10, %s12842_s1  ;;  %p12849_p3 = scmp.lt.s32.totalorder %s1763_s10, %s1763_s10 }
 0x13f   : > { %p12850_p4 = scmp.lt.s32.totalorder %s12848_s2, %s12842_s1 }
 0x140   : > { %p12844_p6 = pnand %p12843_p5, %p12267_p10 }
 0x141   : > { %p12851_p7 = por %p12850_p4, %p12849_p3 }
 0x142   : > { %p12845_p2 = pneg %p12844_p6 }
 0x144   : > { %p12852_p8 = pnand %p12851_p7, %p12845_p2 }
 0x146   : > { %12855 = shalt.err (!%p12852_p8)
}
 0x147   : > { %12080 = dma.hbm_to_vmem [thread:$0]  (%p12267_p10), %s16363_s4, 16, %s1763_s10, [#allocation24]  }
 0x148   : > { %s12856_s26 = scalar_lea.hbm %s16359_s9, 512 }
 0x149   : > { %p12857_p11 = scmp.ne.s32.totalorder %s16359_s9, %s12856_s26  ;;  %p12862_p0 = scmp.lt.u32.totalorder %s12856_s26, %s16359_s9 }
 0x14b   : > { %p12858_p12 = pnand %p12857_p11, %p12267_p10 }
 0x14d   : > { %p12859_p13 = pneg %p12858_p12 }
 0x14f   : > { %p12864_p1 = pnand %p12862_p0, %p12859_p13 }
 0x151   : > { %12867 = shalt.err (!%p12864_p1)
}
 0x152   : > { %s12868_s16 = scalar_lea.vmem %s1787_s17, 512  ;;  %p12875_p3 = scmp.lt.s32.totalorder %s1787_s17, %s1787_s17 }
 0x153   : > { %p12869_p5 = scmp.ne.s32.totalorder %s1787_s17, %s12868_s16  ;;  %p12876_p4 = scmp.lt.s32.totalorder %s12868_s16, %s12868_s16 }
 0x155   : > { %p12870_p6 = pnand %p12869_p5, %p12267_p10  ;;  %p12877_p7 = por %p12876_p4, %p12875_p3 }
 0x157   : > { %p12871_p2 = pneg %p12870_p6 }
 0x159   : > { %p12878_p8 = pnand %p12877_p7, %p12871_p2 }
 0x15b   : > { %12881 = shalt.err (!%p12878_p8)
}
 0x15c   : > { %s16231_s10 = smov 128   ;;  %s16233_s23 = smov 8  }
 0x15d   : > { %12084 = dma.hbm_to_vmem [thread:$0]  (%p12267_p10), %s16359_s9, 512, %s1787_s17, [#allocation27], %s16231_s10, %s16231_s10, %s16233_s23  }
 0x15e   : > { %s14274_s28 = smov [#allocation29]   ;;  %s14275_s2 = smov [#allocation32]  }
 0x15f   : > { %s1816_s1 = sshll.u32 %s14274_s28, 4  ;;  %s1838_s26 = sshll.u32 %s14275_s2, 4  ;;  %s1817_s1 = int_to_ptr.vmem [resolvable:$true] %s1816_s1  ;;  %s1839_s26 = int_to_ptr.vmem [resolvable:$true] %s1838_s26 }
 0x160   : > { %s12882_s16 = scalar_lea.hbm %s14456_s19, 16 }
 0x161   : > { %p12883_p11 = scmp.ne.s32.totalorder %s14456_s19, %s12882_s16  ;;  %p12888_p0 = scmp.lt.u32.totalorder %s12882_s16, %s14456_s19 }
 0x163   : > { %p12884_p12 = pnand %p12883_p11, %p12267_p10 }
 0x165   : > { %p12885_p13 = pneg %p12884_p12 }
 0x167   : > { %p12890_p1 = pnand %p12888_p0, %p12885_p13 }
 0x169   : > { %12893 = shalt.err (!%p12890_p1)
}
 0x16a   : > { %s12894_s3 = scalar_lea.vmem %s1817_s1, 16  ;;  %s12900_s17 = scalar_lea.vmem %s1817_s1, 32 }
 0x16b   : > { %p12895_p5 = scmp.ne.s32.totalorder %s1817_s1, %s12894_s3  ;;  %p12901_p3 = scmp.lt.s32.totalorder %s1817_s1, %s1817_s1 }
 0x16c   : > { %p12902_p4 = scmp.lt.s32.totalorder %s12900_s17, %s12894_s3 }
 0x16d   : > { %p12896_p6 = pnand %p12895_p5, %p12267_p10 }
 0x16e   : > { %p12903_p7 = por %p12902_p4, %p12901_p3 }
 0x16f   : > { %p12897_p2 = pneg %p12896_p6 }
 0x171   : > { %p12904_p8 = pnand %p12903_p7, %p12897_p2 }
 0x173   : > { %12907 = shalt.err (!%p12904_p8)
}
 0x174   : > { %12088 = dma.hbm_to_vmem [thread:$0]  (%p12267_p10), %s14456_s19, 16, %s1817_s1, [#allocation30]  }
 0x175   : > { %s12908_s28 = scalar_lea.hbm %s16362_s5, 16 }
 0x176   : > { %p12909_p11 = scmp.ne.s32.totalorder %s16362_s5, %s12908_s28  ;;  %p12914_p0 = scmp.lt.u32.totalorder %s12908_s28, %s16362_s5 }
 0x178   : > { %p12910_p12 = pnand %p12909_p11, %p12267_p10 }
 0x17a   : > { %p12911_p13 = pneg %p12910_p12 }
 0x17c   : > { %p12916_p1 = pnand %p12914_p0, %p12911_p13 }
 0x17e   : > { %12919 = shalt.err (!%p12916_p1)
}
 0x17f   : > { %s12920_s3 = scalar_lea.vmem %s1839_s26, 16  ;;  %s12926_s2 = scalar_lea.vmem %s1839_s26, 32 }
 0x180   : > { %p12921_p5 = scmp.ne.s32.totalorder %s1839_s26, %s12920_s3  ;;  %p12927_p3 = scmp.lt.s32.totalorder %s1839_s26, %s1839_s26 }
 0x181   : > { %p12928_p4 = scmp.lt.s32.totalorder %s12926_s2, %s12920_s3 }
 0x182   : > { %p12922_p6 = pnand %p12921_p5, %p12267_p10 }
 0x183   : > { %p12929_p7 = por %p12928_p4, %p12927_p3 }
 0x184   : > { %p12923_p2 = pneg %p12922_p6 }
 0x186   : > { %p12930_p8 = pnand %p12929_p7, %p12923_p2 }
 0x188   : > { %12933 = shalt.err (!%p12930_p8)
}
 0x189   : > { %12092 = dma.hbm_to_vmem [thread:$0]  (%p12267_p10), %s16362_s5, 16, %s1839_s26, [#allocation33]  }
 0x18a   : > { %s14276_s1 = smov [#allocation35]   ;;  %s14277_s17 = smov [#allocation38]  }
 0x18b   : > { %s1859_s16 = sshll.u32 %s14276_s1, 4  ;;  %s1886_s28 = sshll.u32 %s14277_s17, 4  ;;  %s1860_s16 = int_to_ptr.vmem [resolvable:$true] %s1859_s16  ;;  %s1887_s28 = int_to_ptr.vmem [resolvable:$true] %s1886_s28 }
 0x18c   : > { %s12934_s10 = scalar_lea.hbm %s16358_s12, 512 }
 0x18d   : > { %p12935_p11 = scmp.ne.s32.totalorder %s16358_s12, %s12934_s10  ;;  %p12940_p0 = scmp.lt.u32.totalorder %s12934_s10, %s16358_s12 }
 0x18f   : > { %p12936_p12 = pnand %p12935_p11, %p12267_p10 }
 0x191   : > { %p12937_p13 = pneg %p12936_p12 }
 0x193   : > { %p12942_p1 = pnand %p12940_p0, %p12937_p13 }
 0x195   : > { %12945 = shalt.err (!%p12942_p1)
}
 0x196   : > { %s12946_s3 = scalar_lea.vmem %s1860_s16, 512  ;;  %p12953_p3 = scmp.lt.s32.totalorder %s1860_s16, %s1860_s16 }
 0x197   : > { %p12947_p5 = scmp.ne.s32.totalorder %s1860_s16, %s12946_s3  ;;  %p12954_p4 = scmp.lt.s32.totalorder %s12946_s3, %s12946_s3 }
 0x199   : > { %p12948_p6 = pnand %p12947_p5, %p12267_p10  ;;  %p12955_p7 = por %p12954_p4, %p12953_p3 }
 0x19b   : > { %p12949_p2 = pneg %p12948_p6 }
 0x19d   : > { %p12956_p8 = pnand %p12955_p7, %p12949_p2 }
 0x19f   : > { %12959 = shalt.err (!%p12956_p8)
}
 0x1a0   : > { %s16373_s26 = smov 128   ;;  %s12960_s10 = scalar_lea.hbm %s14486_s30, 16 }
 0x1a1   : > { %12096 = dma.hbm_to_vmem [thread:$0]  (%p12267_p10), %s16358_s12, 512, %s1860_s16, [#allocation36], %s16373_s26, %s16373_s26, %s16233_s23  }
 0x1a2   : > { %p12961_p11 = scmp.ne.s32.totalorder %s14486_s30, %s12960_s10  ;;  %p12966_p0 = scmp.lt.u32.totalorder %s12960_s10, %s14486_s30 }
 0x1a4   : > { %p12962_p12 = pnand %p12961_p11, %p12267_p10 }
 0x1a6   : > { %p12963_p13 = pneg %p12962_p12 }
 0x1a8   : > { %p12968_p1 = pnand %p12966_p0, %p12963_p13 }
 0x1aa   : > { %12971 = shalt.err (!%p12968_p1)
}
 0x1ab   : > { %s12972_s2 = scalar_lea.vmem %s1887_s28, 16  ;;  %s12978_s1 = scalar_lea.vmem %s1887_s28, 32 }
 0x1ac   : > { %p12973_p5 = scmp.ne.s32.totalorder %s1887_s28, %s12972_s2  ;;  %p12979_p3 = scmp.lt.s32.totalorder %s1887_s28, %s1887_s28 }
 0x1ad   : > { %p12980_p4 = scmp.lt.s32.totalorder %s12978_s1, %s12972_s2 }
 0x1ae   : > { %p12974_p6 = pnand %p12973_p5, %p12267_p10 }
 0x1af   : > { %p12981_p7 = por %p12980_p4, %p12979_p3 }
 0x1b0   : > { %p12975_p2 = pneg %p12974_p6 }
 0x1b2   : > { %p12982_p8 = pnand %p12981_p7, %p12975_p2 }
 0x1b4   : > { %12985 = shalt.err (!%p12982_p8)
}
 0x1b5   : > { %12100 = dma.hbm_to_vmem [thread:$0]  (%p12267_p10), %s14486_s30, 16, %s1887_s28, [#allocation39]  }
 0x1b6   : > { %s14278_s16 = smov [#allocation41]   ;;  %s14279_s3 = smov [#allocation44]  }
 0x1b7   : > { %s1908_s17 = sshll.u32 %s14278_s16, 4  ;;  %s1930_s10 = sshll.u32 %s14279_s3, 4  ;;  %s1909_s17 = int_to_ptr.vmem [resolvable:$true] %s1908_s17  ;;  %s1931_s10 = int_to_ptr.vmem [resolvable:$true] %s1930_s10 }
 0x1b8   : > { %s12986_s23 = scalar_lea.hbm %s16360_s8, 16 }
 0x1b9   : > { %p12987_p11 = scmp.ne.s32.totalorder %s16360_s8, %s12986_s23  ;;  %p12992_p0 = scmp.lt.u32.totalorder %s12986_s23, %s16360_s8 }
 0x1bb   : > { %p12988_p12 = pnand %p12987_p11, %p12267_p10 }
 0x1bd   : > { %p12989_p13 = pneg %p12988_p12 }
 0x1bf   : > { %p12994_p1 = pnand %p12992_p0, %p12989_p13 }
 0x1c1   : > { %12997 = shalt.err (!%p12994_p1)
}
 0x1c2   : > { %s12998_s2 = scalar_lea.vmem %s1909_s17, 16  ;;  %s13004_s28 = scalar_lea.vmem %s1909_s17, 32 }
 0x1c3   : > { %p12999_p5 = scmp.ne.s32.totalorder %s1909_s17, %s12998_s2  ;;  %p13005_p3 = scmp.lt.s32.totalorder %s1909_s17, %s1909_s17 }
 0x1c4   : > { %p13006_p4 = scmp.lt.s32.totalorder %s13004_s28, %s12998_s2 }
 0x1c5   : > { %p13000_p6 = pnand %p12999_p5, %p12267_p10 }
 0x1c6   : > { %p13007_p7 = por %p13006_p4, %p13005_p3 }
 0x1c7   : > { %p13001_p2 = pneg %p13000_p6 }
 0x1c9   : > { %p13008_p8 = pnand %p13007_p7, %p13001_p2 }
 0x1cb   : > { %13011 = shalt.err (!%p13008_p8)
}
 0x1cc   : > { %12104 = dma.hbm_to_vmem [thread:$0]  (%p12267_p10), %s16360_s8, 16, %s1909_s17, [#allocation42]  }
 0x1cd   : > { %s13012_s23 = scalar_lea.hbm %s14506_s29, 16 }
 0x1ce   : > { %p13013_p11 = scmp.ne.s32.totalorder %s14506_s29, %s13012_s23  ;;  %p13018_p0 = scmp.lt.u32.totalorder %s13012_s23, %s14506_s29 }
 0x1d0   : > { %p13014_p12 = pnand %p13013_p11, %p12267_p10 }
 0x1d2   : > { %p13015_p13 = pneg %p13014_p12 }
 0x1d4   : > { %p13020_p1 = pnand %p13018_p0, %p13015_p13 }
 0x1d6   : > { %13023 = shalt.err (!%p13020_p1)
}
 0x1d7   : > { %s13024_s1 = scalar_lea.vmem %s1931_s10, 16  ;;  %s13030_s16 = scalar_lea.vmem %s1931_s10, 32 }
 0x1d8   : > { %p13025_p5 = scmp.ne.s32.totalorder %s1931_s10, %s13024_s1  ;;  %p13031_p3 = scmp.lt.s32.totalorder %s1931_s10, %s1931_s10 }
 0x1d9   : > { %p13032_p4 = scmp.lt.s32.totalorder %s13030_s16, %s13024_s1 }
 0x1da   : > { %p13026_p6 = pnand %p13025_p5, %p12267_p10 }
 0x1db   : > { %p13033_p7 = por %p13032_p4, %p13031_p3 }
 0x1dc   : > { %p13027_p2 = pneg %p13026_p6 }
 0x1de   : > { %p13034_p8 = pnand %p13033_p7, %p13027_p2 }
 0x1e0   : > { %13037 = shalt.err (!%p13034_p8)
}
 0x1e1   : > { %s16374_s17 = sld [smem:[#allocation140_spill]]  ;;  %s14280_s3 = smov [#allocation47]  }
 0x1e2   : > { %12108 = dma.hbm_to_vmem [thread:$0]  (%p12267_p10), %s14506_s29, 16, %s1931_s10, [#allocation45]  }
 0x1e3   : > { %s1952_s2 = sshll.u32 %s14280_s3, 4  ;;  %s14281_s28 = smov [#allocation50]   ;;  %s1953_s2 = int_to_ptr.vmem [resolvable:$true] %s1952_s2 }
 0x1e4   : > { %s1976_s23 = sshll.u32 %s14281_s28, 4  ;;  %s1977_s23 = int_to_ptr.vmem [resolvable:$true] %s1976_s23 }
 0x1e7   : > { %s13038_s4 = scalar_lea.hbm %s16374_s17, 16 }
 0x1e8   : > { %p13039_p11 = scmp.ne.s32.totalorder %s16374_s17, %s13038_s4  ;;  %p13044_p0 = scmp.lt.u32.totalorder %s13038_s4, %s16374_s17 }
 0x1ea   : > { %p13040_p12 = pnand %p13039_p11, %p12267_p10 }
 0x1ec   : > { %p13041_p13 = pneg %p13040_p12 }
 0x1ee   : > { %p13046_p1 = pnand %p13044_p0, %p13041_p13 }
 0x1f0   : > { %13049 = shalt.err (!%p13046_p1)
}
 0x1f1   : > { %s13050_s1 = scalar_lea.vmem %s1953_s2, 16  ;;  %s13056_s10 = scalar_lea.vmem %s1953_s2, 32 }
 0x1f2   : > { %p13051_p5 = scmp.ne.s32.totalorder %s1953_s2, %s13050_s1  ;;  %p13057_p3 = scmp.lt.s32.totalorder %s1953_s2, %s1953_s2 }
 0x1f3   : > { %p13058_p4 = scmp.lt.s32.totalorder %s13056_s10, %s13050_s1 }
 0x1f4   : > { %p13052_p6 = pnand %p13051_p5, %p12267_p10 }
 0x1f5   : > { %p13059_p7 = por %p13058_p4, %p13057_p3 }
 0x1f6   : > { %p13053_p2 = pneg %p13052_p6 }
 0x1f8   : > { %p13060_p8 = pnand %p13059_p7, %p13053_p2 }
 0x1fa   : > { %13063 = shalt.err (!%p13060_p8)
}
 0x1fb   : > { %s16375_s16 = sld [smem:[#allocation143_spill]] }
 0x1fc   : > { %12112 = dma.hbm_to_vmem [thread:$0]  (%p12267_p10), %s16374_s17, 16, %s1953_s2, [#allocation48]  }
 0x201   : > { %s16376_s3 = smov %s16375_s16  ;;  %s13064_s4 = scalar_lea.hbm %s16375_s16, 512 }
 0x202   : > { %p13065_p11 = scmp.ne.s32.totalorder %s16376_s3, %s13064_s4  ;;  %p13070_p0 = scmp.lt.u32.totalorder %s13064_s4, %s16376_s3 }
 0x204   : > { %p13066_p12 = pnand %p13065_p11, %p12267_p10 }
 0x206   : > { %p13067_p13 = pneg %p13066_p12 }
 0x208   : > { %p13072_p1 = pnand %p13070_p0, %p13067_p13 }
 0x20a   : > { %13075 = shalt.err (!%p13072_p1)
}
 0x20b   : > { %s13076_s28 = scalar_lea.vmem %s1977_s23, 512  ;;  %p13083_p3 = scmp.lt.s32.totalorder %s1977_s23, %s1977_s23 }
 0x20c   : > { %p13077_p5 = scmp.ne.s32.totalorder %s1977_s23, %s13076_s28  ;;  %p13084_p4 = scmp.lt.s32.totalorder %s13076_s28, %s13076_s28 }
 0x20e   : > { %p13078_p6 = pnand %p13077_p5, %p12267_p10  ;;  %p13085_p7 = por %p13084_p4, %p13083_p3 }
 0x210   : > { %p13079_p2 = pneg %p13078_p6 }
 0x212   : > { %p13086_p8 = pnand %p13085_p7, %p13079_p2 }
 0x214   : > { %13089 = shalt.err (!%p13086_p8)
}
 0x215   : > { %s16377_s2 = smov 8   ;;  %s16378_s1 = sld [smem:[#allocation146_spill]] }
 0x216   : > { %12116 = dma.hbm_to_vmem [thread:$0]  (%p12267_p10), %s16376_s3, 512, %s1977_s23, [#allocation51], %s16373_s26, %s16373_s26, %s16377_s2  }
 0x217   : > { %s14282_s10 = smov [#allocation53]   ;;  %s14283_s4 = smov [#allocation56]  }
 0x218   : > { %s2006_s16 = sshll.u32 %s14282_s10, 4  ;;  %s2028_s5 = sshll.u32 %s14283_s4, 4  ;;  %s2007_s16 = int_to_ptr.vmem [resolvable:$true] %s2006_s16  ;;  %s2029_s5 = int_to_ptr.vmem [resolvable:$true] %s2028_s5 }
 0x21b   : > { %s13090_s28 = scalar_lea.hbm %s16378_s1, 16 }
 0x21c   : > { %p13091_p11 = scmp.ne.s32.totalorder %s16378_s1, %s13090_s28  ;;  %p13096_p0 = scmp.lt.u32.totalorder %s13090_s28, %s16378_s1 }
 0x21e   : > { %p13092_p12 = pnand %p13091_p11, %p12267_p10 }
 0x220   : > { %p13093_p13 = pneg %p13092_p12 }
 0x222   : > { %p13098_p1 = pnand %p13096_p0, %p13093_p13 }
 0x224   : > { %13101 = shalt.err (!%p13098_p1)
}
 0x225   : > { %s13102_s6 = scalar_lea.vmem %s2007_s16, 16  ;;  %s13108_s23 = scalar_lea.vmem %s2007_s16, 32 }
 0x226   : > { %p13103_p5 = scmp.ne.s32.totalorder %s2007_s16, %s13102_s6  ;;  %p13109_p3 = scmp.lt.s32.totalorder %s2007_s16, %s2007_s16 }
 0x227   : > { %p13110_p4 = scmp.lt.s32.totalorder %s13108_s23, %s13102_s6 }
 0x228   : > { %p13104_p6 = pnand %p13103_p5, %p12267_p10 }
 0x229   : > { %p13111_p7 = por %p13110_p4, %p13109_p3 }
 0x22a   : > { %p13105_p2 = pneg %p13104_p6 }
 0x22c   : > { %p13112_p8 = pnand %p13111_p7, %p13105_p2 }
 0x22e   : > { %13115 = shalt.err (!%p13112_p8)
}
 0x22f   : > { %s16379_s10 = sld [smem:[#allocation148_spill]] }
 0x230   : > { %12120 = dma.hbm_to_vmem [thread:$0]  (%p12267_p10), %s16378_s1, 16, %s2007_s16, [#allocation54]  }
 0x235   : > { %s13116_s4 = scalar_lea.hbm %s16379_s10, 16 }
 0x236   : > { %p13117_p11 = scmp.ne.s32.totalorder %s16379_s10, %s13116_s4  ;;  %p13122_p0 = scmp.lt.u32.totalorder %s13116_s4, %s16379_s10 }
 0x238   : > { %p13118_p12 = pnand %p13117_p11, %p12267_p10 }
 0x23a   : > { %p13119_p13 = pneg %p13118_p12 }
 0x23c   : > { %p13124_p1 = pnand %p13122_p0, %p13119_p13 }
 0x23e   : > { %13127 = shalt.err (!%p13124_p1)
}
 0x23f   : > { %s13128_s6 = scalar_lea.vmem %s2029_s5, 16  ;;  %s13134_s28 = scalar_lea.vmem %s2029_s5, 32 }
 0x240   : > { %p13129_p5 = scmp.ne.s32.totalorder %s2029_s5, %s13128_s6  ;;  %p13135_p3 = scmp.lt.s32.totalorder %s2029_s5, %s2029_s5 }
 0x241   : > { %p13136_p4 = scmp.lt.s32.totalorder %s13134_s28, %s13128_s6 }
 0x242   : > { %p13130_p6 = pnand %p13129_p5, %p12267_p10 }
 0x243   : > { %p13137_p7 = por %p13136_p4, %p13135_p3 }
 0x244   : > { %p13131_p2 = pneg %p13130_p6 }
 0x246   : > { %p13138_p8 = pnand %p13137_p7, %p13131_p2 }
 0x248   : > { %13141 = shalt.err (!%p13138_p8)
}
 0x249   : > { %s16380_s16 = sld [smem:[#allocation150_spill]]  ;;  %s14284_s4 = smov [#allocation59]  }
 0x24a   : > { %12124 = dma.hbm_to_vmem [thread:$0]  (%p12267_p10), %s16379_s10, 16, %s2029_s5, [#allocation57]  }
 0x24b   : > { %s2050_s1 = sshll.u32 %s14284_s4, 4  ;;  %s14285_s3 = smov [#allocation62]   ;;  %s2051_s1 = int_to_ptr.vmem [resolvable:$true] %s2050_s1 }
 0x24c   : > { %s2072_s8 = sshll.u32 %s14285_s3, 4  ;;  %s2073_s8 = int_to_ptr.vmem [resolvable:$true] %s2072_s8 }
 0x24f   : > { %s16381_s23 = smov %s16380_s16  ;;  %s13142_s9 = scalar_lea.hbm %s16380_s16, 16 }
 0x250   : > { %p13143_p11 = scmp.ne.s32.totalorder %s16381_s23, %s13142_s9  ;;  %p13148_p0 = scmp.lt.u32.totalorder %s13142_s9, %s16381_s23 }
 0x252   : > { %p13144_p12 = pnand %p13143_p11, %p12267_p10 }
 0x254   : > { %p13145_p13 = pneg %p13144_p12 }
 0x256   : > { %p13150_p1 = pnand %p13148_p0, %p13145_p13 }
 0x258   : > { %13153 = shalt.err (!%p13150_p1)
}
 0x259   : > { %s13154_s6 = scalar_lea.vmem %s2051_s1, 16  ;;  %s13160_s5 = scalar_lea.vmem %s2051_s1, 32 }
 0x25a   : > { %p13155_p5 = scmp.ne.s32.totalorder %s2051_s1, %s13154_s6  ;;  %p13161_p3 = scmp.lt.s32.totalorder %s2051_s1, %s2051_s1 }
 0x25b   : > { %p13162_p4 = scmp.lt.s32.totalorder %s13160_s5, %s13154_s6 }
 0x25c   : > { %p13156_p6 = pnand %p13155_p5, %p12267_p10 }
 0x25d   : > { %p13163_p7 = por %p13162_p4, %p13161_p3 }
 0x25e   : > { %p13157_p2 = pneg %p13156_p6 }
 0x260   : > { %p13164_p8 = pnand %p13163_p7, %p13157_p2 }
 0x262   : > { %13167 = shalt.err (!%p13164_p8)
}
 0x263   : > { %s16382_s3 = sld [smem:[#allocation152_spill]] }
 0x264   : > { %12128 = dma.hbm_to_vmem [thread:$0]  (%p12267_p10), %s16381_s23, 16, %s2051_s1, [#allocation60]  }
 0x269   : > { %s13168_s9 = scalar_lea.hbm %s16382_s3, 16 }
 0x26a   : > { %p13169_p11 = scmp.ne.s32.totalorder %s16382_s3, %s13168_s9  ;;  %p13174_p0 = scmp.lt.u32.totalorder %s13168_s9, %s16382_s3 }
 0x26c   : > { %p13170_p12 = pnand %p13169_p11, %p12267_p10 }
 0x26e   : > { %p13171_p13 = pneg %p13170_p12 }
 0x270   : > { %p13176_p1 = pnand %p13174_p0, %p13171_p13 }
 0x272   : > { %13179 = shalt.err (!%p13176_p1)
}
 0x273   : > { %s13180_s28 = scalar_lea.vmem %s2073_s8, 16  ;;  %s13186_s16 = scalar_lea.vmem %s2073_s8, 32 }
 0x274   : > { %p13181_p5 = scmp.ne.s32.totalorder %s2073_s8, %s13180_s28  ;;  %p13187_p3 = scmp.lt.s32.totalorder %s2073_s8, %s2073_s8 }
 0x275   : > { %p13188_p4 = scmp.lt.s32.totalorder %s13186_s16, %s13180_s28 }
 0x276   : > { %p13182_p6 = pnand %p13181_p5, %p12267_p10 }
 0x277   : > { %p13189_p7 = por %p13188_p4, %p13187_p3 }
 0x278   : > { %p13183_p2 = pneg %p13182_p6 }
 0x27a   : > { %p13190_p8 = pnand %p13189_p7, %p13183_p2 }
 0x27c   : > { %13193 = shalt.err (!%p13190_p8)
}
 0x27d   : > { %s16383_s1 = sld [smem:[#allocation155_spill]]  ;;  %s14286_s4 = smov [#allocation65]  }
 0x27e   : > { %12132 = dma.hbm_to_vmem [thread:$0]  (%p12267_p10), %s16382_s3, 16, %s2073_s8, [#allocation63]  }
 0x27f   : > { %s2096_s6 = sshll.u32 %s14286_s4, 4  ;;  %s14287_s5 = smov [#allocation68]   ;;  %s2097_s6 = int_to_ptr.vmem [resolvable:$true] %s2096_s6 }
 0x280   : > { %s2122_s9 = sshll.u32 %s14287_s5, 4  ;;  %s2123_s9 = int_to_ptr.vmem [resolvable:$true] %s2122_s9 }
 0x283   : > { %s13194_s10 = scalar_lea.hbm %s16383_s1, 512 }
 0x284   : > { %p13195_p11 = scmp.ne.s32.totalorder %s16383_s1, %s13194_s10  ;;  %p13200_p0 = scmp.lt.u32.totalorder %s13194_s10, %s16383_s1 }
 0x286   : > { %p13196_p12 = pnand %p13195_p11, %p12267_p10 }
 0x288   : > { %p13197_p13 = pneg %p13196_p12 }
 0x28a   : > { %p13202_p1 = pnand %p13200_p0, %p13197_p13 }
 0x28c   : > { %13205 = shalt.err (!%p13202_p1)
}
 0x28d   : > { %s13206_s28 = scalar_lea.vmem %s2097_s6, 512  ;;  %p13213_p3 = scmp.lt.s32.totalorder %s2097_s6, %s2097_s6 }
 0x28e   : > { %p13207_p5 = scmp.ne.s32.totalorder %s2097_s6, %s13206_s28  ;;  %p13214_p4 = scmp.lt.s32.totalorder %s13206_s28, %s13206_s28 }
 0x290   : > { %p13208_p6 = pnand %p13207_p5, %p12267_p10  ;;  %p13215_p7 = por %p13214_p4, %p13213_p3 }
 0x292   : > { %p13209_p2 = pneg %p13208_p6 }
 0x294   : > { %p13216_p8 = pnand %p13215_p7, %p13209_p2 }
 0x296   : > { %13219 = shalt.err (!%p13216_p8)
}
 0x297   : > { %s16384_s8 = sld [smem:[#allocation157_spill]] }
 0x298   : > { %12136 = dma.hbm_to_vmem [thread:$0]  (%p12267_p10), %s16383_s1, 512, %s2097_s6, [#allocation66], %s16373_s26, %s16373_s26, %s16377_s2  }
 0x29d   : > { %s13220_s10 = scalar_lea.hbm %s16384_s8, 512 }
 0x29e   : > { %p13221_p11 = scmp.ne.s32.totalorder %s16384_s8, %s13220_s10  ;;  %p13226_p0 = scmp.lt.u32.totalorder %s13220_s10, %s16384_s8 }
 0x2a0   : > { %p13222_p12 = pnand %p13221_p11, %p12267_p10 }
 0x2a2   : > { %p13223_p13 = pneg %p13222_p12 }
 0x2a4   : > { %p13228_p1 = pnand %p13226_p0, %p13223_p13 }
 0x2a6   : > { %13231 = shalt.err (!%p13228_p1)
}
 0x2a7   : > { %s13232_s16 = scalar_lea.vmem %s2123_s9, 512  ;;  %p13239_p3 = scmp.lt.s32.totalorder %s2123_s9, %s2123_s9 }
 0x2a8   : > { %p13233_p5 = scmp.ne.s32.totalorder %s2123_s9, %s13232_s16  ;;  %p13240_p4 = scmp.lt.s32.totalorder %s13232_s16, %s13232_s16 }
 0x2aa   : > { %p13234_p6 = pnand %p13233_p5, %p12267_p10  ;;  %p13241_p7 = por %p13240_p4, %p13239_p3 }
 0x2ac   : > { %p13235_p2 = pneg %p13234_p6 }
 0x2ae   : > { %p13242_p8 = pnand %p13241_p7, %p13235_p2 }
 0x2b0   : > { %13245 = shalt.err (!%p13242_p8)
}
 0x2b1   : > { %s16385_s4 = sld [smem:[#allocation159_spill]]  ;;  %s14288_s6 = smov [#allocation71]  }
 0x2b2   : > { %12140 = dma.hbm_to_vmem [thread:$0]  (%p12267_p10), %s16384_s8, 512, %s2123_s9, [#allocation69], %s16373_s26, %s16373_s26, %s16377_s2  }
 0x2b3   : > { %s2147_s5 = sshll.u32 %s14288_s6, 4  ;;  %s14289_s28 = smov [#allocation74]   ;;  %s2148_s5 = int_to_ptr.vmem [resolvable:$true] %s2147_s5 }
 0x2b4   : > { %s2175_s10 = sshll.u32 %s14289_s28, 4  ;;  %s2176_s10 = int_to_ptr.vmem [resolvable:$true] %s2175_s10 }
 0x2b7   : > { %s13246_s16 = scalar_lea.hbm %s16385_s4, 16 }
 0x2b8   : > { %p13247_p11 = scmp.ne.s32.totalorder %s16385_s4, %s13246_s16  ;;  %p13252_p0 = scmp.lt.u32.totalorder %s13246_s16, %s16385_s4 }
 0x2ba   : > { %p13248_p12 = pnand %p13247_p11, %p12267_p10 }
 0x2bc   : > { %p13249_p13 = pneg %p13248_p12 }
 0x2be   : > { %p13254_p1 = pnand %p13252_p0, %p13249_p13 }
 0x2c0   : > { %13257 = shalt.err (!%p13254_p1)
}
 0x2c1   : > { %s13258_s1 = scalar_lea.vmem %s2148_s5, 16  ;;  %s13264_s9 = scalar_lea.vmem %s2148_s5, 32 }
 0x2c2   : > { %p13259_p5 = scmp.ne.s32.totalorder %s2148_s5, %s13258_s1  ;;  %p13265_p3 = scmp.lt.s32.totalorder %s2148_s5, %s2148_s5 }
 0x2c3   : > { %p13266_p4 = scmp.lt.s32.totalorder %s13264_s9, %s13258_s1 }
 0x2c4   : > { %p13260_p6 = pnand %p13259_p5, %p12267_p10 }
 0x2c5   : > { %p13267_p7 = por %p13266_p4, %p13265_p3 }
 0x2c6   : > { %p13261_p2 = pneg %p13260_p6 }
 0x2c8   : > { %p13268_p8 = pnand %p13267_p7, %p13261_p2 }
 0x2ca   : > { %13271 = shalt.err (!%p13268_p8)
}
 0x2cb   : > { %s16386_s6 = sld [smem:[#allocation163_spill]] }
 0x2cc   : > { %12144 = dma.hbm_to_vmem [thread:$0]  (%p12267_p10), %s16385_s4, 16, %s2148_s5, [#allocation72]  }
 0x2d1   : > { %s13272_s28 = scalar_lea.hbm %s16386_s6, 16 }
 0x2d2   : > { %p13273_p11 = scmp.ne.s32.totalorder %s16386_s6, %s13272_s28  ;;  %p13278_p0 = scmp.lt.u32.totalorder %s13272_s28, %s16386_s6 }
 0x2d4   : > { %p13274_p12 = pnand %p13273_p11, %p12267_p10 }
 0x2d6   : > { %p13275_p13 = pneg %p13274_p12 }
 0x2d8   : > { %p13280_p1 = pnand %p13278_p0, %p13275_p13 }
 0x2da   : > { %13283 = shalt.err (!%p13280_p1)
}
 0x2db   : > { %s13284_s1 = scalar_lea.vmem %s2176_s10, 16  ;;  %s13290_s16 = scalar_lea.vmem %s2176_s10, 32 }
 0x2dc   : > { %p13285_p5 = scmp.ne.s32.totalorder %s2176_s10, %s13284_s1  ;;  %p13291_p3 = scmp.lt.s32.totalorder %s2176_s10, %s2176_s10 }
 0x2dd   : > { %p13292_p4 = scmp.lt.s32.totalorder %s13290_s16, %s13284_s1 }
 0x2de   : > { %p13286_p6 = pnand %p13285_p5, %p12267_p10 }
 0x2df   : > { %p13293_p7 = por %p13292_p4, %p13291_p3 }
 0x2e0   : > { %p13287_p2 = pneg %p13286_p6 }
 0x2e2   : > { %p13294_p8 = pnand %p13293_p7, %p13287_p2 }
 0x2e4   : > { %13297 = shalt.err (!%p13294_p8)
}
 0x2e5   : > { %s16387_s5 = sld [smem:[#allocation165_spill]]  ;;  %s14290_s9 = smov [#allocation77]  }
 0x2e6   : > { %12148 = dma.hbm_to_vmem [thread:$0]  (%p12267_p10), %s16386_s6, 16, %s2176_s10, [#allocation75]  }
 0x2e7   : > { %s2197_s28 = sshll.u32 %s14290_s9, 4  ;;  %s2198_s28 = int_to_ptr.vmem [resolvable:$true] %s2197_s28 }
 0x2eb   : > { %s13298_s3 = scalar_lea.hbm %s16387_s5, 16 }
 0x2ec   : > { %p13299_p11 = scmp.ne.s32.totalorder %s16387_s5, %s13298_s3  ;;  %p13304_p0 = scmp.lt.u32.totalorder %s13298_s3, %s16387_s5 }
 0x2ee   : > { %p13300_p12 = pnand %p13299_p11, %p12267_p10 }
 0x2f0   : > { %p13301_p13 = pneg %p13300_p12 }
 0x2f2   : > { %p13306_p1 = pnand %p13304_p0, %p13301_p13 }
 0x2f4   : > { %13309 = shalt.err (!%p13306_p1)
}
 0x2f5   : > { %s13310_s1 = scalar_lea.vmem %s2198_s28, 16  ;;  %s13316_s16 = scalar_lea.vmem %s2198_s28, 32 }
 0x2f6   : > { %p13311_p5 = scmp.ne.s32.totalorder %s2198_s28, %s13310_s1  ;;  %p13317_p3 = scmp.lt.s32.totalorder %s2198_s28, %s2198_s28 }
 0x2f7   : > { %p13318_p4 = scmp.lt.s32.totalorder %s13316_s16, %s13310_s1 }
 0x2f8   : > { %p13312_p6 = pnand %p13311_p5, %p12267_p10 }
 0x2f9   : > { %p13319_p7 = por %p13318_p4, %p13317_p3 }
 0x2fa   : > { %p13313_p2 = pneg %p13312_p6 }
 0x2fc   : > { %p13320_p8 = pnand %p13319_p7, %p13313_p2 }
 0x2fe   : > { %13323 = shalt.err (!%p13320_p8)
}
 0x2ff   : > { %s16388_s10 = sld [smem:[#allocation113_spill]]  ;;  %s14291_s3 = smov [#allocation2]  }
 0x300   : > { %12152 = dma.hbm_to_vmem [thread:$0]  (%p12267_p10), %s16387_s5, 16, %s2198_s28, [#allocation78]  }
 0x301   : > { %s1613_s9 = sshll.u32 %s14291_s3, 4  ;;  %s14292_s4 = smov [#allocation7]   ;;  %s1614_s9 = int_to_ptr.vmem [resolvable:$true] %s1613_s9 }
 0x302   : > { %s1635_s6 = sshll.u32 %s14292_s4, 4  ;;  %s1636_s6 = int_to_ptr.vmem [resolvable:$true] %s1635_s6 }
 0x305   : > { %s13324_s8 = scalar_lea.hbm %s16388_s10, 128 }
 0x306   : > { %p13325_p11 = scmp.ne.s32.totalorder %s16388_s10, %s13324_s8  ;;  %p13330_p0 = scmp.lt.u32.totalorder %s13324_s8, %s16388_s10 }
 0x308   : > { %p13326_p12 = pnand %p13325_p11, %p12267_p10 }
 0x30a   : > { %p13327_p13 = pneg %p13326_p12 }
 0x30c   : > { %p13332_p1 = pnand %p13330_p0, %p13327_p13 }
 0x30e   : > { %13335 = shalt.err (!%p13332_p1)
}
 0x30f   : > { %s13336_s1 = scalar_lea.vmem %s1614_s9, 128  ;;  %p13343_p3 = scmp.lt.s32.totalorder %s1614_s9, %s1614_s9 }
 0x310   : > { %p13337_p5 = scmp.ne.s32.totalorder %s1614_s9, %s13336_s1  ;;  %p13344_p4 = scmp.lt.s32.totalorder %s13336_s1, %s13336_s1 }
 0x312   : > { %p13338_p6 = pnand %p13337_p5, %p12267_p10  ;;  %p13345_p7 = por %p13344_p4, %p13343_p3 }
 0x314   : > { %p13339_p2 = pneg %p13338_p6 }
 0x316   : > { %p13346_p8 = pnand %p13345_p7, %p13339_p2 }
 0x318   : > { %13349 = shalt.err (!%p13346_p8)
}
 0x319   : > { %s16389_s4 = sld [smem:[#allocation115_spill]] }
 0x31a   : > { %12054 = dma.hbm_to_vmem [thread:$0]  (%p12267_p10), %s16388_s10, 128, %s1614_s9, [#allocation3]  }
 0x31f   : > { %s13350_s8 = scalar_lea.hbm %s16389_s4, 16 }
 0x320   : > { %p13351_p11 = scmp.ne.s32.totalorder %s16389_s4, %s13350_s8  ;;  %p13356_p0 = scmp.lt.u32.totalorder %s13350_s8, %s16389_s4 }
 0x322   : > { %p13352_p12 = pnand %p13351_p11, %p12267_p10 }
 0x324   : > { %p13353_p13 = pneg %p13352_p12 }
 0x326   : > { %p13358_p1 = pnand %p13356_p0, %p13353_p13 }
 0x328   : > { %13361 = shalt.err (!%p13358_p1)
}
 0x329   : > { %s13362_s28 = scalar_lea.vmem %s1636_s6, 16  ;;  %s13368_s16 = scalar_lea.vmem %s1636_s6, 32 }
 0x32a   : > { %p13363_p5 = scmp.ne.s32.totalorder %s1636_s6, %s13362_s28  ;;  %p13369_p3 = scmp.lt.s32.totalorder %s1636_s6, %s1636_s6 }
 0x32b   : > { %p13370_p4 = scmp.lt.s32.totalorder %s13368_s16, %s13362_s28 }
 0x32c   : > { %p13364_p6 = pnand %p13363_p5, %p12267_p10 }
 0x32d   : > { %p13371_p7 = por %p13370_p4, %p13369_p3 }
 0x32e   : > { %p13365_p2 = pneg %p13364_p6 }
 0x330   : > { %p13372_p8 = pnand %p13371_p7, %p13365_p2 }
 0x332   : > { %13375 = shalt.err (!%p13372_p8)
}
 0x333   : > { %s16390_s3 = sld [smem:[#allocation116_spill]]  ;;  %s14293_s9 = smov [#allocation10]  }
 0x334   : > { %12058 = dma.hbm_to_vmem [thread:$0]  (%p12267_p10), %s16389_s4, 16, %s1636_s6, [#allocation6]  }
 0x335   : > { %s1657_s1 = sshll.u32 %s14293_s9, 4  ;;  %s14294_s8 = smov [#allocation13]   ;;  %s1658_s1 = int_to_ptr.vmem [resolvable:$true] %s1657_s1 }
 0x336   : > { %s1679_s5 = sshll.u32 %s14294_s8, 4  ;;  %s1680_s5 = int_to_ptr.vmem [resolvable:$true] %s1679_s5 }
 0x339   : > { %s13376_s10 = scalar_lea.hbm %s16390_s3, 16 }
 0x33a   : > { %p13377_p11 = scmp.ne.s32.totalorder %s16390_s3, %s13376_s10  ;;  %p13382_p0 = scmp.lt.u32.totalorder %s13376_s10, %s16390_s3 }
 0x33c   : > { %p13378_p12 = pnand %p13377_p11, %p12267_p10 }
 0x33e   : > { %p13379_p13 = pneg %p13378_p12 }
 0x340   : > { %p13384_p1 = pnand %p13382_p0, %p13379_p13 }
 0x342   : > { %13387 = shalt.err (!%p13384_p1)
}
 0x343   : > { %s13388_s28 = scalar_lea.vmem %s1658_s1, 16  ;;  %s13394_s6 = scalar_lea.vmem %s1658_s1, 32 }
 0x344   : > { %p13389_p5 = scmp.ne.s32.totalorder %s1658_s1, %s13388_s28  ;;  %p13395_p3 = scmp.lt.s32.totalorder %s1658_s1, %s1658_s1 }
 0x345   : > { %p13396_p4 = scmp.lt.s32.totalorder %s13394_s6, %s13388_s28 }
 0x346   : > { %p13390_p6 = pnand %p13389_p5, %p12267_p10 }
 0x347   : > { %p13397_p7 = por %p13396_p4, %p13395_p3 }
 0x348   : > { %p13391_p2 = pneg %p13390_p6 }
 0x34a   : > { %p13398_p8 = pnand %p13397_p7, %p13391_p2 }
 0x34c   : > { %13401 = shalt.err (!%p13398_p8)
}
 0x34d   : > { %s16391_s16 = sld [smem:[#allocation118_spill]] }
 0x34e   : > { %12062 = dma.hbm_to_vmem [thread:$0]  (%p12267_p10), %s16390_s3, 16, %s1658_s1, [#allocation9]  }
 0x353   : > { %s16392_s9 = smov %s16391_s16  ;;  %s13402_s10 = scalar_lea.hbm %s16391_s16, 16 }
 0x354   : > { %p13403_p11 = scmp.ne.s32.totalorder %s16392_s9, %s13402_s10  ;;  %p13408_p0 = scmp.lt.u32.totalorder %s13402_s10, %s16392_s9 }
 0x356   : > { %p13404_p12 = pnand %p13403_p11, %p12267_p10 }
 0x358   : > { %p13405_p13 = pneg %p13404_p12 }
 0x35a   : > { %p13410_p1 = pnand %p13408_p0, %p13405_p13 }
 0x35c   : > { %13413 = shalt.err (!%p13410_p1)
}
 0x35d   : > { %s13414_s8 = scalar_lea.vmem %s1680_s5, 16  ;;  %s13420_s28 = scalar_lea.vmem %s1680_s5, 32 }
 0x35e   : > { %p13415_p5 = scmp.ne.s32.totalorder %s1680_s5, %s13414_s8  ;;  %p13421_p3 = scmp.lt.s32.totalorder %s1680_s5, %s1680_s5 }
 0x35f   : > { %p13422_p4 = scmp.lt.s32.totalorder %s13420_s28, %s13414_s8 }
 0x360   : > { %p13416_p6 = pnand %p13415_p5, %p12267_p10 }
 0x361   : > { %p13423_p7 = por %p13422_p4, %p13421_p3 }
 0x362   : > { %p13417_p2 = pneg %p13416_p6 }
 0x364   : > { %p13424_p8 = pnand %p13423_p7, %p13417_p2 }
 0x366   : > { %13427 = shalt.err (!%p13424_p8)
}
 0x367   : > { %s16393_s1 = sld [smem:[#allocation121_spill]]  ;;  %s14295_s6 = smov [#allocation16]  }
 0x368   : > { %12066 = dma.hbm_to_vmem [thread:$0]  (%p12267_p10), %s16392_s9, 16, %s1680_s5, [#allocation12]  }
 0x369   : > { %s1707_s16 = sshll.u32 %s14295_s6, 4  ;;  %s14296_s10 = smov [#allocation19]   ;;  %s1708_s16 = int_to_ptr.vmem [resolvable:$true] %s1707_s16 }
 0x36a   : > { %s1729_s3 = sshll.u32 %s14296_s10, 4  ;;  %s1730_s3 = int_to_ptr.vmem [resolvable:$true] %s1729_s3 }
 0x36d   : > { %s13428_s4 = scalar_lea.hbm %s16393_s1, 16 }
 0x36e   : > { %p13429_p11 = scmp.ne.s32.totalorder %s16393_s1, %s13428_s4  ;;  %p13434_p0 = scmp.lt.u32.totalorder %s13428_s4, %s16393_s1 }
 0x370   : > { %p13430_p12 = pnand %p13429_p11, %p12267_p10 }
 0x372   : > { %p13431_p13 = pneg %p13430_p12 }
 0x374   : > { %p13436_p1 = pnand %p13434_p0, %p13431_p13 }
 0x376   : > { %13439 = shalt.err (!%p13436_p1)
}
 0x377   : > { %s13440_s8 = scalar_lea.vmem %s1708_s16, 16  ;;  %s13446_s5 = scalar_lea.vmem %s1708_s16, 32 }
 0x378   : > { %p13441_p5 = scmp.ne.s32.totalorder %s1708_s16, %s13440_s8  ;;  %p13447_p3 = scmp.lt.s32.totalorder %s1708_s16, %s1708_s16 }
 0x379   : > { %p13448_p4 = scmp.lt.s32.totalorder %s13446_s5, %s13440_s8 }
 0x37a   : > { %p13442_p6 = pnand %p13441_p5, %p12267_p10 }
 0x37b   : > { %p13449_p7 = por %p13448_p4, %p13447_p3 }
 0x37c   : > { %p13443_p2 = pneg %p13442_p6 }
 0x37e   : > { %p13450_p8 = pnand %p13449_p7, %p13443_p2 }
 0x380   : > { %13453 = shalt.err (!%p13450_p8)
}
 0x381   : > { %s16394_s28 = sld [smem:[#allocation123_spill]] }
 0x382   : > { %12070 = dma.hbm_to_vmem [thread:$0]  (%p12267_p10), %s16393_s1, 16, %s1708_s16, [#allocation15]  }
 0x387   : > { %s13454_s4 = scalar_lea.hbm %s16394_s28, 16 }
 0x388   : > { %p13455_p11 = scmp.ne.s32.totalorder %s16394_s28, %s13454_s4  ;;  %p13460_p0 = scmp.lt.u32.totalorder %s13454_s4, %s16394_s28 }
 0x38a   : > { %p13456_p12 = pnand %p13455_p11, %p12267_p10 }
 0x38c   : > { %p13457_p13 = pneg %p13456_p12 }
 0x38e   : > { %p13462_p1 = pnand %p13460_p0, %p13457_p13 }
 0x390   : > { %13465 = shalt.err (!%p13462_p1)
}
 0x391   : > { %s13466_s6 = scalar_lea.vmem %s1730_s3, 16  ;;  %s13472_s10 = scalar_lea.vmem %s1730_s3, 32 }
 0x392   : > { %p13467_p5 = scmp.ne.s32.totalorder %s1730_s3, %s13466_s6  ;;  %p13473_p3 = scmp.lt.s32.totalorder %s1730_s3, %s1730_s3 }
 0x393   : > { %p13474_p4 = scmp.lt.s32.totalorder %s13472_s10, %s13466_s6 }
 0x394   : > { %p13468_p6 = pnand %p13467_p5, %p12267_p10 }
 0x395   : > { %p13475_p7 = por %p13474_p4, %p13473_p3 }
 0x396   : > { %p13469_p2 = pneg %p13468_p6 }
 0x398   : > { %p13476_p8 = pnand %p13475_p7, %p13469_p2 }
 0x39a   : > { %13479 = shalt.err (!%p13476_p8)
}
 0x39b   : > { %s16395_s16 = sld [smem:[#allocation124_spill]]  ;;  %s14297_s5 = smov [#allocation22]  }
 0x39c   : > { %12074 = dma.hbm_to_vmem [thread:$0]  (%p12267_p10), %s16394_s28, 16, %s1730_s3, [#allocation18]  }
 0x39d   : > { %s1751_s4 = sshll.u32 %s14297_s5, 4  ;;  %s14298_s1 = smov [#allocation25]   ;;  %s1752_s4 = int_to_ptr.vmem [resolvable:$true] %s1751_s4 }
 0x39e   : > { %s1773_s9 = sshll.u32 %s14298_s1, 4  ;;  %s1774_s9 = int_to_ptr.vmem [resolvable:$true] %s1773_s9 }
 0x3a1   : > { %s16396_s8 = smov %s16395_s16  ;;  %s13480_s12 = scalar_lea.hbm %s16395_s16, 16 }
 0x3a2   : > { %p13481_p11 = scmp.ne.s32.totalorder %s16396_s8, %s13480_s12  ;;  %p13486_p0 = scmp.lt.u32.totalorder %s13480_s12, %s16396_s8 }
 0x3a4   : > { %p13482_p12 = pnand %p13481_p11, %p12267_p10 }
 0x3a6   : > { %p13483_p13 = pneg %p13482_p12 }
 0x3a8   : > { %p13488_p1 = pnand %p13486_p0, %p13483_p13 }
 0x3aa   : > { %13491 = shalt.err (!%p13488_p1)
}
 0x3ab   : > { %s13492_s6 = scalar_lea.vmem %s1752_s4, 16  ;;  %s13498_s3 = scalar_lea.vmem %s1752_s4, 32 }
 0x3ac   : > { %p13493_p5 = scmp.ne.s32.totalorder %s1752_s4, %s13492_s6  ;;  %p13499_p3 = scmp.lt.s32.totalorder %s1752_s4, %s1752_s4 }
 0x3ad   : > { %p13500_p4 = scmp.lt.s32.totalorder %s13498_s3, %s13492_s6 }
 0x3ae   : > { %p13494_p6 = pnand %p13493_p5, %p12267_p10 }
 0x3af   : > { %p13501_p7 = por %p13500_p4, %p13499_p3 }
 0x3b0   : > { %p13495_p2 = pneg %p13494_p6 }
 0x3b2   : > { %p13502_p8 = pnand %p13501_p7, %p13495_p2 }
 0x3b4   : > { %13505 = shalt.err (!%p13502_p8)
}
 0x3b5   : > { %s16397_s1 = sld [smem:[#allocation126_spill]] }
 0x3b6   : > { %12078 = dma.hbm_to_vmem [thread:$0]  (%p12267_p10), %s16396_s8, 16, %s1752_s4, [#allocation21]  }
 0x3bb   : > { %s13506_s12 = scalar_lea.hbm %s16397_s1, 16 }
 0x3bc   : > { %p13507_p11 = scmp.ne.s32.totalorder %s16397_s1, %s13506_s12  ;;  %p13512_p0 = scmp.lt.u32.totalorder %s13506_s12, %s16397_s1 }
 0x3be   : > { %p13508_p12 = pnand %p13507_p11, %p12267_p10 }
 0x3c0   : > { %p13509_p13 = pneg %p13508_p12 }
 0x3c2   : > { %p13514_p1 = pnand %p13512_p0, %p13509_p13 }
 0x3c4   : > { %13517 = shalt.err (!%p13514_p1)
}
 0x3c5   : > { %s13518_s10 = scalar_lea.vmem %s1774_s9, 16  ;;  %s13524_s16 = scalar_lea.vmem %s1774_s9, 32 }
 0x3c6   : > { %p13519_p5 = scmp.ne.s32.totalorder %s1774_s9, %s13518_s10  ;;  %p13525_p3 = scmp.lt.s32.totalorder %s1774_s9, %s1774_s9 }
 0x3c7   : > { %p13526_p4 = scmp.lt.s32.totalorder %s13524_s16, %s13518_s10 }
 0x3c8   : > { %p13520_p6 = pnand %p13519_p5, %p12267_p10 }
 0x3c9   : > { %p13527_p7 = por %p13526_p4, %p13525_p3 }
 0x3ca   : > { %p13521_p2 = pneg %p13520_p6 }
 0x3cc   : > { %p13528_p8 = pnand %p13527_p7, %p13521_p2 }
 0x3ce   : > { %13531 = shalt.err (!%p13528_p8)
}
 0x3cf   : > { %s16398_s5 = sld [smem:[#allocation129_spill]]  ;;  %s14299_s4 = smov [#allocation28]  }
 0x3d0   : > { %12082 = dma.hbm_to_vmem [thread:$0]  (%p12267_p10), %s16397_s1, 16, %s1774_s9, [#allocation24]  }
 0x3d1   : > { %s1799_s6 = sshll.u32 %s14299_s4, 4  ;;  %s14300_s3 = smov [#allocation31]   ;;  %s1800_s6 = int_to_ptr.vmem [resolvable:$true] %s1799_s6 }
 0x3d2   : > { %s1827_s12 = sshll.u32 %s14300_s3, 4  ;;  %s1828_s12 = int_to_ptr.vmem [resolvable:$true] %s1827_s12 }
 0x3d5   : > { %s13532_s8 = scalar_lea.hbm %s16398_s5, 512 }
 0x3d6   : > { %p13533_p11 = scmp.ne.s32.totalorder %s16398_s5, %s13532_s8  ;;  %p13538_p0 = scmp.lt.u32.totalorder %s13532_s8, %s16398_s5 }
 0x3d8   : > { %p13534_p12 = pnand %p13533_p11, %p12267_p10 }
 0x3da   : > { %p13535_p13 = pneg %p13534_p12 }
 0x3dc   : > { %p13540_p1 = pnand %p13538_p0, %p13535_p13 }
 0x3de   : > { %13543 = shalt.err (!%p13540_p1)
}
 0x3df   : > { %s13544_s10 = scalar_lea.vmem %s1800_s6, 512  ;;  %p13551_p3 = scmp.lt.s32.totalorder %s1800_s6, %s1800_s6 }
 0x3e0   : > { %p13545_p5 = scmp.ne.s32.totalorder %s1800_s6, %s13544_s10  ;;  %p13552_p4 = scmp.lt.s32.totalorder %s13544_s10, %s13544_s10 }
 0x3e2   : > { %p13546_p6 = pnand %p13545_p5, %p12267_p10  ;;  %p13553_p7 = por %p13552_p4, %p13551_p3 }
 0x3e4   : > { %p13547_p2 = pneg %p13546_p6 }
 0x3e6   : > { %p13554_p8 = pnand %p13553_p7, %p13547_p2 }
 0x3e8   : > { %13557 = shalt.err (!%p13554_p8)
}
 0x3e9   : > { %s16399_s9 = sld [smem:[#allocation131_spill]] }
 0x3ea   : > { %12086 = dma.hbm_to_vmem [thread:$0]  (%p12267_p10), %s16398_s5, 512, %s1800_s6, [#allocation27], %s16373_s26, %s16373_s26, %s16377_s2  }
 0x3ef   : > { %s13558_s8 = scalar_lea.hbm %s16399_s9, 16 }
 0x3f0   : > { %p13559_p11 = scmp.ne.s32.totalorder %s16399_s9, %s13558_s8  ;;  %p13564_p0 = scmp.lt.u32.totalorder %s13558_s8, %s16399_s9 }
 0x3f2   : > { %p13560_p12 = pnand %p13559_p11, %p12267_p10 }
 0x3f4   : > { %p13561_p13 = pneg %p13560_p12 }
 0x3f6   : > { %p13566_p1 = pnand %p13564_p0, %p13561_p13 }
 0x3f8   : > { %13569 = shalt.err (!%p13566_p1)
}
 0x3f9   : > { %s13570_s16 = scalar_lea.vmem %s1828_s12, 16  ;;  %s13576_s4 = scalar_lea.vmem %s1828_s12, 32 }
 0x3fa   : > { %p13571_p5 = scmp.ne.s32.totalorder %s1828_s12, %s13570_s16  ;;  %p13577_p3 = scmp.lt.s32.totalorder %s1828_s12, %s1828_s12 }
 0x3fb   : > { %p13578_p4 = scmp.lt.s32.totalorder %s13576_s4, %s13570_s16 }
 0x3fc   : > { %p13572_p6 = pnand %p13571_p5, %p12267_p10 }
 0x3fd   : > { %p13579_p7 = por %p13578_p4, %p13577_p3 }
 0x3fe   : > { %p13573_p2 = pneg %p13572_p6 }
 0x400   : > { %p13580_p8 = pnand %p13579_p7, %p13573_p2 }
 0x402   : > { %13583 = shalt.err (!%p13580_p8)
}
 0x403   : > { %s16400_s6 = sld [smem:[#allocation133_spill]]  ;;  %s14301_s3 = smov [#allocation34]  }
 0x404   : > { %12090 = dma.hbm_to_vmem [thread:$0]  (%p12267_p10), %s16399_s9, 16, %s1828_s12, [#allocation30]  }
 0x405   : > { %s1849_s10 = sshll.u32 %s14301_s3, 4  ;;  %s14302_s8 = smov [#allocation37]   ;;  %s1850_s10 = int_to_ptr.vmem [resolvable:$true] %s1849_s10 }
 0x406   : > { %s1872_s1 = sshll.u32 %s14302_s8, 4  ;;  %s1873_s1 = int_to_ptr.vmem [resolvable:$true] %s1872_s1 }
 0x409   : > { %s13584_s5 = scalar_lea.hbm %s16400_s6, 16 }
 0x40a   : > { %p13585_p11 = scmp.ne.s32.totalorder %s16400_s6, %s13584_s5  ;;  %p13590_p0 = scmp.lt.u32.totalorder %s13584_s5, %s16400_s6 }
 0x40c   : > { %p13586_p12 = pnand %p13585_p11, %p12267_p10 }
 0x40e   : > { %p13587_p13 = pneg %p13586_p12 }
 0x410   : > { %p13592_p1 = pnand %p13590_p0, %p13587_p13 }
 0x412   : > { %13595 = shalt.err (!%p13592_p1)
}
 0x413   : > { %s13596_s16 = scalar_lea.vmem %s1850_s10, 16  ;;  %s13602_s12 = scalar_lea.vmem %s1850_s10, 32 }
 0x414   : > { %p13597_p5 = scmp.ne.s32.totalorder %s1850_s10, %s13596_s16  ;;  %p13603_p3 = scmp.lt.s32.totalorder %s1850_s10, %s1850_s10 }
 0x415   : > { %p13604_p4 = scmp.lt.s32.totalorder %s13602_s12, %s13596_s16 }
 0x416   : > { %p13598_p6 = pnand %p13597_p5, %p12267_p10 }
 0x417   : > { %p13605_p7 = por %p13604_p4, %p13603_p3 }
 0x418   : > { %p13599_p2 = pneg %p13598_p6 }
 0x41a   : > { %p13606_p8 = pnand %p13605_p7, %p13599_p2 }
 0x41c   : > { %13609 = shalt.err (!%p13606_p8)
}
 0x41d   : > { %s16401_s4 = sld [smem:[#allocation135_spill]] }
 0x41e   : > { %12094 = dma.hbm_to_vmem [thread:$0]  (%p12267_p10), %s16400_s6, 16, %s1850_s10, [#allocation33]  }
 0x423   : > { %s13610_s5 = scalar_lea.hbm %s16401_s4, 512 }
 0x424   : > { %p13611_p11 = scmp.ne.s32.totalorder %s16401_s4, %s13610_s5  ;;  %p13616_p0 = scmp.lt.u32.totalorder %s13610_s5, %s16401_s4 }
 0x426   : > { %p13612_p12 = pnand %p13611_p11, %p12267_p10 }
 0x428   : > { %p13613_p13 = pneg %p13612_p12 }
 0x42a   : > { %p13618_p1 = pnand %p13616_p0, %p13613_p13 }
 0x42c   : > { %13621 = shalt.err (!%p13618_p1)
}
 0x42d   : > { %s13622_s3 = scalar_lea.vmem %s1873_s1, 512  ;;  %p13629_p3 = scmp.lt.s32.totalorder %s1873_s1, %s1873_s1 }
 0x42e   : > { %p13623_p5 = scmp.ne.s32.totalorder %s1873_s1, %s13622_s3  ;;  %p13630_p4 = scmp.lt.s32.totalorder %s13622_s3, %s13622_s3 }
 0x430   : > { %p13624_p6 = pnand %p13623_p5, %p12267_p10  ;;  %p13631_p7 = por %p13630_p4, %p13629_p3 }
 0x432   : > { %p13625_p2 = pneg %p13624_p6 }
 0x434   : > { %p13632_p8 = pnand %p13631_p7, %p13625_p2 }
 0x436   : > { %13635 = shalt.err (!%p13632_p8)
}
 0x437   : > { %s16402_s10 = sld [smem:[#allocation136_spill]]  ;;  %s14303_s8 = smov [#allocation40]  }
 0x438   : > { %12098 = dma.hbm_to_vmem [thread:$0]  (%p12267_p10), %s16401_s4, 512, %s1873_s1, [#allocation36], %s16373_s26, %s16373_s26, %s16377_s2  }
 0x439   : > { %s1897_s16 = sshll.u32 %s14303_s8, 4  ;;  %s14304_s12 = smov [#allocation43]   ;;  %s1898_s16 = int_to_ptr.vmem [resolvable:$true] %s1897_s16 }
 0x43a   : > { %s1919_s5 = sshll.u32 %s14304_s12, 4  ;;  %s1920_s5 = int_to_ptr.vmem [resolvable:$true] %s1919_s5 }
 0x43d   : > { %s13636_s3 = scalar_lea.hbm %s16402_s10, 16 }
 0x43e   : > { %p13637_p11 = scmp.ne.s32.totalorder %s16402_s10, %s13636_s3  ;;  %p13642_p0 = scmp.lt.u32.totalorder %s13636_s3, %s16402_s10 }
 0x440   : > { %p13638_p12 = pnand %p13637_p11, %p12267_p10 }
 0x442   : > { %p13639_p13 = pneg %p13638_p12 }
 0x444   : > { %p13644_p1 = pnand %p13642_p0, %p13639_p13 }
 0x446   : > { %13647 = shalt.err (!%p13644_p1)
}
 0x447   : > { %s13648_s6 = scalar_lea.vmem %s1898_s16, 16  ;;  %s13654_s1 = scalar_lea.vmem %s1898_s16, 32 }
 0x448   : > { %p13649_p5 = scmp.ne.s32.totalorder %s1898_s16, %s13648_s6  ;;  %p13655_p3 = scmp.lt.s32.totalorder %s1898_s16, %s1898_s16 }
 0x449   : > { %p13656_p4 = scmp.lt.s32.totalorder %s13654_s1, %s13648_s6 }
 0x44a   : > { %p13650_p6 = pnand %p13649_p5, %p12267_p10 }
 0x44b   : > { %p13657_p7 = por %p13656_p4, %p13655_p3 }
 0x44c   : > { %p13651_p2 = pneg %p13650_p6 }
 0x44e   : > { %p13658_p8 = pnand %p13657_p7, %p13651_p2 }
 0x450   : > { %13661 = shalt.err (!%p13658_p8)
}
 0x451   : > { %s16403_s8 = sld [smem:[#allocation138_spill]] }
 0x452   : > { %12102 = dma.hbm_to_vmem [thread:$0]  (%p12267_p10), %s16402_s10, 16, %s1898_s16, [#allocation39]  }
 0x457   : > { %s13662_s12 = scalar_lea.hbm %s16403_s8, 16 }
 0x458   : > { %p13663_p11 = scmp.ne.s32.totalorder %s16403_s8, %s13662_s12  ;;  %p13668_p0 = scmp.lt.u32.totalorder %s13662_s12, %s16403_s8 }
 0x45a   : > { %p13664_p12 = pnand %p13663_p11, %p12267_p10 }
 0x45c   : > { %p13665_p13 = pneg %p13664_p12 }
 0x45e   : > { %p13670_p1 = pnand %p13668_p0, %p13665_p13 }
 0x460   : > { %13673 = shalt.err (!%p13670_p1)
}
 0x461   : > { %s13674_s6 = scalar_lea.vmem %s1920_s5, 16  ;;  %s13680_s3 = scalar_lea.vmem %s1920_s5, 32 }
 0x462   : > { %p13675_p5 = scmp.ne.s32.totalorder %s1920_s5, %s13674_s6  ;;  %p13681_p3 = scmp.lt.s32.totalorder %s1920_s5, %s1920_s5 }
 0x463   : > { %p13682_p4 = scmp.lt.s32.totalorder %s13680_s3, %s13674_s6 }
 0x464   : > { %p13676_p6 = pnand %p13675_p5, %p12267_p10 }
 0x465   : > { %p13683_p7 = por %p13682_p4, %p13681_p3 }
 0x466   : > { %p13677_p2 = pneg %p13676_p6 }
 0x468   : > { %p13684_p8 = pnand %p13683_p7, %p13677_p2 }
 0x46a   : > { %13687 = shalt.err (!%p13684_p8)
}
 0x46b   : > { %s16404_s16 = sld [smem:[#allocation139_spill]]  ;;  %s14305_s12 = smov [#allocation46]  }
 0x46c   : > { %12106 = dma.hbm_to_vmem [thread:$0]  (%p12267_p10), %s16403_s8, 16, %s1920_s5, [#allocation42]  }
 0x46d   : > { %s1941_s4 = sshll.u32 %s14305_s12, 4  ;;  %s14306_s9 = smov [#allocation49]   ;;  %s1942_s4 = int_to_ptr.vmem [resolvable:$true] %s1941_s4 }
 0x46e   : > { %s1963_s10 = sshll.u32 %s14306_s9, 4  ;;  %s1964_s10 = int_to_ptr.vmem [resolvable:$true] %s1963_s10 }
 0x471   : > { %s16405_s1 = smov %s16404_s16  ;;  %s13688_s17 = scalar_lea.hbm %s16404_s16, 16 }
 0x472   : > { %p13689_p11 = scmp.ne.s32.totalorder %s16405_s1, %s13688_s17  ;;  %p13694_p0 = scmp.lt.u32.totalorder %s13688_s17, %s16405_s1 }
 0x474   : > { %p13690_p12 = pnand %p13689_p11, %p12267_p10 }
 0x476   : > { %p13691_p13 = pneg %p13690_p12 }
 0x478   : > { %p13696_p1 = pnand %p13694_p0, %p13691_p13 }
 0x47a   : > { %13699 = shalt.err (!%p13696_p1)
}
 0x47b   : > { %s13700_s6 = scalar_lea.vmem %s1942_s4, 16  ;;  %s13706_s5 = scalar_lea.vmem %s1942_s4, 32 }
 0x47c   : > { %p13701_p5 = scmp.ne.s32.totalorder %s1942_s4, %s13700_s6  ;;  %p13707_p3 = scmp.lt.s32.totalorder %s1942_s4, %s1942_s4 }
 0x47d   : > { %p13708_p4 = scmp.lt.s32.totalorder %s13706_s5, %s13700_s6 }
 0x47e   : > { %p13702_p6 = pnand %p13701_p5, %p12267_p10 }
 0x47f   : > { %p13709_p7 = por %p13708_p4, %p13707_p3 }
 0x480   : > { %p13703_p2 = pneg %p13702_p6 }
 0x482   : > { %p13710_p8 = pnand %p13709_p7, %p13703_p2 }
 0x484   : > { %13713 = shalt.err (!%p13710_p8)
}
 0x485   : > { %s16406_s9 = sld [smem:[#allocation141_spill]] }
 0x486   : > { %12110 = dma.hbm_to_vmem [thread:$0]  (%p12267_p10), %s16405_s1, 16, %s1942_s4, [#allocation45]  }
 0x48b   : > { %s13714_s17 = scalar_lea.hbm %s16406_s9, 16 }
 0x48c   : > { %p13715_p11 = scmp.ne.s32.totalorder %s16406_s9, %s13714_s17  ;;  %p13720_p0 = scmp.lt.u32.totalorder %s13714_s17, %s16406_s9 }
 0x48e   : > { %p13716_p12 = pnand %p13715_p11, %p12267_p10 }
 0x490   : > { %p13717_p13 = pneg %p13716_p12 }
 0x492   : > { %p13722_p1 = pnand %p13720_p0, %p13717_p13 }
 0x494   : > { %13725 = shalt.err (!%p13722_p1)
}
 0x495   : > { %s13726_s3 = scalar_lea.vmem %s1964_s10, 16  ;;  %s13732_s16 = scalar_lea.vmem %s1964_s10, 32 }
 0x496   : > { %p13727_p5 = scmp.ne.s32.totalorder %s1964_s10, %s13726_s3  ;;  %p13733_p3 = scmp.lt.s32.totalorder %s1964_s10, %s1964_s10 }
 0x497   : > { %p13734_p4 = scmp.lt.s32.totalorder %s13732_s16, %s13726_s3 }
 0x498   : > { %p13728_p6 = pnand %p13727_p5, %p12267_p10 }
 0x499   : > { %p13735_p7 = por %p13734_p4, %p13733_p3 }
 0x49a   : > { %p13729_p2 = pneg %p13728_p6 }
 0x49c   : > { %p13736_p8 = pnand %p13735_p7, %p13729_p2 }
 0x49e   : > { %13739 = shalt.err (!%p13736_p8)
}
 0x49f   : > { %s16407_s4 = sld [smem:[#allocation145_spill]]  ;;  %s14307_s12 = smov [#allocation52]  }
 0x4a0   : > { %12114 = dma.hbm_to_vmem [thread:$0]  (%p12267_p10), %s16406_s9, 16, %s1964_s10, [#allocation48]  }
 0x4a1   : > { %s1992_s6 = sshll.u32 %s14307_s12, 4  ;;  %s14308_s5 = smov [#allocation55]   ;;  %s1993_s6 = int_to_ptr.vmem [resolvable:$true] %s1992_s6 }
 0x4a2   : > { %s2017_s17 = sshll.u32 %s14308_s5, 4  ;;  %s2018_s17 = int_to_ptr.vmem [resolvable:$true] %s2017_s17 }
 0x4a5   : > { %s13740_s1 = scalar_lea.hbm %s16407_s4, 512 }
 0x4a6   : > { %p13741_p11 = scmp.ne.s32.totalorder %s16407_s4, %s13740_s1  ;;  %p13746_p0 = scmp.lt.u32.totalorder %s13740_s1, %s16407_s4 }
 0x4a8   : > { %p13742_p12 = pnand %p13741_p11, %p12267_p10 }
 0x4aa   : > { %p13743_p13 = pneg %p13742_p12 }
 0x4ac   : > { %p13748_p1 = pnand %p13746_p0, %p13743_p13 }
 0x4ae   : > { %13751 = shalt.err (!%p13748_p1)
}
 0x4af   : > { %s13752_s3 = scalar_lea.vmem %s1993_s6, 512  ;;  %p13759_p3 = scmp.lt.s32.totalorder %s1993_s6, %s1993_s6 }
 0x4b0   : > { %p13753_p5 = scmp.ne.s32.totalorder %s1993_s6, %s13752_s3  ;;  %p13760_p4 = scmp.lt.s32.totalorder %s13752_s3, %s13752_s3 }
 0x4b2   : > { %p13754_p6 = pnand %p13753_p5, %p12267_p10  ;;  %p13761_p7 = por %p13760_p4, %p13759_p3 }
 0x4b4   : > { %p13755_p2 = pneg %p13754_p6 }
 0x4b6   : > { %p13762_p8 = pnand %p13761_p7, %p13755_p2 }
 0x4b8   : > { %13765 = shalt.err (!%p13762_p8)
}
 0x4b9   : > { %s16408_s10 = sld [smem:[#allocation147_spill]] }
 0x4ba   : > { %12118 = dma.hbm_to_vmem [thread:$0]  (%p12267_p10), %s16407_s4, 512, %s1993_s6, [#allocation51], %s16373_s26, %s16373_s26, %s16377_s2  }
 0x4bf   : > { %s13766_s1 = scalar_lea.hbm %s16408_s10, 16 }
 0x4c0   : > { %p13767_p11 = scmp.ne.s32.totalorder %s16408_s10, %s13766_s1  ;;  %p13772_p0 = scmp.lt.u32.totalorder %s13766_s1, %s16408_s10 }
 0x4c2   : > { %p13768_p12 = pnand %p13767_p11, %p12267_p10 }
 0x4c4   : > { %p13769_p13 = pneg %p13768_p12 }
 0x4c6   : > { %p13774_p1 = pnand %p13772_p0, %p13769_p13 }
 0x4c8   : > { %13777 = shalt.err (!%p13774_p1)
}
 0x4c9   : > { %s13778_s16 = scalar_lea.vmem %s2018_s17, 16  ;;  %s13784_s12 = scalar_lea.vmem %s2018_s17, 32 }
 0x4ca   : > { %p13779_p5 = scmp.ne.s32.totalorder %s2018_s17, %s13778_s16  ;;  %p13785_p3 = scmp.lt.s32.totalorder %s2018_s17, %s2018_s17 }
 0x4cb   : > { %p13786_p4 = scmp.lt.s32.totalorder %s13784_s12, %s13778_s16 }
 0x4cc   : > { %p13780_p6 = pnand %p13779_p5, %p12267_p10 }
 0x4cd   : > { %p13787_p7 = por %p13786_p4, %p13785_p3 }
 0x4ce   : > { %p13781_p2 = pneg %p13780_p6 }
 0x4d0   : > { %p13788_p8 = pnand %p13787_p7, %p13781_p2 }
 0x4d2   : > { %13791 = shalt.err (!%p13788_p8)
}
 0x4d3   : > { %s16409_s6 = sld [smem:[#allocation149_spill]]  ;;  %s14309_s5 = smov [#allocation58]  }
 0x4d4   : > { %12122 = dma.hbm_to_vmem [thread:$0]  (%p12267_p10), %s16408_s10, 16, %s2018_s17, [#allocation54]  }
 0x4d5   : > { %s2039_s3 = sshll.u32 %s14309_s5, 4  ;;  %s14310_s1 = smov [#allocation61]   ;;  %s2040_s3 = int_to_ptr.vmem [resolvable:$true] %s2039_s3 }
 0x4d6   : > { %s2061_s4 = sshll.u32 %s14310_s1, 4  ;;  %s2062_s4 = int_to_ptr.vmem [resolvable:$true] %s2061_s4 }
 0x4d9   : > { %s13792_s8 = scalar_lea.hbm %s16409_s6, 16 }
 0x4da   : > { %p13793_p11 = scmp.ne.s32.totalorder %s16409_s6, %s13792_s8  ;;  %p13798_p0 = scmp.lt.u32.totalorder %s13792_s8, %s16409_s6 }
 0x4dc   : > { %p13794_p12 = pnand %p13793_p11, %p12267_p10 }
 0x4de   : > { %p13795_p13 = pneg %p13794_p12 }
 0x4e0   : > { %p13800_p1 = pnand %p13798_p0, %p13795_p13 }
 0x4e2   : > { %13803 = shalt.err (!%p13800_p1)
}
 0x4e3   : > { %s13804_s16 = scalar_lea.vmem %s2040_s3, 16  ;;  %s13810_s17 = scalar_lea.vmem %s2040_s3, 32 }
 0x4e4   : > { %p13805_p5 = scmp.ne.s32.totalorder %s2040_s3, %s13804_s16  ;;  %p13811_p3 = scmp.lt.s32.totalorder %s2040_s3, %s2040_s3 }
 0x4e5   : > { %p13812_p4 = scmp.lt.s32.totalorder %s13810_s17, %s13804_s16 }
 0x4e6   : > { %p13806_p6 = pnand %p13805_p5, %p12267_p10 }
 0x4e7   : > { %p13813_p7 = por %p13812_p4, %p13811_p3 }
 0x4e8   : > { %p13807_p2 = pneg %p13806_p6 }
 0x4ea   : > { %p13814_p8 = pnand %p13813_p7, %p13807_p2 }
 0x4ec   : > { %13817 = shalt.err (!%p13814_p8)
}
 0x4ed   : > { %s16410_s12 = sld [smem:[#allocation151_spill]] }
 0x4ee   : > { %12126 = dma.hbm_to_vmem [thread:$0]  (%p12267_p10), %s16409_s6, 16, %s2040_s3, [#allocation57]  }
 0x4f3   : > { %s13818_s8 = scalar_lea.hbm %s16410_s12, 16 }
 0x4f4   : > { %p13819_p11 = scmp.ne.s32.totalorder %s16410_s12, %s13818_s8  ;;  %p13824_p0 = scmp.lt.u32.totalorder %s13818_s8, %s16410_s12 }
 0x4f6   : > { %p13820_p12 = pnand %p13819_p11, %p12267_p10 }
 0x4f8   : > { %p13821_p13 = pneg %p13820_p12 }
 0x4fa   : > { %p13826_p1 = pnand %p13824_p0, %p13821_p13 }
 0x4fc   : > { %13829 = shalt.err (!%p13826_p1)
}
 0x4fd   : > { %s13830_s5 = scalar_lea.vmem %s2062_s4, 16  ;;  %s13836_s1 = scalar_lea.vmem %s2062_s4, 32 }
 0x4fe   : > { %p13831_p5 = scmp.ne.s32.totalorder %s2062_s4, %s13830_s5  ;;  %p13837_p3 = scmp.lt.s32.totalorder %s2062_s4, %s2062_s4 }
 0x4ff   : > { %p13838_p4 = scmp.lt.s32.totalorder %s13836_s1, %s13830_s5 }
 0x500   : > { %p13832_p6 = pnand %p13831_p5, %p12267_p10 }
 0x501   : > { %p13839_p7 = por %p13838_p4, %p13837_p3 }
 0x502   : > { %p13833_p2 = pneg %p13832_p6 }
 0x504   : > { %p13840_p8 = pnand %p13839_p7, %p13833_p2 }
 0x506   : > { %13843 = shalt.err (!%p13840_p8)
}
 0x507   : > { %s16411_s3 = sld [smem:[#allocation153_spill]]  ;;  %s14311_s16 = smov [#allocation64]  }
 0x508   : > { %12130 = dma.hbm_to_vmem [thread:$0]  (%p12267_p10), %s16410_s12, 16, %s2062_s4, [#allocation60]  }
 0x509   : > { %s2083_s17 = sshll.u32 %s14311_s16, 4  ;;  %s14312_s8 = smov [#allocation67]   ;;  %s2084_s17 = int_to_ptr.vmem [resolvable:$true] %s2083_s17 }
 0x50a   : > { %s2109_s6 = sshll.u32 %s14312_s8, 4  ;;  %s2110_s6 = int_to_ptr.vmem [resolvable:$true] %s2109_s6 }
 0x50d   : > { %s13844_s9 = scalar_lea.hbm %s16411_s3, 16 }
 0x50e   : > { %p13845_p11 = scmp.ne.s32.totalorder %s16411_s3, %s13844_s9  ;;  %p13850_p0 = scmp.lt.u32.totalorder %s13844_s9, %s16411_s3 }
 0x510   : > { %p13846_p12 = pnand %p13845_p11, %p12267_p10 }
 0x512   : > { %p13847_p13 = pneg %p13846_p12 }
 0x514   : > { %p13852_p1 = pnand %p13850_p0, %p13847_p13 }
 0x516   : > { %13855 = shalt.err (!%p13852_p1)
}
 0x517   : > { %s13856_s5 = scalar_lea.vmem %s2084_s17, 16  ;;  %s13862_s4 = scalar_lea.vmem %s2084_s17, 32 }
 0x518   : > { %p13857_p5 = scmp.ne.s32.totalorder %s2084_s17, %s13856_s5  ;;  %p13863_p3 = scmp.lt.s32.totalorder %s2084_s17, %s2084_s17 }
 0x519   : > { %p13864_p4 = scmp.lt.s32.totalorder %s13862_s4, %s13856_s5 }
 0x51a   : > { %p13858_p6 = pnand %p13857_p5, %p12267_p10 }
 0x51b   : > { %p13865_p7 = por %p13864_p4, %p13863_p3 }
 0x51c   : > { %p13859_p2 = pneg %p13858_p6 }
 0x51e   : > { %p13866_p8 = pnand %p13865_p7, %p13859_p2 }
 0x520   : > { %13869 = shalt.err (!%p13866_p8)
}
 0x521   : > { %s16412_s1 = sld [smem:[#allocation156_spill]] }
 0x522   : > { %12134 = dma.hbm_to_vmem [thread:$0]  (%p12267_p10), %s16411_s3, 16, %s2084_s17, [#allocation63]  }
 0x527   : > { %s13870_s9 = scalar_lea.hbm %s16412_s1, 512 }
 0x528   : > { %p13871_p11 = scmp.ne.s32.totalorder %s16412_s1, %s13870_s9  ;;  %p13876_p0 = scmp.lt.u32.totalorder %s13870_s9, %s16412_s1 }
 0x52a   : > { %p13872_p12 = pnand %p13871_p11, %p12267_p10 }
 0x52c   : > { %p13873_p13 = pneg %p13872_p12 }
 0x52e   : > { %p13878_p1 = pnand %p13876_p0, %p13873_p13 }
 0x530   : > { %13881 = shalt.err (!%p13878_p1)
}
 0x531   : > { %s13882_s16 = scalar_lea.vmem %s2110_s6, 512  ;;  %p13889_p3 = scmp.lt.s32.totalorder %s2110_s6, %s2110_s6 }
 0x532   : > { %p13883_p5 = scmp.ne.s32.totalorder %s2110_s6, %s13882_s16  ;;  %p13890_p4 = scmp.lt.s32.totalorder %s13882_s16, %s13882_s16 }
 0x534   : > { %p13884_p6 = pnand %p13883_p5, %p12267_p10  ;;  %p13891_p7 = por %p13890_p4, %p13889_p3 }
 0x536   : > { %p13885_p2 = pneg %p13884_p6 }
 0x538   : > { %p13892_p8 = pnand %p13891_p7, %p13885_p2 }
 0x53a   : > { %13895 = shalt.err (!%p13892_p8)
}
 0x53b   : > { %s16413_s17 = sld [smem:[#allocation158_spill]]  ;;  %s14313_s8 = smov [#allocation70]  }
 0x53c   : > { %12138 = dma.hbm_to_vmem [thread:$0]  (%p12267_p10), %s16412_s1, 512, %s2110_s6, [#allocation66], %s16373_s26, %s16373_s26, %s16377_s2  }
 0x53d   : > { %s2136_s5 = sshll.u32 %s14313_s8, 4  ;;  %s14314_s4 = smov [#allocation73]   ;;  %s2137_s5 = int_to_ptr.vmem [resolvable:$true] %s2136_s5 }
 0x53e   : > { %s2158_s9 = sshll.u32 %s14314_s4, 4  ;;  %s2159_s9 = int_to_ptr.vmem [resolvable:$true] %s2158_s9 }
 0x541   : > { %s13896_s16 = scalar_lea.hbm %s16413_s17, 16 }
 0x542   : > { %p13897_p11 = scmp.ne.s32.totalorder %s16413_s17, %s13896_s16  ;;  %p13902_p0 = scmp.lt.u32.totalorder %s13896_s16, %s16413_s17 }
 0x544   : > { %p13898_p12 = pnand %p13897_p11, %p12267_p10 }
 0x546   : > { %p13899_p13 = pneg %p13898_p12 }
 0x548   : > { %p13904_p1 = pnand %p13902_p0, %p13899_p13 }
 0x54a   : > { %13907 = shalt.err (!%p13904_p1)
}
 0x54b   : > { %s13908_s3 = scalar_lea.vmem %s2137_s5, 16  ;;  %s13914_s6 = scalar_lea.vmem %s2137_s5, 32 }
 0x54c   : > { %p13909_p5 = scmp.ne.s32.totalorder %s2137_s5, %s13908_s3  ;;  %p13915_p3 = scmp.lt.s32.totalorder %s2137_s5, %s2137_s5 }
 0x54d   : > { %p13916_p4 = scmp.lt.s32.totalorder %s13914_s6, %s13908_s3 }
 0x54e   : > { %p13910_p6 = pnand %p13909_p5, %p12267_p10 }
 0x54f   : > { %p13917_p7 = por %p13916_p4, %p13915_p3 }
 0x550   : > { %p13911_p2 = pneg %p13910_p6 }
 0x552   : > { %p13918_p8 = pnand %p13917_p7, %p13911_p2 }
 0x554   : > { %13921 = shalt.err (!%p13918_p8)
}
 0x555   : > { %s16414_s8 = sld [smem:[#allocation160_spill]] }
 0x556   : > { %12142 = dma.hbm_to_vmem [thread:$0]  (%p12267_p10), %s16413_s17, 16, %s2137_s5, [#allocation69]  }
 0x55b   : > { %s13922_s4 = scalar_lea.hbm %s16414_s8, 16 }
 0x55c   : > { %p13923_p11 = scmp.ne.s32.totalorder %s16414_s8, %s13922_s4  ;;  %p13928_p0 = scmp.lt.u32.totalorder %s13922_s4, %s16414_s8 }
 0x55e   : > { %p13924_p12 = pnand %p13923_p11, %p12267_p10 }
 0x560   : > { %p13925_p13 = pneg %p13924_p12 }
 0x562   : > { %p13930_p1 = pnand %p13928_p0, %p13925_p13 }
 0x564   : > { %13933 = shalt.err (!%p13930_p1)
}
 0x565   : > { %s13934_s3 = scalar_lea.vmem %s2159_s9, 16  ;;  %s13940_s16 = scalar_lea.vmem %s2159_s9, 32 }
 0x566   : > { %p13935_p5 = scmp.ne.s32.totalorder %s2159_s9, %s13934_s3  ;;  %p13941_p3 = scmp.lt.s32.totalorder %s2159_s9, %s2159_s9 }
 0x567   : > { %p13942_p4 = scmp.lt.s32.totalorder %s13940_s16, %s13934_s3 }
 0x568   : > { %p13936_p6 = pnand %p13935_p5, %p12267_p10 }
 0x569   : > { %p13943_p7 = por %p13942_p4, %p13941_p3 }
 0x56a   : > { %p13937_p2 = pneg %p13936_p6 }
 0x56c   : > { %p13944_p8 = pnand %p13943_p7, %p13937_p2 }
 0x56e   : > { %13947 = shalt.err (!%p13944_p8)
}
 0x56f   : > { %s16415_s5 = sld [smem:[#allocation164_spill]]  ;;  %s14315_s6 = smov [#allocation76]  }
 0x570   : > { %12146 = dma.hbm_to_vmem [thread:$0]  (%p12267_p10), %s16414_s8, 16, %s2159_s9, [#allocation72]  }
 0x571   : > { %s2186_s4 = sshll.u32 %s14315_s6, 4  ;;  %s14316_s1 = smov [#allocation79]   ;;  %s2187_s4 = int_to_ptr.vmem [resolvable:$true] %s2186_s4 }
 0x572   : > { %s2210_s10 = sshll.u32 %s14316_s1, 4  ;;  %s2211_s10 = int_to_ptr.vmem [resolvable:$true] %s2210_s10 }
 0x575   : > { %s13948_s12 = scalar_lea.hbm %s16415_s5, 16 }
 0x576   : > { %p13949_p11 = scmp.ne.s32.totalorder %s16415_s5, %s13948_s12  ;;  %p13954_p0 = scmp.lt.u32.totalorder %s13948_s12, %s16415_s5 }
 0x578   : > { %p13950_p12 = pnand %p13949_p11, %p12267_p10 }
 0x57a   : > { %p13951_p13 = pneg %p13950_p12 }
 0x57c   : > { %p13956_p1 = pnand %p13954_p0, %p13951_p13 }
 0x57e   : > { %13959 = shalt.err (!%p13956_p1)
}
 0x57f   : > { %s13960_s3 = scalar_lea.vmem %s2187_s4, 16  ;;  %s13966_s9 = scalar_lea.vmem %s2187_s4, 32 }
 0x580   : > { %p13961_p5 = scmp.ne.s32.totalorder %s2187_s4, %s13960_s3  ;;  %p13967_p3 = scmp.lt.s32.totalorder %s2187_s4, %s2187_s4 }
 0x581   : > { %p13968_p4 = scmp.lt.s32.totalorder %s13966_s9, %s13960_s3 }
 0x582   : > { %p13962_p6 = pnand %p13961_p5, %p12267_p10 }
 0x583   : > { %p13969_p7 = por %p13968_p4, %p13967_p3 }
 0x584   : > { %p13963_p2 = pneg %p13962_p6 }
 0x586   : > { %p13970_p8 = pnand %p13969_p7, %p13963_p2 }
 0x588   : > { %13973 = shalt.err (!%p13970_p8)
}
 0x589   : > { %s16416_s1 = sld [smem:[#allocation167_spill]] }
 0x58a   : > { %12150 = dma.hbm_to_vmem [thread:$0]  (%p12267_p10), %s16415_s5, 16, %s2187_s4, [#allocation75]  }
 0x58f   : > { %s13974_s12 = scalar_lea.hbm %s16416_s1, 512 }
 0x590   : > { %p13975_p11 = scmp.ne.s32.totalorder %s16416_s1, %s13974_s12  ;;  %p13980_p0 = scmp.lt.u32.totalorder %s13974_s12, %s16416_s1 }
 0x592   : > { %p13976_p12 = pnand %p13975_p11, %p12267_p10 }
 0x594   : > { %p13977_p13 = pneg %p13976_p12 }
 0x596   : > { %p13982_p1 = pnand %p13980_p0, %p13977_p13 }
 0x598   : > { %13985 = shalt.err (!%p13982_p1)
}
 0x599   : > { %s13986_s16 = scalar_lea.vmem %s2211_s10, 512  ;;  %p13993_p3 = scmp.lt.s32.totalorder %s2211_s10, %s2211_s10 }
 0x59a   : > { %p13987_p5 = scmp.ne.s32.totalorder %s2211_s10, %s13986_s16  ;;  %p13994_p4 = scmp.lt.s32.totalorder %s13986_s16, %s13986_s16 }
 0x59c   : > { %p13988_p6 = pnand %p13987_p5, %p12267_p10  ;;  %p13995_p7 = por %p13994_p4, %p13993_p3 }
 0x59e   : > { %p13989_p2 = pneg %p13988_p6 }
 0x5a0   : > { %p13996_p8 = pnand %p13995_p7, %p13989_p2 }
 0x5a2   : > { %13999 = shalt.err (!%p13996_p8)
}
 0x5a3   : > { %12154 = dma.hbm_to_vmem [thread:$0]  (%p12267_p10), %s16416_s1, 512, %s2211_s10, [#allocation78], %s16373_s26, %s16373_s26, %s16377_s2  }
 0x5a4   : > { %s14317_s6 = smov [#allocation80]   ;;  %s14000_s3 = scalar_lea.hbm %s14656_s21, 512 }
 0x5a5   : > { %s2223_s4 = sshll.u32 %s14317_s6, 4  ;;  %p14001_p11 = scmp.ne.s32.totalorder %s14656_s21, %s14000_s3  ;;  %s2224_s4 = int_to_ptr.vmem [resolvable:$true] %s2223_s4 }
 0x5a6   : > { %p14006_p0 = scmp.lt.u32.totalorder %s14000_s3, %s14656_s21 }
 0x5a7   : > { %p14002_p12 = pnand %p14001_p11, %p12267_p10 }
 0x5a9   : > { %p14003_p13 = pneg %p14002_p12 }
 0x5ab   : > { %p14008_p1 = pnand %p14006_p0, %p14003_p13 }
 0x5ad   : > { %14011 = shalt.err (!%p14008_p1)
}
 0x5ae   : > { %s14012_s9 = scalar_lea.vmem %s2224_s4, 512  ;;  %p14019_p3 = scmp.lt.s32.totalorder %s2224_s4, %s2224_s4 }
 0x5af   : > { %p14013_p5 = scmp.ne.s32.totalorder %s2224_s4, %s14012_s9  ;;  %p14020_p4 = scmp.lt.s32.totalorder %s14012_s9, %s14012_s9 }
 0x5b1   : > { %p14014_p6 = pnand %p14013_p5, %p12267_p10  ;;  %p14021_p7 = por %p14020_p4, %p14019_p3 }
 0x5b3   : > { %p14015_p2 = pneg %p14014_p6 }
 0x5b5   : > { %p14022_p8 = pnand %p14021_p7, %p14015_p2 }
 0x5b7   : > { %14025 = shalt.err (!%p14022_p8)
}
 0x5b8   : > { %12156 = dma.hbm_to_vmem [thread:$0]  (%p12267_p10), %s14656_s21, 512, %s2224_s4, [#allocation81], %s16373_s26, %s16373_s26, %s16377_s2  }
 0x5b9 PF: > { %2259 = sbr.rel (%p14721_p9) target bundleno = 21274 (0x531a), region = 284  ;;  %p12319_p11 = scmp.eq.s32.totalorder (!%p14721_p9), %s14694_s22, 0 }
 0x5c0   : > { %14071 = dma.done.wait (%p12319_p11), [#allocation3], 128  }
 0x5c1   : > { %14073 = vsyncadd (%p12319_p11), [#allocation3], 4294967168 }
 0x5c2   : > { %14075 = dma.done.wait (%p12319_p11), [#allocation6], 144  }
 0x5c3   : > { %14077 = vsyncadd (%p12319_p11), [#allocation6], 4294967152 }
 0x5c4   : > { %14079 = dma.done.wait (%p12319_p11), [#allocation9], 32  }
 0x5c5   : > { %14081 = vsyncadd (%p12319_p11), [#allocation9], 4294967264 }
 0x5c6   : > { %14083 = dma.done.wait (%p12319_p11), [#allocation12], 32  }
 0x5c7   : > { %14085 = vsyncadd (%p12319_p11), [#allocation12], 4294967264 }
 0x5c8   : > { %14087 = dma.done.wait (%p12319_p11), [#allocation15], 32  }
 0x5c9   : > { %14089 = vsyncadd (%p12319_p11), [#allocation15], 4294967264 }
 0x5ca   : > { %14091 = dma.done.wait (%p12319_p11), [#allocation18], 32  }
 0x5cb   : > { %14093 = vsyncadd (%p12319_p11), [#allocation18], 4294967264 }
 0x5cc   : > { %14095 = dma.done.wait (%p12319_p11), [#allocation21], 32  }
 0x5cd   : > { %14097 = vsyncadd (%p12319_p11), [#allocation21], 4294967264 }
 0x5ce   : > { %14099 = dma.done.wait (%p12319_p11), [#allocation24], 32  }
 0x5cf   : > { %14101 = vsyncadd (%p12319_p11), [#allocation24], 4294967264 }
 0x5d0   : > { %14103 = dma.done.wait (%p12319_p11), [#allocation27], 1024  }
 0x5d1   : > { %14105 = vsyncadd (%p12319_p11), [#allocation27], 4294966272 }
 0x5d2   : > { %14107 = dma.done.wait (%p12319_p11), [#allocation30], 32  }
 0x5d3   : > { %14109 = vsyncadd (%p12319_p11), [#allocation30], 4294967264 }
 0x5d4   : > { %14111 = dma.done.wait (%p12319_p11), [#allocation33], 32  }
 0x5d5   : > { %14113 = vsyncadd (%p12319_p11), [#allocation33], 4294967264 }
 0x5d6   : > { %14115 = dma.done.wait (%p12319_p11), [#allocation36], 1024  }
 0x5d7   : > { %14117 = vsyncadd (%p12319_p11), [#allocation36], 4294966272 }
 0x5d8   : > { %14119 = dma.done.wait (%p12319_p11), [#allocation39], 32  }
 0x5d9   : > { %14121 = vsyncadd (%p12319_p11), [#allocation39], 4294967264 }
 0x5da   : > { %14123 = dma.done.wait (%p12319_p11), [#allocation42], 32  }
 0x5db   : > { %14125 = vsyncadd (%p12319_p11), [#allocation42], 4294967264 }
 0x5dc   : > { %14127 = dma.done.wait (%p12319_p11), [#allocation45], 32  }
 0x5dd   : > { %14129 = vsyncadd (%p12319_p11), [#allocation45], 4294967264 }
 0x5de   : > { %14131 = dma.done.wait (%p12319_p11), [#allocation48], 32  }
 0x5df   : > { %14133 = vsyncadd (%p12319_p11), [#allocation48], 4294967264 }
 0x5e0   : > { %14135 = dma.done.wait (%p12319_p11), [#allocation51], 1024  }
 0x5e1   : > { %14137 = vsyncadd (%p12319_p11), [#allocation51], 4294966272 }
 0x5e2   : > { %14139 = dma.done.wait (%p12319_p11), [#allocation54], 32  }
 0x5e3   : > { %14141 = vsyncadd (%p12319_p11), [#allocation54], 4294967264 }
 0x5e4   : > { %14143 = dma.done.wait (%p12319_p11), [#allocation57], 32  }
 0x5e5   : > { %14145 = vsyncadd (%p12319_p11), [#allocation57], 4294967264 }
 0x5e6   : > { %14147 = dma.done.wait (%p12319_p11), [#allocation60], 32  }
 0x5e7   : > { %14149 = vsyncadd (%p12319_p11), [#allocation60], 4294967264 }
 0x5e8   : > { %14151 = dma.done.wait (%p12319_p11), [#allocation63], 32  }
 0x5e9   : > { %14153 = vsyncadd (%p12319_p11), [#allocation63], 4294967264 }
 0x5ea   : > { %14155 = dma.done.wait (%p12319_p11), [#allocation66], 1024  }
 0x5eb   : > { %14157 = vsyncadd (%p12319_p11), [#allocation66], 4294966272 }
 0x5ec   : > { %14159 = dma.done.wait (%p12319_p11), [#allocation69], 528  }
 0x5ed   : > { %14161 = vsyncadd (%p12319_p11), [#allocation69], 4294966768 }
 0x5ee   : > { %14163 = dma.done.wait (%p12319_p11), [#allocation72], 32  }
 0x5ef   : > { %14165 = vsyncadd (%p12319_p11), [#allocation72], 4294967264 }
 0x5f0   : > { %14167 = dma.done.wait (%p12319_p11), [#allocation75], 32  }
 0x5f1   : > { %14169 = vsyncadd (%p12319_p11), [#allocation75], 4294967264 }
 0x5f2   : > { %14171 = dma.done.wait (%p12319_p11), [#allocation78], 528  }
 0x5f3   : > { %14173 = vsyncadd (%p12319_p11), [#allocation78], 4294966768 }
 0x5f4   : > { %14175 = dma.done.wait (%p12319_p11), [#allocation81], 512  }
 0x5f5   : > { %14177 = vsyncadd (%p12319_p11), [#allocation81], 4294966784  ;;  %s16417_s11 = sld [smem:[#allocation111_spill]]  ;;  %p2616_p9 = scmp.lt.s32.totalorder %s14694_s22, 1  ;;  %v14318_v0 = vmov 0.0   ;;  %vm14319_vm0 = vmmov 0  }
 0x5f6   : > { %11411 = vmatprep.subr.mxu0 %v14318_v0  ;;  %11413 = vmatprep.mubr.msk.f32.mxu0 %vm14319_vm0, %v14318_v0  ;;  %vm2637_vm1 = vcmask 1043456   ;;  %vm2633_vm2 = vcmask 31744   ;;  %v2624_v1 = vld [vmem:[%s14666_s13] sm:$0xf]  ;;  %v14320_v3 = vmov 0.0|0.0   ;;  %v2792_v5 = vld [vmem:[#allocation65 + $0x8] sm:$0xff] }
 0x5f7   : > { %s15397_s26 = scalar_select %p2616_p9, %s14694_s22, 1  ;;  %11416 = vmatprep.subr.mxu1 %v14318_v0  ;;  %11418 = vmatprep.mubr.msk.f32.mxu1 %vm14319_vm0, %v14318_v0  ;;  %v2791_v4 = vld [vmem:[#allocation65] sm:$0xff]  ;;  %v2793_v7 = vld [vmem:[#allocation65 + $0x10] sm:$0xff]  ;;  %v2794_v8 = vld [vmem:[#allocation65 + $0x18] sm:$0xff]  ;;  %vm2806_vm3 = vcmask 261120   ;;  %vm2884_vm4 = vcmask 64512  }
 0x5f8   : > { %11412 = vmatpush3.msk.msra.mxu0 %vm2637_vm1, %v2624_v1  ;;  %11417 = vmatpush3.msk.msra.mxu1 %vm2637_vm1, %v2624_v1  ;;  %v11958_v6 = vpack.c.bf16 %v2792_v5, %v2791_v4  ;;  %s16418_s12 = sld [smem:[#allocation112_spill]]  ;;  %v11961_v9 = vpack.c.bf16 %v2794_v8, %v2793_v7  ;;  %v15414_v10 = vld [vmem:[#allocation7] ss:$0 sm:$0xff]  ;;  %v2712_v14 = vld [vmem:[#allocation2] sm:$0xff]  ;;  %s16286_s6 = smov 96  }
 0x5f9   : > { %s11019_s2 = sshll.u32 %s15397_s26, 3  ;;  %11957 = vmatprep.subr.bf16.mxu0 %v14320_v3  ;;  %11432 = vmatprep.subr.mxu1 %v14318_v0  ;;  %v11026_v18 = vld [vmem:[#allocation64] ss:$0 sm:$0xff]  ;;  %s16276_s4 = smov 120  }
 0x5fa   : > { %s16284_s3 = smov 88   ;;  %s16419_s9 = sld [smem:[#allocation154_spill]] }
 0x5fb   : > { %s2619_s10 = scalar_lea.vmem %s16417_s11, %s11019_s2  ;;  %s16290_s11 = smov 56  }
 0x5fc   : > { %v2626_v2 = vld [vmem:[%s2619_s10] sm:$0xff]  ;;  %s16280_s26 = smov 64   ;;  %s16278_s10 = smov 112  }
 0x5fd   : > { %11414 = vmatmul.mubr.msk.f32.vlgmr.msra.gmra.mrb[0].mxu0 %vm2633_vm2, %v2626_v2  ;;  %s16430_s1 = sld [smem:[#allocation120_spill]]  ;;  %s16435_s5 = smov 104  }
 0x5fe   : > { %11429 = vmatprep.mubr.msk.f32.mxu0 %vm14319_vm0, %v14318_v0  ;;  %11959 = vmatpush3.bf16.msra.mxu0 %v11958_v6  ;;  %s2623_s16 = scalar_lea.vmem %s16418_s12, %s11019_s2  ;;  %s16272_s2 = smov 80  }
 0x5ff   : > { %11960 = vmatprep.subr.bf16.mxu0 %v14320_v3  ;;  %v2714_v17 = vld [vmem:[%s2623_s16] sm:$0xff]  ;;  %s16274_s12 = smov 72   ;;  %s16291_s16 = smov 104  }
 0x600   : > { %11419 = vmatmul.mubr.msk.f32.vlgmr.msra.gmra.mrb[0].mxu1 %vm2633_vm2, %v2714_v17  ;;  %v2797_v44 = vld [vmem:[%s16419_s9 + $0x8] sm:$0xff]  ;;  %v2796_v53 = vld [vmem:[%s16419_s9] sm:$0xff]  ;;  %s16438_s8 = sld [smem:[#allocation142_spill]]  ;;  %p16440_p12 = scmp.ne.s32.totalorder %s16369_s7, 0 }
 0x601   : > { %11434 = vmatprep.mubr.msk.f32.mxu1 %vm14319_vm0, %v14318_v0 }
 0x602   : > { %11962 = vmatpush3.bf16.msra.mxu0 %v11961_v9 }
 0x603   : > { %11442 = vmatprep.subr.mxu0 %v14318_v0 }
 0x6d0   : > { %v2707_v11 = vpop.f32.mrb[0].mxu0 }
 0x6d1   : > { %v2708_v12 = vadd.f32 %v15414_v10, %v2707_v11  ;;  %v11415_v13 = vpop.f32.mrb[1].mxu0 }
 0x6d3   : > { %v2711_v15 = vmul.f32 5.656854, %v2708_v12  ;;  %v15440_v23 = vpop.f32.mrb[0].mxu1 }
 0x6d4   : > { %v11420_v24 = vpop.f32.mrb[1].mxu1 }
 0x6d5   : > { %v15417_v16 = vadd.f32 %v2712_v14, %v2711_v15 }
 0x6d7   : > { %11430 = vmatmul.mubr.msk.f32.vlgmr.msra.gmra.mrb[2].mxu0 %vm2806_vm3, %v15417_v16 }
 0x6d8   : > { %11444 = vmatprep.mubr.msk.f32.mxu0 %vm14319_vm0, %v14318_v0 }
 0x7aa   : > { %v2876_v19 = vpop.f32.mrb[2].mxu0 }
 0x7ab   : > { %v15429_v20 = vadd.f32 %v11026_v18, %v2876_v19  ;;  %v11431_v21 = vpop.f32.mrb[3].mxu0  ;;  %v2798_v19 = vld [vmem:[%s16419_s9 + $0x10] sm:$0xff] }
 0x7ad   : > { %2882 = vrot.lane.b32.xlu0 %v15429_v20, %s16286_s6  ;;  %v15434_v22 = vmul.f32 0.35355338, %v15429_v20 }
 0x7af   : > { %3047 = vrot.lane.b32.xlu1 %v15434_v22, %s16276_s4 }
 0x7b1   : > { %3049 = vrot.lane.b32.xlu0 %v15429_v20, %s16284_s3 }
 0x81f   : > { %v2883_v25 = vpop.permute.xlu0 %2882 }
 0x820   : > { %11433 = vmatpush3.xpose.msk.msra.mxu1 %vm2884_vm4, %v2883_v25 }
 0x821   : > { %11437 = vmatprep.subr.mxu1 %v14318_v0  ;;  %v3048_v27 = vpop.permute.xlu1 %3047 }
 0x823   : > { %v3050_v26 = vpop.permute.xlu0 %3049  ;;  %11435 = vmatmul.mubr.msk.f32.vlgmr.msra.gmra.mrb[2].mxu1 %vm2884_vm4, %v15434_v22 }
 0x824   : > { %11443 = vmatpush3.xpose.msk.msra.mxu0 %vm2884_vm4, %v3050_v26  ;;  %11439 = vmatprep.mubr.msk.f32.mxu1 %vm14319_vm0, %v14318_v0 }
 0x825   : > { %11452 = vmatprep.subr.mxu0 %v14318_v0 }
 0x827   : > { %11445 = vmatmul.mubr.msk.f32.vlgmr.msra.gmra.mrb[4].mxu0 %vm2884_vm4, %v3048_v27 }
 0x828   : > { %11454 = vmatprep.mubr.msk.f32.mxu0 %vm14319_vm0, %v14318_v0  ;;  %11453 = vmatpush3.msra.mxu0 %v2797_v44 }
 0x829   : > { %11462 = vmatprep.subr.mxu0 %v14318_v0 }
 0x8f6   : > { %v2956_v28 = vpop.f32.mrb[2].mxu1 }
 0x8f7   : > { %v11436_v29 = vpop.f32.mrb[3].mxu1  ;;  %v2960_v30 = vsel %vm2884_vm4, %v2956_v28, -inf }
 0x8f8   : > { %2961 = vmax.xlane.f32.xlu1 %v2960_v30 }
 0x8fa   : > { %v3121_v31 = vpop.f32.mrb[4].mxu0 }
 0x8fb   : > { %v11446_v32 = vpop.f32.mrb[5].mxu0  ;;  %v3125_v33 = vsel %vm2884_vm4, %v3121_v31, -inf }
 0x8fc   : > { %3126 = vmax.xlane.f32.xlu0 %v3125_v33  ;;  %v2799_v33 = vld [vmem:[%s16419_s9 + $0x18] sm:$0xff] }
 0x985   : > { %v2962_v34 = vpop.xlane.xlu1 %2961 }
 0x986   : > { %v2963_v35 = vsub.f32 %v2956_v28, %v2962_v34 }
 0x988   : > { %v2964_v36 = vmul.f32 1.442695, %v2963_v35 }
 0x989   : > { %v3127_v37 = vpop.xlane.xlu0 %3126 }
 0x98a   : > { %12558 = vpow2.f32 %v2964_v36  ;;  %v3128_v38 = vsub.f32 %v3121_v31, %v3127_v37 }
 0x98c   : > { %v3129_v39 = vmul.f32 1.442695, %v3128_v38 }
 0x98e   : > { %12560 = vpow2.f32 %v3129_v39 }
 0x994   : > { %v12559_v40 = vpop.eup %12558 }
 0x995   : > { %v2966_v41 = vsel %vm2884_vm4, %v12559_v40, 0.0 }
 0x996   : > { %2967 = vadd.xlane.f32.xlu0 %v2966_v41 }
 0x998   : > { %v12561_v42 = vpop.eup %12560 }
 0x999   : > { %v3131_v43 = vsel %vm2884_vm4, %v12561_v42, 0.0 }
 0x99a   : > { %3132 = vadd.xlane.f32.xlu1 %v3131_v43 }
 0x9ab   : > { %3136 = vrot.lane.b32.xlu1 %v15429_v20, %s16290_s11 }
 0x9ac   : > { %2971 = vrot.lane.b32.xlu0 %v15429_v20, %s16280_s26 }
 0x9af   : > { %3360 = vrot.lane.b32.xlu1 %v15429_v20, %s16272_s2  ;;  %s16288_s2 = smov 48  }
 0x9b0   : > { %3358 = vrot.lane.b32.xlu0 %v15434_v22, %s16278_s10 }
 0xa23   : > { %v2968_v45 = vpop.xlane.xlu0 %2967 }
 0xa24   : > { %12562 = vrcp.f32 %v2968_v45 }
 0xa27   : > { %v3133_v46 = vpop.xlane.xlu1 %3132  ;;  %v2972_v47 = vpop.permute.xlu0 %2971 }
 0xa28   : > { %12564 = vrcp.f32 %v3133_v46  ;;  %11438 = vmatpush3.msra.mxu1 %v2972_v47 }
 0xa29   : > { %11447 = vmatprep.subr.mxu1 %v14318_v0 }
 0xa2b   : > { %v3137_v50 = vpop.permute.xlu1 %3136  ;;  %v3359_v59 = vpop.permute.xlu0 %3358 }
 0xa2e   : > { %v12563_v48 = vpop.eup %12562 }
 0xa2f   : > { %v2970_v49 = vmul.f32 %v12563_v48, %v12559_v40  ;;  %v3361_v57 = vpop.permute.xlu1 %3360 }
 0xa31   : > { %11440 = vmatmul.mubr.msk.f32.vlgmr.msra.gmra.mrb[4].mxu1 %vm2884_vm4, %v2970_v49 }
 0xa32   : > { %v12565_v51 = vpop.eup %12564  ;;  %11448 = vmatpush3.msra.mxu1 %v3137_v50  ;;  %11449 = vmatprep.mubr.msk.f32.mxu1 %vm14319_vm0, %v14318_v0 }
 0xa33   : > { %v3135_v52 = vmul.f32 %v12565_v51, %v12561_v42  ;;  %11457 = vmatprep.subr.mxu1 %v14318_v0  ;;  %v11044_v42 = vld [vmem:[#allocation62] ss:$0 sm:$0xff] }
 0xa35   : > { %11450 = vmatmul.mubr.msk.f32.vlgmr.msra.gmra.mrb[6].mxu1 %vm2884_vm4, %v3135_v52 }
 0xa36   : > { %11459 = vmatprep.mubr.msk.f32.mxu1 %vm14319_vm0, %v14318_v0  ;;  %11458 = vmatpush3.msra.mxu1 %v2796_v53  ;;  %v3875_v53 = vld [vmem:[#allocation67] sm:$0xff] }
 0xa37   : > { %11467 = vmatprep.subr.mxu1 %v14318_v0 }
 0xb04   : > { %v3043_v54 = vpop.f32.mrb[4].mxu1 }
 0xb05   : > { %v11441_v55 = vpop.f32.mrb[5].mxu1  ;;  %11460 = vmatmul.mubr.msk.f32.vlgmr.msra.gmra.mrb[8].mxu1 %vm2884_vm4, %v3043_v54  ;;  %v3876_v54 = vld [vmem:[#allocation67 + $0x8] sm:$0xff] }
 0xb06   : > { %11469 = vmatprep.mubr.msk.f32.mxu1 %vm14319_vm0, %v14318_v0  ;;  %v11964_v55 = vpack.c.bf16 %v3876_v54, %v3875_v53 }
 0xb08   : > { %v3208_v56 = vpop.f32.mrb[6].mxu1 }
 0xb09   : > { %v11451_v58 = vpop.f32.mrb[7].mxu1  ;;  %11455 = vmatmul.mubr.msk.f32.vlgmr.msra.gmra.mrb[6].mxu0 %vm2884_vm4, %v3208_v56  ;;  %v3877_v56 = vld [vmem:[#allocation67 + $0x10] sm:$0xff] }
 0xb0a   : > { %11463 = vmatpush3.xpose.msk.msra.mxu0 %vm2884_vm4, %v3361_v57  ;;  %11464 = vmatprep.mubr.msk.f32.mxu0 %vm14319_vm0, %v14318_v0  ;;  %v3878_v57 = vld [vmem:[#allocation67 + $0x18] sm:$0xff] }
 0xb0b   : > { %11472 = vmatprep.subr.mxu0 %v14318_v0  ;;  %v11967_v58 = vpack.c.bf16 %v3878_v57, %v3877_v56 }
 0xb0d   : > { %11465 = vmatmul.mubr.msk.f32.vlgmr.msra.gmra.mrb[8].mxu0 %vm2884_vm4, %v3359_v59  ;;  %v3961_v59 = vld [vmem:[#allocation68 + $0x8] sm:$0xff] }
 0xb0e   : > { %11474 = vmatprep.mubr.msk.f32.mxu0 %vm14319_vm0, %v14318_v0  ;;  %11473 = vmatpush3.msra.mxu0 %v2798_v19 }
 0xb0f   : > { %11482 = vmatprep.subr.mxu0 %v14318_v0 }
 0xbd8   : > { %v3354_v60 = vpop.f32.mrb[8].mxu1 }
 0xbd9   : > { %v11461_v61 = vpop.f32.mrb[9].mxu1 }
 0xbdc   : > { %v3281_v62 = vpop.f32.mrb[6].mxu0 }
 0xbdd   : > { %v3355_v63 = vadd.f32 %v3354_v60, %v3281_v62  ;;  %v11456_v1 = vpop.f32.mrb[7].mxu0 }
 0xbe0   : > { %v3432_v2 = vpop.f32.mrb[8].mxu0 }
 0xbe1   : > { %v11466_v4 = vpop.f32.mrb[9].mxu0  ;;  %v3436_v5 = vsel %vm2884_vm4, %v3432_v2, -inf }
 0xbe2   : > { %3437 = vmax.xlane.f32.xlu1 %v3436_v5  ;;  %v11046_v5 = vld [vmem:[#allocation56] ss:$0 sm:$0xff] }
 0xbf3   : > { %3599 = vrot.lane.b32.xlu1 %v15429_v20, %s16274_s12  ;;  %s16282_s12 = smov 40  }
 0xbf7   : > { %3597 = vrot.lane.b32.xlu1 %v15434_v22, %s16291_s16 }
 0xc6f   : > { %v3438_v6 = vpop.xlane.xlu1 %3437 }
 0xc70   : > { %v3439_v7 = vsub.f32 %v3432_v2, %v3438_v6  ;;  %v11045_v2 = vld [vmem:[#allocation58] ss:$0 sm:$0xff] }
 0xc72   : > { %v3440_v8 = vmul.f32 1.442695, %v3439_v7 }
 0xc73   : > { %v3600_v15 = vpop.permute.xlu1 %3599 }
 0xc74   : > { %12566 = vpow2.f32 %v3440_v8  ;;  %v3962_v8 = vld [vmem:[#allocation68 + $0x10] sm:$0xff] }
 0xc77   : > { %v3598_v18 = vpop.permute.xlu1 %3597 }
 0xc7e   : > { %v12567_v9 = vpop.eup %12566 }
 0xc7f   : > { %v3442_v11 = vsel %vm2884_vm4, %v12567_v9, 0.0 }
 0xc80   : > { %3443 = vadd.xlane.f32.xlu0 %v3442_v11 }
 0xc96   : > { %3447 = vrot.lane.b32.xlu0 %v15429_v20, %s16288_s2 }
 0xd0d   : > { %v3444_v12 = vpop.xlane.xlu0 %3443 }
 0xd0e   : > { %12568 = vrcp.f32 %v3444_v12  ;;  %v11047_v12 = vld [vmem:[#allocation53] ss:$0 sm:$0xff] }
 0xd11   : > { %v3448_v13 = vpop.permute.xlu0 %3447 }
 0xd12   : > { %11468 = vmatpush3.msra.mxu1 %v3448_v13 }
 0xd13   : > { %11477 = vmatprep.subr.mxu1 %v14318_v0 }
 0xd18   : > { %v12569_v14 = vpop.eup %12568 }
 0xd19   : > { %v3446_v17 = vmul.f32 %v12569_v14, %v12567_v9  ;;  %v3963_v9 = vld [vmem:[#allocation68 + $0x18] sm:$0xff] }
 0xd1a   : > { %v11973_v11 = vpack.c.bf16 %v3963_v9, %v3962_v8 }
 0xd1b   : > { %11470 = vmatmul.mubr.msk.f32.vlgmr.msra.gmra.mrb[10].mxu1 %vm2884_vm4, %v3446_v17 }
 0xd1c   : > { %11478 = vmatpush3.xpose.msk.msra.mxu1 %vm2884_vm4, %v3600_v15  ;;  %11479 = vmatprep.mubr.msk.f32.mxu1 %vm14319_vm0, %v14318_v0 }
 0xd1d   : > { %11487 = vmatprep.subr.mxu1 %v14318_v0 }
 0xd1f   : > { %11480 = vmatmul.mubr.msk.f32.vlgmr.msra.gmra.mrb[12].mxu1 %vm2884_vm4, %v3598_v18  ;;  %v11049_v18 = vld [vmem:[#allocation55] ss:$0 sm:$0xff] }
 0xd20   : > { %11489 = vmatprep.mubr.msk.f32.mxu1 %vm14319_vm0, %v14318_v0  ;;  %11488 = vmatpush3.msra.mxu1 %v2799_v33 }
 0xd21   : > { %11969 = vmatprep.subr.bf16.mxu1 %v14320_v3 }
 0xdee   : > { %v3519_v21 = vpop.f32.mrb[10].mxu1 }
 0xdef   : > { %v11471_v22 = vpop.f32.mrb[11].mxu1  ;;  %11475 = vmatmul.mubr.msk.f32.vlgmr.msra.gmra.mrb[10].mxu0 %vm2884_vm4, %v3519_v21 }
 0xdf0   : > { %11484 = vmatprep.mubr.msk.f32.mxu0 %vm14319_vm0, %v14318_v0 }
 0xdf2   : > { %v3671_v24 = vpop.f32.mrb[12].mxu1 }
 0xdf3   : > { %v11481_v25 = vpop.f32.mrb[13].mxu1  ;;  %v3675_v26 = vsel %vm2884_vm4, %v3671_v24, -inf }
 0xdf4   : > { %3676 = vmax.xlane.f32.xlu0 %v3675_v26 }
 0xe0a   : > { %3686 = vrot.lane.b32.xlu0 %v15429_v20, %s16282_s12 }
 0xe81   : > { %v3677_v27 = vpop.xlane.xlu0 %3676 }
 0xe82   : > { %v3678_v28 = vsub.f32 %v3671_v24, %v3677_v27 }
 0xe84   : > { %v3679_v29 = vmul.f32 1.442695, %v3678_v28 }
 0xe85   : > { %v3687_v30 = vpop.permute.xlu0 %3686 }
 0xe86   : > { %12570 = vpow2.f32 %v3679_v29  ;;  %11483 = vmatpush3.msra.mxu0 %v3687_v30 }
 0xe87   : > { %11963 = vmatprep.subr.bf16.mxu0 %v14320_v3 }
 0xe90   : > { %v12571_v31 = vpop.eup %12570 }
 0xe91   : > { %v3681_v32 = vsel %vm2884_vm4, %v12571_v31, 0.0 }
 0xe92   : > { %3682 = vadd.xlane.f32.xlu1 %v3681_v32  ;;  %v4075_v32 = vld [vmem:[#allocation79 + $0x8] sm:$0xff] }
 0xec2   : > { %v3592_v34 = vpop.f32.mrb[10].mxu0 }
 0xec3   : > { %v3596_v35 = vadd.f32 %v3592_v34, %v3355_v63  ;;  %v11476_v36 = vpop.f32.mrb[11].mxu0  ;;  %v4076_v34 = vld [vmem:[#allocation79 + $0x10] sm:$0xff] }
 0xf1f   : > { %v3683_v20 = vpop.xlane.xlu1 %3682 }
 0xf20   : > { %12572 = vrcp.f32 %v3683_v20 }
 0xf2a   : > { %v12573_v37 = vpop.eup %12572 }
 0xf2b   : > { %v3685_v38 = vmul.f32 %v12573_v37, %v12571_v31  ;;  %v4074_v31 = vld [vmem:[#allocation79] sm:$0xff] }
 0xf2c   : > { %v11976_v33 = vpack.c.bf16 %v4075_v32, %v4074_v31 }
 0xf2d   : > { %11485 = vmatmul.mubr.msk.f32.vlgmr.msra.gmra.mrb[12].mxu0 %vm2884_vm4, %v3685_v38 }
 0xf2e   : > { %11500 = vmatprep.mubr.msk.f32.mxu0 %vm14319_vm0, %v14318_v0  ;;  %11965 = vmatpush3.bf16.msra.mxu0 %v11964_v55 }
 0xf2f   : > { %11966 = vmatprep.subr.bf16.mxu0 %v14320_v3 }
 0xf32   : > { %11968 = vmatpush3.bf16.msra.mxu0 %v11967_v58 }
 0xf33   : > { %11975 = vmatprep.subr.bf16.mxu0 %v14320_v3 }
0x1000   : > { %v3758_v39 = vpop.f32.mrb[12].mxu0 }
0x1001   : > { %v11486_v40 = vpop.f32.mrb[13].mxu0  ;;  %11490 = vmatmul.mubr.msk.f32.vlgmr.msra.gmra.mrb[14].mxu1 %vm2884_vm4, %v3758_v39 }
0x1002   : > { %11511 = vmatprep.mubr.msk.f32.mxu1 %vm14319_vm0, %v14318_v0  ;;  %v11051_v40 = vld [vmem:[#allocation61] ss:$0 sm:$0xff] }
0x10d4   : > { %v3831_v41 = vpop.f32.mrb[14].mxu1 }
0x10d5   : > { %v3835_v43 = vadd.f32 %v3831_v41, %v3596_v35  ;;  %v11491_v44 = vpop.f32.mrb[15].mxu1  ;;  %v4077_v35 = vld [vmem:[#allocation79 + $0x18] sm:$0xff] }
0x10d6   : > { %v11979_v36 = vpack.c.bf16 %v4077_v35, %v4076_v34 }
0x10d7   : > { %v3843_v45 = vadd.f32 %v11044_v42, %v3835_v43  ;;  %v11052_v42 = vld [vmem:[#allocation59] ss:$0 sm:$0xff] }
0x10d9   : > { %v3844_v46 = vadd.f32 %v3843_v45, %v15417_v16  ;;  %v3960_v16 = vld [vmem:[#allocation68] sm:$0xff]  ;;  %v11053_v45 = vld [vmem:[#allocation77] ss:$0 sm:$0xff] }
0x10da   : > { %v11970_v60 = vpack.c.bf16 %v3961_v59, %v3960_v16 }
0x10db   : > { %v3845_v47 = vsel %vm2806_vm3, %v3844_v46, 0.0 }
0x10dc   : > { %3846 = vadd.xlane.f32.xlu1 %v3845_v47  ;;  %11971 = vmatpush3.bf16.msra.mxu1 %v11970_v60 }
0x10dd   : > { %11972 = vmatprep.subr.bf16.mxu1 %v14320_v3 }
0x10e0   : > { %11974 = vmatpush3.bf16.msra.mxu1 %v11973_v11 }
0x10e1   : > { %11525 = vmatprep.subr.mxu1 %v14318_v0 }
0x1169   : > { %v3847_v48 = vpop.xlane.xlu1 %3846 }
0x116a   : > { %v3849_v49 = vmul.f32 0.03125, %v3847_v48 }
0x116c   : > { %v3850_v50 = vsub.f32 %v3844_v46, %v3849_v49 }
0x116e   : > { %v3851_v51 = vmul.f32 %v3850_v50, %v3850_v50 }
0x1170   : > { %v3852_v52 = vsel %vm2806_vm3, %v3851_v51, 0.0 }
0x1171   : > { %3853 = vadd.xlane.f32.xlu1 %v3852_v52 }
0x11fe   : > { %v3854_v61 = vpop.xlane.xlu1 %3853 }
0x11ff   : > { %v3855_v62 = vmul.f32 0.03125, %v3854_v61 }
0x1201   : > { %v3856_v63 = vadd.f32 1e-05, %v3855_v62 }
0x1203   : > { %12574 = vrsqrt.f32 %v3856_v63 }
0x120d   : > { %v12575_v1 = vpop.eup %12574 }
0x120e   : > { %v3858_v4 = vmul.f32 %v12575_v1, %v3850_v50 }
0x1210   : > { %v3866_v6 = vmul.f32 %v11045_v2, %v3858_v4 }
0x1212   : > { %v3874_v7 = vadd.f32 %v11046_v5, %v3866_v6 }
0x1214   : > { %11501 = vmatmul.mubr.msk.f32.vlgmr.msra.gmra.mrb[14].mxu0 %vm2806_vm3, %v3874_v7 }
0x1215   : > { %11522 = vmatprep.mubr.msk.f32.mxu0 %vm14319_vm0, %v14318_v0  ;;  %11977 = vmatpush3.bf16.msra.mxu0 %v11976_v33 }
0x1216   : > { %11978 = vmatprep.subr.bf16.mxu0 %v14320_v3 }
0x1219   : > { %11980 = vmatpush3.bf16.msra.mxu0 %v11979_v36 }
0x121a   : > { %11535 = vmatprep.subr.mxu0 %v14318_v0 }
0x12e7   : > { %v3955_v13 = vpop.f32.mrb[14].mxu0 }
0x12e8   : > { %v3956_v14 = vadd.f32 %v11047_v12, %v3955_v13  ;;  %v11502_v15 = vpop.f32.mrb[15].mxu0 }
0x12ea   : > { %v3959_v17 = vmax.f32 %v3956_v14, 0.0 }
0x12ec   : > { %11512 = vmatmul.mubr.msk.f32.vlgmr.msra.gmra.mrb[16].mxu1 %vm2806_vm3, %v3959_v17 }
0x12ed   : > { %11527 = vmatprep.mubr.msk.f32.mxu1 %vm14319_vm0, %v14318_v0 }
0x13bf   : > { %v4040_v19 = vpop.f32.mrb[16].mxu1 }
0x13c0   : > { %v4041_v21 = vadd.f32 %v11049_v18, %v4040_v19  ;;  %v11513_v22 = vpop.f32.mrb[17].mxu1 }
0x13c2   : > { %v4044_v24 = vadd.f32 %v4041_v21, %v3874_v7 }
0x13c4   : > { %v4045_v25 = vsel %vm2806_vm3, %v4044_v24, 0.0 }
0x13c5   : > { %4046 = vadd.xlane.f32.xlu1 %v4045_v25 }
0x1452   : > { %v4047_v26 = vpop.xlane.xlu1 %4046 }
0x1453   : > { %v4048_v27 = vmul.f32 0.03125, %v4047_v26 }
0x1455   : > { %v4049_v28 = vsub.f32 %v4044_v24, %v4048_v27 }
0x1457   : > { %v4050_v29 = vmul.f32 %v4049_v28, %v4049_v28 }
0x1459   : > { %v4051_v30 = vsel %vm2806_vm3, %v4050_v29, 0.0 }
0x145a   : > { %4052 = vadd.xlane.f32.xlu1 %v4051_v30 }
0x14e7   : > { %v4053_v20 = vpop.xlane.xlu1 %4052 }
0x14e8   : > { %v4054_v37 = vmul.f32 0.03125, %v4053_v20 }
0x14ea   : > { %v4055_v38 = vadd.f32 1e-05, %v4054_v37 }
0x14ec   : > { %12576 = vrsqrt.f32 %v4055_v38 }
0x14f6   : > { %v12577_v39 = vpop.eup %12576 }
0x14f7   : > { %v4057_v41 = vmul.f32 %v12577_v39, %v4049_v28 }
0x14f9   : > { %v4065_v43 = vmul.f32 %v11051_v40, %v4057_v41 }
0x14fb   : > { %v15540_v44 = vadd.f32 %v11052_v42, %v4065_v43 }
0x14fd   : > { %11523 = vmatmul.mubr.msk.f32.vlgmr.msra.gmra.mrb[16].mxu0 %vm2806_vm3, %v15540_v44 }
0x14fe   : > { %11537 = vmatprep.mubr.msk.f32.mxu0 %vm14319_vm0, %v14318_v0 }
0x15d0   : > { %v4158_v46 = vpop.f32.mrb[16].mxu0 }
0x15d1   : > { %v15546_v47 = vadd.f32 %v11053_v45, %v4158_v46  ;;  %v11524_v48 = vpop.f32.mrb[17].mxu0 }
0x15d3   : > { %4330 = vrot.lane.b32.xlu0 %v15546_v47, %s16284_s3  ;;  %4164 = vrot.lane.b32.xlu1 %v15546_v47, %s16286_s6  ;;  %v15553_v49 = vmul.f32 0.35355338, %v15546_v47 }
0x15d7   : > { %4328 = vrot.lane.b32.xlu0 %v15553_v49, %s16276_s4  ;;  %s16420_s4 = sld [smem:[#allocation166_spill]] }
0x15dd   : > { %v4080_v6 = vld [vmem:[%s16420_s4 + $0x8] sm:$0xff]  ;;  %v4079_v17 = vld [vmem:[%s16420_s4] sm:$0xff]  ;;  %v4081_v45 = vld [vmem:[%s16420_s4 + $0x10] sm:$0xff] }
0x1645   : > { %v4331_v50 = vpop.permute.xlu0 %4330  ;;  %v4165_v51 = vpop.permute.xlu1 %4164 }
0x1646   : > { %11526 = vmatpush3.xpose.msk.msra.mxu1 %vm2884_vm4, %v4165_v51  ;;  %11536 = vmatpush3.xpose.msk.msra.mxu0 %vm2884_vm4, %v4331_v50 }
0x1647   : > { %11530 = vmatprep.subr.mxu1 %v14318_v0  ;;  %11545 = vmatprep.subr.mxu0 %v14318_v0 }
0x1649   : > { %v4329_v52 = vpop.permute.xlu0 %4328  ;;  %11528 = vmatmul.mubr.msk.f32.vlgmr.msra.gmra.mrb[18].mxu1 %vm2884_vm4, %v15553_v49 }
0x164a   : > { %11538 = vmatmul.mubr.msk.f32.vlgmr.msra.gmra.mrb[18].mxu0 %vm2884_vm4, %v4329_v52  ;;  %11532 = vmatprep.mubr.msk.f32.mxu1 %vm14319_vm0, %v14318_v0 }
0x164b   : > { %11547 = vmatprep.mubr.msk.f32.mxu0 %vm14319_vm0, %v14318_v0  ;;  %11546 = vmatpush3.msra.mxu0 %v4080_v6 }
0x164c   : > { %11555 = vmatprep.subr.mxu0 %v14318_v0 }
0x171c   : > { %v4237_v53 = vpop.f32.mrb[18].mxu1 }
0x171d   : > { %v11529_v54 = vpop.f32.mrb[19].mxu1  ;;  %v4402_v55 = vpop.f32.mrb[18].mxu0  ;;  %v4241_v56 = vsel %vm2884_vm4, %v4237_v53, -inf }
0x171e   : > { %4242 = vmax.xlane.f32.xlu0 %v4241_v56  ;;  %v11539_v57 = vpop.f32.mrb[19].mxu0  ;;  %v4406_v58 = vsel %vm2884_vm4, %v4402_v55, -inf }
0x171f   : > { %4407 = vmax.xlane.f32.xlu1 %v4406_v58  ;;  %v4082_v57 = vld [vmem:[%s16420_s4 + $0x18] sm:$0xff]  ;;  %s16434_s4 = smov 88  }
0x1730   : > { %4417 = vrot.lane.b32.xlu1 %v15546_v47, %s16290_s11 }
0x1734   : > { %4639 = vrot.lane.b32.xlu1 %v15553_v49, %s16278_s10  ;;  %s16421_s10 = smov 80  }
0x17ab   : > { %v4243_v16 = vpop.xlane.xlu0 %4242 }
0x17ac   : > { %v4244_v59 = vsub.f32 %v4237_v53, %v4243_v16  ;;  %v4408_v60 = vpop.xlane.xlu1 %4407 }
0x17ad   : > { %v4409_v61 = vsub.f32 %v4402_v55, %v4408_v60 }
0x17ae   : > { %v4245_v62 = vmul.f32 1.442695, %v4244_v59 }
0x17af   : > { %v4410_v63 = vmul.f32 1.442695, %v4409_v61 }
0x17b0   : > { %12578 = vpow2.f32 %v4245_v62  ;;  %v4418_v13 = vpop.permute.xlu1 %4417 }
0x17b1   : > { %12580 = vpow2.f32 %v4410_v63 }
0x17b4   : > { %v4640_v25 = vpop.permute.xlu1 %4639 }
0x17ba   : > { %v12579_v1 = vpop.eup %12578 }
0x17bb   : > { %v4247_v2 = vsel %vm2884_vm4, %v12579_v1, 0.0  ;;  %v12581_v4 = vpop.eup %12580 }
0x17bc   : > { %4248 = vadd.xlane.f32.xlu0 %v4247_v2  ;;  %v4412_v5 = vsel %vm2884_vm4, %v12581_v4, 0.0 }
0x17c0   : > { %4413 = vadd.xlane.f32.xlu0 %v4412_v5 }
0x17d6   : > { %4252 = vrot.lane.b32.xlu0 %v15546_v47, %s16280_s26  ;;  %s16422_s26 = smov 72  }
0x17da   : > { %4641 = vrot.lane.b32.xlu0 %v15546_v47, %s16421_s10 }
0x1849   : > { %v4249_v7 = vpop.xlane.xlu0 %4248 }
0x184a   : > { %12582 = vrcp.f32 %v4249_v7 }
0x184d   : > { %v4414_v8 = vpop.xlane.xlu0 %4413 }
0x184e   : > { %12584 = vrcp.f32 %v4414_v8 }
0x1851   : > { %v4253_v9 = vpop.permute.xlu0 %4252 }
0x1852   : > { %11531 = vmatpush3.msra.mxu1 %v4253_v9 }
0x1853   : > { %11540 = vmatprep.subr.mxu1 %v14318_v0 }
0x1854   : > { %v12583_v11 = vpop.eup %12582 }
0x1855   : > { %v4251_v12 = vmul.f32 %v12583_v11, %v12579_v1  ;;  %v4642_v22 = vpop.permute.xlu0 %4641 }
0x1857   : > { %11533 = vmatmul.mubr.msk.f32.vlgmr.msra.gmra.mrb[20].mxu1 %vm2884_vm4, %v4251_v12 }
0x1858   : > { %v12585_v14 = vpop.eup %12584  ;;  %11541 = vmatpush3.msra.mxu1 %v4418_v13  ;;  %11542 = vmatprep.mubr.msk.f32.mxu1 %vm14319_vm0, %v14318_v0 }
0x1859   : > { %v4416_v15 = vmul.f32 %v12585_v14, %v12581_v4  ;;  %11550 = vmatprep.subr.mxu1 %v14318_v0  ;;  %v11071_v4 = vld [vmem:[#allocation76] ss:$0 sm:$0xff] }
0x185b   : > { %11543 = vmatmul.mubr.msk.f32.vlgmr.msra.gmra.mrb[22].mxu1 %vm2884_vm4, %v4416_v15 }
0x185c   : > { %11552 = vmatprep.mubr.msk.f32.mxu1 %vm14319_vm0, %v14318_v0  ;;  %11551 = vmatpush3.msra.mxu1 %v4079_v17  ;;  %v5155_v17 = vld [vmem:[#allocation80] sm:$0xff] }
0x185d   : > { %11560 = vmatprep.subr.mxu1 %v14318_v0 }
0x192a   : > { %v4324_v18 = vpop.f32.mrb[20].mxu1 }
0x192b   : > { %v11534_v19 = vpop.f32.mrb[21].mxu1  ;;  %11553 = vmatmul.mubr.msk.f32.vlgmr.msra.gmra.mrb[24].mxu1 %vm2884_vm4, %v4324_v18  ;;  %v5156_v18 = vld [vmem:[#allocation80 + $0x8] sm:$0xff] }
0x192c   : > { %11562 = vmatprep.mubr.msk.f32.mxu1 %vm14319_vm0, %v14318_v0  ;;  %v11982_v19 = vpack.c.bf16 %v5156_v18, %v5155_v17 }
0x192e   : > { %v4489_v21 = vpop.f32.mrb[22].mxu1 }
0x192f   : > { %v11544_v24 = vpop.f32.mrb[23].mxu1  ;;  %11548 = vmatmul.mubr.msk.f32.vlgmr.msra.gmra.mrb[20].mxu0 %vm2884_vm4, %v4489_v21  ;;  %v5158_v21 = vld [vmem:[#allocation80 + $0x18] sm:$0xff] }
0x1930   : > { %11556 = vmatpush3.xpose.msk.msra.mxu0 %vm2884_vm4, %v4642_v22  ;;  %11557 = vmatprep.mubr.msk.f32.mxu0 %vm14319_vm0, %v14318_v0  ;;  %v5240_v24 = vld [vmem:[%s14661_s27] sm:$0xff] }
0x1931   : > { %11565 = vmatprep.subr.mxu0 %v14318_v0 }
0x1933   : > { %11558 = vmatmul.mubr.msk.f32.vlgmr.msra.gmra.mrb[22].mxu0 %vm2884_vm4, %v4640_v25  ;;  %v5241_v25 = vld [vmem:[%s14661_s27 + $0x8] sm:$0xff] }
0x1934   : > { %11567 = vmatprep.mubr.msk.f32.mxu0 %vm14319_vm0, %v14318_v0  ;;  %11566 = vmatpush3.msra.mxu0 %v4081_v45  ;;  %v5243_v45 = vld [vmem:[%s14661_s27 + $0x18] sm:$0xff] }
0x1935   : > { %11575 = vmatprep.subr.mxu0 %v14318_v0 }
0x19fe   : > { %v4635_v26 = vpop.f32.mrb[24].mxu1 }
0x19ff   : > { %v11554_v27 = vpop.f32.mrb[25].mxu1 }
0x1a02   : > { %v4562_v28 = vpop.f32.mrb[20].mxu0 }
0x1a03   : > { %v4636_v29 = vadd.f32 %v4635_v26, %v4562_v28  ;;  %v11549_v30 = vpop.f32.mrb[21].mxu0  ;;  %v11988_v26 = vpack.c.bf16 %v5241_v25, %v5240_v24 }
0x1a06   : > { %v4713_v31 = vpop.f32.mrb[22].mxu0 }
0x1a07   : > { %v11559_v32 = vpop.f32.mrb[23].mxu0  ;;  %v4717_v33 = vsel %vm2884_vm4, %v4713_v31, -inf }
0x1a08   : > { %4718 = vmax.xlane.f32.xlu0 %v4717_v33  ;;  %v5361_v33 = vld [vmem:[#allocation26] sm:$0xff] }
0x1a1e   : > { %4728 = vrot.lane.b32.xlu0 %v15546_v47, %s16288_s2  ;;  %s16427_s2 = smov 112  }
0x1a22   : > { %4878 = vrot.lane.b32.xlu0 %v15553_v49, %s16291_s16 }
0x1a95   : > { %v4719_v34 = vpop.xlane.xlu0 %4718 }
0x1a96   : > { %v4720_v35 = vsub.f32 %v4713_v31, %v4719_v34  ;;  %v5362_v34 = vld [vmem:[#allocation26 + $0x8] sm:$0xff] }
0x1a98   : > { %v4721_v36 = vmul.f32 1.442695, %v4720_v35  ;;  %v11073_v35 = vld [vmem:[#allocation73] ss:$0 sm:$0xff] }
0x1a99   : > { %v4729_v20 = vpop.permute.xlu0 %4728 }
0x1a9a   : > { %12586 = vpow2.f32 %v4721_v36  ;;  %11561 = vmatpush3.msra.mxu1 %v4729_v20  ;;  %v11994_v20 = vpack.c.bf16 %v5362_v34, %v5361_v33 }
0x1a9b   : > { %11570 = vmatprep.subr.mxu1 %v14318_v0 }
0x1a9d   : > { %v4879_v43 = vpop.permute.xlu0 %4878 }
0x1aa4   : > { %v12587_v37 = vpop.eup %12586 }
0x1aa5   : > { %v4723_v38 = vsel %vm2884_vm4, %v12587_v37, 0.0 }
0x1aa6   : > { %4724 = vadd.xlane.f32.xlu1 %v4723_v38 }
0x1ab7   : > { %4880 = vrot.lane.b32.xlu1 %v15546_v47, %s16422_s26 }
0x1b33   : > { %v4725_v39 = vpop.xlane.xlu1 %4724 }
0x1b34   : > { %12588 = vrcp.f32 %v4725_v39  ;;  %v5363_v39 = vld [vmem:[#allocation26 + $0x10] sm:$0xff] }
0x1b37   : > { %v4881_v42 = vpop.permute.xlu1 %4880 }
0x1b3e   : > { %v12589_v40 = vpop.eup %12588 }
0x1b3f   : > { %v4727_v41 = vmul.f32 %v12589_v40, %v12587_v37  ;;  %v2785_v37 = vadd.f32 %v15414_v10, %v15440_v23  ;;  %v5364_v40 = vld [vmem:[#allocation26 + $0x18] sm:$0xff] }
0x1b40   : > { %v5242_v23 = vld [vmem:[%s14661_s27 + $0x10] sm:$0xff] }
0x1b41   : > { %11563 = vmatmul.mubr.msk.f32.vlgmr.msra.gmra.mrb[26].mxu1 %vm2884_vm4, %v4727_v41  ;;  %v11997_v41 = vpack.c.bf16 %v5364_v40, %v5363_v39 }
0x1b42   : > { %11571 = vmatpush3.xpose.msk.msra.mxu1 %vm2884_vm4, %v4881_v42  ;;  %11572 = vmatprep.mubr.msk.f32.mxu1 %vm14319_vm0, %v14318_v0  ;;  %v2788_v42 = vmul.f32 5.656854, %v2785_v37 }
0x1b43   : > { %11580 = vmatprep.subr.mxu1 %v14318_v0 }
0x1b45   : > { %11573 = vmatmul.mubr.msk.f32.vlgmr.msra.gmra.mrb[28].mxu1 %vm2884_vm4, %v4879_v43  ;;  %v2789_v43 = vld [vmem:[#allocation5] sm:$0xff] }
0x1b46   : > { %11582 = vmatprep.mubr.msk.f32.mxu1 %vm14319_vm0, %v14318_v0  ;;  %11581 = vmatpush3.msra.mxu1 %v4082_v57  ;;  %v15656_v10 = vadd.f32 %v2789_v43, %v2788_v42 }
0x1b47   : > { %11987 = vmatprep.subr.bf16.mxu1 %v14320_v3 }
0x1c14   : > { %v4800_v46 = vpop.f32.mrb[26].mxu1 }
0x1c15   : > { %v11564_v48 = vpop.f32.mrb[27].mxu1  ;;  %11568 = vmatmul.mubr.msk.f32.vlgmr.msra.gmra.mrb[24].mxu0 %vm2884_vm4, %v4800_v46  ;;  %v11991_v46 = vpack.c.bf16 %v5243_v45, %v5242_v23 }
0x1c16   : > { %11577 = vmatprep.mubr.msk.f32.mxu0 %vm14319_vm0, %v14318_v0  ;;  %v11074_v48 = vld [vmem:[#allocation70] ss:$0 sm:$0xff] }
0x1c18   : > { %v4952_v49 = vpop.f32.mrb[28].mxu1 }
0x1c19   : > { %v11574_v50 = vpop.f32.mrb[29].mxu1  ;;  %v4956_v51 = vsel %vm2884_vm4, %v4952_v49, -inf }
0x1c1a   : > { %4957 = vmax.xlane.f32.xlu1 %v4956_v51 }
0x1ca7   : > { %v4958_v52 = vpop.xlane.xlu1 %4957 }
0x1ca8   : > { %v4959_v53 = vsub.f32 %v4952_v49, %v4958_v52 }
0x1caa   : > { %v4960_v54 = vmul.f32 1.442695, %v4959_v53  ;;  %v11081_v53 = vld [vmem:[#allocation25] ss:$0 sm:$0xff] }
0x1cac   : > { %12590 = vpow2.f32 %v4960_v54 }
0x1cb6   : > { %v12591_v55 = vpop.eup %12590 }
0x1cb7   : > { %v4962_v56 = vsel %vm2884_vm4, %v12591_v55, 0.0 }
0x1cb8   : > { %4963 = vadd.xlane.f32.xlu0 %v4962_v56 }
0x1cce   : > { %4967 = vrot.lane.b32.xlu0 %v15546_v47, %s16282_s12  ;;  %s16423_s12 = sld [smem:[#allocation161_spill]] }
0x1cd4   : > { %v11072_v31 = vld [vmem:[%s16423_s12] ss:$0 sm:$0xff]  ;;  %s16424_s12 = smov 120  }
0x1ce8   : > { %v4873_v58 = vpop.f32.mrb[24].mxu0 }
0x1ce9   : > { %v4877_v16 = vadd.f32 %v4873_v58, %v4636_v29  ;;  %v11569_v59 = vpop.f32.mrb[25].mxu0 }
0x1d45   : > { %v4964_v60 = vpop.xlane.xlu0 %4963 }
0x1d46   : > { %12592 = vrcp.f32 %v4964_v60 }
0x1d49   : > { %v4968_v61 = vpop.permute.xlu0 %4967 }
0x1d4a   : > { %11576 = vmatpush3.msra.mxu0 %v4968_v61 }
0x1d4b   : > { %11981 = vmatprep.subr.bf16.mxu0 %v14320_v3 }
0x1d50   : > { %v12593_v62 = vpop.eup %12592 }
0x1d51   : > { %v4966_v63 = vmul.f32 %v12593_v62, %v12591_v55  ;;  %v5354_v62 = vlaneseq }
0x1d53   : > { %11578 = vmatmul.mubr.msk.f32.vlgmr.msra.gmra.mrb[26].mxu0 %vm2884_vm4, %v4966_v63  ;;  %v5355_v63 = vshrl.u32 %v5354_v62, 7 }
0x1d54   : > { %11593 = vmatprep.mubr.msk.f32.mxu0 %vm14319_vm0, %v14318_v0  ;;  %11983 = vmatpush3.bf16.msra.mxu0 %v11982_v19 }
0x1d55   : > { %11984 = vmatprep.subr.bf16.mxu0 %v14320_v3 }
0x1e26   : > { %v5039_v47 = vpop.f32.mrb[26].mxu0 }
0x1e27   : > { %v11579_v1 = vpop.f32.mrb[27].mxu0  ;;  %11583 = vmatmul.mubr.msk.f32.vlgmr.msra.gmra.mrb[30].mxu1 %vm2884_vm4, %v5039_v47  ;;  %v5357_v47 = vand.u32 127, %v5354_v62 }
0x1e28   : > { %11604 = vmatprep.mubr.msk.f32.mxu1 %vm14319_vm0, %v14318_v0  ;;  %11989 = vmatpush3.bf16.msra.mxu1 %v11988_v26 }
0x1e29   : > { %11990 = vmatprep.subr.bf16.mxu1 %v14320_v3  ;;  %vm5358_vm5 = vcmp.ge.s32.totalorder %v5355_v63, %v5357_v47 }
0x1e2a   : > { %v15694_v1 = vsel %vm5358_vm5, 1.0, %v14318_v0 }
0x1e2c   : > { %11992 = vmatpush3.bf16.msra.mxu1 %v11991_v46 }
0x1e2d   : > { %11618 = vmatprep.subr.mxu1 %v14318_v0 }
0x1efa   : > { %v5112_v2 = vpop.f32.mrb[30].mxu1 }
0x1efb   : > { %v5116_v5 = vadd.f32 %v5112_v2, %v4877_v16  ;;  %v11584_v6 = vpop.f32.mrb[31].mxu1 }
0x1efd   : > { %v5124_v7 = vadd.f32 %v11071_v4, %v5116_v5 }
0x1eff   : > { %v5125_v8 = vadd.f32 %v5124_v7, %v15540_v44  ;;  %v5157_v44 = vld [vmem:[#allocation80 + $0x10] sm:$0xff] }
0x1f00   : > { %v11985_v22 = vpack.c.bf16 %v5158_v21, %v5157_v44 }
0x1f01   : > { %v5126_v9 = vsel %vm2806_vm3, %v5125_v8, 0.0 }
0x1f02   : > { %5127 = vadd.xlane.f32.xlu1 %v5126_v9  ;;  %11986 = vmatpush3.bf16.msra.mxu0 %v11985_v22 }
0x1f03   : > { %11993 = vmatprep.subr.bf16.mxu0 %v14320_v3 }
0x1f8f   : > { %v5128_v11 = vpop.xlane.xlu1 %5127 }
0x1f90   : > { %v5129_v12 = vmul.f32 0.03125, %v5128_v11 }
0x1f92   : > { %v5130_v13 = vsub.f32 %v5125_v8, %v5129_v12 }
0x1f94   : > { %v5131_v14 = vmul.f32 %v5130_v13, %v5130_v13 }
0x1f96   : > { %v5132_v15 = vsel %vm2806_vm3, %v5131_v14, 0.0 }
0x1f97   : > { %5133 = vadd.xlane.f32.xlu1 %v5132_v15 }
0x2024   : > { %v5134_v27 = vpop.xlane.xlu1 %5133 }
0x2025   : > { %v5135_v28 = vmul.f32 0.03125, %v5134_v27 }
0x2027   : > { %v5136_v29 = vadd.f32 1e-05, %v5135_v28 }
0x2029   : > { %12594 = vrsqrt.f32 %v5136_v29 }
0x2033   : > { %v12595_v30 = vpop.eup %12594 }
0x2034   : > { %v5138_v32 = vmul.f32 %v12595_v30, %v5130_v13 }
0x2036   : > { %v5146_v36 = vmul.f32 %v11072_v31, %v5138_v32 }
0x2038   : > { %v15649_v38 = vadd.f32 %v11073_v35, %v5146_v36 }
0x203a   : > { %11594 = vmatmul.mubr.msk.f32.vlgmr.msra.gmra.mrb[28].mxu0 %vm2806_vm3, %v15649_v38 }
0x203b   : > { %11995 = vmatpush3.bf16.msra.mxu0 %v11994_v20  ;;  %11615 = vmatprep.mubr.msk.f32.mxu0 %vm14319_vm0, %v14318_v0 }
0x203c   : > { %11996 = vmatprep.subr.bf16.mxu0 %v14320_v3 }
0x203f   : > { %11998 = vmatpush3.bf16.msra.mxu0 %v11997_v41 }
0x2040   : > { %11628 = vmatprep.subr.mxu0 %v14318_v0 }
0x2042   : > { %11616 = vmatmul.mubr.msk.f32.vlgmr.msra.gmra.mrb[30].mxu0 %vm2806_vm3, %v15656_v10 }
0x2043   : > { %11630 = vmatprep.mubr.msk.f32.mxu0 %vm14319_vm0, %v14318_v0 }
0x210d   : > { %v5235_v49 = vpop.f32.mrb[28].mxu0 }
0x210e   : > { %v5236_v50 = vadd.f32 %v11074_v48, %v5235_v49  ;;  %v11595_v51 = vpop.f32.mrb[29].mxu0 }
0x2110   : > { %v5239_v52 = vmax.f32 %v5236_v50, 0.0 }
0x2112   : > { %11605 = vmatmul.mubr.msk.f32.vlgmr.msra.gmra.mrb[32].mxu1 %vm2806_vm3, %v5239_v52 }
0x2113   : > { %11620 = vmatprep.mubr.msk.f32.mxu1 %vm14319_vm0, %v14318_v0 }
0x2115   : > { %v5445_v54 = vpop.f32.mrb[30].mxu0 }
0x2116   : > { %v15669_v55 = vadd.f32 %v11081_v53, %v5445_v54  ;;  %v11617_v56 = vpop.f32.mrb[31].mxu0 }
0x2118   : > { %5617 = vrot.lane.b32.xlu0 %v15669_v55, %s16284_s3  ;;  %5451 = vrot.lane.b32.xlu1 %v15669_v55, %s16286_s6  ;;  %v15676_v57 = vmul.f32 0.35355338, %v15669_v55  ;;  %s16425_s3 = sld [smem:[#allocation127_spill]]  ;;  %s16426_s6 = smov 64  }
0x211c   : > { %5615 = vrot.lane.b32.xlu0 %v15676_v57, %s16424_s12 }
0x211e   : > { %v5367_v24 = vld [vmem:[%s16425_s3 + $0x8] sm:$0xff]  ;;  %v5366_v33 = vld [vmem:[%s16425_s3] sm:$0xff]  ;;  %v5368_v62 = vld [vmem:[%s16425_s3 + $0x10] sm:$0xff] }
0x218a   : > { %v5618_v58 = vpop.permute.xlu0 %5617  ;;  %v5452_v16 = vpop.permute.xlu1 %5451 }
0x218b   : > { %11619 = vmatpush3.xpose.msk.msra.mxu1 %vm2884_vm4, %v5452_v16  ;;  %11629 = vmatpush3.xpose.msk.msra.mxu0 %vm2884_vm4, %v5618_v58 }
0x218c   : > { %11623 = vmatprep.subr.mxu1 %v14318_v0  ;;  %11638 = vmatprep.subr.mxu0 %v14318_v0 }
0x218e   : > { %v5616_v59 = vpop.permute.xlu0 %5615  ;;  %11621 = vmatmul.mubr.msk.f32.vlgmr.msra.gmra.mrb[34].mxu1 %vm2884_vm4, %v15676_v57 }
0x218f   : > { %11631 = vmatmul.mubr.msk.f32.vlgmr.msra.gmra.mrb[32].mxu0 %vm2884_vm4, %v5616_v59  ;;  %11625 = vmatprep.mubr.msk.f32.mxu1 %vm14319_vm0, %v14318_v0 }
0x2190   : > { %11640 = vmatprep.mubr.msk.f32.mxu0 %vm14319_vm0, %v14318_v0  ;;  %11639 = vmatpush3.msra.mxu0 %v5367_v24 }
0x2191   : > { %11648 = vmatprep.subr.mxu0 %v14318_v0 }
0x21e5   : > { %v15691_v60 = vpop.f32.mrb[32].mxu1 }
0x21e6   : > { %v11606_v61 = vpop.f32.mrb[33].mxu1 }
0x2261   : > { %v5524_v2 = vpop.f32.mrb[34].mxu1 }
0x2262   : > { %v5525_v4 = vadd.f32 %v15694_v1, %v5524_v2  ;;  %v11622_v5 = vpop.f32.mrb[35].mxu1  ;;  %v5689_v6 = vpop.f32.mrb[32].mxu0 }
0x2263   : > { %v5690_v7 = vadd.f32 %v15694_v1, %v5689_v6  ;;  %v11632_v8 = vpop.f32.mrb[33].mxu0 }
0x2264   : > { %v5528_v9 = vsel %vm2884_vm4, %v5525_v4, -inf }
0x2265   : > { %5529 = vmax.xlane.f32.xlu1 %v5528_v9  ;;  %v5693_v11 = vsel %vm2884_vm4, %v5690_v7, -inf }
0x2266   : > { %5694 = vmax.xlane.f32.xlu0 %v5693_v11 }
0x22f2   : > { %v5530_v12 = vpop.xlane.xlu1 %5529 }
0x22f3   : > { %v5531_v13 = vsub.f32 %v5525_v4, %v5530_v12  ;;  %v5695_v14 = vpop.xlane.xlu0 %5694  ;;  %v11076_v12 = vld [vmem:[#allocation71] ss:$0 sm:$0xff] }
0x22f4   : > { %v5696_v15 = vsub.f32 %v5690_v7, %v5695_v14 }
0x22f5   : > { %v5532_v17 = vmul.f32 1.442695, %v5531_v13  ;;  %v5321_v13 = vadd.f32 %v11076_v12, %v15691_v60 }
0x22f6   : > { %v5697_v18 = vmul.f32 1.442695, %v5696_v15 }
0x22f7   : > { %12596 = vpow2.f32 %v5532_v17  ;;  %v5324_v17 = vadd.f32 %v5321_v13, %v15649_v38  ;;  %v11100_v13 = vld [vmem:[#allocation16] ss:$0 sm:$0xff] }
0x22f8   : > { %12598 = vpow2.f32 %v5697_v18  ;;  %v5369_v18 = vld [vmem:[%s16425_s3 + $0x18] sm:$0xff]  ;;  %s16431_s3 = smov 96  }
0x2301   : > { %v12597_v19 = vpop.eup %12596 }
0x2302   : > { %v12599_v44 = vpop.eup %12598  ;;  %v5534_v21 = vsel %vm2884_vm4, %v12597_v19, 0.0 }
0x2303   : > { %5535 = vadd.xlane.f32.xlu0 %v5534_v21  ;;  %v5699_v22 = vsel %vm2884_vm4, %v12599_v44, 0.0 }
0x2304   : > { %5700 = vadd.xlane.f32.xlu1 %v5699_v22 }
0x2315   : > { %5704 = vrot.lane.b32.xlu1 %v15669_v55, %s16290_s11  ;;  %s16428_s11 = smov 48  }
0x2319   : > { %5539 = vrot.lane.b32.xlu0 %v15669_v55, %s16426_s6  ;;  %5928 = vrot.lane.b32.xlu1 %v15669_v55, %s16421_s10 }
0x231d   : > { %5926 = vrot.lane.b32.xlu0 %v15676_v57, %s16427_s2 }
0x2390   : > { %v5536_v25 = vpop.xlane.xlu0 %5535 }
0x2391   : > { %12600 = vrcp.f32 %v5536_v25  ;;  %v5701_v26 = vpop.xlane.xlu1 %5700 }
0x2392   : > { %12602 = vrcp.f32 %v5701_v26 }
0x2394   : > { %v5540_v27 = vpop.permute.xlu0 %5539 }
0x2395   : > { %11624 = vmatpush3.msra.mxu1 %v5540_v27  ;;  %v5705_v31 = vpop.permute.xlu1 %5704 }
0x2396   : > { %11633 = vmatprep.subr.mxu1 %v14318_v0 }
0x2398   : > { %v5927_v39 = vpop.permute.xlu0 %5926 }
0x2399   : > { %v5929_v20 = vpop.permute.xlu1 %5928 }
0x239b   : > { %v12601_v28 = vpop.eup %12600 }
0x239c   : > { %v5538_v29 = vmul.f32 %v12601_v28, %v12597_v19  ;;  %v12603_v30 = vpop.eup %12602 }
0x239d   : > { %v5703_v32 = vmul.f32 %v12603_v30, %v12599_v44 }
0x239e   : > { %11626 = vmatmul.mubr.msk.f32.vlgmr.msra.gmra.mrb[36].mxu1 %vm2884_vm4, %v5538_v29  ;;  %v11099_v29 = vld [vmem:[#allocation23] ss:$0 sm:$0xff] }
0x239f   : > { %11634 = vmatpush3.msra.mxu1 %v5705_v31  ;;  %11635 = vmatprep.mubr.msk.f32.mxu1 %vm14319_vm0, %v14318_v0 }
0x23a0   : > { %11643 = vmatprep.subr.mxu1 %v14318_v0 }
0x23a2   : > { %11636 = vmatmul.mubr.msk.f32.vlgmr.msra.gmra.mrb[38].mxu1 %vm2884_vm4, %v5703_v32 }
0x23a3   : > { %11645 = vmatprep.mubr.msk.f32.mxu1 %vm14319_vm0, %v14318_v0  ;;  %11644 = vmatpush3.msra.mxu1 %v5366_v33 }
0x23a4   : > { %11653 = vmatprep.subr.mxu1 %v14318_v0 }
0x2471   : > { %v5611_v34 = vpop.f32.mrb[36].mxu1 }
0x2472   : > { %v11627_v35 = vpop.f32.mrb[37].mxu1  ;;  %11646 = vmatmul.mubr.msk.f32.vlgmr.msra.gmra.mrb[40].mxu1 %vm2884_vm4, %v5611_v34 }
0x2473   : > { %11655 = vmatprep.mubr.msk.f32.mxu1 %vm14319_vm0, %v14318_v0 }
0x2475   : > { %v5776_v36 = vpop.f32.mrb[38].mxu1 }
0x2476   : > { %v11637_v37 = vpop.f32.mrb[39].mxu1  ;;  %11641 = vmatmul.mubr.msk.f32.vlgmr.msra.gmra.mrb[34].mxu0 %vm2884_vm4, %v5776_v36 }
0x2477   : > { %11649 = vmatpush3.xpose.msk.msra.mxu0 %vm2884_vm4, %v5929_v20  ;;  %11650 = vmatprep.mubr.msk.f32.mxu0 %vm14319_vm0, %v14318_v0  ;;  %v6442_v37 = vld [vmem:[%s16430_s1] sm:$0xff] }
0x2478   : > { %11658 = vmatprep.subr.mxu0 %v14318_v0 }
0x247a   : > { %11651 = vmatmul.mubr.msk.f32.vlgmr.msra.gmra.mrb[36].mxu0 %vm2884_vm4, %v5927_v39  ;;  %v6443_v39 = vld [vmem:[%s16430_s1 + $0x8] sm:$0xff] }
0x247b   : > { %11660 = vmatprep.mubr.msk.f32.mxu0 %vm14319_vm0, %v14318_v0  ;;  %11659 = vmatpush3.msra.mxu0 %v5368_v62 }
0x247c   : > { %11668 = vmatprep.subr.mxu0 %v14318_v0 }
0x2545   : > { %v5922_v40 = vpop.f32.mrb[40].mxu1 }
0x2546   : > { %v11647_v41 = vpop.f32.mrb[41].mxu1 }
0x2547   : > { %v12000_v41 = vpack.c.bf16 %v6443_v39, %v6442_v37 }
0x2549   : > { %v5849_v42 = vpop.f32.mrb[34].mxu0 }
0x254a   : > { %v15733_v43 = vadd.f32 %v5922_v40, %v5849_v42  ;;  %v11642_v23 = vpop.f32.mrb[35].mxu0  ;;  %v12538_v40 = vpack.i.bf16 %v6443_v39, %v6442_v37  ;;  %v6444_v42 = vld [vmem:[%s16430_s1 + $0x10] sm:$0xff] }
0x254d   : > { %v6000_v45 = vpop.f32.mrb[36].mxu0 }
0x254e   : > { %v6001_v46 = vadd.f32 %v15694_v1, %v6000_v45  ;;  %v11652_v48 = vpop.f32.mrb[37].mxu0 }
0x2550   : > { %v6004_v49 = vsel %vm2884_vm4, %v6001_v46, -inf }
0x2551   : > { %6005 = vmax.xlane.f32.xlu1 %v6004_v49 }
0x2562   : > { %6167 = vrot.lane.b32.xlu1 %v15669_v55, %s16422_s26 }
0x2566   : > { %6165 = vrot.lane.b32.xlu1 %v15676_v57, %s16291_s16  ;;  %s16429_s16 = smov 40  }
0x25de   : > { %v6006_v50 = vpop.xlane.xlu1 %6005 }
0x25df   : > { %v6007_v51 = vsub.f32 %v6001_v46, %v6006_v50 }
0x25e1   : > { %v6008_v52 = vmul.f32 1.442695, %v6007_v51  ;;  %v11102_v51 = vld [vmem:[#allocation13] ss:$0 sm:$0xff] }
0x25e2   : > { %v6168_v57 = vpop.permute.xlu1 %6167 }
0x25e3   : > { %12604 = vpow2.f32 %v6008_v52 }
0x25e6   : > { %v6166_v61 = vpop.permute.xlu1 %6165 }
0x25ed   : > { %v12605_v53 = vpop.eup %12604 }
0x25ee   : > { %v6010_v54 = vsel %vm2884_vm4, %v12605_v53, 0.0 }
0x25ef   : > { %6011 = vadd.xlane.f32.xlu0 %v6010_v54 }
0x2605   : > { %6015 = vrot.lane.b32.xlu0 %v15669_v55, %s16428_s11 }
0x267c   : > { %v6012_v56 = vpop.xlane.xlu0 %6011 }
0x267d   : > { %12606 = vrcp.f32 %v6012_v56 }
0x2680   : > { %v6016_v58 = vpop.permute.xlu0 %6015 }
0x2681   : > { %11654 = vmatpush3.msra.mxu1 %v6016_v58 }
0x2682   : > { %11663 = vmatprep.subr.mxu1 %v14318_v0 }
0x2687   : > { %v12607_v16 = vpop.eup %12606 }
0x2688   : > { %v6014_v59 = vmul.f32 %v12607_v16, %v12605_v53 }
0x268a   : > { %11656 = vmatmul.mubr.msk.f32.vlgmr.msra.gmra.mrb[42].mxu1 %vm2884_vm4, %v6014_v59 }
0x268b   : > { %11664 = vmatpush3.xpose.msk.msra.mxu1 %vm2884_vm4, %v6168_v57  ;;  %11665 = vmatprep.mubr.msk.f32.mxu1 %vm14319_vm0, %v14318_v0 }
0x268c   : > { %11673 = vmatprep.subr.mxu1 %v14318_v0 }
0x268e   : > { %11666 = vmatmul.mubr.msk.f32.vlgmr.msra.gmra.mrb[44].mxu1 %vm2884_vm4, %v6166_v61 }
0x268f   : > { %11675 = vmatprep.mubr.msk.f32.mxu1 %vm14319_vm0, %v14318_v0  ;;  %11674 = vmatpush3.msra.mxu1 %v5369_v18 }
0x2690   : > { %12005 = vmatprep.subr.bf16.mxu1 %v14320_v3 }
0x275d   : > { %v6087_v63 = vpop.f32.mrb[42].mxu1 }
0x275e   : > { %v11657_v47 = vpop.f32.mrb[43].mxu1  ;;  %11661 = vmatmul.mubr.msk.f32.vlgmr.msra.gmra.mrb[38].mxu0 %vm2884_vm4, %v6087_v63 }
0x275f   : > { %11670 = vmatprep.mubr.msk.f32.mxu0 %vm14319_vm0, %v14318_v0 }
0x2761   : > { %v6239_v2 = vpop.f32.mrb[44].mxu1 }
0x2762   : > { %v6240_v4 = vadd.f32 %v15694_v1, %v6239_v2  ;;  %v11667_v5 = vpop.f32.mrb[45].mxu1 }
0x2764   : > { %v6243_v6 = vsel %vm2884_vm4, %v6240_v4, -inf }
0x2765   : > { %6244 = vmax.xlane.f32.xlu0 %v6243_v6  ;;  %v11078_v6 = vld [vmem:[#allocation74] ss:$0 sm:$0xff] }
0x277b   : > { %6254 = vrot.lane.b32.xlu0 %v15669_v55, %s16429_s16  ;;  %v5325_v55 = vsel %vm2806_vm3, %v5324_v17, 0.0 }
0x27f2   : > { %v6245_v7 = vpop.xlane.xlu0 %6244 }
0x27f3   : > { %v6246_v8 = vsub.f32 %v6240_v4, %v6245_v7 }
0x27f5   : > { %v6247_v9 = vmul.f32 1.442695, %v6246_v8 }
0x27f6   : > { %v6255_v11 = vpop.permute.xlu0 %6254 }
0x27f7   : > { %12608 = vpow2.f32 %v6247_v9  ;;  %11669 = vmatpush3.msra.mxu0 %v6255_v11 }
0x27f8   : > { %11999 = vmatprep.subr.bf16.mxu0 %v14320_v3 }
0x2801   : > { %v12609_v14 = vpop.eup %12608 }
0x2802   : > { %v6249_v15 = vsel %vm2884_vm4, %v12609_v14, 0.0 }
0x2803   : > { %6250 = vadd.xlane.f32.xlu1 %v6249_v15  ;;  %v11101_v15 = vld [vmem:[#allocation14] ss:$0 sm:$0xff] }
0x2807   : > { %5326 = vadd.xlane.f32.xlu1 %v5325_v55 }
0x2831   : > { %v6160_v19 = vpop.f32.mrb[38].mxu0 }
0x2832   : > { %v6164_v44 = vadd.f32 %v6160_v19, %v15733_v43  ;;  %v11662_v21 = vpop.f32.mrb[39].mxu0  ;;  %v6445_v43 = vld [vmem:[%s16430_s1 + $0x18] sm:$0xff]  ;;  %s16432_s1 = sld [smem:[#allocation162_spill]] }
0x2833   : > { %v12543_v23 = vpack.i.bf16 %v6445_v43, %v6444_v42  ;;  %v12003_v45 = vpack.c.bf16 %v6445_v43, %v6444_v42 }
0x2835   : > { %12544 = vrot.lane.b32.xlu0 %v12543_v23, %s16431_s3 }
0x2838   : > { %v11079_v9 = vld [vmem:[%s16432_s1] ss:$0 sm:$0xff]  ;;  %s16433_s1 = sld [smem:[#allocation119_spill]] }
0x2839   : > { %6546 = vrot.lane.b32.xlu0 %v11102_v51, %s16431_s3 }
0x2890   : > { %v6251_v22 = vpop.xlane.xlu1 %6250 }
0x2891   : > { %12610 = vrcp.f32 %v6251_v22 }
0x2894   : > { %v5327_v26 = vpop.xlane.xlu1 %5326 }
0x2895   : > { %v5328_v27 = vmul.f32 0.03125, %v5327_v26 }
0x2897   : > { %v5329_v32 = vsub.f32 %v5324_v17, %v5328_v27 }
0x2899   : > { %v5330_v36 = vmul.f32 %v5329_v32, %v5329_v32 }
0x289b   : > { %v12611_v60 = vpop.eup %12610  ;;  %v5331_v20 = vsel %vm2806_vm3, %v5330_v36, 0.0 }
0x289c   : > { %v6253_v24 = vmul.f32 %v12611_v60, %v12609_v14 }
0x289e   : > { %11671 = vmatmul.mubr.msk.f32.vlgmr.msra.gmra.mrb[40].mxu0 %vm2884_vm4, %v6253_v24 }
0x289f   : > { %11686 = vmatprep.mubr.msk.f32.mxu0 %vm14319_vm0, %v14318_v0  ;;  %12001 = vmatpush3.bf16.msra.mxu0 %v12000_v41 }
0x28a0   : > { %12002 = vmatprep.subr.bf16.mxu0 %v14320_v3 }
0x28a3   : > { %12004 = vmatpush3.bf16.msra.mxu0 %v12003_v45 }
0x28a4   : > { %11700 = vmatprep.subr.mxu0 %v14318_v0 }
0x28a7   : > { %v12545_v16 = vpop.permute.xlu0 %12544 }
0x28a8   : > { %v12547_v62 = vunpack.i.h.bf16 %v12545_v16  ;;  %v12546_v2 = vunpack.i.l.bf16 %v12545_v16 }
0x28aa   : > { %v12009_v7 = vpack.c.bf16 %v12547_v62, %v12546_v2 }
0x28ab   : > { %v6547_v18 = vpop.permute.xlu0 %6546 }
0x2971   : > { %v6326_v38 = vpop.f32.mrb[40].mxu0 }
0x2972   : > { %v11672_v25 = vpop.f32.mrb[41].mxu0  ;;  %11676 = vmatmul.mubr.msk.f32.vlgmr.msra.gmra.mrb[46].mxu1 %vm2884_vm4, %v6326_v38 }
0x2973   : > { %11697 = vmatprep.mubr.msk.f32.mxu1 %vm14319_vm0, %v14318_v0 }
0x2a45   : > { %v6399_v28 = vpop.f32.mrb[46].mxu1 }
0x2a46   : > { %v6403_v30 = vadd.f32 %v6399_v28, %v6164_v44  ;;  %v11677_v31 = vpop.f32.mrb[47].mxu1 }
0x2a48   : > { %v6411_v33 = vadd.f32 %v11099_v29, %v6403_v30 }
0x2a4a   : > { %v6412_v34 = vadd.f32 %v6411_v33, %v15656_v10 }
0x2a4c   : > { %v6413_v35 = vsel %vm2806_vm3, %v6412_v34, 0.0 }
0x2a4d   : > { %6414 = vadd.xlane.f32.xlu1 %v6413_v35 }
0x2a51   : > { %5332 = vadd.xlane.f32.xlu1 %v5331_v20 }
0x2ada   : > { %v6415_v10 = vpop.xlane.xlu1 %6414 }
0x2adb   : > { %v6416_v46 = vmul.f32 0.03125, %v6415_v10 }
0x2add   : > { %v6417_v48 = vsub.f32 %v6412_v34, %v6416_v46  ;;  %v6448_v46 = vld [vmem:[%s16433_s1 + $0x8] sm:$0xff] }
0x2ade   : > { %v5333_v52 = vpop.xlane.xlu1 %5332 }
0x2adf   : > { %v6418_v49 = vmul.f32 %v6417_v48, %v6417_v48  ;;  %v5334_v53 = vmul.f32 0.03125, %v5333_v52  ;;  %v6447_v52 = vld [vmem:[%s16433_s1] sm:$0xff] }
0x2ae1   : > { %v6419_v50 = vsel %vm2806_vm3, %v6418_v49, 0.0  ;;  %v5335_v54 = vadd.f32 1e-05, %v5334_v53 }
0x2ae2   : > { %6420 = vadd.xlane.f32.xlu1 %v6419_v50 }
0x2ae3   : > { %12612 = vrsqrt.f32 %v5335_v54 }
0x2aed   : > { %v12613_v57 = vpop.eup %12612 }
0x2aee   : > { %v5337_v4 = vmul.f32 %v12613_v57, %v5329_v32 }
0x2af0   : > { %v5345_v8 = vmul.f32 %v11078_v6, %v5337_v4 }
0x2af2   : > { %v15791_v11 = vadd.f32 %v11079_v9, %v5345_v8 }
0x2af3   : > { %12539 = vrot.lane.b32.xlu1 %v12538_v40, %s16431_s3 }
0x2b6f   : > { %v6421_v56 = vpop.xlane.xlu1 %6420 }
0x2b70   : > { %v6422_v58 = vmul.f32 0.03125, %v6421_v56 }
0x2b72   : > { %v6423_v59 = vadd.f32 1e-05, %v6422_v58 }
0x2b73   : > { %v12540_v61 = vpop.permute.xlu1 %12539 }
0x2b74   : > { %12614 = vrsqrt.f32 %v6423_v59  ;;  %v12542_v63 = vunpack.i.h.bf16 %v12540_v61  ;;  %v12541_v47 = vunpack.i.l.bf16 %v12540_v61 }
0x2b76   : > { %v12006_v5 = vpack.c.bf16 %v12542_v63, %v12541_v47 }
0x2b78   : > { %12007 = vmatpush3.bf16.msra.mxu1 %v12006_v5 }
0x2b79   : > { %12008 = vmatprep.subr.bf16.mxu1 %v14320_v3 }
0x2b7c   : > { %12010 = vmatpush3.bf16.msra.mxu1 %v12009_v7 }
0x2b7d   : > { %11705 = vmatprep.subr.mxu1 %v14318_v0 }
0x2b7e   : > { %v12615_v12 = vpop.eup %12614 }
0x2b7f   : > { %v6425_v14 = vmul.f32 %v12615_v12, %v6417_v48  ;;  %11698 = vmatmul.mubr.msk.f32.vlgmr.msra.gmra.mrb[48].mxu1 %vm2806_vm3, %v15791_v11 }
0x2b80   : > { %11707 = vmatprep.mubr.msk.f32.mxu1 %vm14319_vm0, %v14318_v0 }
0x2b81   : > { %v6433_v17 = vmul.f32 %v11100_v13, %v6425_v14 }
0x2b83   : > { %v15798_v55 = vadd.f32 %v11101_v15, %v6433_v17 }
0x2b85   : > { %11687 = vmatmul.mubr.msk.f32.vlgmr.msra.gmra.mrb[42].mxu0 %vm2806_vm3, %v15798_v55 }
0x2b86   : > { %11702 = vmatprep.mubr.msk.f32.mxu0 %vm14319_vm0, %v14318_v0 }
0x2c52   : > { %v6618_v19 = vpop.f32.mrb[48].mxu1 }
0x2c53   : > { %v15804_v44 = vadd.f32 %v6618_v19, %v6547_v18  ;;  %v11699_v21 = vpop.f32.mrb[49].mxu1 }
0x2c54   : > { %v6449_v21 = vld [vmem:[%s16433_s1 + $0x10] sm:$0xff] }
0x2c55   : > { %6788 = vrot.lane.b32.xlu0 %v15804_v44, %s16424_s12  ;;  %11701 = vmatpush3.xpose.msk.msra.mxu0 %vm2884_vm4, %v15804_v44 }
0x2c56   : > { %11710 = vmatprep.subr.mxu0 %v14318_v0 }
0x2c58   : > { %v6526_v22 = vpop.f32.mrb[42].mxu0 }
0x2c59   : > { %v6527_v60 = vadd.f32 %v11102_v51, %v6526_v22  ;;  %v11688_v24 = vpop.f32.mrb[43].mxu0 }
0x2c5b   : > { %v15811_v38 = vmul.f32 0.35355338, %v6527_v60 }
0x2c5d   : > { %6786 = vrot.lane.b32.xlu0 %v15811_v38, %s16424_s12  ;;  %11703 = vmatmul.mubr.msk.f32.vlgmr.msra.gmra.mrb[44].mxu0 %vm2884_vm4, %v15811_v38 }
0x2c5e   : > { %11712 = vmatprep.mubr.msk.f32.mxu0 %vm14319_vm0, %v14318_v0 }
0x2cc7   : > { %v6789_v25 = vpop.permute.xlu0 %6788 }
0x2cc8   : > { %11711 = vmatpush3.xpose.msk.msra.mxu0 %vm2884_vm4, %v6789_v25 }
0x2cc9   : > { %11720 = vmatprep.subr.mxu0 %v14318_v0 }
0x2ccf   : > { %v6787_v26 = vpop.permute.xlu0 %6786 }
0x2cd0   : > { %11713 = vmatmul.mubr.msk.f32.vlgmr.msra.gmra.mrb[46].mxu0 %vm2884_vm4, %v6787_v26 }
0x2cd1   : > { %11722 = vmatprep.mubr.msk.f32.mxu0 %vm14319_vm0, %v14318_v0  ;;  %11721 = vmatpush3.msra.mxu0 %v6448_v46 }
0x2cd2   : > { %11730 = vmatprep.subr.mxu0 %v14318_v0 }
0x2d30   : > { %v6695_v27 = vpop.f32.mrb[44].mxu0 }
0x2d31   : > { %v11704_v28 = vpop.f32.mrb[45].mxu0  ;;  %v6699_v29 = vsel %vm2884_vm4, %v6695_v27, -inf }
0x2d32   : > { %6700 = vmax.xlane.f32.xlu0 %v6699_v29 }
0x2da3   : > { %v6860_v30 = vpop.f32.mrb[46].mxu0 }
0x2da4   : > { %v11714_v31 = vpop.f32.mrb[47].mxu0  ;;  %v6864_v32 = vsel %vm2884_vm4, %v6860_v30, -inf }
0x2da5   : > { %6865 = vmax.xlane.f32.xlu1 %v6864_v32  ;;  %v6450_v31 = vld [vmem:[%s16433_s1 + $0x18] sm:$0xff]  ;;  %s16436_s1 = sld [smem:[#allocation130_spill]] }
0x2db6   : > { %6710 = vrot.lane.b32.xlu1 %v15804_v44, %s16431_s3 }
0x2dba   : > { %7099 = vrot.lane.b32.xlu1 %v15804_v44, %s16427_s2 }
0x2dbe   : > { %7097 = vrot.lane.b32.xlu1 %v15811_v38, %s16427_s2 }
0x2dbf   : > { %v6701_v33 = vpop.xlane.xlu0 %6700 }
0x2dc0   : > { %v6702_v34 = vsub.f32 %v6695_v27, %v6701_v33 }
0x2dc2   : > { %v6703_v35 = vmul.f32 1.442695, %v6702_v34 }
0x2dc4   : > { %12616 = vpow2.f32 %v6703_v35 }
0x2dce   : > { %v12617_v36 = vpop.eup %12616 }
0x2dcf   : > { %v6705_v20 = vsel %vm2884_vm4, %v12617_v36, 0.0 }
0x2dd0   : > { %6706 = vadd.xlane.f32.xlu0 %v6705_v20 }
0x2e32   : > { %v6866_v37 = vpop.xlane.xlu1 %6865 }
0x2e33   : > { %v6867_v39 = vsub.f32 %v6860_v30, %v6866_v37 }
0x2e35   : > { %v6868_v40 = vmul.f32 1.442695, %v6867_v39 }
0x2e36   : > { %v6711_v41 = vpop.permute.xlu1 %6710 }
0x2e37   : > { %12618 = vpow2.f32 %v6868_v40  ;;  %11706 = vmatpush3.msra.mxu1 %v6711_v41  ;;  %v11121_v41 = vld [vmem:[#allocation11] ss:$0 sm:$0xff] }
0x2e38   : > { %11715 = vmatprep.subr.mxu1 %v14318_v0 }
0x2e3a   : > { %v7100_v56 = vpop.permute.xlu1 %7099 }
0x2e3e   : > { %v7098_v57 = vpop.permute.xlu1 %7097 }
0x2e41   : > { %v12619_v42 = vpop.eup %12618 }
0x2e42   : > { %v6870_v43 = vsel %vm2884_vm4, %v12619_v42, 0.0 }
0x2e43   : > { %6871 = vadd.xlane.f32.xlu0 %v6870_v43 }
0x2e59   : > { %6875 = vrot.lane.b32.xlu0 %v15804_v44, %s16434_s4 }
0x2e5d   : > { %v6707_v23 = vpop.xlane.xlu0 %6706 }
0x2e5e   : > { %12620 = vrcp.f32 %v6707_v23 }
0x2e68   : > { %v12621_v45 = vpop.eup %12620 }
0x2e69   : > { %v6709_v10 = vmul.f32 %v12621_v45, %v12617_v36 }
0x2e6b   : > { %11708 = vmatmul.mubr.msk.f32.vlgmr.msra.gmra.mrb[50].mxu1 %vm2884_vm4, %v6709_v10 }
0x2e6c   : > { %11717 = vmatprep.mubr.msk.f32.mxu1 %vm14319_vm0, %v14318_v0 }
0x2ed0   : > { %v6872_v48 = vpop.xlane.xlu0 %6871 }
0x2ed1   : > { %12622 = vrcp.f32 %v6872_v48 }
0x2ed4   : > { %v6876_v49 = vpop.permute.xlu0 %6875 }
0x2ed5   : > { %11716 = vmatpush3.msra.mxu1 %v6876_v49 }
0x2ed6   : > { %11725 = vmatprep.subr.mxu1 %v14318_v0 }
0x2edb   : > { %v12623_v50 = vpop.eup %12622 }
0x2edc   : > { %v6874_v51 = vmul.f32 %v12623_v50, %v12619_v42 }
0x2ede   : > { %11718 = vmatmul.mubr.msk.f32.vlgmr.msra.gmra.mrb[52].mxu1 %vm2884_vm4, %v6874_v51 }
0x2edf   : > { %11726 = vmatpush3.msra.mxu1 %v6447_v52  ;;  %11727 = vmatprep.mubr.msk.f32.mxu1 %vm14319_vm0, %v14318_v0  ;;  %v7613_v52 = vld [vmem:[#allocation28] sm:$0xff] }
0x2ee0   : > { %11735 = vmatprep.subr.mxu1 %v14318_v0 }
0x2f3e   : > { %v6782_v53 = vpop.f32.mrb[50].mxu1 }
0x2f3f   : > { %v11709_v54 = vpop.f32.mrb[51].mxu1  ;;  %11728 = vmatmul.mubr.msk.f32.vlgmr.msra.gmra.mrb[54].mxu1 %vm2884_vm4, %v6782_v53  ;;  %v7614_v53 = vld [vmem:[#allocation28 + $0x8] sm:$0xff] }
0x2f40   : > { %11737 = vmatprep.mubr.msk.f32.mxu1 %vm14319_vm0, %v14318_v0  ;;  %v12012_v54 = vpack.c.bf16 %v7614_v53, %v7613_v52 }
0x2fb1   : > { %v6947_v58 = vpop.f32.mrb[52].mxu1 }
0x2fb2   : > { %v11719_v16 = vpop.f32.mrb[53].mxu1  ;;  %11723 = vmatmul.mubr.msk.f32.vlgmr.msra.gmra.mrb[48].mxu0 %vm2884_vm4, %v6947_v58  ;;  %v7616_v58 = vld [vmem:[#allocation28 + $0x18] sm:$0xff] }
0x2fb3   : > { %11731 = vmatpush3.xpose.msk.msra.mxu0 %vm2884_vm4, %v7100_v56  ;;  %11732 = vmatprep.mubr.msk.f32.mxu0 %vm14319_vm0, %v14318_v0  ;;  %v7615_v56 = vld [vmem:[#allocation28 + $0x10] sm:$0xff]  ;;  %v7698_v16 = vld [vmem:[%s16436_s1] sm:$0xff] }
0x2fb4   : > { %11740 = vmatprep.subr.mxu0 %v14318_v0 }
0x2fb6   : > { %11733 = vmatmul.mubr.msk.f32.vlgmr.msra.gmra.mrb[50].mxu0 %vm2884_vm4, %v7098_v57  ;;  %v7699_v57 = vld [vmem:[%s16436_s1 + $0x8] sm:$0xff] }
0x2fb7   : > { %11742 = vmatprep.mubr.msk.f32.mxu0 %vm14319_vm0, %v14318_v0  ;;  %11741 = vmatpush3.msra.mxu0 %v6449_v21 }
0x2fb8   : > { %11750 = vmatprep.subr.mxu0 %v14318_v0 }
0x3012   : > { %v7093_v59 = vpop.f32.mrb[54].mxu1 }
0x3013   : > { %v11729_v61 = vpop.f32.mrb[55].mxu1 }
0x3085   : > { %v7020_v62 = vpop.f32.mrb[48].mxu0 }
0x3086   : > { %v7094_v63 = vadd.f32 %v7093_v59, %v7020_v62  ;;  %v11724_v47 = vpop.f32.mrb[49].mxu0  ;;  %v12018_v59 = vpack.c.bf16 %v7699_v57, %v7698_v16 }
0x3089   : > { %v7171_v2 = vpop.f32.mrb[50].mxu0 }
0x308a   : > { %v11734_v4 = vpop.f32.mrb[51].mxu0  ;;  %v7175_v5 = vsel %vm2884_vm4, %v7171_v2, -inf }
0x308b   : > { %7176 = vmax.xlane.f32.xlu0 %v7175_v5  ;;  %v11123_v5 = vld [vmem:[#allocation17] ss:$0 sm:$0xff] }
0x30a1   : > { %7186 = vrot.lane.b32.xlu0 %v15804_v44, %s16421_s10 }
0x30a5   : > { %7336 = vrot.lane.b32.xlu0 %v15811_v38, %s16435_s5 }
0x3118   : > { %v7177_v6 = vpop.xlane.xlu0 %7176 }
0x3119   : > { %v7178_v7 = vsub.f32 %v7171_v2, %v7177_v6  ;;  %v11122_v2 = vld [vmem:[#allocation19] ss:$0 sm:$0xff] }
0x311b   : > { %v7179_v8 = vmul.f32 1.442695, %v7178_v7 }
0x311c   : > { %v7187_v9 = vpop.permute.xlu0 %7186 }
0x311d   : > { %12624 = vpow2.f32 %v7179_v8  ;;  %11736 = vmatpush3.msra.mxu1 %v7187_v9  ;;  %v7700_v8 = vld [vmem:[%s16436_s1 + $0x10] sm:$0xff]  ;;  %v7701_v9 = vld [vmem:[%s16436_s1 + $0x18] sm:$0xff]  ;;  %s16437_s1 = smov 56  }
0x311e   : > { %11745 = vmatprep.subr.mxu1 %v14318_v0 }
0x3120   : > { %v7337_v19 = vpop.permute.xlu0 %7336 }
0x3127   : > { %v12625_v12 = vpop.eup %12624 }
0x3128   : > { %v7181_v13 = vsel %vm2884_vm4, %v12625_v12, 0.0 }
0x3129   : > { %7182 = vadd.xlane.f32.xlu1 %v7181_v13  ;;  %v11124_v13 = vld [vmem:[#allocation8] ss:$0 sm:$0xff] }
0x313a   : > { %7338 = vrot.lane.b32.xlu1 %v15804_v44, %s16435_s5 }
0x31b6   : > { %v7183_v14 = vpop.xlane.xlu1 %7182 }
0x31b7   : > { %12626 = vrcp.f32 %v7183_v14 }
0x31ba   : > { %v7339_v18 = vpop.permute.xlu1 %7338 }
0x31c1   : > { %v12627_v15 = vpop.eup %12626 }
0x31c2   : > { %v7185_v17 = vmul.f32 %v12627_v15, %v12625_v12  ;;  %v12021_v12 = vpack.c.bf16 %v7701_v9, %v7700_v8  ;;  %v7818_v8 = vld [vmem:[%s16438_s8 + $0x8] sm:$0xff] }
0x31c4   : > { %11738 = vmatmul.mubr.msk.f32.vlgmr.msra.gmra.mrb[56].mxu1 %vm2884_vm4, %v7185_v17 }
0x31c5   : > { %11746 = vmatpush3.xpose.msk.msra.mxu1 %vm2884_vm4, %v7339_v18  ;;  %11747 = vmatprep.mubr.msk.f32.mxu1 %vm14319_vm0, %v14318_v0 }
0x31c6   : > { %11755 = vmatprep.subr.mxu1 %v14318_v0 }
0x31c8   : > { %11748 = vmatmul.mubr.msk.f32.vlgmr.msra.gmra.mrb[58].mxu1 %vm2884_vm4, %v7337_v19  ;;  %v11126_v19 = vld [vmem:[#allocation10] ss:$0 sm:$0xff] }
0x31c9   : > { %11757 = vmatprep.mubr.msk.f32.mxu1 %vm14319_vm0, %v14318_v0  ;;  %11756 = vmatpush3.msra.mxu1 %v6450_v31  ;;  %v7813_v31 = vld [vmem:[#allocation50 + $0x8] sm:$0xff] }
0x31ca   : > { %12017 = vmatprep.subr.bf16.mxu1 %v14320_v3 }
0x3297   : > { %v7258_v22 = vpop.f32.mrb[56].mxu1 }
0x3298   : > { %v11739_v60 = vpop.f32.mrb[57].mxu1  ;;  %11743 = vmatmul.mubr.msk.f32.vlgmr.msra.gmra.mrb[52].mxu0 %vm2884_vm4, %v7258_v22 }
0x3299   : > { %11752 = vmatprep.mubr.msk.f32.mxu0 %vm14319_vm0, %v14318_v0 }
0x329b   : > { %v7410_v24 = vpop.f32.mrb[58].mxu1 }
0x329c   : > { %v11749_v38 = vpop.f32.mrb[59].mxu1  ;;  %v7414_v25 = vsel %vm2884_vm4, %v7410_v24, -inf }
0x329d   : > { %7415 = vmax.xlane.f32.xlu1 %v7414_v25 }
0x332a   : > { %v7416_v26 = vpop.xlane.xlu1 %7415 }
0x332b   : > { %v7417_v27 = vsub.f32 %v7410_v24, %v7416_v26 }
0x332d   : > { %v7418_v28 = vmul.f32 1.442695, %v7417_v27 }
0x332f   : > { %12628 = vpow2.f32 %v7418_v28 }
0x3339   : > { %v12629_v29 = vpop.eup %12628 }
0x333a   : > { %v7420_v30 = vsel %vm2884_vm4, %v12629_v29, 0.0 }
0x333b   : > { %7421 = vadd.xlane.f32.xlu0 %v7420_v30  ;;  %v7812_v30 = vld [vmem:[#allocation50] sm:$0xff] }
0x3351   : > { %7425 = vrot.lane.b32.xlu0 %v15804_v44, %s16422_s26 }
0x336b   : > { %v7331_v32 = vpop.f32.mrb[52].mxu0 }
0x336c   : > { %v7335_v33 = vadd.f32 %v7331_v32, %v7094_v63  ;;  %v11744_v34 = vpop.f32.mrb[53].mxu0  ;;  %v12024_v32 = vpack.c.bf16 %v7813_v31, %v7812_v30 }
0x336d   : > { %v7815_v34 = vld [vmem:[#allocation50 + $0x18] sm:$0xff] }
0x33c8   : > { %v7422_v35 = vpop.xlane.xlu0 %7421 }
0x33c9   : > { %12630 = vrcp.f32 %v7422_v35 }
0x33cc   : > { %v7426_v36 = vpop.permute.xlu0 %7425 }
0x33cd   : > { %11751 = vmatpush3.msra.mxu0 %v7426_v36 }
0x33ce   : > { %12011 = vmatprep.subr.bf16.mxu0 %v14320_v3 }
0x33d3   : > { %v12631_v20 = vpop.eup %12630 }
0x33d4   : > { %v7424_v37 = vmul.f32 %v12631_v20, %v12629_v29 }
0x33d6   : > { %11753 = vmatmul.mubr.msk.f32.vlgmr.msra.gmra.mrb[54].mxu0 %vm2884_vm4, %v7424_v37 }
0x33d7   : > { %11768 = vmatprep.mubr.msk.f32.mxu0 %vm14319_vm0, %v14318_v0  ;;  %12013 = vmatpush3.bf16.msra.mxu0 %v12012_v54 }
0x33d8   : > { %12014 = vmatprep.subr.bf16.mxu0 %v14320_v3 }
0x34a9   : > { %v7497_v44 = vpop.f32.mrb[54].mxu0 }
0x34aa   : > { %v11754_v39 = vpop.f32.mrb[55].mxu0  ;;  %11758 = vmatmul.mubr.msk.f32.vlgmr.msra.gmra.mrb[60].mxu1 %vm2884_vm4, %v7497_v44 }
0x34ab   : > { %11779 = vmatprep.mubr.msk.f32.mxu1 %vm14319_vm0, %v14318_v0  ;;  %12019 = vmatpush3.bf16.msra.mxu1 %v12018_v59  ;;  %v11128_v39 = vld [vmem:[#allocation22] ss:$0 sm:$0xff] }
0x34ac   : > { %12020 = vmatprep.subr.bf16.mxu1 %v14320_v3 }
0x34af   : > { %12022 = vmatpush3.bf16.msra.mxu1 %v12021_v12 }
0x34b0   : > { %11793 = vmatprep.subr.mxu1 %v14318_v0 }
0x357d   : > { %v7570_v40 = vpop.f32.mrb[60].mxu1 }
0x357e   : > { %v7574_v42 = vadd.f32 %v7570_v40, %v7335_v33  ;;  %v11759_v43 = vpop.f32.mrb[61].mxu1  ;;  %v7814_v33 = vld [vmem:[#allocation50 + $0x10] sm:$0xff] }
0x357f   : > { %v12027_v35 = vpack.c.bf16 %v7815_v34, %v7814_v33 }
0x3580   : > { %v7582_v23 = vadd.f32 %v11121_v41, %v7574_v42  ;;  %v11129_v41 = vld [vmem:[#allocation20] ss:$0 sm:$0xff] }
0x3582   : > { %v7583_v45 = vadd.f32 %v7582_v23, %v15798_v55  ;;  %v12015_v55 = vpack.c.bf16 %v7616_v58, %v7615_v56  ;;  %v11130_v23 = vld [vmem:[#allocation49] ss:$0 sm:$0xff] }
0x3584   : > { %v7584_v10 = vsel %vm2806_vm3, %v7583_v45, 0.0  ;;  %12016 = vmatpush3.bf16.msra.mxu0 %v12015_v55 }
0x3585   : > { %7585 = vadd.xlane.f32.xlu1 %v7584_v10  ;;  %12023 = vmatprep.subr.bf16.mxu0 %v14320_v3 }
0x3612   : > { %v7586_v46 = vpop.xlane.xlu1 %7585 }
0x3613   : > { %v7587_v48 = vmul.f32 0.03125, %v7586_v46 }
0x3615   : > { %v7588_v49 = vsub.f32 %v7583_v45, %v7587_v48 }
0x3617   : > { %v7589_v50 = vmul.f32 %v7588_v49, %v7588_v49 }
0x3619   : > { %v7590_v51 = vsel %vm2806_vm3, %v7589_v50, 0.0 }
0x361a   : > { %7591 = vadd.xlane.f32.xlu1 %v7590_v51 }
0x36a7   : > { %v7592_v61 = vpop.xlane.xlu1 %7591 }
0x36a8   : > { %v7593_v62 = vmul.f32 0.03125, %v7592_v61 }
0x36aa   : > { %v7594_v63 = vadd.f32 1e-05, %v7593_v62 }
0x36ac   : > { %12632 = vrsqrt.f32 %v7594_v63 }
0x36b6   : > { %v12633_v47 = vpop.eup %12632 }
0x36b7   : > { %v7596_v4 = vmul.f32 %v12633_v47, %v7588_v49 }
0x36b9   : > { %v7604_v6 = vmul.f32 %v11122_v2, %v7596_v4 }
0x36bb   : > { %v7612_v7 = vadd.f32 %v11123_v5, %v7604_v6 }
0x36bd   : > { %11769 = vmatmul.mubr.msk.f32.vlgmr.msra.gmra.mrb[56].mxu0 %vm2806_vm3, %v7612_v7 }
0x36be   : > { %11790 = vmatprep.mubr.msk.f32.mxu0 %vm14319_vm0, %v14318_v0  ;;  %12025 = vmatpush3.bf16.msra.mxu0 %v12024_v32 }
0x36bf   : > { %12026 = vmatprep.subr.bf16.mxu0 %v14320_v3 }
0x36c2   : > { %12028 = vmatpush3.bf16.msra.mxu0 %v12027_v35 }
0x36c3   : > { %11803 = vmatprep.subr.mxu0 %v14318_v0 }
0x3790   : > { %v7693_v14 = vpop.f32.mrb[56].mxu0 }
0x3791   : > { %v7694_v15 = vadd.f32 %v11124_v13, %v7693_v14  ;;  %v11770_v17 = vpop.f32.mrb[57].mxu0 }
0x3793   : > { %v7697_v18 = vmax.f32 %v7694_v15, 0.0 }
0x3795   : > { %11780 = vmatmul.mubr.msk.f32.vlgmr.msra.gmra.mrb[62].mxu1 %vm2806_vm3, %v7697_v18 }
0x3796   : > { %11795 = vmatprep.mubr.msk.f32.mxu1 %vm14319_vm0, %v14318_v0 }
0x3868   : > { %v7778_v21 = vpop.f32.mrb[62].mxu1 }
0x3869   : > { %v7779_v22 = vadd.f32 %v11126_v19, %v7778_v21  ;;  %v11781_v60 = vpop.f32.mrb[63].mxu1  ;;  %v7817_v21 = vld [vmem:[%s16438_s8] sm:$0xff] }
0x386b   : > { %v7782_v24 = vadd.f32 %v7779_v22, %v7612_v7 }
0x386d   : > { %v7783_v38 = vsel %vm2806_vm3, %v7782_v24, 0.0 }
0x386e   : > { %7784 = vadd.xlane.f32.xlu1 %v7783_v38 }
0x38fb   : > { %v7785_v25 = vpop.xlane.xlu1 %7784 }
0x38fc   : > { %v7786_v26 = vmul.f32 0.03125, %v7785_v25 }
0x38fe   : > { %v7787_v27 = vsub.f32 %v7782_v24, %v7786_v26 }
0x3900   : > { %v7788_v28 = vmul.f32 %v7787_v27, %v7787_v27 }
0x3902   : > { %v7789_v29 = vsel %vm2806_vm3, %v7788_v28, 0.0 }
0x3903   : > { %7790 = vadd.xlane.f32.xlu1 %v7789_v29 }
0x3990   : > { %v7791_v36 = vpop.xlane.xlu1 %7790 }
0x3991   : > { %v7792_v20 = vmul.f32 0.03125, %v7791_v36 }
0x3993   : > { %v7793_v37 = vadd.f32 1e-05, %v7792_v20 }
0x3995   : > { %12634 = vrsqrt.f32 %v7793_v37 }
0x399f   : > { %v12635_v44 = vpop.eup %12634 }
0x39a0   : > { %v7795_v40 = vmul.f32 %v12635_v44, %v7787_v27 }
0x39a2   : > { %v7803_v42 = vmul.f32 %v11128_v39, %v7795_v40 }
0x39a4   : > { %v15915_v43 = vadd.f32 %v11129_v41, %v7803_v42 }
0x39a6   : > { %11791 = vmatmul.mubr.msk.f32.vlgmr.msra.gmra.mrb[58].mxu0 %vm2806_vm3, %v15915_v43 }
0x39a7   : > { %11805 = vmatprep.mubr.msk.f32.mxu0 %vm14319_vm0, %v14318_v0 }
0x3a79   : > { %v7896_v45 = vpop.f32.mrb[58].mxu0 }
0x3a7a   : > { %v15921_v10 = vadd.f32 %v11130_v23, %v7896_v45  ;;  %v11792_v46 = vpop.f32.mrb[59].mxu0 }
0x3a7c   : > { %8068 = vrot.lane.b32.xlu0 %v15921_v10, %s16434_s4  ;;  %7902 = vrot.lane.b32.xlu1 %v15921_v10, %s16431_s3  ;;  %v15928_v48 = vmul.f32 0.35355338, %v15921_v10 }
0x3a80   : > { %8066 = vrot.lane.b32.xlu0 %v15928_v48, %s16424_s12 }
0x3aee   : > { %v8069_v49 = vpop.permute.xlu0 %8068  ;;  %v7903_v50 = vpop.permute.xlu1 %7902 }
0x3aef   : > { %11794 = vmatpush3.xpose.msk.msra.mxu1 %vm2884_vm4, %v7903_v50  ;;  %11804 = vmatpush3.xpose.msk.msra.mxu0 %vm2884_vm4, %v8069_v49 }
0x3af0   : > { %11798 = vmatprep.subr.mxu1 %v14318_v0  ;;  %11813 = vmatprep.subr.mxu0 %v14318_v0 }
0x3af2   : > { %v8067_v51 = vpop.permute.xlu0 %8066  ;;  %11796 = vmatmul.mubr.msk.f32.vlgmr.msra.gmra.mrb[64].mxu1 %vm2884_vm4, %v15928_v48 }
0x3af3   : > { %11806 = vmatmul.mubr.msk.f32.vlgmr.msra.gmra.mrb[60].mxu0 %vm2884_vm4, %v8067_v51  ;;  %11800 = vmatprep.mubr.msk.f32.mxu1 %vm14319_vm0, %v14318_v0 }
0x3af4   : > { %11815 = vmatprep.mubr.msk.f32.mxu0 %vm14319_vm0, %v14318_v0  ;;  %11814 = vmatpush3.msra.mxu0 %v7818_v8 }
0x3af5   : > { %11823 = vmatprep.subr.mxu0 %v14318_v0 }
0x3bc5   : > { %v7975_v52 = vpop.f32.mrb[64].mxu1 }
0x3bc6   : > { %v7976_v53 = vadd.f32 %v15694_v1, %v7975_v52  ;;  %v11797_v54 = vpop.f32.mrb[65].mxu1  ;;  %v8140_v56 = vpop.f32.mrb[60].mxu0 }
0x3bc7   : > { %v8141_v58 = vadd.f32 %v15694_v1, %v8140_v56  ;;  %v11807_v55 = vpop.f32.mrb[61].mxu0 }
0x3bc8   : > { %v7979_v16 = vsel %vm2884_vm4, %v7976_v53, -inf }
0x3bc9   : > { %7980 = vmax.xlane.f32.xlu0 %v7979_v16  ;;  %v8144_v57 = vsel %vm2884_vm4, %v8141_v58, -inf }
0x3bca   : > { %8145 = vmax.xlane.f32.xlu1 %v8144_v57 }
0x3bdb   : > { %8155 = vrot.lane.b32.xlu1 %v15921_v10, %s16437_s1 }
0x3bdf   : > { %8379 = vrot.lane.b32.xlu1 %v15921_v10, %s16421_s10 }
0x3c56   : > { %v7981_v59 = vpop.xlane.xlu0 %7980 }
0x3c57   : > { %v7982_v61 = vsub.f32 %v7976_v53, %v7981_v59  ;;  %v8146_v62 = vpop.xlane.xlu1 %8145 }
0x3c58   : > { %v8147_v63 = vsub.f32 %v8141_v58, %v8146_v62 }
0x3c59   : > { %v7983_v47 = vmul.f32 1.442695, %v7982_v61 }
0x3c5a   : > { %v8148_v2 = vmul.f32 1.442695, %v8147_v63 }
0x3c5b   : > { %12636 = vpow2.f32 %v7983_v47  ;;  %v8156_v17 = vpop.permute.xlu1 %8155 }
0x3c5c   : > { %12638 = vpow2.f32 %v8148_v2 }
0x3c5f   : > { %v8380_v38 = vpop.permute.xlu1 %8379 }
0x3c65   : > { %v12637_v4 = vpop.eup %12636 }
0x3c66   : > { %v7985_v5 = vsel %vm2884_vm4, %v12637_v4, 0.0  ;;  %v12639_v6 = vpop.eup %12638 }
0x3c67   : > { %7986 = vadd.xlane.f32.xlu0 %v7985_v5  ;;  %v8150_v7 = vsel %vm2884_vm4, %v12639_v6, 0.0 }
0x3c6b   : > { %8151 = vadd.xlane.f32.xlu0 %v8150_v7  ;;  %v11148_v7 = vld [vmem:[#allocation47] ss:$0 sm:$0xff] }
0x3c81   : > { %7990 = vrot.lane.b32.xlu0 %v15921_v10, %s16426_s6  ;;  %s2613_s6 = sand.u32 1, %s14188_s15  }
0x3c85   : > { %8377 = vrot.lane.b32.xlu0 %v15928_v48, %s16427_s2 }
0x3cf4   : > { %v7987_v9 = vpop.xlane.xlu0 %7986 }
0x3cf5   : > { %12640 = vrcp.f32 %v7987_v9 }
0x3cf8   : > { %v8152_v12 = vpop.xlane.xlu0 %8151 }
0x3cf9   : > { %12642 = vrcp.f32 %v8152_v12 }
0x3cfc   : > { %v7991_v13 = vpop.permute.xlu0 %7990 }
0x3cfd   : > { %11799 = vmatpush3.msra.mxu1 %v7991_v13 }
0x3cfe   : > { %11808 = vmatprep.subr.mxu1 %v14318_v0 }
0x3cff   : > { %v12641_v14 = vpop.eup %12640 }
0x3d00   : > { %v7989_v15 = vmul.f32 %v12641_v14, %v12637_v4  ;;  %v8378_v26 = vpop.permute.xlu0 %8377 }
0x3d02   : > { %11801 = vmatmul.mubr.msk.f32.vlgmr.msra.gmra.mrb[66].mxu1 %vm2884_vm4, %v7989_v15  ;;  %v8895_v15 = vld [vmem:[#allocation37 + $0x10] sm:$0xff] }
0x3d03   : > { %v12643_v18 = vpop.eup %12642  ;;  %11809 = vmatpush3.msra.mxu1 %v8156_v17  ;;  %11810 = vmatprep.mubr.msk.f32.mxu1 %vm14319_vm0, %v14318_v0  ;;  %v8896_v17 = vld [vmem:[#allocation37 + $0x18] sm:$0xff] }
0x3d04   : > { %v8154_v19 = vmul.f32 %v12643_v18, %v12639_v6  ;;  %11818 = vmatprep.subr.mxu1 %v14318_v0  ;;  %v12553_v18 = vpack.i.bf16 %v8896_v17, %v8895_v15 }
0x3d06   : > { %11811 = vmatmul.mubr.msk.f32.vlgmr.msra.gmra.mrb[68].mxu1 %vm2884_vm4, %v8154_v19 }
0x3d07   : > { %11820 = vmatprep.mubr.msk.f32.mxu1 %vm14319_vm0, %v14318_v0  ;;  %11819 = vmatpush3.msra.mxu1 %v7817_v21 }
0x3d08   : > { %11828 = vmatprep.subr.mxu1 %v14318_v0 }
0x3dd5   : > { %v8062_v22 = vpop.f32.mrb[66].mxu1 }
0x3dd6   : > { %v11802_v60 = vpop.f32.mrb[67].mxu1  ;;  %11821 = vmatmul.mubr.msk.f32.vlgmr.msra.gmra.mrb[70].mxu1 %vm2884_vm4, %v8062_v22 }
0x3dd7   : > { %11830 = vmatprep.mubr.msk.f32.mxu1 %vm14319_vm0, %v14318_v0 }
0x3dd9   : > { %v8227_v24 = vpop.f32.mrb[68].mxu1 }
0x3dda   : > { %v11812_v25 = vpop.f32.mrb[69].mxu1  ;;  %11816 = vmatmul.mubr.msk.f32.vlgmr.msra.gmra.mrb[62].mxu0 %vm2884_vm4, %v8227_v24 }
0x3ddb   : > { %11824 = vmatpush3.xpose.msk.msra.mxu0 %vm2884_vm4, %v8380_v38  ;;  %11825 = vmatprep.mubr.msk.f32.mxu0 %vm14319_vm0, %v14318_v0  ;;  %v8893_v38 = vld [vmem:[#allocation37] sm:$0xff]  ;;  %v8894_v25 = vld [vmem:[#allocation37 + $0x8] sm:$0xff] }
0x3ddc   : > { %11833 = vmatprep.subr.mxu0 %v14318_v0 }
0x3dde   : > { %11826 = vmatmul.mubr.msk.f32.vlgmr.msra.gmra.mrb[64].mxu0 %vm2884_vm4, %v8378_v26  ;;  %v12548_v26 = vpack.i.bf16 %v8894_v25, %v8893_v38 }
0x3ddf   : > { %11835 = vmatprep.mubr.msk.f32.mxu0 %vm14319_vm0, %v14318_v0 }
0x3ea9   : > { %v8373_v27 = vpop.f32.mrb[70].mxu1 }
0x3eaa   : > { %v11822_v28 = vpop.f32.mrb[71].mxu1 }
0x3eab   : > { %v11151_v28 = vld [vmem:[#allocation34] ss:$0 sm:$0xff] }
0x3ead   : > { %v8300_v29 = vpop.f32.mrb[62].mxu0 }
0x3eae   : > { %v8374_v30 = vadd.f32 %v8373_v27, %v8300_v29  ;;  %v11817_v31 = vpop.f32.mrb[63].mxu0  ;;  %v12033_v27 = vpack.c.bf16 %v8896_v17, %v8895_v15 }
0x3eb1   : > { %v8451_v32 = vpop.f32.mrb[64].mxu0 }
0x3eb2   : > { %v8452_v33 = vadd.f32 %v15694_v1, %v8451_v32  ;;  %v11827_v34 = vpop.f32.mrb[65].mxu0 }
0x3eb4   : > { %v8455_v35 = vsel %vm2884_vm4, %v8452_v33, -inf }
0x3eb5   : > { %8456 = vmax.xlane.f32.xlu1 %v8455_v35 }
0x3ec6   : > { %8618 = vrot.lane.b32.xlu1 %v15921_v10, %s16422_s26 }
0x3eca   : > { %8616 = vrot.lane.b32.xlu1 %v15928_v48, %s16435_s5  ;;  %v7819_v48 = vld [vmem:[%s16438_s8 + $0x10] sm:$0xff] }
0x3ecb   : > { %11834 = vmatpush3.msra.mxu0 %v7819_v48 }
0x3ecc   : > { %11843 = vmatprep.subr.mxu0 %v14318_v0 }
0x3f42   : > { %v8457_v36 = vpop.xlane.xlu1 %8456 }
0x3f43   : > { %v8458_v20 = vsub.f32 %v8452_v33, %v8457_v36 }
0x3f45   : > { %v8459_v37 = vmul.f32 1.442695, %v8458_v20 }
0x3f46   : > { %v8619_v23 = vpop.permute.xlu1 %8618 }
0x3f47   : > { %12644 = vpow2.f32 %v8459_v37 }
0x3f4a   : > { %v8617_v46 = vpop.permute.xlu1 %8616 }
0x3f51   : > { %v12645_v44 = vpop.eup %12644 }
0x3f52   : > { %v8461_v39 = vsel %vm2884_vm4, %v12645_v44, 0.0 }
0x3f53   : > { %8462 = vadd.xlane.f32.xlu0 %v8461_v39 }
0x3f69   : > { %8466 = vrot.lane.b32.xlu0 %v15921_v10, %s16428_s11 }
0x3fe0   : > { %v8463_v40 = vpop.xlane.xlu0 %8462 }
0x3fe1   : > { %12646 = vrcp.f32 %v8463_v40  ;;  %v11149_v40 = vld [vmem:[#allocation40] ss:$0 sm:$0xff] }
0x3fe4   : > { %v8467_v41 = vpop.permute.xlu0 %8466 }
0x3fe5   : > { %11829 = vmatpush3.msra.mxu1 %v8467_v41 }
0x3fe6   : > { %11838 = vmatprep.subr.mxu1 %v14318_v0 }
0x3feb   : > { %v12647_v42 = vpop.eup %12646 }
0x3fec   : > { %v8465_v45 = vmul.f32 %v12647_v42, %v12645_v44  ;;  %v11150_v42 = vld [vmem:[#allocation38] ss:$0 sm:$0xff] }
0x3fee   : > { %11831 = vmatmul.mubr.msk.f32.vlgmr.msra.gmra.mrb[72].mxu1 %vm2884_vm4, %v8465_v45 }
0x3fef   : > { %11839 = vmatpush3.xpose.msk.msra.mxu1 %vm2884_vm4, %v8619_v23  ;;  %11840 = vmatprep.mubr.msk.f32.mxu1 %vm14319_vm0, %v14318_v0 }
0x3ff0   : > { %11848 = vmatprep.subr.mxu1 %v14318_v0 }
0x3ff2   : > { %11841 = vmatmul.mubr.msk.f32.vlgmr.msra.gmra.mrb[74].mxu1 %vm2884_vm4, %v8617_v46 }
0x3ff3   : > { %11850 = vmatprep.mubr.msk.f32.mxu1 %vm14319_vm0, %v14318_v0 }
0x40c1   : > { %v8538_v49 = vpop.f32.mrb[72].mxu1 }
0x40c2   : > { %v11832_v50 = vpop.f32.mrb[73].mxu1  ;;  %11836 = vmatmul.mubr.msk.f32.vlgmr.msra.gmra.mrb[66].mxu0 %vm2884_vm4, %v8538_v49 }
0x40c3   : > { %11845 = vmatprep.mubr.msk.f32.mxu0 %vm14319_vm0, %v14318_v0 }
0x40c5   : > { %v8690_v51 = vpop.f32.mrb[74].mxu1 }
0x40c6   : > { %v8691_v52 = vadd.f32 %v15694_v1, %v8690_v51  ;;  %v11842_v53 = vpop.f32.mrb[75].mxu1  ;;  %v7820_v1 = vld [vmem:[%s16438_s8 + $0x18] sm:$0xff] }
0x40c7   : > { %11849 = vmatpush3.msra.mxu1 %v7820_v1 }
0x40c8   : > { %v8694_v54 = vsel %vm2884_vm4, %v8691_v52, -inf  ;;  %12035 = vmatprep.subr.bf16.mxu1 %v14320_v3 }
0x40c9   : > { %8695 = vmax.xlane.f32.xlu0 %v8694_v54 }
0x40df   : > { %8705 = vrot.lane.b32.xlu0 %v15921_v10, %s16429_s16 }
0x40e3   : > { %12554 = vrot.lane.b32.xlu0 %v12553_v18, %s16431_s3 }
0x40e7   : > { %8997 = vrot.lane.b32.xlu0 %v11151_v28, %s16431_s3 }
0x4156   : > { %v8696_v56 = vpop.xlane.xlu0 %8695 }
0x4157   : > { %v8697_v58 = vsub.f32 %v8691_v52, %v8696_v56 }
0x4159   : > { %v8698_v55 = vmul.f32 1.442695, %v8697_v58 }
0x415a   : > { %v8706_v16 = vpop.permute.xlu0 %8705 }
0x415b   : > { %12648 = vpow2.f32 %v8698_v55  ;;  %11844 = vmatpush3.msra.mxu0 %v8706_v16 }
0x415c   : > { %12029 = vmatprep.subr.bf16.mxu0 %v14320_v3 }
0x415e   : > { %v12555_v31 = vpop.permute.xlu0 %12554 }
0x415f   : > { %v12557_v34 = vunpack.i.h.bf16 %v12555_v31  ;;  %v12556_v20 = vunpack.i.l.bf16 %v12555_v31 }
0x4161   : > { %v12039_v44 = vpack.c.bf16 %v12557_v34, %v12556_v20 }
0x4162   : > { %v8998_v46 = vpop.permute.xlu0 %8997 }
0x4165   : > { %v12649_v57 = vpop.eup %12648 }
0x4166   : > { %v8700_v59 = vsel %vm2884_vm4, %v12649_v57, 0.0 }
0x4167   : > { %8701 = vadd.xlane.f32.xlu1 %v8700_v59 }
0x4195   : > { %v8611_v61 = vpop.f32.mrb[66].mxu0 }
0x4196   : > { %v8615_v62 = vadd.f32 %v8611_v61, %v8374_v30  ;;  %v11837_v63 = vpop.f32.mrb[67].mxu0 }
0x41f4   : > { %v8702_v10 = vpop.xlane.xlu1 %8701 }
0x41f5   : > { %12650 = vrcp.f32 %v8702_v10 }
0x41ff   : > { %v12651_v47 = vpop.eup %12650 }
0x4200   : > { %v8704_v2 = vmul.f32 %v12651_v47, %v12649_v57 }
0x4202   : > { %11846 = vmatmul.mubr.msk.f32.vlgmr.msra.gmra.mrb[68].mxu0 %vm2884_vm4, %v8704_v2 }
0x4203   : > { %11861 = vmatprep.mubr.msk.f32.mxu0 %vm14319_vm0, %v14318_v0 }
0x42d5   : > { %v8777_v4 = vpop.f32.mrb[68].mxu0 }
0x42d6   : > { %v11847_v5 = vpop.f32.mrb[69].mxu0  ;;  %11851 = vmatmul.mubr.msk.f32.vlgmr.msra.gmra.mrb[76].mxu1 %vm2884_vm4, %v8777_v4 }
0x42d7   : > { %11872 = vmatprep.mubr.msk.f32.mxu1 %vm14319_vm0, %v14318_v0 }
0x43a9   : > { %v8850_v6 = vpop.f32.mrb[76].mxu1 }
0x43aa   : > { %v8854_v8 = vadd.f32 %v8850_v6, %v8615_v62  ;;  %v11852_v9 = vpop.f32.mrb[77].mxu1 }
0x43ac   : > { %v8862_v12 = vadd.f32 %v11148_v7, %v8854_v8 }
0x43ae   : > { %v8863_v13 = vadd.f32 %v8862_v12, %v15915_v43  ;;  %v12030_v43 = vpack.c.bf16 %v8894_v25, %v8893_v38 }
0x43b0   : > { %v8864_v14 = vsel %vm2806_vm3, %v8863_v13, 0.0  ;;  %12031 = vmatpush3.bf16.msra.mxu0 %v12030_v43 }
0x43b1   : > { %8865 = vadd.xlane.f32.xlu1 %v8864_v14  ;;  %12032 = vmatprep.subr.bf16.mxu0 %v14320_v3  ;;  %v8899_v14 = vld [vmem:[#allocation35 + $0x8] sm:$0xff] }
0x43b4   : > { %12034 = vmatpush3.bf16.msra.mxu0 %v12033_v27 }
0x43b5   : > { %11875 = vmatprep.subr.mxu0 %v14318_v0 }
0x443e   : > { %v8866_v19 = vpop.xlane.xlu1 %8865 }
0x443f   : > { %v8867_v21 = vmul.f32 0.03125, %v8866_v19 }
0x4441   : > { %v8868_v22 = vsub.f32 %v8863_v13, %v8867_v21  ;;  %v8898_v21 = vld [vmem:[#allocation35] sm:$0xff] }
0x4443   : > { %v8869_v60 = vmul.f32 %v8868_v22, %v8868_v22 }
0x4445   : > { %v8870_v24 = vsel %vm2806_vm3, %v8869_v60, 0.0 }
0x4446   : > { %8871 = vadd.xlane.f32.xlu1 %v8870_v24 }
0x4457   : > { %12549 = vrot.lane.b32.xlu1 %v12548_v26, %s16431_s3 }
0x44d3   : > { %v8872_v29 = vpop.xlane.xlu1 %8871 }
0x44d4   : > { %v8873_v30 = vmul.f32 0.03125, %v8872_v29 }
0x44d6   : > { %v8874_v32 = vadd.f32 1e-05, %v8873_v30 }
0x44d7   : > { %v12550_v33 = vpop.permute.xlu1 %12549 }
0x44d8   : > { %12652 = vrsqrt.f32 %v8874_v32  ;;  %v12552_v35 = vunpack.i.h.bf16 %v12550_v33  ;;  %v12551_v36 = vunpack.i.l.bf16 %v12550_v33 }
0x44da   : > { %v12036_v37 = vpack.c.bf16 %v12552_v35, %v12551_v36 }
0x44dc   : > { %12037 = vmatpush3.bf16.msra.mxu1 %v12036_v37 }
0x44dd   : > { %12038 = vmatprep.subr.bf16.mxu1 %v14320_v3 }
0x44e0   : > { %12040 = vmatpush3.bf16.msra.mxu1 %v12039_v44 }
0x44e1   : > { %11880 = vmatprep.subr.mxu1 %v14318_v0 }
0x44e2   : > { %v12653_v39 = vpop.eup %12652 }
0x44e3   : > { %v8876_v41 = vmul.f32 %v12653_v39, %v8868_v22  ;;  %11873 = vmatmul.mubr.msk.f32.vlgmr.msra.gmra.mrb[78].mxu1 %vm2806_vm3, %v15791_v11 }
0x44e4   : > { %11882 = vmatprep.mubr.msk.f32.mxu1 %vm14319_vm0, %v14318_v0 }
0x44e5   : > { %v8884_v23 = vmul.f32 %v11149_v40, %v8876_v41 }
0x44e7   : > { %v16031_v45 = vadd.f32 %v11150_v42, %v8884_v23 }
0x44e9   : > { %11862 = vmatmul.mubr.msk.f32.vlgmr.msra.gmra.mrb[70].mxu0 %vm2806_vm3, %v16031_v45 }
0x44ea   : > { %11877 = vmatprep.mubr.msk.f32.mxu0 %vm14319_vm0, %v14318_v0 }
0x45b6   : > { %v9066_v48 = vpop.f32.mrb[78].mxu1 }
0x45b7   : > { %v16037_v49 = vadd.f32 %v9066_v48, %v8998_v46  ;;  %v11874_v50 = vpop.f32.mrb[79].mxu1  ;;  %v8900_v46 = vld [vmem:[#allocation35 + $0x10] sm:$0xff] }
0x45b9   : > { %9236 = vrot.lane.b32.xlu0 %v16037_v49, %s16424_s12  ;;  %11876 = vmatpush3.xpose.msk.msra.mxu0 %vm2884_vm4, %v16037_v49 }
0x45ba   : > { %11885 = vmatprep.subr.mxu0 %v14318_v0 }
0x45bc   : > { %v8977_v11 = vpop.f32.mrb[70].mxu0 }
0x45bd   : > { %v8978_v51 = vadd.f32 %v11151_v28, %v8977_v11  ;;  %v11863_v52 = vpop.f32.mrb[71].mxu0 }
0x45bf   : > { %v16044_v53 = vmul.f32 0.35355338, %v8978_v51 }
0x45c1   : > { %9234 = vrot.lane.b32.xlu1 %v16044_v53, %s16424_s12  ;;  %11878 = vmatmul.mubr.msk.f32.vlgmr.msra.gmra.mrb[72].mxu0 %vm2884_vm4, %v16044_v53 }
0x45c2   : > { %11887 = vmatprep.mubr.msk.f32.mxu0 %vm14319_vm0, %v14318_v0 }
0x462b   : > { %v9237_v54 = vpop.permute.xlu0 %9236 }
0x462c   : > { %11886 = vmatpush3.xpose.msk.msra.mxu0 %vm2884_vm4, %v9237_v54 }
0x462d   : > { %11895 = vmatprep.subr.mxu0 %v14318_v0 }
0x4633   : > { %v9235_v56 = vpop.permute.xlu1 %9234 }
0x4634   : > { %11888 = vmatmul.mubr.msk.f32.vlgmr.msra.gmra.mrb[74].mxu0 %vm2884_vm4, %v9235_v56 }
0x4635   : > { %11897 = vmatprep.mubr.msk.f32.mxu0 %vm14319_vm0, %v14318_v0  ;;  %11896 = vmatpush3.msra.mxu0 %v8899_v14 }
0x4636   : > { %11905 = vmatprep.subr.mxu0 %v14318_v0 }
0x4694   : > { %v9143_v58 = vpop.f32.mrb[72].mxu0 }
0x4695   : > { %v11879_v55 = vpop.f32.mrb[73].mxu0  ;;  %v9147_v16 = vsel %vm2884_vm4, %v9143_v58, -inf }
0x4696   : > { %9148 = vmax.xlane.f32.xlu0 %v9147_v16  ;;  %v8901_v16 = vld [vmem:[#allocation35 + $0x18] sm:$0xff] }
0x4707   : > { %v9308_v57 = vpop.f32.mrb[74].mxu0 }
0x4708   : > { %v11889_v59 = vpop.f32.mrb[75].mxu0  ;;  %v9312_v1 = vsel %vm2884_vm4, %v9308_v57, -inf }
0x4709   : > { %9313 = vmax.xlane.f32.xlu1 %v9312_v1 }
0x471a   : > { %9158 = vrot.lane.b32.xlu1 %v16037_v49, %s16431_s3  ;;  %s11180_s3 = sshll.u32 %s14694_s22, 7  ;;  %s14332_s22 = smov [#allocation82]  }
0x471b   : > { %s14030_s12 = sshll.u32 %s14332_s22, 4  ;;  %s14031_s12 = int_to_ptr.vmem [resolvable:$false] %s14030_s12 }
0x471c   : > { %s14032_s1 = scalar_lea.vmem %s14031_s12, 256 }
0x471e   : > { %9547 = vrot.lane.b32.xlu1 %v16037_v49, %s16427_s2 }
0x4722   : > { %9545 = vrot.lane.b32.xlu1 %v16044_v53, %s16427_s2  ;;  %s16139_s2 = scalar_lea.hbm %s14671_s14, %s11180_s3 }
0x4723   : > { %v9149_v61 = vpop.xlane.xlu0 %9148 }
0x4724   : > { %v9150_v62 = vsub.f32 %v9143_v58, %v9149_v61 }
0x4726   : > { %v9151_v63 = vmul.f32 1.442695, %v9150_v62 }
0x4728   : > { %12654 = vpow2.f32 %v9151_v63 }
0x4732   : > { %v12655_v10 = vpop.eup %12654 }
0x4733   : > { %v9153_v47 = vsel %vm2884_vm4, %v12655_v10, 0.0 }
0x4734   : > { %9154 = vadd.xlane.f32.xlu0 %v9153_v47 }
0x4796   : > { %v9314_v2 = vpop.xlane.xlu1 %9313 }
0x4797   : > { %v9315_v4 = vsub.f32 %v9308_v57, %v9314_v2 }
0x4799   : > { %v9316_v5 = vmul.f32 1.442695, %v9315_v4  ;;  %v11170_v4 = vld [vmem:[#allocation32] ss:$0 sm:$0xff] }
0x479a   : > { %v9159_v6 = vpop.permute.xlu1 %9158 }
0x479b   : > { %12656 = vpow2.f32 %v9316_v5  ;;  %11881 = vmatpush3.msra.mxu1 %v9159_v6 }
0x479c   : > { %11890 = vmatprep.subr.mxu1 %v14318_v0 }
0x479e   : > { %v9548_v24 = vpop.permute.xlu1 %9547 }
0x47a2   : > { %v9546_v26 = vpop.permute.xlu1 %9545 }
0x47a5   : > { %v12657_v7 = vpop.eup %12656 }
0x47a6   : > { %v9318_v8 = vsel %vm2884_vm4, %v12657_v7, 0.0 }
0x47a7   : > { %9319 = vadd.xlane.f32.xlu0 %v9318_v8 }
0x47bd   : > { %9323 = vrot.lane.b32.xlu0 %v16037_v49, %s16434_s4  ;;  %s11018_s4 = sshll.u32 %s2613_s6, 3 }
0x47be   : > { %s2615_s11 = scalar_lea.vmem [#allocation82], %s11018_s4 }
0x47c1   : > { %v9155_v9 = vpop.xlane.xlu0 %9154 }
0x47c2   : > { %12658 = vrcp.f32 %v9155_v9 }
0x47cc   : > { %v12659_v12 = vpop.eup %12658 }
0x47cd   : > { %v9157_v13 = vmul.f32 %v12659_v12, %v12655_v10 }
0x47cf   : > { %11883 = vmatmul.mubr.msk.f32.vlgmr.msra.gmra.mrb[80].mxu1 %vm2884_vm4, %v9157_v13 }
0x47d0   : > { %11892 = vmatprep.mubr.msk.f32.mxu1 %vm14319_vm0, %v14318_v0 }
0x4834   : > { %v9320_v15 = vpop.xlane.xlu0 %9319 }
0x4835   : > { %12660 = vrcp.f32 %v9320_v15 }
0x4838   : > { %v9324_v17 = vpop.permute.xlu0 %9323 }
0x4839   : > { %11891 = vmatpush3.msra.mxu1 %v9324_v17 }
0x483a   : > { %11900 = vmatprep.subr.mxu1 %v14318_v0 }
0x483f   : > { %v12661_v18 = vpop.eup %12660 }
0x4840   : > { %v9322_v19 = vmul.f32 %v12661_v18, %v12657_v7 }
0x4842   : > { %11893 = vmatmul.mubr.msk.f32.vlgmr.msra.gmra.mrb[82].mxu1 %vm2884_vm4, %v9322_v19 }
0x4843   : > { %11901 = vmatpush3.msra.mxu1 %v8898_v21  ;;  %11902 = vmatprep.mubr.msk.f32.mxu1 %vm14319_vm0, %v14318_v0 }
0x4844   : > { %11910 = vmatprep.subr.mxu1 %v14318_v0 }
0x48a2   : > { %v9230_v22 = vpop.f32.mrb[80].mxu1 }
0x48a3   : > { %v11884_v60 = vpop.f32.mrb[81].mxu1  ;;  %11903 = vmatmul.mubr.msk.f32.vlgmr.msra.gmra.mrb[84].mxu1 %vm2884_vm4, %v9230_v22 }
0x48a4   : > { %11912 = vmatprep.mubr.msk.f32.mxu1 %vm14319_vm0, %v14318_v0 }
0x4915   : > { %v9395_v38 = vpop.f32.mrb[82].mxu1 }
0x4916   : > { %v11894_v25 = vpop.f32.mrb[83].mxu1  ;;  %11898 = vmatmul.mubr.msk.f32.vlgmr.msra.gmra.mrb[76].mxu0 %vm2884_vm4, %v9395_v38 }
0x4917   : > { %11906 = vmatpush3.xpose.msk.msra.mxu0 %vm2884_vm4, %v9548_v24  ;;  %11907 = vmatprep.mubr.msk.f32.mxu0 %vm14319_vm0, %v14318_v0  ;;  %v10147_v24 = vld [vmem:[#allocation52 + $0x8] sm:$0xff] }
0x4918   : > { %11915 = vmatprep.subr.mxu0 %v14318_v0 }
0x491a   : > { %11908 = vmatmul.mubr.msk.f32.vlgmr.msra.gmra.mrb[78].mxu0 %vm2884_vm4, %v9546_v26 }
0x491b   : > { %11917 = vmatprep.mubr.msk.f32.mxu0 %vm14319_vm0, %v14318_v0  ;;  %11916 = vmatpush3.msra.mxu0 %v8900_v46 }
0x491c   : > { %11925 = vmatprep.subr.mxu0 %v14318_v0 }
0x4976   : > { %v9541_v43 = vpop.f32.mrb[84].mxu1 }
0x4977   : > { %v11904_v27 = vpop.f32.mrb[85].mxu1 }
0x49e9   : > { %v9468_v28 = vpop.f32.mrb[76].mxu0 }
0x49ea   : > { %v9542_v29 = vadd.f32 %v9541_v43, %v9468_v28  ;;  %v11899_v30 = vpop.f32.mrb[77].mxu0  ;;  %v11171_v28 = vld [vmem:[#allocation43] ss:$0 sm:$0xff] }
0x49eb   : > { %v11172_v30 = vld [vmem:[#allocation41] ss:$0 sm:$0xff] }
0x49ed   : > { %v9619_v31 = vpop.f32.mrb[78].mxu0 }
0x49ee   : > { %v11909_v32 = vpop.f32.mrb[79].mxu0  ;;  %v9623_v33 = vsel %vm2884_vm4, %v9619_v31, -inf }
0x49ef   : > { %9624 = vmax.xlane.f32.xlu0 %v9623_v33  ;;  %v10148_v33 = vld [vmem:[#allocation52 + $0x10] sm:$0xff] }
0x4a05   : > { %9634 = vrot.lane.b32.xlu0 %v16037_v49, %s16421_s10  ;;  %s10263_s10 = scalar_lea.sflag [#allocation4], %s2613_s6 }
0x4a09   : > { %9784 = vrot.lane.b32.xlu0 %v16044_v53, %s16435_s5 }
0x4a7c   : > { %v9625_v34 = vpop.xlane.xlu0 %9624 }
0x4a7d   : > { %v9626_v35 = vsub.f32 %v9619_v31, %v9625_v34  ;;  %v10149_v34 = vld [vmem:[#allocation52 + $0x18] sm:$0xff] }
0x4a7f   : > { %v9627_v36 = vmul.f32 1.442695, %v9626_v35  ;;  %v12051_v35 = vpack.c.bf16 %v10149_v34, %v10148_v33 }
0x4a80   : > { %v9635_v20 = vpop.permute.xlu0 %9634 }
0x4a81   : > { %12662 = vpow2.f32 %v9627_v36  ;;  %11911 = vmatpush3.msra.mxu1 %v9635_v20  ;;  %v11173_v36 = vld [vmem:[#allocation29] ss:$0 sm:$0xff] }
0x4a82   : > { %11920 = vmatprep.subr.mxu1 %v14318_v0 }
0x4a84   : > { %v9785_v23 = vpop.permute.xlu0 %9784 }
0x4a8b   : > { %v12663_v37 = vpop.eup %12662 }
0x4a8c   : > { %v9629_v44 = vsel %vm2884_vm4, %v12663_v37, 0.0 }
0x4a8d   : > { %9630 = vadd.xlane.f32.xlu1 %v9629_v44 }
0x4a9e   : > { %9786 = vrot.lane.b32.xlu1 %v16037_v49, %s16435_s5  ;;  %s16439_s5 = sld [smem:[#allocation144_spill]] }
0x4aa4   : > { %v10062_v18 = vld [vmem:[%s16439_s5 + $0x8] sm:$0xff]  ;;  %v10063_v21 = vld [vmem:[%s16439_s5 + $0x10] sm:$0xff]  ;;  %v10064_v22 = vld [vmem:[%s16439_s5 + $0x18] sm:$0xff] }
0x4aa5   : > { %v12045_v60 = vpack.c.bf16 %v10064_v22, %v10063_v21 }
0x4b1a   : > { %v9631_v39 = vpop.xlane.xlu1 %9630 }
0x4b1b   : > { %12664 = vrcp.f32 %v9631_v39  ;;  %v11175_v39 = vld [vmem:[#allocation31] ss:$0 sm:$0xff] }
0x4b1e   : > { %v9787_v42 = vpop.permute.xlu1 %9786 }
0x4b25   : > { %v12665_v40 = vpop.eup %12664 }
0x4b26   : > { %v9633_v41 = vmul.f32 %v12665_v40, %v12663_v37 }
0x4b28   : > { %11913 = vmatmul.mubr.msk.f32.vlgmr.msra.gmra.mrb[86].mxu1 %vm2884_vm4, %v9633_v41 }
0x4b29   : > { %11921 = vmatpush3.xpose.msk.msra.mxu1 %vm2884_vm4, %v9787_v42  ;;  %11922 = vmatprep.mubr.msk.f32.mxu1 %vm14319_vm0, %v14318_v0 }
0x4b2a   : > { %11930 = vmatprep.subr.mxu1 %v14318_v0 }
0x4b2c   : > { %11923 = vmatmul.mubr.msk.f32.vlgmr.msra.gmra.mrb[88].mxu1 %vm2884_vm4, %v9785_v23 }
0x4b2d   : > { %11932 = vmatprep.mubr.msk.f32.mxu1 %vm14319_vm0, %v14318_v0  ;;  %11931 = vmatpush3.msra.mxu1 %v8901_v16 }
0x4b2e   : > { %12047 = vmatprep.subr.bf16.mxu1 %v14320_v3 }
0x4bfb   : > { %v9706_v48 = vpop.f32.mrb[86].mxu1 }
0x4bfc   : > { %v11914_v50 = vpop.f32.mrb[87].mxu1  ;;  %11918 = vmatmul.mubr.msk.f32.vlgmr.msra.gmra.mrb[80].mxu0 %vm2884_vm4, %v9706_v48 }
0x4bfd   : > { %11927 = vmatprep.mubr.msk.f32.mxu0 %vm14319_vm0, %v14318_v0 }
0x4bff   : > { %v9858_v11 = vpop.f32.mrb[88].mxu1 }
0x4c00   : > { %v11924_v51 = vpop.f32.mrb[89].mxu1  ;;  %v9862_v52 = vsel %vm2884_vm4, %v9858_v11, -inf }
0x4c01   : > { %9863 = vmax.xlane.f32.xlu1 %v9862_v52 }
0x4c8e   : > { %v9864_v53 = vpop.xlane.xlu1 %9863 }
0x4c8f   : > { %v9865_v54 = vsub.f32 %v9858_v11, %v9864_v53 }
0x4c91   : > { %v9866_v56 = vmul.f32 1.442695, %v9865_v54 }
0x4c93   : > { %12666 = vpow2.f32 %v9866_v56 }
0x4c9d   : > { %v12667_v58 = vpop.eup %12666 }
0x4c9e   : > { %v9868_v55 = vsel %vm2884_vm4, %v12667_v58, 0.0 }
0x4c9f   : > { %9869 = vadd.xlane.f32.xlu0 %v9868_v55  ;;  %v11177_v55 = vld [vmem:[#allocation46] ss:$0 sm:$0xff] }
0x4cb5   : > { %9873 = vrot.lane.b32.xlu0 %v16037_v49, %s16422_s26  ;;  %s10276_s26 = sshll.u32 %s2615_s11, 4  ;;  %s16141_s26 = int_to_ptr.vmem [resolvable:$true] %s10276_s26 }
0x4cb6   : > { %s14026_s16 = scalar_lea.vmem %s16141_s26, 128  ;;  %p14033_p1 = scmp.lt.s32.totalorder %s16141_s26, %s14031_s12 }
0x4cb7   : > { %p14027_p10 = scmp.ne.s32.totalorder %s16141_s26, %s14026_s16  ;;  %p14034_p5 = scmp.lt.s32.totalorder %s14032_s1, %s14026_s16 }
0x4cb9   : > { %p14028_p13 = pnand %p14027_p10, %p16440_p12  ;;  %p14035_p6 = por %p14034_p5, %p14033_p1 }
0x4cbb   : > { %p14029_p0 = pneg %p14028_p13 }
0x4cbd   : > { %p14036_p2 = pnand %p14035_p6, %p14029_p0 }
0x4ccf   : > { %v9779_v57 = vpop.f32.mrb[80].mxu0 }
0x4cd0   : > { %v9783_v59 = vadd.f32 %v9779_v57, %v9542_v29  ;;  %v11919_v1 = vpop.f32.mrb[81].mxu0  ;;  %v11178_v57 = vld [vmem:[#allocation44] ss:$0 sm:$0xff] }
0x4d2c   : > { %v9870_v61 = vpop.xlane.xlu0 %9869 }
0x4d2d   : > { %12668 = vrcp.f32 %v9870_v61 }
0x4d30   : > { %v9874_v62 = vpop.permute.xlu0 %9873 }
0x4d31   : > { %11926 = vmatpush3.msra.mxu0 %v9874_v62 }
0x4d32   : > { %12041 = vmatprep.subr.bf16.mxu0 %v14320_v3 }
0x4d37   : > { %v12669_v63 = vpop.eup %12668 }
0x4d38   : > { %v9872_v10 = vmul.f32 %v12669_v63, %v12667_v58 }
0x4d3a   : > { %11928 = vmatmul.mubr.msk.f32.vlgmr.msra.gmra.mrb[82].mxu0 %vm2884_vm4, %v9872_v10 }
0x4d3b   : > { %11943 = vmatprep.mubr.msk.f32.mxu0 %vm14319_vm0, %v14318_v0 }
0x4e0d   : > { %v9945_v49 = vpop.f32.mrb[82].mxu0 }
0x4e0e   : > { %v11929_v47 = vpop.f32.mrb[83].mxu0  ;;  %11933 = vmatmul.mubr.msk.f32.vlgmr.msra.gmra.mrb[90].mxu1 %vm2884_vm4, %v9945_v49 }
0x4e0f   : > { %11954 = vmatprep.mubr.msk.f32.mxu1 %vm14319_vm0, %v14318_v0  ;;  %v10061_v0 = vld [vmem:[%s16439_s5] sm:$0xff] }
0x4e10   : > { %v12042_v19 = vpack.c.bf16 %v10062_v18, %v10061_v0 }
0x4e12   : > { %12043 = vmatpush3.bf16.msra.mxu0 %v12042_v19 }
0x4e13   : > { %12044 = vmatprep.subr.bf16.mxu0 %v14320_v3 }
0x4e16   : > { %12046 = vmatpush3.bf16.msra.mxu0 %v12045_v60 }
0x4ee1   : > { %v10018_v2 = vpop.f32.mrb[90].mxu1 }
0x4ee2   : > { %v10022_v5 = vadd.f32 %v10018_v2, %v9783_v59  ;;  %v11934_v6 = vpop.f32.mrb[91].mxu1 }
0x4ee4   : > { %v10030_v7 = vadd.f32 %v11170_v4, %v10022_v5 }
0x4ee6   : > { %v10031_v8 = vadd.f32 %v10030_v7, %v16031_v45  ;;  %v10146_v45 = vld [vmem:[#allocation52] sm:$0xff] }
0x4ee7   : > { %v12048_v38 = vpack.c.bf16 %v10147_v24, %v10146_v45 }
0x4ee8   : > { %v10032_v9 = vsel %vm2806_vm3, %v10031_v8, 0.0 }
0x4ee9   : > { %10033 = vadd.xlane.f32.xlu1 %v10032_v9  ;;  %12049 = vmatpush3.bf16.msra.mxu1 %v12048_v38 }
0x4eea   : > { %12050 = vmatprep.subr.bf16.mxu1 %v14320_v3 }
0x4eed   : > { %12052 = vmatpush3.bf16.msra.mxu1 %v12051_v35 }
0x4f76   : > { %v10034_v12 = vpop.xlane.xlu1 %10033 }
0x4f77   : > { %v10035_v13 = vmul.f32 0.03125, %v10034_v12 }
0x4f79   : > { %v10036_v14 = vsub.f32 %v10031_v8, %v10035_v13 }
0x4f7b   : > { %v10037_v15 = vmul.f32 %v10036_v14, %v10036_v14 }
0x4f7d   : > { %v10038_v17 = vsel %vm2806_vm3, %v10037_v15, 0.0 }
0x4f7e   : > { %10039 = vadd.xlane.f32.xlu1 %v10038_v17 }
0x500b   : > { %v10040_v25 = vpop.xlane.xlu1 %10039 }
0x500c   : > { %v10041_v26 = vmul.f32 0.03125, %v10040_v25 }
0x500e   : > { %v10042_v43 = vadd.f32 1e-05, %v10041_v26 }
0x5010   : > { %12670 = vrsqrt.f32 %v10042_v43 }
0x501a   : > { %v12671_v27 = vpop.eup %12670 }
0x501b   : > { %v10044_v29 = vmul.f32 %v12671_v27, %v10036_v14 }
0x501d   : > { %v10052_v31 = vmul.f32 %v11171_v28, %v10044_v29 }
0x501f   : > { %v10060_v32 = vadd.f32 %v11172_v30, %v10052_v31 }
0x5021   : > { %11944 = vmatmul.mubr.msk.f32.vlgmr.msra.gmra.mrb[84].mxu0 %vm2806_vm3, %v10060_v32 }
0x50f4   : > { %v10141_v20 = vpop.f32.mrb[84].mxu0 }
0x50f5   : > { %v10142_v37 = vadd.f32 %v11173_v36, %v10141_v20  ;;  %v11945_v3 = vpop.f32.mrb[85].mxu0 }
0x50f7   : > { %v10145_v44 = vmax.f32 %v10142_v37, 0.0 }
0x50f9   : > { %11955 = vmatmul.mubr.msk.f32.vlgmr.msra.gmra.mrb[92].mxu1 %vm2806_vm3, %v10145_v44 }
0x51cc   : > { %v10226_v40 = vpop.f32.mrb[92].mxu1 }
0x51cd   : > { %v10227_v41 = vadd.f32 %v11175_v39, %v10226_v40  ;;  %v11956_v42 = vpop.f32.mrb[93].mxu1 }
0x51cf   : > { %v10230_v23 = vadd.f32 %v10227_v41, %v10060_v32 }
0x51d1   : > { %v10231_v46 = vsel %vm2806_vm3, %v10230_v23, 0.0 }
0x51d2   : > { %10232 = vadd.xlane.f32.xlu1 %v10231_v46 }
0x525f   : > { %v10233_v48 = vpop.xlane.xlu1 %10232 }
0x5260   : > { %v10234_v50 = vmul.f32 0.03125, %v10233_v48 }
0x5262   : > { %v10235_v11 = vsub.f32 %v10230_v23, %v10234_v50 }
0x5264   : > { %v10236_v51 = vmul.f32 %v10235_v11, %v10235_v11 }
0x5266   : > { %v10237_v52 = vsel %vm2806_vm3, %v10236_v51, 0.0 }
0x5267   : > { %10238 = vadd.xlane.f32.xlu1 %v10237_v52 }
0x52f4   : > { %v10239_v53 = vpop.xlane.xlu1 %10238 }
0x52f5   : > { %v10240_v54 = vmul.f32 0.03125, %v10239_v53 }
0x52f7   : > { %v10241_v56 = vadd.f32 1e-05, %v10240_v54 }
0x52f9   : > { %12672 = vrsqrt.f32 %v10241_v56 }
0x5303   : > { %v12673_v58 = vpop.eup %12672 }
0x5304   : > { %v10243_v16 = vmul.f32 %v12673_v58, %v10235_v11 }
0x5306   : > { %v10251_v59 = vmul.f32 %v11177_v55, %v10243_v16 }
0x5308   : > { %v10259_v1 = vadd.f32 %v11178_v57, %v10251_v59 }
0x530a   : > { %v10260_v61 = vmax.f32 %v10259_v1, 0.0 }
0x530c   : > { %10261 = vst.msk [vmem:[%s2615_s11] sm:$0xff] %vm2806_vm3, %v10260_v61 }
0x530d   : > { %14039 = shalt.err (!%p14036_p2)
}
0x530e   : > { %s14040_s6 = scalar_lea.hbm %s16139_s2, 128  ;;  %s14044_s4 = scalar_lea.hbm %s14671_s14, 256 }
0x530f   : > { %p14041_p3 = scmp.ne.s32.totalorder %s16139_s2, %s14040_s6  ;;  %p14045_p8 = scmp.lt.u32.totalorder %s16139_s2, %s14671_s14 }
0x5310   : > { %p14046_p11 = scmp.lt.u32.totalorder %s14044_s4, %s14040_s6  ;;  %p14048_p10 = scmp.lt.u32.totalorder %s14040_s6, %s16139_s2 }
0x5311   : > { %p14042_p4 = pnand %p14041_p3, %p16440_p12 }
0x5312   : > { %p14047_p9 = por %p14046_p11, %p14045_p8 }
0x5313   : > { %p14043_p7 = pneg %p14042_p4 }
0x5314   : > { %p14049_p13 = por %p14048_p10, %p14047_p9 }
0x5316   : > { %p14050_p0 = pnand %p14049_p13, %p14043_p7 }
0x5318   : > { %14053 = shalt.err (!%p14050_p0)
}
0x5319   : > { %12261 = dma.vmem_to_hbm [thread:$0]  (%p16440_p12), %s16141_s26, 128, %s16139_s2, %s10263_s10  }
0x531a PF: > { %s16441_s3 = sld [smem:[#allocation171_spill]]  ;;  %p12371_p1 = scmp.ge.s32.totalorder %s14196_s18, 2 }
0x531b   : > { %s10288_s11 = sand.u32 1, %s14184_s0  }
0x531c   : > { %s10289_s16 = scalar_lea.sflag [#allocation4], %s10288_s11 }
0x5320   : > { %p16442_p5 = scmp.ne.s32.totalorder %s16441_s3, 0 }
0x5322   : > { %p12264_p6 = pnand %p12371_p1, %p16442_p5 }
0x5324   : > { %14179 = dma.done.wait (!%p12264_p6), %s10289_s16, 128  }
0x5325   : > { %14181 = vsyncadd (!%p12264_p6), %s10289_s16, 4294967168  ;;  %s16443_s18 = sld [smem:[#allocation169_spill]]  ;;  %s16444_s22 = sld [smem:[#allocation168_spill]] }
0x5326   : > { %s16445_s16 = sld [smem:[#allocation170_spill]]  ;;  %s16446_s0 = smov %s14188_s15 }
0x532b   : > { %p170_p2 = scmp.ge.s32.totalorder %s16443_s18, 4   ;;  %s16447_s15 = smov %s16444_s22 }
0x532d   :  { %172 = sbr.rel (!%p170_p2) target bundleno = 155 (0x9b), region = 597 }
0x5334   :  { %10294 = vsyncpa [#allocation3], 1 }
0x5335   :  { %10296 = vsyncpa [#allocation3 + $0x1], 1 }
0x5336   :  { %10297 = vsyncpa [#allocation6], 1 }
0x5337   :  { %10298 = vsyncpa [#allocation9], 1 }
0x5338   :  { %10299 = vsyncpa [#allocation12], 1 }
0x5339   :  { %10300 = vsyncpa [#allocation15], 1 }
0x533a   :  { %10301 = vsyncpa [#allocation18], 1 }
0x533b   :  { %10302 = vsyncpa [#allocation21], 1 }
0x533c   :  { %10303 = vsyncpa [#allocation24], 1 }
0x533d   :  { %10304 = vsyncpa [#allocation27], 1 }
0x533e   :  { %10305 = vsyncpa [#allocation30], 1 }
0x533f   :  { %10306 = vsyncpa [#allocation33], 1 }
0x5340   :  { %10307 = vsyncpa [#allocation36], 1 }
0x5341   :  { %10308 = vsyncpa [#allocation39], 1 }
0x5342   :  { %10309 = vsyncpa [#allocation42], 1 }
0x5343   :  { %10310 = vsyncpa [#allocation45], 1 }
0x5344   :  { %10311 = vsyncpa [#allocation48], 1 }
0x5345   :  { %10312 = vsyncpa [#allocation51], 1 }
0x5346   :  { %10313 = vsyncpa [#allocation54], 1 }
0x5347   :  { %10314 = vsyncpa [#allocation57], 1 }
0x5348   :  { %10315 = vsyncpa [#allocation60], 1 }
0x5349   :  { %10316 = vsyncpa [#allocation63], 1 }
0x534a   :  { %10317 = vsyncpa [#allocation66], 1 }
0x534b   :  { %10318 = vsyncpa [#allocation69], 1 }
0x534c   :  { %10319 = vsyncpa [#allocation72], 1 }
0x534d   :  { %10320 = vsyncpa [#allocation75], 1 }
0x534e   :  { %10321 = vsyncpa [#allocation78], 1 }
0x534f   :  { %10322 = vsyncpa [#allocation81], 1 }
0x5350   :  { %10323 = vsyncpa [#allocation4], 1 }
0x5351   :  { %10325 = vsyncpa [#allocation4 + $0x1], 1 }

</bundles_post_ra>
